<compile_context>
chip_gen: v7x
topology: tpu7x:2x2x1
jax: 0.10.0
libtpu: 0.0.40
codegen_flags: <defaults>
</compile_context>

<pallas_src>
import jax
import jax.numpy as jnp
import numpy as np
from jax import lax
from jax.experimental import pallas as pl
from jax.experimental.pallas import tpu as pltpu

# Make the pure-JAX reference matmuls run at full f32 so they match the kernel closely.
jax.config.update("jax_default_matmul_precision", "highest")

# ---- model dims (small, consistent with the module's forward) ----
B = 2       # batch
L = 16      # encoder output length
E = 32      # encoder_output_dim
H = 32      # decoder_hidden_dim
O = 32      # decoder_output_dim
W = 8       # nr_output_batched_words_per_example
V = 16      # nr_output_common_embeddings
T = 8       # target_seq_len (== max_target_seq_len)
BP = 8      # batch padded to a full sublane group
LANES = 128 # lane width: padded logits row / flattened (batch*len) attention axis
NEG_INF = float("-inf")


def _relu(x):
    return jnp.maximum(x, 0.0)


# ---------------------------------------------------------------------------
# Pallas kernel: whole decoder (all T-1 steps) in one invocation.
# LSTM h/c are fori_loop carries (live in vregs); the output head is deferred.
# ---------------------------------------------------------------------------
def decoder_kernel(pre_q_ref, pre_x_ref, keysT_ref, enc2d_ref, smask_ref,
                   w_h_ref, wih_ref, wc_a_ref, bg_ref,
                   wout_ref, bo_ref, projT_ref, lmask_ref,
                   out_ref, h_hist_ref):
    # ---- loop-invariant constants needed inside the recurrence (~22 vregs) ----
    keysT = keysT_ref[...]                                   # (E, BP*L)   pre-projected keys
    smask = smask_ref[...]                                   # (BP, BP*L)  block-diag + enc mask
    w_h = w_h_ref[...]                                       # (H, 4H+E)   [whh_r | wq_h]
    wih = wih_ref[...]                                       # (H, 4H)     gate cols (i,f,o,g)
    wc_a = wc_a_ref[...]                                     # (E, H)      combine, attn part
    bg = jnp.broadcast_to(bg_ref[...], (BP, 4 * H))          # hoisted bias broadcast

    def step(t, carry):
        h, c = carry

        # one MXU pass for BOTH h-consumers (LSTM hidden->gates and query hidden part)
        hq = jnp.dot(h, w_h, preferred_element_type=jnp.float32)          # (BP, 4H+E)
        gates_h = hq[:, :4 * H]                                           # lanes 0..127
        q = _relu(pre_q_ref[t] + hq[:, 4 * H:4 * H + E])                  # (BP, E)

        # attention over encoder outputs: block-diagonal flattened scores; the row-sum of
        # the (unnormalized) softmax weights comes from the appended all-ones column.
        s = jnp.dot(q, keysT, preferred_element_type=jnp.float32) + smask  # (BP, BP*L)
        m = jnp.max(s, axis=1, keepdims=True)
        p = jnp.exp(s - m)                                                 # unnormalized weights
        av = jnp.dot(p, enc2d_ref[...], preferred_element_type=jnp.float32)  # (BP, E+1)
        attn = av[:, :E] * pl.reciprocal(av[:, E:E + 1], approx=False)     # (BP, E)

        # combine (prev target enc, attention) -> rnn cell input
        x = _relu(pre_x_ref[t]
                  + jnp.dot(attn, wc_a, preferred_element_type=jnp.float32))  # (BP, H)

        # single-layer LSTM cell, gates packed as (i, f, o, g)
        gates = jnp.dot(x, wih, preferred_element_type=jnp.float32) + gates_h + bg
        sg = jax.nn.sigmoid(gates[:, :3 * H])                              # one EUP dispatch
        i_g = sg[:, 0:H]
        f_g = sg[:, H:2 * H]
        o_g = sg[:, 2 * H:3 * H]
        g_g = jnp.tanh(gates[:, 3 * H:4 * H])
        c_new = f_g * c + i_g * g_g
        h_new = o_g * jnp.tanh(c_new)

        # output head is deferred: just record the hidden state
        r0 = pl.multiple_of(t * BP, BP)
        h_hist_ref[pl.ds(r0, BP), :] = h_new
        return h_new, c_new

    h0 = jnp.zeros((BP, H), jnp.float32)   # rnn_hidden init (zeros)
    c0 = jnp.zeros((BP, H), jnp.float32)   # rnn_state  init (zeros)
    lax.fori_loop(0, T - 1, step, (h0, c0), unroll=True)

    # ---- post-loop batched output head: out linear + vocab logits + log_softmax ----
    h_all = h_hist_ref[...]                                                # ((T-1)*BP, H)
    nout = (jnp.dot(h_all, wout_ref[...], preferred_element_type=jnp.float32)
            + bo_ref[...])                                                 # ((T-1)*BP, O)
    logits = (jnp.dot(nout, projT_ref[...], preferred_element_type=jnp.float32)
              + lmask_ref[...])                                            # ((T-1)*BP, 128)
    m2 = jnp.max(logits, axis=1, keepdims=True)
    lse = m2 + jnp.log(jnp.sum(jnp.exp(logits - m2), axis=1, keepdims=True))
    out_ref[...] = logits - lse                                            # one lane-dense store


def _full_spec(a):
    n = a.ndim
    return pl.BlockSpec(a.shape, lambda i, n=n: (0,) * n)


# ---------------------------------------------------------------------------
# Wrapper: embedding gather, mask construction, weight packing / pre-projection,
# pallas_call, and un-packing of the lane-dense output to (B, T-1, V+W).
# ---------------------------------------------------------------------------
@jax.jit
def attn_rnn_decoder_forward(params, encoder_outputs, encoder_outputs_mask,
                             output_vocab_example_based_encodings,
                             output_vocab_example_based_encodings_mask,
                             groundtruth_target_idxs):
    f32 = jnp.float32
    common_emb = params["common_emb"]
    vocab_enc = output_vocab_example_based_encodings
    wq, wc = params["wq"], params["wc"]

    # apply_embeddings: idx < V -> common embedding, idx >= V -> per-example batched encoding
    idx = groundtruth_target_idxs
    common_part = common_emb[jnp.clip(idx, 0, V - 1)]                          # (B, T, O)
    batched_part = vocab_enc[jnp.arange(B)[:, None], jnp.clip(idx - V, 0, W - 1)]
    target_enc = jnp.where((idx < V)[..., None], common_part, batched_part)    # (B, T, O)
    tgt = jnp.transpose(target_enc[:, :T - 1, :], (1, 0, 2))                   # (T-1, B, O)
    tgt_p = jnp.zeros((T - 1, BP, O), f32).at[:, :B, :].set(tgt)

    # precomputed prev-target projections for all steps (biases baked in)
    pre_q = (jnp.einsum("tbo,eo->tbe", tgt_p, wq[:, :O]) + params["bq"]).astype(f32)  # (T-1,BP,E)
    pre_x = (jnp.einsum("tbo,ho->tbh", tgt_p, wc[:, :O]) + params["bc"]).astype(f32)  # (T-1,BP,H)

    # additive masks
    enc_mask_add = jnp.where(encoder_outputs_mask, 0.0, NEG_INF).astype(f32)   # (B, L)
    vocab_mask_add = jnp.where(output_vocab_example_based_encodings_mask,
                               0.0, NEG_INF).astype(f32)                       # (B, W)

    # hoisted time-invariant key projection; flatten (batch, len) into the lane axis
    enc_p = jnp.zeros((BP, L, E), f32).at[:B].set(encoder_outputs)
    keys = _relu(jnp.einsum("ble,fe->blf", enc_p, params["wk"]) + params["bk"])  # (BP, L, E)
    keysT = keys.reshape(BP * L, E).T                                            # (E, BP*L)
    # raw encoder outputs flattened + an all-ones column that yields the softmax row-sum
    enc2d_aug = jnp.concatenate(
        [enc_p.reshape(BP * L, E), jnp.ones((BP * L, 1), f32)], axis=1)          # (BP*L, E+1)

    # block-diagonal score mask: row b only attends its own L columns (pad rows stay finite)
    enc_mask_p = jnp.zeros((BP, L), f32).at[:B].set(enc_mask_add)
    own = jnp.repeat(jnp.eye(BP, dtype=bool), L, axis=1)                         # (BP, BP*L)
    smask = jnp.where(own, 0.0, NEG_INF).astype(f32) + enc_mask_p.reshape(1, BP * L)

    # packed output projection: lanes [0:V]=common vocab, [V+b*W : V+(b+1)*W]=example b's vocab
    projT = jnp.zeros((O, LANES), f32)
    projT = projT.at[:, :V].set(common_emb.T)
    projT = projT.at[:, V:V + B * W].set(vocab_enc.reshape(B * W, O).T)
    lmask = jnp.full((BP, LANES), NEG_INF, f32).at[:, :V].set(0.0)
    for b in range(B):
        lmask = lmask.at[b, V + b * W:V + (b + 1) * W].set(vocab_mask_add[b])
    lmask_tiled = jnp.tile(lmask, (T - 1, 1))                                    # ((T-1)*BP, 128)

    # LSTM weights with gate columns reordered to (i, f, o, g); h-consumers K-packed together
    def reord_rows(wmat):   # (4H, ...) rows i,f,g,o -> i,f,o,g
        return jnp.concatenate([wmat[0:H], wmat[H:2 * H], wmat[3 * H:4 * H],
                                wmat[2 * H:3 * H]], axis=0)
    wih_r = reord_rows(params["wih"]).T.astype(f32)            # (H, 4H)
    whh_r = reord_rows(params["whh"]).T.astype(f32)            # (H, 4H)
    bg_flat = (params["bih"] + params["bhh"])[0]
    bg_r = jnp.concatenate([bg_flat[0:H], bg_flat[H:2 * H], bg_flat[3 * H:4 * H],
                            bg_flat[2 * H:3 * H]])[None, :].astype(f32)          # (1, 4H)
    w_h = jnp.concatenate([whh_r, wq[:, O:].T], axis=1).astype(f32)              # (H, 4H+E)
    wc_a = wc[:, O:].T.astype(f32)                                               # (E, H)
    woutT = params["wout"].T.astype(f32)                                         # (H, O)
    bo = params["bout"].astype(f32)                                              # (1, O)

    inputs = (pre_q, pre_x, keysT, enc2d_aug, smask,
              w_h, wih_r, wc_a, bg_r,
              woutT, bo, projT, lmask_tiled)

    out = pl.pallas_call(
        decoder_kernel,
        out_shape=jax.ShapeDtypeStruct(((T - 1) * BP, LANES), f32),
        grid_spec=pltpu.PrefetchScalarGridSpec(
            num_scalar_prefetch=0,
            grid=(1,),
            in_specs=[_full_spec(a) for a in inputs],
            out_specs=pl.BlockSpec(((T - 1) * BP, LANES), lambda i: (0, 0)),
            scratch_shapes=[pltpu.VMEM(((T - 1) * BP, H), f32)],
        ),
        compiler_params=pltpu.CompilerParams(dimension_semantics=("arbitrary",)),
    )(*inputs)

    # un-pack: ((T-1)*BP, 128) -> (B, T-1, V+W)
    out3 = out.reshape(T - 1, BP, LANES)
    out_t = jnp.transpose(out3, (1, 0, 2))                                       # (BP, T-1, 128)
    common_out = out_t[:B, :, :V]
    batched_out = jnp.stack(
        [out_t[b, :, V + b * W:V + (b + 1) * W] for b in range(B)], axis=0)
    return jnp.concatenate([common_out, batched_out], axis=-1)                   # (B, T-1, V+W)


# ---------------------------------------------------------------------------
# Pure-JAX reference (same math as the PyTorch forward) for a correctness check
# ---------------------------------------------------------------------------
def reference_forward(params, encoder_outputs, encoder_outputs_mask,
                      vocab_enc, vocab_mask, gt_idxs):
    common_emb = params["common_emb"]
    idx = gt_idxs
    common_part = common_emb[jnp.clip(idx, 0, V - 1)]
    batched_part = vocab_enc[jnp.arange(B)[:, None], jnp.clip(idx - V, 0, W - 1)]
    target_encodings = jnp.where((idx < V)[..., None], common_part, batched_part)
    enc_mask_add = jnp.where(encoder_outputs_mask, 0.0, NEG_INF)
    vocab_mask_add = jnp.where(vocab_mask, 0.0, NEG_INF)

    h = jnp.zeros((B, H), jnp.float32)
    c = jnp.zeros((B, H), jnp.float32)
    outs = []
    for t in range(T - 1):
        prev_enc = target_encodings[:, t, :]
        query_in = jnp.concatenate([prev_enc, h], axis=1)
        q_proj = _relu(query_in @ params["wq"].T + params["bq"])
        keys = _relu(encoder_outputs @ params["wk"].T + params["bk"])
        scores = jnp.einsum("ble,be->bl", keys, q_proj) + enc_mask_add
        p = jax.nn.softmax(scores, axis=1)
        attn = jnp.einsum("bl,ble->be", p, encoder_outputs)
        combine_in = jnp.concatenate([prev_enc, attn], axis=1)
        x = _relu(combine_in @ params["wc"].T + params["bc"])
        gates = (x @ params["wih"].T + params["bih"]
                 + h @ params["whh"].T + params["bhh"])
        i_g = jax.nn.sigmoid(gates[:, :H])
        f_g = jax.nn.sigmoid(gates[:, H:2 * H])
        g_g = jnp.tanh(gates[:, 2 * H:3 * H])
        o_g = jax.nn.sigmoid(gates[:, 3 * H:4 * H])
        c = f_g * c + i_g * g_g
        h = o_g * jnp.tanh(c)
        next_out = h @ params["wout"].T + params["bout"]
        proj_batched = jnp.einsum("bwo,bo->bw", vocab_enc, next_out) + vocab_mask_add
        proj_common = next_out @ common_emb.T
        logits = jnp.concatenate([proj_common, proj_batched], axis=1)
        outs.append(jax.nn.log_softmax(logits, axis=1))
    return jnp.stack(outs, axis=1)


if __name__ == "__main__":
    key = jax.random.PRNGKey(0)
    ks = jax.random.split(key, 20)
    params = {
        "common_emb": 0.1 * jax.random.normal(ks[0], (V, O), jnp.float32),
        # Attention: query proj Linear(O+H -> E), key proj Linear(E -> E)
        "wq": 0.1 * jax.random.normal(ks[1], (E, O + H), jnp.float32),
        "bq": 0.01 * jax.random.normal(ks[2], (1, E), jnp.float32),
        "wk": 0.1 * jax.random.normal(ks[3], (E, E), jnp.float32),
        "bk": 0.01 * jax.random.normal(ks[4], (1, E), jnp.float32),
        # attn_and_input_combine_linear_layer: Linear(O+E -> H)
        "wc": 0.1 * jax.random.normal(ks[5], (H, O + E), jnp.float32),
        "bc": 0.01 * jax.random.normal(ks[6], (1, H), jnp.float32),
        # LSTM(H -> H), 1 layer (PyTorch param shapes, gate order i,f,g,o)
        "wih": 0.1 * jax.random.normal(ks[7], (4 * H, H), jnp.float32),
        "bih": 0.01 * jax.random.normal(ks[8], (1, 4 * H), jnp.float32),
        "whh": 0.1 * jax.random.normal(ks[9], (4 * H, H), jnp.float32),
        "bhh": 0.01 * jax.random.normal(ks[10], (1, 4 * H), jnp.float32),
        # out_linear_layer: Linear(H -> O)
        "wout": 0.1 * jax.random.normal(ks[11], (O, H), jnp.float32),
        "bout": 0.01 * jax.random.normal(ks[12], (1, O), jnp.float32),
    }

    encoder_outputs = jax.random.normal(ks[13], (B, L, E), jnp.float32)
    enc_mask = jnp.ones((B, L), dtype=bool).at[1, L - 3:].set(False)
    vocab_enc = jax.random.normal(ks[14], (B, W, O), jnp.float32)
    vocab_mask = jnp.ones((B, W), dtype=bool).at[0, W - 2:].set(False)
    gt_idxs = jax.random.randint(ks[15], (B, T), 0, V + W)

    out = attn_rnn_decoder_forward(params, encoder_outputs, enc_mask,
                                   vocab_enc, vocab_mask, gt_idxs)
    out = jax.block_until_ready(out)
    assert out.shape == (B, T - 1, V + W)

    ref = reference_forward(params, encoder_outputs, enc_mask,
                            vocab_enc, vocab_mask, gt_idxs)
    np.testing.assert_allclose(np.asarray(out), np.asarray(ref), rtol=2e-3, atol=2e-3)

    print("KERNEL_OK")
</pallas_src>

<mosaic_0001>
module attributes {stable_mosaic.version = 11 : i64} {
  func.func @decoder_kernel(%arg0: i32, %arg1: memref<7x8x32xf32, #tpu.memory_space<vmem>>, %arg2: memref<7x8x32xf32, #tpu.memory_space<vmem>>, %arg3: memref<32x128xf32, #tpu.memory_space<vmem>>, %arg4: memref<128x33xf32, #tpu.memory_space<vmem>>, %arg5: memref<8x128xf32, #tpu.memory_space<vmem>>, %arg6: memref<32x160xf32, #tpu.memory_space<vmem>>, %arg7: memref<32x128xf32, #tpu.memory_space<vmem>>, %arg8: memref<32x32xf32, #tpu.memory_space<vmem>>, %arg9: memref<1x128xf32, #tpu.memory_space<vmem>>, %arg10: memref<32x32xf32, #tpu.memory_space<vmem>>, %arg11: memref<1x32xf32, #tpu.memory_space<vmem>>, %arg12: memref<32x128xf32, #tpu.memory_space<vmem>>, %arg13: memref<56x128xf32, #tpu.memory_space<vmem>>, %arg14: memref<56x128xf32, #tpu.memory_space<vmem>>, %arg15: memref<56x32xf32, #tpu.memory_space<vmem>>) attributes {dimension_semantics = [#tpu.dimension_semantics<arbitrary>], iteration_bounds = array<i64: 1>, scalar_prefetch = 0 : i64, scratch_operands = 1 : i64, tpu.core_type = #tpu.core_type<tc>, window_params = [{pipeline_mode = #tpu.pipeline_mode<synchronous>, transform_indices = @transform_0, window_bounds = array<i64: 7, 8, 32>}, {pipeline_mode = #tpu.pipeline_mode<synchronous>, transform_indices = @transform_1, window_bounds = array<i64: 7, 8, 32>}, {pipeline_mode = #tpu.pipeline_mode<synchronous>, transform_indices = @transform_2, window_bounds = array<i64: 32, 128>}, {pipeline_mode = #tpu.pipeline_mode<synchronous>, transform_indices = @transform_3, window_bounds = array<i64: 128, 33>}, {pipeline_mode = #tpu.pipeline_mode<synchronous>, transform_indices = @transform_4, window_bounds = array<i64: 8, 128>}, {pipeline_mode = #tpu.pipeline_mode<synchronous>, transform_indices = @transform_5, window_bounds = array<i64: 32, 160>}, {pipeline_mode = #tpu.pipeline_mode<synchronous>, transform_indices = @transform_6, window_bounds = array<i64: 32, 128>}, {pipeline_mode = #tpu.pipeline_mode<synchronous>, transform_indices = @transform_7, window_bounds = array<i64: 32, 32>}, {pipeline_mode = #tpu.pipeline_mode<synchronous>, transform_indices = @transform_8, window_bounds = array<i64: 1, 128>}, {pipeline_mode = #tpu.pipeline_mode<synchronous>, transform_indices = @transform_9, window_bounds = array<i64: 32, 32>}, {pipeline_mode = #tpu.pipeline_mode<synchronous>, transform_indices = @transform_10, window_bounds = array<i64: 1, 32>}, {pipeline_mode = #tpu.pipeline_mode<synchronous>, transform_indices = @transform_11, window_bounds = array<i64: 32, 128>}, {pipeline_mode = #tpu.pipeline_mode<synchronous>, transform_indices = @transform_12, window_bounds = array<i64: 56, 128>}, {pipeline_mode = #tpu.pipeline_mode<synchronous>, transform_indices = @transform_13, window_bounds = array<i64: 56, 128>}]} {
    %c0 = arith.constant 0 : index
    %c0_0 = arith.constant 0 : index
    %0 = vector.load %arg3[%c0, %c0_0] : memref<32x128xf32, #tpu.memory_space<vmem>>, vector<32x128xf32>
    %c0_1 = arith.constant 0 : index
    %c0_2 = arith.constant 0 : index
    %1 = vector.load %arg5[%c0_1, %c0_2] : memref<8x128xf32, #tpu.memory_space<vmem>>, vector<8x128xf32>
    %c0_3 = arith.constant 0 : index
    %c0_4 = arith.constant 0 : index
    %2 = vector.load %arg6[%c0_3, %c0_4] : memref<32x160xf32, #tpu.memory_space<vmem>>, vector<32x160xf32>
    %c0_5 = arith.constant 0 : index
    %c0_6 = arith.constant 0 : index
    %3 = vector.load %arg7[%c0_5, %c0_6] : memref<32x128xf32, #tpu.memory_space<vmem>>, vector<32x128xf32>
    %c0_7 = arith.constant 0 : index
    %c0_8 = arith.constant 0 : index
    %4 = vector.load %arg8[%c0_7, %c0_8] : memref<32x32xf32, #tpu.memory_space<vmem>>, vector<32x32xf32>
    %c0_9 = arith.constant 0 : index
    %c0_10 = arith.constant 0 : index
    %5 = vector.load %arg9[%c0_9, %c0_10] : memref<1x128xf32, #tpu.memory_space<vmem>>, vector<1x128xf32>
    %6 = vector.shape_cast %5 : vector<1x128xf32> to vector<1x128xf32>
    %7 = vector.broadcast %6 : vector<1x128xf32> to vector<8x128xf32>
    %cst = arith.constant 0.000000e+00 : f32
    %8 = vector.broadcast %cst : f32 to vector<8x32xf32>
    %cst_11 = arith.constant 0.000000e+00 : f32
    %9 = vector.broadcast %cst_11 : f32 to vector<8x32xf32>
    %c0_i32 = arith.constant 0 : i32
    %cst_12 = arith.constant dense<0.000000e+00> : vector<8x160xf32>
    %10 = tpu.matmul %8, %2, %cst_12 {dimension_numbers = #tpu.dot_dimension_numbers<[1], [0], [0], [1], [0, 0, 1, 1], [], []>, precision = #tpu.contract_precision<fp32>} : vector<8x32xf32>, vector<32x160xf32>, vector<8x160xf32> -> vector<8x160xf32>
    %11 = vector.extract_strided_slice %10 {offsets = [0, 0], sizes = [8, 128], strides = [1, 1]} : vector<8x160xf32> to vector<8x128xf32>
    %12 = arith.index_cast %c0_i32 : i32 to index
    %c0_13 = arith.constant 0 : index
    %c0_14 = arith.constant 0 : index
    %13 = vector.load %arg1[%12, %c0_13, %c0_14] : memref<7x8x32xf32, #tpu.memory_space<vmem>>, vector<1x8x32xf32>
    %14 = vector.shape_cast %13 : vector<1x8x32xf32> to vector<8x32xf32>
    %15 = vector.extract_strided_slice %10 {offsets = [0, 128], sizes = [8, 32], strides = [1, 1]} : vector<8x160xf32> to vector<8x32xf32>
    %16 = arith.addf %14, %15 : vector<8x32xf32>
    %cst_15 = arith.constant 0.000000e+00 : f32
    %17 = vector.broadcast %cst_15 : f32 to vector<8x32xf32>
    %18 = arith.maximumf %16, %17 : vector<8x32xf32>
    %cst_16 = arith.constant dense<0.000000e+00> : vector<8x128xf32>
    %19 = tpu.matmul %18, %0, %cst_16 {dimension_numbers = #tpu.dot_dimension_numbers<[1], [0], [0], [1], [0, 0, 1, 1], [], []>, precision = #tpu.contract_precision<fp32>} : vector<8x32xf32>, vector<32x128xf32>, vector<8x128xf32> -> vector<8x128xf32>
    %20 = arith.addf %19, %1 : vector<8x128xf32>
    %cst_17 = arith.constant dense<0xFF800000> : vector<8xf32>
    %21 = vector.multi_reduction <maximumf>, %20, %cst_17 [1] : vector<8x128xf32> to vector<8xf32>
    %22 = vector.shape_cast %21 : vector<8xf32> to vector<8x1xf32>
    %23 = vector.broadcast %22 : vector<8x1xf32> to vector<8x128xf32>
    %24 = arith.subf %20, %23 : vector<8x128xf32>
    %25 = math.exp %24 : vector<8x128xf32>
    %c0_18 = arith.constant 0 : index
    %c0_19 = arith.constant 0 : index
    %26 = vector.load %arg4[%c0_18, %c0_19] : memref<128x33xf32, #tpu.memory_space<vmem>>, vector<128x33xf32>
    %cst_20 = arith.constant dense<0.000000e+00> : vector<8x33xf32>
    %27 = tpu.matmul %25, %26, %cst_20 {dimension_numbers = #tpu.dot_dimension_numbers<[1], [0], [0], [1], [0, 0, 1, 1], [], []>, precision = #tpu.contract_precision<fp32>} : vector<8x128xf32>, vector<128x33xf32>, vector<8x33xf32> -> vector<8x33xf32>
    %28 = vector.extract_strided_slice %27 {offsets = [0, 0], sizes = [8, 32], strides = [1, 1]} : vector<8x33xf32> to vector<8x32xf32>
    %29 = vector.extract_strided_slice %27 {offsets = [0, 32], sizes = [8, 1], strides = [1, 1]} : vector<8x33xf32> to vector<8x1xf32>
    %30 = tpu.reciprocal %29 : vector<8x1xf32> -> vector<8x1xf32>
    %31 = vector.broadcast %30 : vector<8x1xf32> to vector<8x32xf32>
    %32 = arith.mulf %28, %31 : vector<8x32xf32>
    %33 = arith.index_cast %c0_i32 : i32 to index
    %c0_21 = arith.constant 0 : index
    %c0_22 = arith.constant 0 : index
    %34 = vector.load %arg2[%33, %c0_21, %c0_22] : memref<7x8x32xf32, #tpu.memory_space<vmem>>, vector<1x8x32xf32>
    %35 = vector.shape_cast %34 : vector<1x8x32xf32> to vector<8x32xf32>
    %cst_23 = arith.constant dense<0.000000e+00> : vector<8x32xf32>
    %36 = tpu.matmul %32, %4, %cst_23 {dimension_numbers = #tpu.dot_dimension_numbers<[1], [0], [0], [1], [0, 0, 1, 1], [], []>, precision = #tpu.contract_precision<fp32>} : vector<8x32xf32>, vector<32x32xf32>, vector<8x32xf32> -> vector<8x32xf32>
    %37 = arith.addf %35, %36 : vector<8x32xf32>
    %cst_24 = arith.constant 0.000000e+00 : f32
    %38 = vector.broadcast %cst_24 : f32 to vector<8x32xf32>
    %39 = arith.maximumf %37, %38 : vector<8x32xf32>
    %cst_25 = arith.constant dense<0.000000e+00> : vector<8x128xf32>
    %40 = tpu.matmul %39, %3, %cst_25 {dimension_numbers = #tpu.dot_dimension_numbers<[1], [0], [0], [1], [0, 0, 1, 1], [], []>, precision = #tpu.contract_precision<fp32>} : vector<8x32xf32>, vector<32x128xf32>, vector<8x128xf32> -> vector<8x128xf32>
    %41 = arith.addf %40, %11 : vector<8x128xf32>
    %42 = arith.addf %41, %7 : vector<8x128xf32>
    %43 = vector.extract_strided_slice %42 {offsets = [0, 0], sizes = [8, 96], strides = [1, 1]} : vector<8x128xf32> to vector<8x96xf32>
    %44 = arith.negf %43 : vector<8x96xf32>
    %45 = math.exp %44 : vector<8x96xf32>
    %cst_26 = arith.constant 1.000000e+00 : f32
    %46 = vector.broadcast %cst_26 : f32 to vector<8x96xf32>
    %47 = arith.addf %46, %45 : vector<8x96xf32>
    %48 = arith.divf %46, %47 : vector<8x96xf32>
    %49 = vector.extract_strided_slice %48 {offsets = [0, 0], sizes = [8, 32], strides = [1, 1]} : vector<8x96xf32> to vector<8x32xf32>
    %50 = vector.extract_strided_slice %48 {offsets = [0, 32], sizes = [8, 32], strides = [1, 1]} : vector<8x96xf32> to vector<8x32xf32>
    %51 = vector.extract_strided_slice %48 {offsets = [0, 64], sizes = [8, 32], strides = [1, 1]} : vector<8x96xf32> to vector<8x32xf32>
    %52 = vector.extract_strided_slice %42 {offsets = [0, 96], sizes = [8, 32], strides = [1, 1]} : vector<8x128xf32> to vector<8x32xf32>
    %53 = math.tanh %52 : vector<8x32xf32>
    %54 = arith.mulf %50, %9 : vector<8x32xf32>
    %55 = arith.mulf %49, %53 : vector<8x32xf32>
    %56 = arith.addf %54, %55 : vector<8x32xf32>
    %57 = math.tanh %56 : vector<8x32xf32>
    %58 = arith.mulf %51, %57 : vector<8x32xf32>
    %c8_i32 = arith.constant 8 : i32
    %59 = arith.muli %c0_i32, %c8_i32 : i32
    %60 = tpu.assume_multiple %59, 8 : i32
    %61 = arith.index_cast %60 : i32 to index
    %c0_27 = arith.constant 0 : index
    %62 = vector.load %arg15[%61, %c0_27] : memref<56x32xf32, #tpu.memory_space<vmem>>, vector<8x32xf32>
    tpu.vector_store %arg15[%61, %c0_27], %58 {strides = array<i32>} : memref<56x32xf32, #tpu.memory_space<vmem>>, vector<8x32xf32>,
    %c1_i32 = arith.constant 1 : i32
    %cst_28 = arith.constant dense<0.000000e+00> : vector<8x160xf32>
    %63 = tpu.matmul %58, %2, %cst_28 {dimension_numbers = #tpu.dot_dimension_numbers<[1], [0], [0], [1], [0, 0, 1, 1], [], []>, precision = #tpu.contract_precision<fp32>} : vector<8x32xf32>, vector<32x160xf32>, vector<8x160xf32> -> vector<8x160xf32>
    %64 = vector.extract_strided_slice %63 {offsets = [0, 0], sizes = [8, 128], strides = [1, 1]} : vector<8x160xf32> to vector<8x128xf32>
    %65 = arith.index_cast %c1_i32 : i32 to index
    %c0_29 = arith.constant 0 : index
    %c0_30 = arith.constant 0 : index
    %66 = vector.load %arg1[%65, %c0_29, %c0_30] : memref<7x8x32xf32, #tpu.memory_space<vmem>>, vector<1x8x32xf32>
    %67 = vector.shape_cast %66 : vector<1x8x32xf32> to vector<8x32xf32>
    %68 = vector.extract_strided_slice %63 {offsets = [0, 128], sizes = [8, 32], strides = [1, 1]} : vector<8x160xf32> to vector<8x32xf32>
    %69 = arith.addf %67, %68 : vector<8x32xf32>
    %cst_31 = arith.constant 0.000000e+00 : f32
    %70 = vector.broadcast %cst_31 : f32 to vector<8x32xf32>
    %71 = arith.maximumf %69, %70 : vector<8x32xf32>
    %cst_32 = arith.constant dense<0.000000e+00> : vector<8x128xf32>
    %72 = tpu.matmul %71, %0, %cst_32 {dimension_numbers = #tpu.dot_dimension_numbers<[1], [0], [0], [1], [0, 0, 1, 1], [], []>, precision = #tpu.contract_precision<fp32>} : vector<8x32xf32>, vector<32x128xf32>, vector<8x128xf32> -> vector<8x128xf32>
    %73 = arith.addf %72, %1 : vector<8x128xf32>
    %cst_33 = arith.constant dense<0xFF800000> : vector<8xf32>
    %74 = vector.multi_reduction <maximumf>, %73, %cst_33 [1] : vector<8x128xf32> to vector<8xf32>
    %75 = vector.shape_cast %74 : vector<8xf32> to vector<8x1xf32>
    %76 = vector.broadcast %75 : vector<8x1xf32> to vector<8x128xf32>
    %77 = arith.subf %73, %76 : vector<8x128xf32>
    %78 = math.exp %77 : vector<8x128xf32>
    %c0_34 = arith.constant 0 : index
    %c0_35 = arith.constant 0 : index
    %79 = vector.load %arg4[%c0_34, %c0_35] : memref<128x33xf32, #tpu.memory_space<vmem>>, vector<128x33xf32>
    %cst_36 = arith.constant dense<0.000000e+00> : vector<8x33xf32>
    %80 = tpu.matmul %78, %79, %cst_36 {dimension_numbers = #tpu.dot_dimension_numbers<[1], [0], [0], [1], [0, 0, 1, 1], [], []>, precision = #tpu.contract_precision<fp32>} : vector<8x128xf32>, vector<128x33xf32>, vector<8x33xf32> -> vector<8x33xf32>
    %81 = vector.extract_strided_slice %80 {offsets = [0, 0], sizes = [8, 32], strides = [1, 1]} : vector<8x33xf32> to vector<8x32xf32>
    %82 = vector.extract_strided_slice %80 {offsets = [0, 32], sizes = [8, 1], strides = [1, 1]} : vector<8x33xf32> to vector<8x1xf32>
    %83 = tpu.reciprocal %82 : vector<8x1xf32> -> vector<8x1xf32>
    %84 = vector.broadcast %83 : vector<8x1xf32> to vector<8x32xf32>
    %85 = arith.mulf %81, %84 : vector<8x32xf32>
    %86 = arith.index_cast %c1_i32 : i32 to index
    %c0_37 = arith.constant 0 : index
    %c0_38 = arith.constant 0 : index
    %87 = vector.load %arg2[%86, %c0_37, %c0_38] : memref<7x8x32xf32, #tpu.memory_space<vmem>>, vector<1x8x32xf32>
    %88 = vector.shape_cast %87 : vector<1x8x32xf32> to vector<8x32xf32>
    %cst_39 = arith.constant dense<0.000000e+00> : vector<8x32xf32>
    %89 = tpu.matmul %85, %4, %cst_39 {dimension_numbers = #tpu.dot_dimension_numbers<[1], [0], [0], [1], [0, 0, 1, 1], [], []>, precision = #tpu.contract_precision<fp32>} : vector<8x32xf32>, vector<32x32xf32>, vector<8x32xf32> -> vector<8x32xf32>
    %90 = arith.addf %88, %89 : vector<8x32xf32>
    %cst_40 = arith.constant 0.000000e+00 : f32
    %91 = vector.broadcast %cst_40 : f32 to vector<8x32xf32>
    %92 = arith.maximumf %90, %91 : vector<8x32xf32>
    %cst_41 = arith.constant dense<0.000000e+00> : vector<8x128xf32>
    %93 = tpu.matmul %92, %3, %cst_41 {dimension_numbers = #tpu.dot_dimension_numbers<[1], [0], [0], [1], [0, 0, 1, 1], [], []>, precision = #tpu.contract_precision<fp32>} : vector<8x32xf32>, vector<32x128xf32>, vector<8x128xf32> -> vector<8x128xf32>
    %94 = arith.addf %93, %64 : vector<8x128xf32>
    %95 = arith.addf %94, %7 : vector<8x128xf32>
    %96 = vector.extract_strided_slice %95 {offsets = [0, 0], sizes = [8, 96], strides = [1, 1]} : vector<8x128xf32> to vector<8x96xf32>
    %97 = arith.negf %96 : vector<8x96xf32>
    %98 = math.exp %97 : vector<8x96xf32>
    %cst_42 = arith.constant 1.000000e+00 : f32
    %99 = vector.broadcast %cst_42 : f32 to vector<8x96xf32>
    %100 = arith.addf %99, %98 : vector<8x96xf32>
    %101 = arith.divf %99, %100 : vector<8x96xf32>
    %102 = vector.extract_strided_slice %101 {offsets = [0, 0], sizes = [8, 32], strides = [1, 1]} : vector<8x96xf32> to vector<8x32xf32>
    %103 = vector.extract_strided_slice %101 {offsets = [0, 32], sizes = [8, 32], strides = [1, 1]} : vector<8x96xf32> to vector<8x32xf32>
    %104 = vector.extract_strided_slice %101 {offsets = [0, 64], sizes = [8, 32], strides = [1, 1]} : vector<8x96xf32> to vector<8x32xf32>
    %105 = vector.extract_strided_slice %95 {offsets = [0, 96], sizes = [8, 32], strides = [1, 1]} : vector<8x128xf32> to vector<8x32xf32>
    %106 = math.tanh %105 : vector<8x32xf32>
    %107 = arith.mulf %103, %56 : vector<8x32xf32>
    %108 = arith.mulf %102, %106 : vector<8x32xf32>
    %109 = arith.addf %107, %108 : vector<8x32xf32>
    %110 = math.tanh %109 : vector<8x32xf32>
    %111 = arith.mulf %104, %110 : vector<8x32xf32>
    %c8_i32_43 = arith.constant 8 : i32
    %112 = arith.muli %c1_i32, %c8_i32_43 : i32
    %113 = tpu.assume_multiple %112, 8 : i32
    %114 = arith.index_cast %113 : i32 to index
    %c0_44 = arith.constant 0 : index
    %115 = vector.load %arg15[%114, %c0_44] : memref<56x32xf32, #tpu.memory_space<vmem>>, vector<8x32xf32>
    tpu.vector_store %arg15[%114, %c0_44], %111 {strides = array<i32>} : memref<56x32xf32, #tpu.memory_space<vmem>>, vector<8x32xf32>,
    %c2_i32 = arith.constant 2 : i32
    %cst_45 = arith.constant dense<0.000000e+00> : vector<8x160xf32>
    %116 = tpu.matmul %111, %2, %cst_45 {dimension_numbers = #tpu.dot_dimension_numbers<[1], [0], [0], [1], [0, 0, 1, 1], [], []>, precision = #tpu.contract_precision<fp32>} : vector<8x32xf32>, vector<32x160xf32>, vector<8x160xf32> -> vector<8x160xf32>
    %117 = vector.extract_strided_slice %116 {offsets = [0, 0], sizes = [8, 128], strides = [1, 1]} : vector<8x160xf32> to vector<8x128xf32>
    %118 = arith.index_cast %c2_i32 : i32 to index
    %c0_46 = arith.constant 0 : index
    %c0_47 = arith.constant 0 : index
    %119 = vector.load %arg1[%118, %c0_46, %c0_47] : memref<7x8x32xf32, #tpu.memory_space<vmem>>, vector<1x8x32xf32>
    %120 = vector.shape_cast %119 : vector<1x8x32xf32> to vector<8x32xf32>
    %121 = vector.extract_strided_slice %116 {offsets = [0, 128], sizes = [8, 32], strides = [1, 1]} : vector<8x160xf32> to vector<8x32xf32>
    %122 = arith.addf %120, %121 : vector<8x32xf32>
    %cst_48 = arith.constant 0.000000e+00 : f32
    %123 = vector.broadcast %cst_48 : f32 to vector<8x32xf32>
    %124 = arith.maximumf %122, %123 : vector<8x32xf32>
    %cst_49 = arith.constant dense<0.000000e+00> : vector<8x128xf32>
    %125 = tpu.matmul %124, %0, %cst_49 {dimension_numbers = #tpu.dot_dimension_numbers<[1], [0], [0], [1], [0, 0, 1, 1], [], []>, precision = #tpu.contract_precision<fp32>} : vector<8x32xf32>, vector<32x128xf32>, vector<8x128xf32> -> vector<8x128xf32>
    %126 = arith.addf %125, %1 : vector<8x128xf32>
    %cst_50 = arith.constant dense<0xFF800000> : vector<8xf32>
    %127 = vector.multi_reduction <maximumf>, %126, %cst_50 [1] : vector<8x128xf32> to vector<8xf32>
    %128 = vector.shape_cast %127 : vector<8xf32> to vector<8x1xf32>
    %129 = vector.broadcast %128 : vector<8x1xf32> to vector<8x128xf32>
    %130 = arith.subf %126, %129 : vector<8x128xf32>
    %131 = math.exp %130 : vector<8x128xf32>
    %c0_51 = arith.constant 0 : index
    %c0_52 = arith.constant 0 : index
    %132 = vector.load %arg4[%c0_51, %c0_52] : memref<128x33xf32, #tpu.memory_space<vmem>>, vector<128x33xf32>
    %cst_53 = arith.constant dense<0.000000e+00> : vector<8x33xf32>
    %133 = tpu.matmul %131, %132, %cst_53 {dimension_numbers = #tpu.dot_dimension_numbers<[1], [0], [0], [1], [0, 0, 1, 1], [], []>, precision = #tpu.contract_precision<fp32>} : vector<8x128xf32>, vector<128x33xf32>, vector<8x33xf32> -> vector<8x33xf32>
    %134 = vector.extract_strided_slice %133 {offsets = [0, 0], sizes = [8, 32], strides = [1, 1]} : vector<8x33xf32> to vector<8x32xf32>
    %135 = vector.extract_strided_slice %133 {offsets = [0, 32], sizes = [8, 1], strides = [1, 1]} : vector<8x33xf32> to vector<8x1xf32>
    %136 = tpu.reciprocal %135 : vector<8x1xf32> -> vector<8x1xf32>
    %137 = vector.broadcast %136 : vector<8x1xf32> to vector<8x32xf32>
    %138 = arith.mulf %134, %137 : vector<8x32xf32>
    %139 = arith.index_cast %c2_i32 : i32 to index
    %c0_54 = arith.constant 0 : index
    %c0_55 = arith.constant 0 : index
    %140 = vector.load %arg2[%139, %c0_54, %c0_55] : memref<7x8x32xf32, #tpu.memory_space<vmem>>, vector<1x8x32xf32>
    %141 = vector.shape_cast %140 : vector<1x8x32xf32> to vector<8x32xf32>
    %cst_56 = arith.constant dense<0.000000e+00> : vector<8x32xf32>
    %142 = tpu.matmul %138, %4, %cst_56 {dimension_numbers = #tpu.dot_dimension_numbers<[1], [0], [0], [1], [0, 0, 1, 1], [], []>, precision = #tpu.contract_precision<fp32>} : vector<8x32xf32>, vector<32x32xf32>, vector<8x32xf32> -> vector<8x32xf32>
    %143 = arith.addf %141, %142 : vector<8x32xf32>
    %cst_57 = arith.constant 0.000000e+00 : f32
    %144 = vector.broadcast %cst_57 : f32 to vector<8x32xf32>
    %145 = arith.maximumf %143, %144 : vector<8x32xf32>
    %cst_58 = arith.constant dense<0.000000e+00> : vector<8x128xf32>
    %146 = tpu.matmul %145, %3, %cst_58 {dimension_numbers = #tpu.dot_dimension_numbers<[1], [0], [0], [1], [0, 0, 1, 1], [], []>, precision = #tpu.contract_precision<fp32>} : vector<8x32xf32>, vector<32x128xf32>, vector<8x128xf32> -> vector<8x128xf32>
    %147 = arith.addf %146, %117 : vector<8x128xf32>
    %148 = arith.addf %147, %7 : vector<8x128xf32>
    %149 = vector.extract_strided_slice %148 {offsets = [0, 0], sizes = [8, 96], strides = [1, 1]} : vector<8x128xf32> to vector<8x96xf32>
    %150 = arith.negf %149 : vector<8x96xf32>
    %151 = math.exp %150 : vector<8x96xf32>
    %cst_59 = arith.constant 1.000000e+00 : f32
    %152 = vector.broadcast %cst_59 : f32 to vector<8x96xf32>
    %153 = arith.addf %152, %151 : vector<8x96xf32>
    %154 = arith.divf %152, %153 : vector<8x96xf32>
    %155 = vector.extract_strided_slice %154 {offsets = [0, 0], sizes = [8, 32], strides = [1, 1]} : vector<8x96xf32> to vector<8x32xf32>
    %156 = vector.extract_strided_slice %154 {offsets = [0, 32], sizes = [8, 32], strides = [1, 1]} : vector<8x96xf32> to vector<8x32xf32>
    %157 = vector.extract_strided_slice %154 {offsets = [0, 64], sizes = [8, 32], strides = [1, 1]} : vector<8x96xf32> to vector<8x32xf32>
    %158 = vector.extract_strided_slice %148 {offsets = [0, 96], sizes = [8, 32], strides = [1, 1]} : vector<8x128xf32> to vector<8x32xf32>
    %159 = math.tanh %158 : vector<8x32xf32>
    %160 = arith.mulf %156, %109 : vector<8x32xf32>
    %161 = arith.mulf %155, %159 : vector<8x32xf32>
    %162 = arith.addf %160, %161 : vector<8x32xf32>
    %163 = math.tanh %162 : vector<8x32xf32>
    %164 = arith.mulf %157, %163 : vector<8x32xf32>
    %c8_i32_60 = arith.constant 8 : i32
    %165 = arith.muli %c2_i32, %c8_i32_60 : i32
    %166 = tpu.assume_multiple %165, 8 : i32
    %167 = arith.index_cast %166 : i32 to index
    %c0_61 = arith.constant 0 : index
    %168 = vector.load %arg15[%167, %c0_61] : memref<56x32xf32, #tpu.memory_space<vmem>>, vector<8x32xf32>
    tpu.vector_store %arg15[%167, %c0_61], %164 {strides = array<i32>} : memref<56x32xf32, #tpu.memory_space<vmem>>, vector<8x32xf32>,
    %c3_i32 = arith.constant 3 : i32
    %cst_62 = arith.constant dense<0.000000e+00> : vector<8x160xf32>
    %169 = tpu.matmul %164, %2, %cst_62 {dimension_numbers = #tpu.dot_dimension_numbers<[1], [0], [0], [1], [0, 0, 1, 1], [], []>, precision = #tpu.contract_precision<fp32>} : vector<8x32xf32>, vector<32x160xf32>, vector<8x160xf32> -> vector<8x160xf32>
    %170 = vector.extract_strided_slice %169 {offsets = [0, 0], sizes = [8, 128], strides = [1, 1]} : vector<8x160xf32> to vector<8x128xf32>
    %171 = arith.index_cast %c3_i32 : i32 to index
    %c0_63 = arith.constant 0 : index
    %c0_64 = arith.constant 0 : index
    %172 = vector.load %arg1[%171, %c0_63, %c0_64] : memref<7x8x32xf32, #tpu.memory_space<vmem>>, vector<1x8x32xf32>
    %173 = vector.shape_cast %172 : vector<1x8x32xf32> to vector<8x32xf32>
    %174 = vector.extract_strided_slice %169 {offsets = [0, 128], sizes = [8, 32], strides = [1, 1]} : vector<8x160xf32> to vector<8x32xf32>
    %175 = arith.addf %173, %174 : vector<8x32xf32>
    %cst_65 = arith.constant 0.000000e+00 : f32
    %176 = vector.broadcast %cst_65 : f32 to vector<8x32xf32>
    %177 = arith.maximumf %175, %176 : vector<8x32xf32>
    %cst_66 = arith.constant dense<0.000000e+00> : vector<8x128xf32>
    %178 = tpu.matmul %177, %0, %cst_66 {dimension_numbers = #tpu.dot_dimension_numbers<[1], [0], [0], [1], [0, 0, 1, 1], [], []>, precision = #tpu.contract_precision<fp32>} : vector<8x32xf32>, vector<32x128xf32>, vector<8x128xf32> -> vector<8x128xf32>
    %179 = arith.addf %178, %1 : vector<8x128xf32>
    %cst_67 = arith.constant dense<0xFF800000> : vector<8xf32>
    %180 = vector.multi_reduction <maximumf>, %179, %cst_67 [1] : vector<8x128xf32> to vector<8xf32>
    %181 = vector.shape_cast %180 : vector<8xf32> to vector<8x1xf32>
    %182 = vector.broadcast %181 : vector<8x1xf32> to vector<8x128xf32>
    %183 = arith.subf %179, %182 : vector<8x128xf32>
    %184 = math.exp %183 : vector<8x128xf32>
    %c0_68 = arith.constant 0 : index
    %c0_69 = arith.constant 0 : index
    %185 = vector.load %arg4[%c0_68, %c0_69] : memref<128x33xf32, #tpu.memory_space<vmem>>, vector<128x33xf32>
    %cst_70 = arith.constant dense<0.000000e+00> : vector<8x33xf32>
    %186 = tpu.matmul %184, %185, %cst_70 {dimension_numbers = #tpu.dot_dimension_numbers<[1], [0], [0], [1], [0, 0, 1, 1], [], []>, precision = #tpu.contract_precision<fp32>} : vector<8x128xf32>, vector<128x33xf32>, vector<8x33xf32> -> vector<8x33xf32>
    %187 = vector.extract_strided_slice %186 {offsets = [0, 0], sizes = [8, 32], strides = [1, 1]} : vector<8x33xf32> to vector<8x32xf32>
    %188 = vector.extract_strided_slice %186 {offsets = [0, 32], sizes = [8, 1], strides = [1, 1]} : vector<8x33xf32> to vector<8x1xf32>
    %189 = tpu.reciprocal %188 : vector<8x1xf32> -> vector<8x1xf32>
    %190 = vector.broadcast %189 : vector<8x1xf32> to vector<8x32xf32>
    %191 = arith.mulf %187, %190 : vector<8x32xf32>
    %192 = arith.index_cast %c3_i32 : i32 to index
    %c0_71 = arith.constant 0 : index
    %c0_72 = arith.constant 0 : index
    %193 = vector.load %arg2[%192, %c0_71, %c0_72] : memref<7x8x32xf32, #tpu.memory_space<vmem>>, vector<1x8x32xf32>
    %194 = vector.shape_cast %193 : vector<1x8x32xf32> to vector<8x32xf32>
    %cst_73 = arith.constant dense<0.000000e+00> : vector<8x32xf32>
    %195 = tpu.matmul %191, %4, %cst_73 {dimension_numbers = #tpu.dot_dimension_numbers<[1], [0], [0], [1], [0, 0, 1, 1], [], []>, precision = #tpu.contract_precision<fp32>} : vector<8x32xf32>, vector<32x32xf32>, vector<8x32xf32> -> vector<8x32xf32>
    %196 = arith.addf %194, %195 : vector<8x32xf32>
    %cst_74 = arith.constant 0.000000e+00 : f32
    %197 = vector.broadcast %cst_74 : f32 to vector<8x32xf32>
    %198 = arith.maximumf %196, %197 : vector<8x32xf32>
    %cst_75 = arith.constant dense<0.000000e+00> : vector<8x128xf32>
    %199 = tpu.matmul %198, %3, %cst_75 {dimension_numbers = #tpu.dot_dimension_numbers<[1], [0], [0], [1], [0, 0, 1, 1], [], []>, precision = #tpu.contract_precision<fp32>} : vector<8x32xf32>, vector<32x128xf32>, vector<8x128xf32> -> vector<8x128xf32>
    %200 = arith.addf %199, %170 : vector<8x128xf32>
    %201 = arith.addf %200, %7 : vector<8x128xf32>
    %202 = vector.extract_strided_slice %201 {offsets = [0, 0], sizes = [8, 96], strides = [1, 1]} : vector<8x128xf32> to vector<8x96xf32>
    %203 = arith.negf %202 : vector<8x96xf32>
    %204 = math.exp %203 : vector<8x96xf32>
    %cst_76 = arith.constant 1.000000e+00 : f32
    %205 = vector.broadcast %cst_76 : f32 to vector<8x96xf32>
    %206 = arith.addf %205, %204 : vector<8x96xf32>
    %207 = arith.divf %205, %206 : vector<8x96xf32>
    %208 = vector.extract_strided_slice %207 {offsets = [0, 0], sizes = [8, 32], strides = [1, 1]} : vector<8x96xf32> to vector<8x32xf32>
    %209 = vector.extract_strided_slice %207 {offsets = [0, 32], sizes = [8, 32], strides = [1, 1]} : vector<8x96xf32> to vector<8x32xf32>
    %210 = vector.extract_strided_slice %207 {offsets = [0, 64], sizes = [8, 32], strides = [1, 1]} : vector<8x96xf32> to vector<8x32xf32>
    %211 = vector.extract_strided_slice %201 {offsets = [0, 96], sizes = [8, 32], strides = [1, 1]} : vector<8x128xf32> to vector<8x32xf32>
    %212 = math.tanh %211 : vector<8x32xf32>
    %213 = arith.mulf %209, %162 : vector<8x32xf32>
    %214 = arith.mulf %208, %212 : vector<8x32xf32>
    %215 = arith.addf %213, %214 : vector<8x32xf32>
    %216 = math.tanh %215 : vector<8x32xf32>
    %217 = arith.mulf %210, %216 : vector<8x32xf32>
    %c8_i32_77 = arith.constant 8 : i32
    %218 = arith.muli %c3_i32, %c8_i32_77 : i32
    %219 = tpu.assume_multiple %218, 8 : i32
    %220 = arith.index_cast %219 : i32 to index
    %c0_78 = arith.constant 0 : index
    %221 = vector.load %arg15[%220, %c0_78] : memref<56x32xf32, #tpu.memory_space<vmem>>, vector<8x32xf32>
    tpu.vector_store %arg15[%220, %c0_78], %217 {strides = array<i32>} : memref<56x32xf32, #tpu.memory_space<vmem>>, vector<8x32xf32>,
    %c4_i32 = arith.constant 4 : i32
    %cst_79 = arith.constant dense<0.000000e+00> : vector<8x160xf32>
    %222 = tpu.matmul %217, %2, %cst_79 {dimension_numbers = #tpu.dot_dimension_numbers<[1], [0], [0], [1], [0, 0, 1, 1], [], []>, precision = #tpu.contract_precision<fp32>} : vector<8x32xf32>, vector<32x160xf32>, vector<8x160xf32> -> vector<8x160xf32>
    %223 = vector.extract_strided_slice %222 {offsets = [0, 0], sizes = [8, 128], strides = [1, 1]} : vector<8x160xf32> to vector<8x128xf32>
    %224 = arith.index_cast %c4_i32 : i32 to index
    %c0_80 = arith.constant 0 : index
    %c0_81 = arith.constant 0 : index
    %225 = vector.load %arg1[%224, %c0_80, %c0_81] : memref<7x8x32xf32, #tpu.memory_space<vmem>>, vector<1x8x32xf32>
    %226 = vector.shape_cast %225 : vector<1x8x32xf32> to vector<8x32xf32>
    %227 = vector.extract_strided_slice %222 {offsets = [0, 128], sizes = [8, 32], strides = [1, 1]} : vector<8x160xf32> to vector<8x32xf32>
    %228 = arith.addf %226, %227 : vector<8x32xf32>
    %cst_82 = arith.constant 0.000000e+00 : f32
    %229 = vector.broadcast %cst_82 : f32 to vector<8x32xf32>
    %230 = arith.maximumf %228, %229 : vector<8x32xf32>
    %cst_83 = arith.constant dense<0.000000e+00> : vector<8x128xf32>
    %231 = tpu.matmul %230, %0, %cst_83 {dimension_numbers = #tpu.dot_dimension_numbers<[1], [0], [0], [1], [0, 0, 1, 1], [], []>, precision = #tpu.contract_precision<fp32>} : vector<8x32xf32>, vector<32x128xf32>, vector<8x128xf32> -> vector<8x128xf32>
    %232 = arith.addf %231, %1 : vector<8x128xf32>
    %cst_84 = arith.constant dense<0xFF800000> : vector<8xf32>
    %233 = vector.multi_reduction <maximumf>, %232, %cst_84 [1] : vector<8x128xf32> to vector<8xf32>
    %234 = vector.shape_cast %233 : vector<8xf32> to vector<8x1xf32>
    %235 = vector.broadcast %234 : vector<8x1xf32> to vector<8x128xf32>
    %236 = arith.subf %232, %235 : vector<8x128xf32>
    %237 = math.exp %236 : vector<8x128xf32>
    %c0_85 = arith.constant 0 : index
    %c0_86 = arith.constant 0 : index
    %238 = vector.load %arg4[%c0_85, %c0_86] : memref<128x33xf32, #tpu.memory_space<vmem>>, vector<128x33xf32>
    %cst_87 = arith.constant dense<0.000000e+00> : vector<8x33xf32>
    %239 = tpu.matmul %237, %238, %cst_87 {dimension_numbers = #tpu.dot_dimension_numbers<[1], [0], [0], [1], [0, 0, 1, 1], [], []>, precision = #tpu.contract_precision<fp32>} : vector<8x128xf32>, vector<128x33xf32>, vector<8x33xf32> -> vector<8x33xf32>
    %240 = vector.extract_strided_slice %239 {offsets = [0, 0], sizes = [8, 32], strides = [1, 1]} : vector<8x33xf32> to vector<8x32xf32>
    %241 = vector.extract_strided_slice %239 {offsets = [0, 32], sizes = [8, 1], strides = [1, 1]} : vector<8x33xf32> to vector<8x1xf32>
    %242 = tpu.reciprocal %241 : vector<8x1xf32> -> vector<8x1xf32>
    %243 = vector.broadcast %242 : vector<8x1xf32> to vector<8x32xf32>
    %244 = arith.mulf %240, %243 : vector<8x32xf32>
    %245 = arith.index_cast %c4_i32 : i32 to index
    %c0_88 = arith.constant 0 : index
    %c0_89 = arith.constant 0 : index
    %246 = vector.load %arg2[%245, %c0_88, %c0_89] : memref<7x8x32xf32, #tpu.memory_space<vmem>>, vector<1x8x32xf32>
    %247 = vector.shape_cast %246 : vector<1x8x32xf32> to vector<8x32xf32>
    %cst_90 = arith.constant dense<0.000000e+00> : vector<8x32xf32>
    %248 = tpu.matmul %244, %4, %cst_90 {dimension_numbers = #tpu.dot_dimension_numbers<[1], [0], [0], [1], [0, 0, 1, 1], [], []>, precision = #tpu.contract_precision<fp32>} : vector<8x32xf32>, vector<32x32xf32>, vector<8x32xf32> -> vector<8x32xf32>
    %249 = arith.addf %247, %248 : vector<8x32xf32>
    %cst_91 = arith.constant 0.000000e+00 : f32
    %250 = vector.broadcast %cst_91 : f32 to vector<8x32xf32>
    %251 = arith.maximumf %249, %250 : vector<8x32xf32>
    %cst_92 = arith.constant dense<0.000000e+00> : vector<8x128xf32>
    %252 = tpu.matmul %251, %3, %cst_92 {dimension_numbers = #tpu.dot_dimension_numbers<[1], [0], [0], [1], [0, 0, 1, 1], [], []>, precision = #tpu.contract_precision<fp32>} : vector<8x32xf32>, vector<32x128xf32>, vector<8x128xf32> -> vector<8x128xf32>
    %253 = arith.addf %252, %223 : vector<8x128xf32>
    %254 = arith.addf %253, %7 : vector<8x128xf32>
    %255 = vector.extract_strided_slice %254 {offsets = [0, 0], sizes = [8, 96], strides = [1, 1]} : vector<8x128xf32> to vector<8x96xf32>
    %256 = arith.negf %255 : vector<8x96xf32>
    %257 = math.exp %256 : vector<8x96xf32>
    %cst_93 = arith.constant 1.000000e+00 : f32
    %258 = vector.broadcast %cst_93 : f32 to vector<8x96xf32>
    %259 = arith.addf %258, %257 : vector<8x96xf32>
    %260 = arith.divf %258, %259 : vector<8x96xf32>
    %261 = vector.extract_strided_slice %260 {offsets = [0, 0], sizes = [8, 32], strides = [1, 1]} : vector<8x96xf32> to vector<8x32xf32>
    %262 = vector.extract_strided_slice %260 {offsets = [0, 32], sizes = [8, 32], strides = [1, 1]} : vector<8x96xf32> to vector<8x32xf32>
    %263 = vector.extract_strided_slice %260 {offsets = [0, 64], sizes = [8, 32], strides = [1, 1]} : vector<8x96xf32> to vector<8x32xf32>
    %264 = vector.extract_strided_slice %254 {offsets = [0, 96], sizes = [8, 32], strides = [1, 1]} : vector<8x128xf32> to vector<8x32xf32>
    %265 = math.tanh %264 : vector<8x32xf32>
    %266 = arith.mulf %262, %215 : vector<8x32xf32>
    %267 = arith.mulf %261, %265 : vector<8x32xf32>
    %268 = arith.addf %266, %267 : vector<8x32xf32>
    %269 = math.tanh %268 : vector<8x32xf32>
    %270 = arith.mulf %263, %269 : vector<8x32xf32>
    %c8_i32_94 = arith.constant 8 : i32
    %271 = arith.muli %c4_i32, %c8_i32_94 : i32
    %272 = tpu.assume_multiple %271, 8 : i32
    %273 = arith.index_cast %272 : i32 to index
    %c0_95 = arith.constant 0 : index
    %274 = vector.load %arg15[%273, %c0_95] : memref<56x32xf32, #tpu.memory_space<vmem>>, vector<8x32xf32>
    tpu.vector_store %arg15[%273, %c0_95], %270 {strides = array<i32>} : memref<56x32xf32, #tpu.memory_space<vmem>>, vector<8x32xf32>,
    %c5_i32 = arith.constant 5 : i32
    %cst_96 = arith.constant dense<0.000000e+00> : vector<8x160xf32>
    %275 = tpu.matmul %270, %2, %cst_96 {dimension_numbers = #tpu.dot_dimension_numbers<[1], [0], [0], [1], [0, 0, 1, 1], [], []>, precision = #tpu.contract_precision<fp32>} : vector<8x32xf32>, vector<32x160xf32>, vector<8x160xf32> -> vector<8x160xf32>
    %276 = vector.extract_strided_slice %275 {offsets = [0, 0], sizes = [8, 128], strides = [1, 1]} : vector<8x160xf32> to vector<8x128xf32>
    %277 = arith.index_cast %c5_i32 : i32 to index
    %c0_97 = arith.constant 0 : index
    %c0_98 = arith.constant 0 : index
    %278 = vector.load %arg1[%277, %c0_97, %c0_98] : memref<7x8x32xf32, #tpu.memory_space<vmem>>, vector<1x8x32xf32>
    %279 = vector.shape_cast %278 : vector<1x8x32xf32> to vector<8x32xf32>
    %280 = vector.extract_strided_slice %275 {offsets = [0, 128], sizes = [8, 32], strides = [1, 1]} : vector<8x160xf32> to vector<8x32xf32>
    %281 = arith.addf %279, %280 : vector<8x32xf32>
    %cst_99 = arith.constant 0.000000e+00 : f32
    %282 = vector.broadcast %cst_99 : f32 to vector<8x32xf32>
    %283 = arith.maximumf %281, %282 : vector<8x32xf32>
    %cst_100 = arith.constant dense<0.000000e+00> : vector<8x128xf32>
    %284 = tpu.matmul %283, %0, %cst_100 {dimension_numbers = #tpu.dot_dimension_numbers<[1], [0], [0], [1], [0, 0, 1, 1], [], []>, precision = #tpu.contract_precision<fp32>} : vector<8x32xf32>, vector<32x128xf32>, vector<8x128xf32> -> vector<8x128xf32>
    %285 = arith.addf %284, %1 : vector<8x128xf32>
    %cst_101 = arith.constant dense<0xFF800000> : vector<8xf32>
    %286 = vector.multi_reduction <maximumf>, %285, %cst_101 [1] : vector<8x128xf32> to vector<8xf32>
    %287 = vector.shape_cast %286 : vector<8xf32> to vector<8x1xf32>
    %288 = vector.broadcast %287 : vector<8x1xf32> to vector<8x128xf32>
    %289 = arith.subf %285, %288 : vector<8x128xf32>
    %290 = math.exp %289 : vector<8x128xf32>
    %c0_102 = arith.constant 0 : index
    %c0_103 = arith.constant 0 : index
    %291 = vector.load %arg4[%c0_102, %c0_103] : memref<128x33xf32, #tpu.memory_space<vmem>>, vector<128x33xf32>
    %cst_104 = arith.constant dense<0.000000e+00> : vector<8x33xf32>
    %292 = tpu.matmul %290, %291, %cst_104 {dimension_numbers = #tpu.dot_dimension_numbers<[1], [0], [0], [1], [0, 0, 1, 1], [], []>, precision = #tpu.contract_precision<fp32>} : vector<8x128xf32>, vector<128x33xf32>, vector<8x33xf32> -> vector<8x33xf32>
    %293 = vector.extract_strided_slice %292 {offsets = [0, 0], sizes = [8, 32], strides = [1, 1]} : vector<8x33xf32> to vector<8x32xf32>
    %294 = vector.extract_strided_slice %292 {offsets = [0, 32], sizes = [8, 1], strides = [1, 1]} : vector<8x33xf32> to vector<8x1xf32>
    %295 = tpu.reciprocal %294 : vector<8x1xf32> -> vector<8x1xf32>
    %296 = vector.broadcast %295 : vector<8x1xf32> to vector<8x32xf32>
    %297 = arith.mulf %293, %296 : vector<8x32xf32>
    %298 = arith.index_cast %c5_i32 : i32 to index
    %c0_105 = arith.constant 0 : index
    %c0_106 = arith.constant 0 : index
    %299 = vector.load %arg2[%298, %c0_105, %c0_106] : memref<7x8x32xf32, #tpu.memory_space<vmem>>, vector<1x8x32xf32>
    %300 = vector.shape_cast %299 : vector<1x8x32xf32> to vector<8x32xf32>
    %cst_107 = arith.constant dense<0.000000e+00> : vector<8x32xf32>
    %301 = tpu.matmul %297, %4, %cst_107 {dimension_numbers = #tpu.dot_dimension_numbers<[1], [0], [0], [1], [0, 0, 1, 1], [], []>, precision = #tpu.contract_precision<fp32>} : vector<8x32xf32>, vector<32x32xf32>, vector<8x32xf32> -> vector<8x32xf32>
    %302 = arith.addf %300, %301 : vector<8x32xf32>
    %cst_108 = arith.constant 0.000000e+00 : f32
    %303 = vector.broadcast %cst_108 : f32 to vector<8x32xf32>
    %304 = arith.maximumf %302, %303 : vector<8x32xf32>
    %cst_109 = arith.constant dense<0.000000e+00> : vector<8x128xf32>
    %305 = tpu.matmul %304, %3, %cst_109 {dimension_numbers = #tpu.dot_dimension_numbers<[1], [0], [0], [1], [0, 0, 1, 1], [], []>, precision = #tpu.contract_precision<fp32>} : vector<8x32xf32>, vector<32x128xf32>, vector<8x128xf32> -> vector<8x128xf32>
    %306 = arith.addf %305, %276 : vector<8x128xf32>
    %307 = arith.addf %306, %7 : vector<8x128xf32>
    %308 = vector.extract_strided_slice %307 {offsets = [0, 0], sizes = [8, 96], strides = [1, 1]} : vector<8x128xf32> to vector<8x96xf32>
    %309 = arith.negf %308 : vector<8x96xf32>
    %310 = math.exp %309 : vector<8x96xf32>
    %cst_110 = arith.constant 1.000000e+00 : f32
    %311 = vector.broadcast %cst_110 : f32 to vector<8x96xf32>
    %312 = arith.addf %311, %310 : vector<8x96xf32>
    %313 = arith.divf %311, %312 : vector<8x96xf32>
    %314 = vector.extract_strided_slice %313 {offsets = [0, 0], sizes = [8, 32], strides = [1, 1]} : vector<8x96xf32> to vector<8x32xf32>
    %315 = vector.extract_strided_slice %313 {offsets = [0, 32], sizes = [8, 32], strides = [1, 1]} : vector<8x96xf32> to vector<8x32xf32>
    %316 = vector.extract_strided_slice %313 {offsets = [0, 64], sizes = [8, 32], strides = [1, 1]} : vector<8x96xf32> to vector<8x32xf32>
    %317 = vector.extract_strided_slice %307 {offsets = [0, 96], sizes = [8, 32], strides = [1, 1]} : vector<8x128xf32> to vector<8x32xf32>
    %318 = math.tanh %317 : vector<8x32xf32>
    %319 = arith.mulf %315, %268 : vector<8x32xf32>
    %320 = arith.mulf %314, %318 : vector<8x32xf32>
    %321 = arith.addf %319, %320 : vector<8x32xf32>
    %322 = math.tanh %321 : vector<8x32xf32>
    %323 = arith.mulf %316, %322 : vector<8x32xf32>
    %c8_i32_111 = arith.constant 8 : i32
    %324 = arith.muli %c5_i32, %c8_i32_111 : i32
    %325 = tpu.assume_multiple %324, 8 : i32
    %326 = arith.index_cast %325 : i32 to index
    %c0_112 = arith.constant 0 : index
    %327 = vector.load %arg15[%326, %c0_112] : memref<56x32xf32, #tpu.memory_space<vmem>>, vector<8x32xf32>
    tpu.vector_store %arg15[%326, %c0_112], %323 {strides = array<i32>} : memref<56x32xf32, #tpu.memory_space<vmem>>, vector<8x32xf32>,
    %c6_i32 = arith.constant 6 : i32
    %cst_113 = arith.constant dense<0.000000e+00> : vector<8x160xf32>
    %328 = tpu.matmul %323, %2, %cst_113 {dimension_numbers = #tpu.dot_dimension_numbers<[1], [0], [0], [1], [0, 0, 1, 1], [], []>, precision = #tpu.contract_precision<fp32>} : vector<8x32xf32>, vector<32x160xf32>, vector<8x160xf32> -> vector<8x160xf32>
    %329 = vector.extract_strided_slice %328 {offsets = [0, 0], sizes = [8, 128], strides = [1, 1]} : vector<8x160xf32> to vector<8x128xf32>
    %330 = arith.index_cast %c6_i32 : i32 to index
    %c0_114 = arith.constant 0 : index
    %c0_115 = arith.constant 0 : index
    %331 = vector.load %arg1[%330, %c0_114, %c0_115] : memref<7x8x32xf32, #tpu.memory_space<vmem>>, vector<1x8x32xf32>
    %332 = vector.shape_cast %331 : vector<1x8x32xf32> to vector<8x32xf32>
    %333 = vector.extract_strided_slice %328 {offsets = [0, 128], sizes = [8, 32], strides = [1, 1]} : vector<8x160xf32> to vector<8x32xf32>
    %334 = arith.addf %332, %333 : vector<8x32xf32>
    %cst_116 = arith.constant 0.000000e+00 : f32
    %335 = vector.broadcast %cst_116 : f32 to vector<8x32xf32>
    %336 = arith.maximumf %334, %335 : vector<8x32xf32>
    %cst_117 = arith.constant dense<0.000000e+00> : vector<8x128xf32>
    %337 = tpu.matmul %336, %0, %cst_117 {dimension_numbers = #tpu.dot_dimension_numbers<[1], [0], [0], [1], [0, 0, 1, 1], [], []>, precision = #tpu.contract_precision<fp32>} : vector<8x32xf32>, vector<32x128xf32>, vector<8x128xf32> -> vector<8x128xf32>
    %338 = arith.addf %337, %1 : vector<8x128xf32>
    %cst_118 = arith.constant dense<0xFF800000> : vector<8xf32>
    %339 = vector.multi_reduction <maximumf>, %338, %cst_118 [1] : vector<8x128xf32> to vector<8xf32>
    %340 = vector.shape_cast %339 : vector<8xf32> to vector<8x1xf32>
    %341 = vector.broadcast %340 : vector<8x1xf32> to vector<8x128xf32>
    %342 = arith.subf %338, %341 : vector<8x128xf32>
    %343 = math.exp %342 : vector<8x128xf32>
    %c0_119 = arith.constant 0 : index
    %c0_120 = arith.constant 0 : index
    %344 = vector.load %arg4[%c0_119, %c0_120] : memref<128x33xf32, #tpu.memory_space<vmem>>, vector<128x33xf32>
    %cst_121 = arith.constant dense<0.000000e+00> : vector<8x33xf32>
    %345 = tpu.matmul %343, %344, %cst_121 {dimension_numbers = #tpu.dot_dimension_numbers<[1], [0], [0], [1], [0, 0, 1, 1], [], []>, precision = #tpu.contract_precision<fp32>} : vector<8x128xf32>, vector<128x33xf32>, vector<8x33xf32> -> vector<8x33xf32>
    %346 = vector.extract_strided_slice %345 {offsets = [0, 0], sizes = [8, 32], strides = [1, 1]} : vector<8x33xf32> to vector<8x32xf32>
    %347 = vector.extract_strided_slice %345 {offsets = [0, 32], sizes = [8, 1], strides = [1, 1]} : vector<8x33xf32> to vector<8x1xf32>
    %348 = tpu.reciprocal %347 : vector<8x1xf32> -> vector<8x1xf32>
    %349 = vector.broadcast %348 : vector<8x1xf32> to vector<8x32xf32>
    %350 = arith.mulf %346, %349 : vector<8x32xf32>
    %351 = arith.index_cast %c6_i32 : i32 to index
    %c0_122 = arith.constant 0 : index
    %c0_123 = arith.constant 0 : index
    %352 = vector.load %arg2[%351, %c0_122, %c0_123] : memref<7x8x32xf32, #tpu.memory_space<vmem>>, vector<1x8x32xf32>
    %353 = vector.shape_cast %352 : vector<1x8x32xf32> to vector<8x32xf32>
    %cst_124 = arith.constant dense<0.000000e+00> : vector<8x32xf32>
    %354 = tpu.matmul %350, %4, %cst_124 {dimension_numbers = #tpu.dot_dimension_numbers<[1], [0], [0], [1], [0, 0, 1, 1], [], []>, precision = #tpu.contract_precision<fp32>} : vector<8x32xf32>, vector<32x32xf32>, vector<8x32xf32> -> vector<8x32xf32>
    %355 = arith.addf %353, %354 : vector<8x32xf32>
    %cst_125 = arith.constant 0.000000e+00 : f32
    %356 = vector.broadcast %cst_125 : f32 to vector<8x32xf32>
    %357 = arith.maximumf %355, %356 : vector<8x32xf32>
    %cst_126 = arith.constant dense<0.000000e+00> : vector<8x128xf32>
    %358 = tpu.matmul %357, %3, %cst_126 {dimension_numbers = #tpu.dot_dimension_numbers<[1], [0], [0], [1], [0, 0, 1, 1], [], []>, precision = #tpu.contract_precision<fp32>} : vector<8x32xf32>, vector<32x128xf32>, vector<8x128xf32> -> vector<8x128xf32>
    %359 = arith.addf %358, %329 : vector<8x128xf32>
    %360 = arith.addf %359, %7 : vector<8x128xf32>
    %361 = vector.extract_strided_slice %360 {offsets = [0, 0], sizes = [8, 96], strides = [1, 1]} : vector<8x128xf32> to vector<8x96xf32>
    %362 = arith.negf %361 : vector<8x96xf32>
    %363 = math.exp %362 : vector<8x96xf32>
    %cst_127 = arith.constant 1.000000e+00 : f32
    %364 = vector.broadcast %cst_127 : f32 to vector<8x96xf32>
    %365 = arith.addf %364, %363 : vector<8x96xf32>
    %366 = arith.divf %364, %365 : vector<8x96xf32>
    %367 = vector.extract_strided_slice %366 {offsets = [0, 0], sizes = [8, 32], strides = [1, 1]} : vector<8x96xf32> to vector<8x32xf32>
    %368 = vector.extract_strided_slice %366 {offsets = [0, 32], sizes = [8, 32], strides = [1, 1]} : vector<8x96xf32> to vector<8x32xf32>
    %369 = vector.extract_strided_slice %366 {offsets = [0, 64], sizes = [8, 32], strides = [1, 1]} : vector<8x96xf32> to vector<8x32xf32>
    %370 = vector.extract_strided_slice %360 {offsets = [0, 96], sizes = [8, 32], strides = [1, 1]} : vector<8x128xf32> to vector<8x32xf32>
    %371 = math.tanh %370 : vector<8x32xf32>
    %372 = arith.mulf %368, %321 : vector<8x32xf32>
    %373 = arith.mulf %367, %371 : vector<8x32xf32>
    %374 = arith.addf %372, %373 : vector<8x32xf32>
    %375 = math.tanh %374 : vector<8x32xf32>
    %376 = arith.mulf %369, %375 : vector<8x32xf32>
    %c8_i32_128 = arith.constant 8 : i32
    %377 = arith.muli %c6_i32, %c8_i32_128 : i32
    %378 = tpu.assume_multiple %377, 8 : i32
    %379 = arith.index_cast %378 : i32 to index
    %c0_129 = arith.constant 0 : index
    %380 = vector.load %arg15[%379, %c0_129] : memref<56x32xf32, #tpu.memory_space<vmem>>, vector<8x32xf32>
    tpu.vector_store %arg15[%379, %c0_129], %376 {strides = array<i32>} : memref<56x32xf32, #tpu.memory_space<vmem>>, vector<8x32xf32>,
    %c7_i32 = arith.constant 7 : i32
    %c0_130 = arith.constant 0 : index
    %c0_131 = arith.constant 0 : index
    %381 = vector.load %arg15[%c0_130, %c0_131] : memref<56x32xf32, #tpu.memory_space<vmem>>, vector<56x32xf32>
    %c0_132 = arith.constant 0 : index
    %c0_133 = arith.constant 0 : index
    %382 = vector.load %arg10[%c0_132, %c0_133] : memref<32x32xf32, #tpu.memory_space<vmem>>, vector<32x32xf32>
    %cst_134 = arith.constant dense<0.000000e+00> : vector<56x32xf32>
    %383 = tpu.matmul %381, %382, %cst_134 {dimension_numbers = #tpu.dot_dimension_numbers<[1], [0], [0], [1], [0, 0, 1, 1], [], []>, precision = #tpu.contract_precision<fp32>} : vector<56x32xf32>, vector<32x32xf32>, vector<56x32xf32> -> vector<56x32xf32>
    %c0_135 = arith.constant 0 : index
    %c0_136 = arith.constant 0 : index
    %384 = vector.load %arg11[%c0_135, %c0_136] : memref<1x32xf32, #tpu.memory_space<vmem>>, vector<1x32xf32>
    %385 = vector.broadcast %384 : vector<1x32xf32> to vector<56x32xf32>
    %386 = arith.addf %383, %385 : vector<56x32xf32>
    %c0_137 = arith.constant 0 : index
    %c0_138 = arith.constant 0 : index
    %387 = vector.load %arg12[%c0_137, %c0_138] : memref<32x128xf32, #tpu.memory_space<vmem>>, vector<32x128xf32>
    %cst_139 = arith.constant dense<0.000000e+00> : vector<56x128xf32>
    %388 = tpu.matmul %386, %387, %cst_139 {dimension_numbers = #tpu.dot_dimension_numbers<[1], [0], [0], [1], [0, 0, 1, 1], [], []>, precision = #tpu.contract_precision<fp32>} : vector<56x32xf32>, vector<32x128xf32>, vector<56x128xf32> -> vector<56x128xf32>
    %c0_140 = arith.constant 0 : index
    %c0_141 = arith.constant 0 : index
    %389 = vector.load %arg13[%c0_140, %c0_141] : memref<56x128xf32, #tpu.memory_space<vmem>>, vector<56x128xf32>
    %390 = arith.addf %388, %389 : vector<56x128xf32>
    %cst_142 = arith.constant dense<0xFF800000> : vector<56xf32>
    %391 = vector.multi_reduction <maximumf>, %390, %cst_142 [1] : vector<56x128xf32> to vector<56xf32>
    %392 = vector.shape_cast %391 : vector<56xf32> to vector<56x1xf32>
    %393 = vector.broadcast %392 : vector<56x1xf32> to vector<56x128xf32>
    %394 = arith.subf %390, %393 : vector<56x128xf32>
    %395 = math.exp %394 : vector<56x128xf32>
    %cst_143 = arith.constant dense<0.000000e+00> : vector<56xf32>
    %396 = vector.multi_reduction <add>, %395, %cst_143 [1] : vector<56x128xf32> to vector<56xf32>
    %397 = vector.shape_cast %396 : vector<56xf32> to vector<56x1xf32>
    %398 = math.log %397 : vector<56x1xf32>
    %399 = arith.addf %392, %398 : vector<56x1xf32>
    %400 = vector.broadcast %399 : vector<56x1xf32> to vector<56x128xf32>
    %401 = arith.subf %390, %400 : vector<56x128xf32>
    %c0_144 = arith.constant 0 : index
    %c0_145 = arith.constant 0 : index
    %402 = vector.load %arg14[%c0_144, %c0_145] : memref<56x128xf32, #tpu.memory_space<vmem>>, vector<56x128xf32>
    tpu.vector_store %arg14[%c0_144, %c0_145], %401 {strides = array<i32>} : memref<56x128xf32, #tpu.memory_space<vmem>>, vector<56x128xf32>,
    return
  }
  func.func @transform_0(%arg0: i32) -> (i32, i32, i32) {
    %c0_i32 = arith.constant 0 : i32
    %c0_i32_0 = arith.constant 0 : i32
    %c0_i32_1 = arith.constant 0 : i32
    %c0_i32_2 = arith.constant 0 : i32
    return %c0_i32, %c0_i32_0, %c0_i32_1 : i32, i32, i32
  }
  func.func @transform_1(%arg0: i32) -> (i32, i32, i32) {
    %c0_i32 = arith.constant 0 : i32
    %c0_i32_0 = arith.constant 0 : i32
    %c0_i32_1 = arith.constant 0 : i32
    %c0_i32_2 = arith.constant 0 : i32
    return %c0_i32, %c0_i32_0, %c0_i32_1 : i32, i32, i32
  }
  func.func @transform_2(%arg0: i32) -> (i32, i32) {
    %c0_i32 = arith.constant 0 : i32
    %c0_i32_0 = arith.constant 0 : i32
    %c0_i32_1 = arith.constant 0 : i32
    return %c0_i32, %c0_i32_0 : i32, i32
  }
  func.func @transform_3(%arg0: i32) -> (i32, i32) {
    %c0_i32 = arith.constant 0 : i32
    %c0_i32_0 = arith.constant 0 : i32
    %c0_i32_1 = arith.constant 0 : i32
    return %c0_i32, %c0_i32_0 : i32, i32
  }
  func.func @transform_4(%arg0: i32) -> (i32, i32) {
    %c0_i32 = arith.constant 0 : i32
    %c0_i32_0 = arith.constant 0 : i32
    %c0_i32_1 = arith.constant 0 : i32
    return %c0_i32, %c0_i32_0 : i32, i32
  }
  func.func @transform_5(%arg0: i32) -> (i32, i32) {
    %c0_i32 = arith.constant 0 : i32
    %c0_i32_0 = arith.constant 0 : i32
    %c0_i32_1 = arith.constant 0 : i32
    return %c0_i32, %c0_i32_0 : i32, i32
  }
  func.func @transform_6(%arg0: i32) -> (i32, i32) {
    %c0_i32 = arith.constant 0 : i32
    %c0_i32_0 = arith.constant 0 : i32
    %c0_i32_1 = arith.constant 0 : i32
    return %c0_i32, %c0_i32_0 : i32, i32
  }
  func.func @transform_7(%arg0: i32) -> (i32, i32) {
    %c0_i32 = arith.constant 0 : i32
    %c0_i32_0 = arith.constant 0 : i32
    %c0_i32_1 = arith.constant 0 : i32
    return %c0_i32, %c0_i32_0 : i32, i32
  }
  func.func @transform_8(%arg0: i32) -> (i32, i32) {
    %c0_i32 = arith.constant 0 : i32
    %c0_i32_0 = arith.constant 0 : i32
    %c0_i32_1 = arith.constant 0 : i32
    return %c0_i32, %c0_i32_0 : i32, i32
  }
  func.func @transform_9(%arg0: i32) -> (i32, i32) {
    %c0_i32 = arith.constant 0 : i32
    %c0_i32_0 = arith.constant 0 : i32
    %c0_i32_1 = arith.constant 0 : i32
    return %c0_i32, %c0_i32_0 : i32, i32
  }
  func.func @transform_10(%arg0: i32) -> (i32, i32) {
    %c0_i32 = arith.constant 0 : i32
    %c0_i32_0 = arith.constant 0 : i32
    %c0_i32_1 = arith.constant 0 : i32
    return %c0_i32, %c0_i32_0 : i32, i32
  }
  func.func @transform_11(%arg0: i32) -> (i32, i32) {
    %c0_i32 = arith.constant 0 : i32
    %c0_i32_0 = arith.constant 0 : i32
    %c0_i32_1 = arith.constant 0 : i32
    return %c0_i32, %c0_i32_0 : i32, i32
  }
  func.func @transform_12(%arg0: i32) -> (i32, i32) {
    %c0_i32 = arith.constant 0 : i32
    %c0_i32_0 = arith.constant 0 : i32
    %c0_i32_1 = arith.constant 0 : i32
    return %c0_i32, %c0_i32_0 : i32, i32
  }
  func.func @transform_13(%arg0: i32) -> (i32, i32) {
    %c0_i32 = arith.constant 0 : i32
    %c0_i32_0 = arith.constant 0 : i32
    %c0_i32_1 = arith.constant 0 : i32
    return %c0_i32, %c0_i32_0 : i32, i32
  }
}

</mosaic_0001>

<bundles_post_ra>
// kernel: attn_rnn_decoder_forward.1
= control target key start
LH: loop header
LB: loop body
LE: loop exit
PB: predicated region body
PF: predicated region fallthrough
CT: control target
= control target key end

     0   :  { %v31951_v3 = vmov 0.0   ;;  %vm28106_vm0 = vmmov 0   ;;  %vm72_vm1 = vcmask 261120   ;;  %s28108_s28 = smov 32   ;;  %s28109_s29 = smov 64   ;;  %s31933_s5 = inlined_call_operand.vmem [shape: f32[32,160], index: 5, kind: input, shape index: {}]   ;;  %s31934_s2 = inlined_call_operand.vmem [shape: f32[32,128], index: 2, kind: input, shape index: {}]   ;;  %s31935_s0 = inlined_call_operand.vmem [shape: f32[7,8,32], index: 0, kind: input, shape index: {}]   ;;  %s31936_s3 = inlined_call_operand.vmem [shape: f32[128,33], index: 3, kind: input, shape index: {}]   ;;  %s31937_s4 = inlined_call_operand.vmem [shape: f32[8,128], index: 4, kind: input, shape index: {}]   ;;  %s31938_s7 = inlined_call_operand.vmem [shape: f32[32,32], index: 7, kind: input, shape index: {}]   ;;  %s31939_s6 = inlined_call_operand.vmem [shape: f32[32,128], index: 6, kind: input, shape index: {}]   ;;  %s31940_s1 = inlined_call_operand.vmem [shape: f32[7,8,32], index: 1, kind: input, shape index: {}]   ;;  %s31941_s8 = inlined_call_operand.vmem [shape: f32[1,128], index: 8, kind: input, shape index: {}]   ;;  %s31942_s9 = inlined_call_operand.vmem [shape: f32[32,32], index: 9, kind: input, shape index: {}]   ;;  %s31943_s11 = inlined_call_operand.vmem [shape: f32[32,128], index: 11, kind: input, shape index: {}]   ;;  %s31944_s10 = inlined_call_operand.vmem [shape: f32[1,32], index: 10, kind: input, shape index: {}]   ;;  %s31945_s12 = inlined_call_operand.vmem [shape: f32[56,128], index: 12, kind: input, shape index: {}]   ;;  %s31946_s13 = inlined_call_operand.vmem [shape: f32[56,128], index: 13, kind: output, shape index: {}]  }
   0x1   :  { %v50_v0 = vld [vmem:[%s31933_s5 + $0x8] sm:$0xff]  ;;  %v52_v1 = vld [vmem:[%s31933_s5 + $0x18] sm:$0xff]  ;;  %v49_v2 = vld [vmem:[%s31933_s5] sm:$0xff]  ;;  %148 = vmatprep.mubr.f32.mxu0 %v31951_v3  ;;  %22240 = vmatprep.mubr.msk.f32.mxu1 %vm28106_vm0, %v31951_v3 }
   0x2   :  { %v76_v4 = vand.u32 4294901760, %v50_v0  ;;  %v80_v5 = vand.u32 4294901760, %v52_v1  ;;  %v51_v6 = vld [vmem:[%s31933_s5 + $0x10] sm:$0xff]  ;;  %v78_v7 = vand.u32 4294901760, %v49_v2  ;;  %v54_v8 = vld [vmem:[%s31933_s5 + $0x28] sm:$0xff]  ;;  %v56_v9 = vld [vmem:[%s31933_s5 + $0x38] sm:$0xff] }
   0x3   :  { %v82_v10 = vand.u32 4294901760, %v51_v6  ;;  %v84_v11 = vand.u32 4294901760, %v54_v8  ;;  %v88_v12 = vand.u32 4294901760, %v56_v9  ;;  %v53_v13 = vld [vmem:[%s31933_s5 + $0x20] sm:$0xff]  ;;  %v55_v14 = vld [vmem:[%s31933_s5 + $0x30] sm:$0xff] }
   0x4   :  { %v28205_v15 = vpack.c.bf16 %v80_v5, %v76_v4  ;;  %v86_v16 = vand.u32 4294901760, %v53_v13  ;;  %v90_v17 = vand.u32 4294901760, %v55_v14  ;;  %v28207_v18 = vsub.f32 %v50_v0, %v76_v4 }
   0x5   :  { %v28209_v19 = vpack.c.bf16 %v82_v10, %v78_v7  ;;  %v28211_v20 = vpack.c.bf16 %v88_v12, %v84_v11  ;;  %v173_v21 = vsub.f32 %v52_v1, %v80_v5  ;;  %v28213_v22 = vsub.f32 %v49_v2, %v78_v7  ;;  %v44_v1 = vld [vmem:[%s31934_s2] sm:$0xff]  ;;  %v45_v2 = vld [vmem:[%s31934_s2 + $0x8] sm:$0xff] }
   0x6   :  { %32107 = vst [vmem:[#allocation3_spill] sm:$0xff] %v28205_v15  ;;  %25437 = vmatprep.subr.bf16.mxu0 %v28205_v15  ;;  %v28216_v23 = vpack.c.bf16 %v90_v17, %v86_v16  ;;  %v162_v24 = vand.u32 4294901760, %v28207_v18  ;;  %v179_v25 = vsub.f32 %v51_v6, %v82_v10  ;;  %v185_v26 = vsub.f32 %v54_v8, %v84_v11  ;;  %v46_v10 = vld [vmem:[%s31934_s2 + $0x10] sm:$0xff]  ;;  %v47_v11 = vld [vmem:[%s31934_s2 + $0x18] sm:$0xff] }
   0x7   :  { %32108 = vst [vmem:[#allocation4_spill] sm:$0xff] %v28209_v19  ;;  %32109 = vst [vmem:[#allocation5_spill] sm:$0xff] %v28211_v20  ;;  %25439 = vmatpush1.bf16.msra.mxu0 %v28209_v19  ;;  %v174_v27 = vand.u32 4294901760, %v173_v21  ;;  %v168_v28 = vand.u32 4294901760, %v28213_v22  ;;  %v197_v29 = vsub.f32 %v56_v9, %v88_v12  ;;  %v191_v30 = vsub.f32 %v53_v13, %v86_v16 }
   0x8   :  { %32110 = vst [vmem:[#allocation6_spill] sm:$0xff] %v28216_v23  ;;  %25441 = vmatprep.subr.bf16.mxu0 %v28211_v20  ;;  %v163_v31 = vsub.f32 %v28207_v18, %v162_v24  ;;  %v180_v32 = vand.u32 4294901760, %v179_v25  ;;  %v186_v33 = vand.u32 4294901760, %v185_v26  ;;  %v203_v34 = vsub.f32 %v55_v14, %v90_v17 }
   0x9   :  { %v175_v35 = vsub.f32 %v173_v21, %v174_v27  ;;  %v169_v36 = vsub.f32 %v28213_v22, %v168_v28  ;;  %v198_v37 = vand.u32 4294901760, %v197_v29  ;;  %v192_v38 = vand.u32 4294901760, %v191_v30 }
   0xa   :  { %v164_v39 = vand.u32 4294901760, %v163_v31  ;;  %v181_v40 = vsub.f32 %v179_v25, %v180_v32  ;;  %v187_v41 = vsub.f32 %v185_v26, %v186_v33  ;;  %v204_v42 = vand.u32 4294901760, %v203_v34 }
   0xb   :  { %25443 = vmatpush1.bf16.msra.mxu0 %v28216_v23  ;;  %v176_v43 = vand.u32 4294901760, %v175_v35  ;;  %v170_v44 = vand.u32 4294901760, %v169_v36  ;;  %v199_v45 = vsub.f32 %v197_v29, %v198_v37  ;;  %v193_v46 = vsub.f32 %v191_v30, %v192_v38 }
   0xc   :  { %v182_v47 = vand.u32 4294901760, %v181_v40  ;;  %v188_v48 = vand.u32 4294901760, %v187_v41  ;;  %v205_v49 = vsub.f32 %v203_v34, %v204_v42  ;;  %v28239_v57 = vpack.c.bf16 %v173_v21, %v28207_v18 }
   0xd   :  { %v28225_v50 = vpack.c.bf16 %v176_v43, %v164_v39  ;;  %v200_v51 = vand.u32 4294901760, %v199_v45  ;;  %v194_v52 = vand.u32 4294901760, %v193_v46  ;;  %v28243_v58 = vpack.c.bf16 %v179_v25, %v28213_v22  ;;  %v619_v39 = vld [vmem:[%s31935_s0] sm:$0xff] }
   0xe   :  { %154 = vmatmul.mubr.f32.vlgmr.msra.gmra.mrb[0].mxu0 %v31951_v3  ;;  %v28228_v53 = vpack.c.bf16 %v182_v47, %v170_v44  ;;  %v206_v54 = vand.u32 4294901760, %v205_v49  ;;  %32115 = vst [vmem:[#allocation11_spill] sm:$0xff] %v28239_v57  ;;  %v28246_v59 = vpack.c.bf16 %v197_v29, %v185_v26  ;;  %v28250_v60 = vpack.c.bf16 %v203_v34, %v191_v30 }
   0xf   :  { %32111 = vst [vmem:[#allocation7_spill] sm:$0xff] %v28225_v50  ;;  %25445 = vmatprep.subr.bf16.mxu0 %v28225_v50  ;;  %v28231_v55 = vpack.c.bf16 %v200_v51, %v188_v48  ;;  %264 = vmatprep.mubr.f32.mxu0 %v31951_v3  ;;  %32116 = vst [vmem:[#allocation12_spill] sm:$0xff] %v28243_v58  ;;  %v28260_v61 = vpack.c.bf16 %v174_v27, %v162_v24  ;;  %v626_v4 = vand.u32 4294901760, %v44_v1  ;;  %v31961_v9 = vmov 0.0|0.0   ;;  %v1115_v51 = vld [vmem:[%s31936_s3] sm:$0xff] }
  0x10   :  { %32112 = vst [vmem:[#allocation8_spill] sm:$0xff] %v28228_v53  ;;  %25447 = vmatpush1.bf16.msra.mxu0 %v28228_v53  ;;  %v28235_v56 = vpack.c.bf16 %v206_v54, %v194_v52  ;;  %32117 = vst [vmem:[#allocation13_spill] sm:$0xff] %v28246_v59  ;;  %v28263_v62 = vpack.c.bf16 %v180_v32, %v168_v28  ;;  %v28266_v63 = vpack.c.bf16 %v198_v37, %v186_v33  ;;  %v1116_v52 = vld [vmem:[%s31936_s3 + $0x8] sm:$0xff]  ;;  %v1117_v54 = vld [vmem:[%s31936_s3 + $0x10] sm:$0xff] }
  0x11   :  { %32113 = vst [vmem:[#allocation9_spill] sm:$0xff] %v28231_v55  ;;  %25449 = vmatprep.subr.bf16.mxu0 %v28231_v55  ;;  %32118 = vst [vmem:[#allocation14_spill] sm:$0xff] %v28250_v60  ;;  %v28270_v0 = vpack.c.bf16 %v204_v42, %v192_v38  ;;  %v629_v5 = vand.u32 4294901760, %v45_v2  ;;  %v706_v7 = vsub.f32 %v44_v1, %v626_v4  ;;  %25484 = vmatprep.subr.bf16.mxu1 %v31961_v9 }
  0x12   :  { %32114 = vst [vmem:[#allocation10_spill] sm:$0xff] %v28235_v56  ;;  %32119 = vst [vmem:[#allocation15_spill] sm:$0xff] %v28260_v61  ;;  %v632_v12 = vand.u32 4294901760, %v46_v10  ;;  %v635_v13 = vand.u32 4294901760, %v47_v11  ;;  %v1132_v1 = vand.u32 4294901760, %v1115_v51 }
  0x13   :  { %32120 = vst [vmem:[#allocation16_spill] sm:$0xff] %v28263_v62  ;;  %32121 = vst [vmem:[#allocation17_spill] sm:$0xff] %v28266_v63  ;;  %v28288_v6 = vpack.c.bf16 %v629_v5, %v626_v4  ;;  %v713_v8 = vsub.f32 %v45_v2, %v629_v5  ;;  %v707_v14 = vand.u32 4294901760, %v706_v7  ;;  %v1135_v2 = vand.u32 4294901760, %v1116_v52  ;;  %v1118_v4 = vld [vmem:[%s31936_s3 + $0x18] sm:$0xff] }
  0x14   :  { %25451 = vmatpush1.bf16.msra.mxu0 %v28235_v56  ;;  %32122 = vst [vmem:[#allocation18_spill] sm:$0xff] %v28270_v0  ;;  %v28304_v17 = vpack.c.bf16 %v635_v13, %v632_v12  ;;  %v720_v22 = vsub.f32 %v46_v10, %v632_v12  ;;  %v727_v24 = vsub.f32 %v47_v11, %v635_v13  ;;  %v1138_v5 = vand.u32 4294901760, %v1117_v54  ;;  %v28385_v13 = vld [vmem:[%s31936_s3 + $0x30] sm:$0xff] }
  0x15   :  { %25453 = vmatprep.subr.bf16.mxu0 %v28239_v57  ;;  %32123 = vst [vmem:[#allocation19_spill] sm:$0xff] %v28288_v6  ;;  %25486 = vmatpush3.bf16.msra.mxu1 %v28288_v6  ;;  %v714_v16 = vand.u32 4294901760, %v713_v8  ;;  %v708_v18 = vsub.f32 %v706_v7, %v707_v14  ;;  %v28312_v35 = vpack.c.bf16 %v713_v8, %v706_v7  ;;  %v28373_v7 = vld [vmem:[%s31936_s3 + $0x20] sm:$0xff]  ;;  %v1141_v10 = vand.u32 4294901760, %v1118_v4 }
  0x16   :  { %25487 = vmatprep.subr.bf16.mxu1 %v31961_v9  ;;  %32124 = vst [vmem:[#allocation20_spill] sm:$0xff] %v28304_v17  ;;  %v721_v27 = vand.u32 4294901760, %v720_v22  ;;  %v728_v28 = vand.u32 4294901760, %v727_v24  ;;  %v28314_v36 = vpack.c.bf16 %v727_v24, %v720_v22  ;;  %v1144_v11 = vand.u32 4294901760, %v28373_v7 }
  0x17   :  { %266 = vmatmul.mubr.f32.vlgmr.msra.gmra.mrb[0].mxu0 %v31951_v3  ;;  %v715_v21 = vsub.f32 %v713_v8, %v714_v16  ;;  %v709_v25 = vand.u32 4294901760, %v708_v18  ;;  %32127 = vst [vmem:[#allocation23_spill] sm:$0xff] %v28312_v35  ;;  %v28316_v37 = vpack.c.bf16 %v714_v16, %v707_v14  ;;  %v28378_v8 = vld [vmem:[%s31936_s3 + $0x28] sm:$0xff]  ;;  %v28390_v14 = vld [vmem:[%s31936_s3 + $0x38] sm:$0xff]  ;;  %v28392_v16 = vsub.f32 %v1115_v51, %v1132_v1 }
  0x18   :  { %25455 = vmatpush1.bf16.msra.mxu0 %v28243_v58  ;;  %352 = vmatprep.mubr.f32.mxu0 %v31951_v3  ;;  %v722_v30 = vsub.f32 %v720_v22, %v721_v27  ;;  %v729_v31 = vsub.f32 %v727_v24, %v728_v28  ;;  %32128 = vst [vmem:[#allocation24_spill] sm:$0xff] %v28314_v36  ;;  %v1147_v12 = vand.u32 4294901760, %v28378_v8 }
  0x19   :  { %25457 = vmatprep.subr.bf16.mxu0 %v28246_v59  ;;  %25489 = vmatpush3.bf16.msra.mxu1 %v28304_v17  ;;  %v716_v26 = vand.u32 4294901760, %v715_v21  ;;  %32129 = vst [vmem:[#allocation25_spill] sm:$0xff] %v28316_v37  ;;  %v28318_v38 = vpack.c.bf16 %v728_v28, %v721_v27  ;;  %v28394_v18 = vsub.f32 %v1116_v52, %v1135_v2  ;;  %v31960_v27 = vand.u32 4294901760, %v28385_v13 }
  0x1a   :  { %25490 = vmatprep.subr.bf16.mxu1 %v31961_v9  ;;  %v723_v32 = vand.u32 4294901760, %v722_v30  ;;  %v730_v33 = vand.u32 4294901760, %v729_v31  ;;  %v28396_v21 = vsub.f32 %v1117_v54, %v1138_v5  ;;  %v28398_v22 = vpack.c.bf16 %v1135_v2, %v1132_v1 }
  0x1b   :  { %v28308_v29 = vpack.c.bf16 %v716_v26, %v709_v25  ;;  %32130 = vst [vmem:[#allocation26_spill] sm:$0xff] %v28318_v38  ;;  %v28400_v24 = vsub.f32 %v1118_v4, %v1141_v10  ;;  %v28405_v25 = vsub.f32 %v28373_v7, %v1144_v11  ;;  %v28410_v26 = vsub.f32 %v28378_v8, %v1147_v12 }
  0x1c   :  { %25459 = vmatpush1.bf16.msra.mxu0 %v28250_v60  ;;  %v28310_v34 = vpack.c.bf16 %v730_v33, %v723_v32  ;;  %v31950_v28 = vand.u32 4294901760, %v28392_v16  ;;  %v31948_v30 = vand.u32 4294901760, %v28394_v18  ;;  %v31947_v31 = vand.u32 4294901760, %v28396_v21 }
  0x1d   :  { %25461 = vmatprep.subr.bf16.mxu0 %v28205_v15  ;;  %32125 = vst [vmem:[#allocation21_spill] sm:$0xff] %v28308_v29  ;;  %v31958_v32 = vand.u32 4294901760, %v28390_v14  ;;  %v31949_v33 = vand.u32 4294901760, %v28400_v24  ;;  %v32131_v8 = vmov 0.0|0.0  }
  0x1e   :  { %32126 = vst [vmem:[#allocation22_spill] sm:$0xff] %v28310_v34 }
  0x1f   :  { %355 = vmatmul.mubr.f32.vlgmr.msra.gmra.mrb[0].mxu0 %v31951_v3 }
  0x20   :  { %25463 = vmatpush1.bf16.msra.mxu0 %v28209_v19  ;;  %433 = vmatprep.mubr.f32.mxu0 %v31951_v3 }
  0x21   :  { %25465 = vmatprep.subr.bf16.mxu0 %v28211_v20 }
  0x24   :  { %25467 = vmatpush1.bf16.msra.mxu0 %v28216_v23 }
  0x25   :  { %25469 = vmatprep.subr.bf16.mxu0 %v28260_v61 }
  0x27   :  { %437 = vmatmul.mubr.f32.vlgmr.msra.gmra.mrb[0].mxu0 %v31951_v3 }
  0x28   :  { %25471 = vmatpush1.bf16.msra.mxu0 %v28263_v62  ;;  %531 = vmatprep.mubr.f32.mxu0 %v31951_v3 }
  0x29   :  { %25473 = vmatprep.subr.bf16.mxu0 %v28266_v63 }
  0x2c   :  { %25475 = vmatpush1.bf16.msra.mxu0 %v28270_v0 }
  0x2d   :  { %25477 = vmatprep.subr.bf16.mxu0 %v28205_v15 }
  0x2f   :  { %533 = vmatmul.mubr.f32.vlgmr.msra.gmra.mrb[0].mxu0 %v31951_v3 }
  0x30   :  { %25479 = vmatpush1.bf16.msra.mxu0 %v28209_v19  ;;  %611 = vmatprep.mubr.f32.mxu0 %v31951_v3 }
  0x31   :  { %25481 = vmatprep.subr.bf16.mxu0 %v28211_v20 }
  0x34   :  { %25483 = vmatpush1.bf16.msra.mxu0 %v28216_v23 }
  0x35   :  { %25544 = vmatprep.subr.bf16.mxu0 %v31961_v9 }
  0x37   :  { %613 = vmatmul.mubr.f32.vlgmr.msra.gmra.mrb[0].mxu0 %v31951_v3 }
  0x38   :  { %22365 = vmatprep.mubr.msk.f32.mxu0 %vm28106_vm0, %v31951_v3 }
 0x10a   :  { %v28323_v40 = vpop.f32.mrb[0].mxu0 }
 0x10b   :  { %v616_v41 = vpop.f32.mrb[1].mxu0 }
 0x10c   :  { %v620_v42 = vadd.f32 %v619_v39, %v616_v41  ;;  %v31953_v39 = vand.u32 4294901760, %v28405_v25  ;;  %v31957_v41 = vand.u32 4294901760, %v28410_v26 }
 0x10e   :  { %v621_v43 = vmax.f32 %v620_v42, 0.0  ;;  %v28425_v42 = vsub.f32 %v28385_v13, %v31960_v27 }
 0x110   :  { %v623_v44 = vsel %vm72_vm1, %v621_v43, 0  ;;  %v1226_v43 = vsub.f32 %v28392_v16, %v31950_v28  ;;  %v31955_v51 = vand.u32 4294901760, %v28425_v42 }
 0x111   :  { %v694_v45 = vand.u32 4294901760, %v623_v44 }
 0x112   :  { %v1227_v52 = vand.u32 4294901760, %v1226_v43 }
 0x113   :  { %v695_v46 = vsub.f32 %v623_v44, %v694_v45  ;;  %v1233_v44 = vsub.f32 %v28394_v18, %v31948_v30  ;;  %v28452_v30 = vpack.c.bf16 %v1141_v10, %v1138_v5 }
 0x115   :  { %v696_v47 = vand.u32 4294901760, %v695_v46  ;;  %v1234_v54 = vand.u32 4294901760, %v1233_v44 }
 0x117   :  { %v697_v48 = vsub.f32 %v695_v46, %v696_v47 }
 0x119   :  { %v698_v49 = vand.u32 4294901760, %v697_v48  ;;  %v1254_v48 = vsub.f32 %v28405_v25, %v31953_v39  ;;  %v1268_v39 = vsub.f32 %v28425_v42, %v31955_v51 }
 0x11b   :  { %22241 = vmatmul.mubr.f32.vlgmr.msra.gmra.mrb[0].mxu1 %v698_v49  ;;  %v1261_v49 = vsub.f32 %v28410_v26, %v31957_v41  ;;  %v1269_v10 = vand.u32 4294901760, %v1268_v39 }
 0x11c   :  { %25492 = vmatpush3.bf16.msra.mxu1 %v28308_v29  ;;  %22251 = vmatprep.mubr.msk.f32.mxu1 %vm28106_vm0, %v31951_v3 }
 0x11d   :  { %25493 = vmatprep.subr.bf16.mxu1 %v31961_v9 }
 0x120   :  { %25495 = vmatpush3.bf16.msra.mxu1 %v28310_v34 }
 0x121   :  { %25496 = vmatprep.subr.bf16.mxu1 %v31961_v9 }
 0x123   :  { %22252 = vmatmul.mubr.f32.vlgmr.msra.gmra.mrb[0].mxu1 %v694_v45 }
 0x124   :  { %25498 = vmatpush3.bf16.msra.mxu1 %v28312_v35  ;;  %22262 = vmatprep.mubr.msk.f32.mxu1 %vm28106_vm0, %v31951_v3 }
 0x125   :  { %25499 = vmatprep.subr.bf16.mxu1 %v31961_v9 }
 0x128   :  { %25501 = vmatpush3.bf16.msra.mxu1 %v28314_v36 }
 0x129   :  { %25502 = vmatprep.subr.bf16.mxu1 %v31961_v9 }
 0x12b   :  { %22263 = vmatmul.mubr.f32.vlgmr.msra.gmra.mrb[0].mxu1 %v695_v46  ;;  %v28439_v46 = vsub.f32 %v28390_v14, %v31958_v32 }
 0x12c   :  { %25504 = vmatpush3.bf16.msra.mxu1 %v28288_v6  ;;  %22273 = vmatprep.mubr.msk.f32.mxu1 %vm28106_vm0, %v31951_v3 }
 0x12d   :  { %25505 = vmatprep.subr.bf16.mxu1 %v31961_v9  ;;  %v31954_v2 = vand.u32 4294901760, %v28439_v46 }
 0x12f   :  { %v1275_v43 = vsub.f32 %v28439_v46, %v31954_v2 }
 0x130   :  { %25507 = vmatpush3.bf16.msra.mxu1 %v28304_v17 }
 0x131   :  { %25508 = vmatprep.subr.bf16.mxu1 %v31961_v9 }
 0x133   :  { %22274 = vmatmul.mubr.f32.vlgmr.msra.gmra.mrb[0].mxu1 %v696_v47  ;;  %v1247_v47 = vsub.f32 %v28400_v24, %v31949_v33  ;;  %v1255_v33 = vand.u32 4294901760, %v1254_v48 }
 0x134   :  { %25510 = vmatpush3.bf16.msra.mxu1 %v28316_v37  ;;  %22284 = vmatprep.mubr.msk.f32.mxu1 %vm28106_vm0, %v31951_v3 }
 0x135   :  { %25511 = vmatprep.subr.bf16.mxu1 %v31961_v9  ;;  %v1248_v4 = vand.u32 4294901760, %v1247_v47 }
 0x138   :  { %25513 = vmatpush3.bf16.msra.mxu1 %v28318_v38 }
 0x139   :  { %25514 = vmatprep.subr.bf16.mxu1 %v31961_v9 }
 0x13b   :  { %22285 = vmatmul.mubr.f32.vlgmr.msra.gmra.mrb[0].mxu1 %v694_v45 }
 0x13c   :  { %25516 = vmatpush3.bf16.msra.mxu1 %v28288_v6  ;;  %22295 = vmatprep.mubr.msk.f32.mxu1 %vm28106_vm0, %v31951_v3 }
 0x13d   :  { %25517 = vmatprep.subr.bf16.mxu1 %v31961_v9 }
 0x140   :  { %25519 = vmatpush3.bf16.msra.mxu1 %v28304_v17 }
 0x141   :  { %25520 = vmatprep.subr.bf16.mxu1 %v31961_v9 }
 0x143   :  { %22296 = vmatmul.mubr.f32.vlgmr.msra.gmra.mrb[0].mxu1 %v694_v45  ;;  %v1240_v45 = vsub.f32 %v28396_v21, %v31947_v31  ;;  %v25545_v31 = vpack.c.bf16 %v1234_v54, %v1227_v52 }
 0x144   :  { %22330 = vmatprep.mubr.msk.f32.mxu1 %vm28106_vm0, %v31951_v3  ;;  %25522 = vmatpush3.bf16.msra.mxu1 %v28398_v22  ;;  %v1262_v3 = vand.u32 4294901760, %v1261_v49 }
 0x145   :  { %25523 = vmatprep.subr.bf16.mxu1 %v31961_v9  ;;  %v1241_v1 = vand.u32 4294901760, %v1240_v45  ;;  %25546 = vmatpush3.bf16.msra.mxu0 %v25545_v31  ;;  %v1276_v31 = vand.u32 4294901760, %v1275_v43  ;;  %v48_v45 = vld [vmem:[%s31937_s4] sm:$0xff] }
 0x146   :  { %25547 = vmatprep.subr.bf16.mxu0 %v31961_v9  ;;  %v25551_v5 = vpack.c.bf16 %v1262_v3, %v1255_v33  ;;  %v1123_v3 = vld [vmem:[%s31936_s3 + $0x40] sm:$0xff]  ;;  %v1124_v33 = vld [vmem:[%s31936_s3 + $0x48] sm:$0xff] }
 0x147   :  { %v25548_v28 = vpack.c.bf16 %v1248_v4, %v1241_v1  ;;  %v25554_v44 = vpack.c.bf16 %v1276_v31, %v1269_v10  ;;  %v1156_v39 = vand.u32 4294901760, %v1123_v3  ;;  %v1159_v49 = vand.u32 4294901760, %v1124_v33  ;;  %v1125_v1 = vld [vmem:[%s31936_s3 + $0x50] sm:$0xff]  ;;  %v1126_v4 = vld [vmem:[%s31936_s3 + $0x58] sm:$0xff] }
 0x148   :  { %25525 = vmatpush3.bf16.msra.mxu1 %v28452_v30  ;;  %v1162_v10 = vand.u32 4294901760, %v1125_v1  ;;  %v1165_v31 = vand.u32 4294901760, %v1126_v4 }
 0x149   :  { %25526 = vmatprep.subr.bf16.mxu1 %v31961_v9  ;;  %25549 = vmatpush3.bf16.msra.mxu0 %v25548_v28  ;;  %v28478_v52 = vsub.f32 %v1123_v3, %v1156_v39  ;;  %v28480_v54 = vsub.f32 %v1124_v33, %v1159_v49  ;;  %v1127_v3 = vld [vmem:[%s31936_s3 + $0x60] sm:$0xff]  ;;  %v1128_v33 = vld [vmem:[%s31936_s3 + $0x68] sm:$0xff] }
 0x14a   :  { %25550 = vmatprep.subr.bf16.mxu0 %v31961_v9  ;;  %v1168_v32 = vand.u32 4294901760, %v1127_v3 }
 0x14b   :  { %v31956_v43 = vand.u32 4294901760, %v28478_v52 }
 0x14d   :  { %25552 = vmatpush3.bf16.msra.mxu0 %v25551_v5  ;;  %v31959_v5 = vand.u32 4294901760, %v28480_v54 }
 0x14e   :  { %25553 = vmatprep.subr.bf16.mxu0 %v31961_v9 }
 0x151   :  { %25555 = vmatpush3.bf16.msra.mxu0 %v25554_v44  ;;  %v1282_v44 = vsub.f32 %v28478_v52, %v31956_v43 }
 0x152   :  { %25556 = vmatprep.subr.bf16.mxu0 %v31961_v9 }
 0x153   :  { %v1283_v2 = vand.u32 4294901760, %v1282_v44  ;;  %v28518_v44 = vpack.c.bf16 %v1147_v12, %v1144_v11 }
 0x155   :  { %25528 = vmatpush3.bf16.msra.mxu1 %v28518_v44 }
 0x156   :  { %25529 = vmatprep.subr.bf16.mxu1 %v32131_v8 }
 0x216   :  { %v1106_v47 = vpop.f32.mrb[0].mxu1 }
 0x217   :  { %v28469_v48 = vadd.f32 %v1106_v47, %v48_v45  ;;  %v22297_v28 = vpop.f32.mrb[1].mxu1  ;;  %v1289_v45 = vsub.f32 %v28480_v54, %v31959_v5  ;;  %v28496_v47 = vsub.f32 %v1125_v1, %v1162_v10  ;;  %v1171_v5 = vand.u32 4294901760, %v1128_v33 }
 0x218   :  { %v28498_v28 = vsub.f32 %v1126_v4, %v1165_v31 }
 0x219   :  { %1110 = vmax.xlane.f32.xlu0 %v28469_v48  ;;  %v1290_v51 = vand.u32 4294901760, %v1289_v45  ;;  %v31964_v43 = vand.u32 4294901760, %v28496_v47  ;;  %v28520_v45 = vsub.f32 %v1127_v3, %v1168_v32  ;;  %v28522_v9 = vsub.f32 %v1128_v33, %v1171_v5 }
 0x21a   :  { %v31963_v41 = vand.u32 4294901760, %v28498_v28 }
 0x21b   :  { %v25557_v1 = vpack.c.bf16 %v1290_v51, %v1283_v2  ;;  %v1296_v4 = vsub.f32 %v28496_v47, %v31964_v43  ;;  %v1129_v51 = vld [vmem:[%s31936_s3 + $0x70] sm:$0xff]  ;;  %v1130_v2 = vld [vmem:[%s31936_s3 + $0x78] sm:$0xff]  ;;  %v1309_v11 = vand.u32 4294901760, %v28520_v45  ;;  %v31973_v12 = vand.u32 4294901760, %v28522_v9 }
 0x21c   :  { %v1303_v27 = vsub.f32 %v28498_v28, %v31963_v41  ;;  %v1174_v7 = vand.u32 4294901760, %v1129_v51  ;;  %v1177_v38 = vand.u32 4294901760, %v1130_v2 }
 0x21d   :  { %25558 = vmatpush3.bf16.msra.mxu0 %v25557_v1  ;;  %v1297_v41 = vand.u32 4294901760, %v1296_v4  ;;  %v32132_v1 = vand.u32 4294901760, %v28385_v13  ;;  %v1310_v36 = vsub.f32 %v28520_v45, %v1309_v11  ;;  %v1317_v35 = vsub.f32 %v28522_v9, %v31973_v12 }
 0x21e   :  { %v1304_v43 = vand.u32 4294901760, %v1303_v27  ;;  %25559 = vmatprep.subr.bf16.mxu0 %v32131_v8  ;;  %v28535_v33 = vsub.f32 %v1129_v51, %v1174_v7  ;;  %v28537_v37 = vsub.f32 %v1130_v2, %v1177_v38  ;;  %v32133_v27 = vand.u32 4294901760, %v28390_v14 }
 0x21f   :  { %v1311_v13 = vand.u32 4294901760, %v1310_v36  ;;  %v1318_v14 = vand.u32 4294901760, %v1317_v35  ;;  %v28555_v51 = vpack.c.bf16 %v1159_v49, %v1156_v39  ;;  %v28565_v36 = vpack.c.bf16 %v1165_v31, %v1162_v10 }
 0x220   :  { %v25560_v3 = vpack.c.bf16 %v1304_v43, %v1297_v41  ;;  %v28543_v4 = vpack.c.bf16 %v32133_v27, %v32132_v1  ;;  %v1323_v41 = vand.u32 4294901760, %v28535_v33  ;;  %v1330_v43 = vand.u32 4294901760, %v28537_v37 }
 0x221   :  { %v25563_v1 = vpack.c.bf16 %v1318_v14, %v1311_v13  ;;  %v28575_v39 = vpack.c.bf16 %v1171_v5, %v1168_v32  ;;  %v28579_v49 = vpack.c.bf16 %v1177_v38, %v1174_v7  ;;  %v25581_v10 = vpack.c.bf16 %v28480_v54, %v28478_v52 }
 0x222   :  { %25561 = vmatpush3.bf16.msra.mxu0 %v25560_v3  ;;  %25531 = vmatpush3.bf16.msra.mxu1 %v28543_v4  ;;  %v1324_v2 = vsub.f32 %v28535_v33, %v1323_v41  ;;  %v1331_v3 = vsub.f32 %v28537_v37, %v1330_v43  ;;  %v25584_v31 = vpack.c.bf16 %v28498_v28, %v28496_v47 }
 0x223   :  { %25562 = vmatprep.subr.bf16.mxu0 %v32131_v8  ;;  %25532 = vmatprep.subr.bf16.mxu1 %v32131_v8  ;;  %v25587_v32 = vpack.c.bf16 %v28522_v9, %v28520_v45  ;;  %v25569_v7 = vpack.c.bf16 %v28394_v18, %v28392_v16  ;;  %v62_v45 = vld [vmem:[%s31938_s7 + $0x8] sm:$0xff] }
 0x224   :  { %v1325_v27 = vand.u32 4294901760, %v1324_v2  ;;  %v1332_v12 = vand.u32 4294901760, %v1331_v3  ;;  %v25572_v3 = vpack.c.bf16 %v28400_v24, %v28396_v21 }
 0x226   :  { %25564 = vmatpush3.bf16.msra.mxu0 %v25563_v1  ;;  %25534 = vmatpush3.bf16.msra.mxu1 %v28555_v51  ;;  %v28569_v35 = vpack.c.bf16 %v1332_v12, %v1325_v27  ;;  %v32134_v1 = vmov 0.0  }
 0x227   :  { %25565 = vmatprep.subr.bf16.mxu0 %v32131_v8  ;;  %25535 = vmatprep.subr.bf16.mxu1 %v32131_v8 }
 0x22a   :  { %25567 = vmatpush3.bf16.msra.mxu0 %v28569_v35  ;;  %25537 = vmatpush3.bf16.msra.mxu1 %v28565_v36 }
 0x22b   :  { %25568 = vmatprep.subr.bf16.mxu0 %v32131_v8  ;;  %25538 = vmatprep.subr.bf16.mxu1 %v32131_v8 }
 0x22e   :  { %25540 = vmatpush3.bf16.msra.mxu1 %v28575_v39 }
 0x22f   :  { %25541 = vmatprep.subr.bf16.mxu1 %v32131_v8 }
 0x232   :  { %25543 = vmatpush3.bf16.msra.mxu1 %v28579_v49 }
 0x233   :  { %25664 = vmatprep.subr.bf16.mxu1 %v32131_v8 }
 0x2a6   :  { %v1111_v5 = vpop.xlane.xlu0 %1110 }
 0x2a7   :  { %v1112_v12 = vsub.f32 %v28469_v48, %v1111_v5  ;;  %v25575_v5 = vpack.c.bf16 %v28410_v26, %v28405_v25 }
 0x2a9   :  { %v1113_v13 = vmul.f32 1.442695, %v1112_v12 }
 0x2ab   :  { %27986 = vpow2.f32 %v1113_v13  ;;  %v25578_v13 = vpack.c.bf16 %v28439_v46, %v28425_v42 }
 0x2b5   :  { %v27987_v38 = vpop.eup %27986 }
 0x2b6   :  { %v28592_v14 = vand.u32 4294901760, %v27987_v38 }
 0x2b8   :  { %22366 = vmatmul.mubr.f32.vlgmr.msra.gmra.mrb[2].mxu0 %v28592_v14  ;;  %v1213_v2 = vsub.f32 %v27987_v38, %v28592_v14  ;;  %v28614_v38 = vpack.c.bf16 %v28537_v37, %v28535_v33  ;;  %v1787_v33 = vand.u32 4294901760, %v62_v45 }
 0x2b9   :  { %25570 = vmatpush3.bf16.msra.mxu0 %v25569_v7  ;;  %22400 = vmatprep.mubr.msk.f32.mxu0 %vm28106_vm0, %v32134_v1  ;;  %v32137_v7 = vand.u32 4294901760, %v28396_v21  ;;  %v32142_v21 = vand.u32 4294901760, %v28439_v46 }
 0x2ba   :  { %25571 = vmatprep.subr.bf16.mxu0 %v32131_v8  ;;  %v1214_v48 = vand.u32 4294901760, %v1213_v2 }
 0x2bc   :  { %v1215_v27 = vsub.f32 %v1213_v2, %v1214_v48 }
 0x2bd   :  { %25573 = vmatpush3.bf16.msra.mxu0 %v25572_v3 }
 0x2be   :  { %25574 = vmatprep.subr.bf16.mxu0 %v32131_v8  ;;  %v1216_v12 = vand.u32 4294901760, %v1215_v27 }
 0x2c0   :  { %22331 = vmatmul.mubr.f32.vlgmr.msra.gmra.mrb[2].mxu1 %v1216_v12  ;;  %v32144_v12 = vand.u32 4294901760, %v28480_v54 }
 0x2c1   :  { %25576 = vmatpush3.bf16.msra.mxu0 %v25575_v5  ;;  %22516 = vmatprep.mubr.msk.f32.mxu1 %vm28106_vm0, %v32134_v1  ;;  %v32143_v5 = vand.u32 4294901760, %v28478_v52  ;;  %v28677_v52 = vpack.c.bf16 %v1330_v43, %v1323_v41  ;;  %v1871_v43 = vsub.f32 %v62_v45, %v1787_v33 }
 0x2c2   :  { %25577 = vmatprep.subr.bf16.mxu0 %v32131_v8 }
 0x2c5   :  { %25579 = vmatpush3.bf16.msra.mxu0 %v25578_v13  ;;  %v25629_v13 = vpack.c.bf16 %v32144_v12, %v32143_v5 }
 0x2c6   :  { %25580 = vmatprep.subr.bf16.mxu0 %v32131_v8 }
 0x2c9   :  { %25582 = vmatpush3.bf16.msra.mxu0 %v25581_v10  ;;  %v32135_v10 = vand.u32 4294901760, %v28392_v16  ;;  %v32139_v16 = vand.u32 4294901760, %v28405_v25  ;;  %v32145_v25 = vand.u32 4294901760, %v28496_v47 }
 0x2ca   :  { %25583 = vmatprep.subr.bf16.mxu0 %v32131_v8 }
 0x2cd   :  { %25585 = vmatpush3.bf16.msra.mxu0 %v25584_v31  ;;  %v32136_v31 = vand.u32 4294901760, %v28394_v18  ;;  %v32140_v18 = vand.u32 4294901760, %v28410_v26  ;;  %v32146_v26 = vand.u32 4294901760, %v28498_v28 }
 0x2ce   :  { %25586 = vmatprep.subr.bf16.mxu0 %v32131_v8 }
 0x2cf   :  { %v25623_v27 = vpack.c.bf16 %v32140_v18, %v32139_v16 }
 0x2d1   :  { %25588 = vmatpush3.bf16.msra.mxu0 %v25587_v32  ;;  %v25617_v32 = vpack.c.bf16 %v32136_v31, %v32135_v10  ;;  %v25632_v10 = vpack.c.bf16 %v32146_v26, %v32145_v25 }
 0x2d2   :  { %25589 = vmatprep.subr.bf16.mxu0 %v32131_v8 }
 0x2d5   :  { %25591 = vmatpush3.bf16.msra.mxu0 %v28614_v38 }
 0x2d6   :  { %25592 = vmatprep.subr.bf16.mxu0 %v32131_v8 }
 0x2d8   :  { %22401 = vmatmul.mubr.f32.vlgmr.msra.gmra.mrb[2].mxu0 %v1213_v2  ;;  %v32138_v2 = vand.u32 4294901760, %v28400_v24 }
 0x2d9   :  { %25594 = vmatpush3.bf16.msra.mxu0 %v28398_v22  ;;  %22435 = vmatprep.mubr.msk.f32.mxu0 %vm28106_vm0, %v32134_v1 }
 0x2da   :  { %25595 = vmatprep.subr.bf16.mxu0 %v32131_v8  ;;  %v25620_v3 = vpack.c.bf16 %v32138_v2, %v32137_v7 }
 0x2dd   :  { %25597 = vmatpush3.bf16.msra.mxu0 %v28452_v30 }
 0x2de   :  { %25598 = vmatprep.subr.bf16.mxu0 %v32131_v8 }
 0x2e1   :  { %25600 = vmatpush3.bf16.msra.mxu0 %v28518_v44 }
 0x2e2   :  { %25601 = vmatprep.subr.bf16.mxu0 %v32131_v8 }
 0x2e5   :  { %25603 = vmatpush3.bf16.msra.mxu0 %v28543_v4 }
 0x2e6   :  { %25604 = vmatprep.subr.bf16.mxu0 %v32131_v8 }
 0x2e9   :  { %25606 = vmatpush3.bf16.msra.mxu0 %v28555_v51 }
 0x2ea   :  { %25607 = vmatprep.subr.bf16.mxu0 %v32131_v8 }
 0x2ed   :  { %25609 = vmatpush3.bf16.msra.mxu0 %v28565_v36 }
 0x2ee   :  { %25610 = vmatprep.subr.bf16.mxu0 %v32131_v8 }
 0x2f1   :  { %25612 = vmatpush3.bf16.msra.mxu0 %v28575_v39 }
 0x2f2   :  { %25613 = vmatprep.subr.bf16.mxu0 %v32131_v8 }
 0x2f5   :  { %25615 = vmatpush3.bf16.msra.mxu0 %v28579_v49 }
 0x2f6   :  { %25616 = vmatprep.subr.bf16.mxu0 %v32131_v8 }
 0x2f8   :  { %22436 = vmatmul.mubr.f32.vlgmr.msra.gmra.mrb[2].mxu0 %v1214_v48  ;;  %v32141_v48 = vand.u32 4294901760, %v28425_v42  ;;  %v32147_v42 = vand.u32 4294901760, %v28522_v9  ;;  %v28107_v9 = vmov 32  }
 0x2f9   :  { %25618 = vmatpush3.bf16.msra.mxu0 %v25617_v32  ;;  %22470 = vmatprep.mubr.msk.f32.mxu0 %vm28106_vm0, %v32134_v1  ;;  %v1872_v32 = vand.u32 4294901760, %v1871_v43 }
 0x2fa   :  { %25619 = vmatprep.subr.bf16.mxu0 %v32131_v8  ;;  %v25626_v24 = vpack.c.bf16 %v32142_v21, %v32141_v48  ;;  %v25635_v46 = vpack.c.bf16 %v32147_v42, %v1309_v11  ;;  %27984 = vset.pattern.permute.xlu0 %v28107_v9 }
 0x2fb   :  { %27985 = vset.pattern.permute.xlu1 %v28107_v9 }
 0x2fd   :  { %25621 = vmatpush3.bf16.msra.mxu0 %v25620_v3  ;;  %v1873_v3 = vsub.f32 %v1871_v43, %v1872_v32 }
 0x2fe   :  { %25622 = vmatprep.subr.bf16.mxu0 %v32131_v8 }
 0x2ff   :  { %v1874_v48 = vand.u32 4294901760, %v1873_v3 }
 0x301   :  { %25624 = vmatpush3.bf16.msra.mxu0 %v25623_v27 }
 0x302   :  { %25625 = vmatprep.subr.bf16.mxu0 %v32131_v8 }
 0x305   :  { %25627 = vmatpush3.bf16.msra.mxu0 %v25626_v24 }
 0x306   :  { %25628 = vmatprep.subr.bf16.mxu0 %v32131_v8 }
 0x309   :  { %25630 = vmatpush3.bf16.msra.mxu0 %v25629_v13 }
 0x30a   :  { %25631 = vmatprep.subr.bf16.mxu0 %v32131_v8 }
 0x30d   :  { %25633 = vmatpush3.bf16.msra.mxu0 %v25632_v10 }
 0x30e   :  { %25634 = vmatprep.subr.bf16.mxu0 %v32131_v8 }
 0x311   :  { %25636 = vmatpush3.bf16.msra.mxu0 %v25635_v46 }
 0x312   :  { %25637 = vmatprep.subr.bf16.mxu0 %v32131_v8 }
 0x315   :  { %25639 = vmatpush3.bf16.msra.mxu0 %v28677_v52 }
 0x316   :  { %25640 = vmatprep.subr.bf16.mxu0 %v32131_v8 }
 0x318   :  { %22471 = vmatmul.mubr.f32.vlgmr.msra.gmra.mrb[2].mxu0 %v28592_v14 }
 0x319   :  { %25642 = vmatpush3.bf16.msra.mxu0 %v28398_v22  ;;  %22505 = vmatprep.mubr.msk.f32.mxu0 %vm28106_vm0, %v32134_v1 }
 0x31a   :  { %25643 = vmatprep.subr.bf16.mxu0 %v32131_v8 }
 0x31d   :  { %25645 = vmatpush3.bf16.msra.mxu0 %v28452_v30 }
 0x31e   :  { %25646 = vmatprep.subr.bf16.mxu0 %v32131_v8 }
 0x321   :  { %25648 = vmatpush3.bf16.msra.mxu0 %v28518_v44  ;;  %v61_v44 = vld [vmem:[%s31938_s7] sm:$0xff] }
 0x322   :  { %25649 = vmatprep.subr.bf16.mxu0 %v32131_v8  ;;  %v1784_v11 = vand.u32 4294901760, %v61_v44 }
 0x324   :  { %v1864_v41 = vsub.f32 %v61_v44, %v1784_v11 }
 0x325   :  { %25651 = vmatpush3.bf16.msra.mxu0 %v28543_v4  ;;  %v28710_v4 = vpack.c.bf16 %v1787_v33, %v1784_v11 }
 0x326   :  { %25652 = vmatprep.subr.bf16.mxu0 %v32131_v8  ;;  %v1865_v31 = vand.u32 4294901760, %v1864_v41  ;;  %v28728_v42 = vpack.c.bf16 %v1871_v43, %v1864_v41 }
 0x327   :  { %25666 = vmatpush3.bf16.msra.mxu1 %v28710_v4 }
 0x328   :  { %25667 = vmatprep.subr.bf16.mxu1 %v32131_v8  ;;  %v1866_v2 = vsub.f32 %v1864_v41, %v1865_v31  ;;  %v28732_v9 = vpack.c.bf16 %v1872_v32, %v1865_v31  ;;  %v58_v41 = vld [vmem:[%s31939_s6 + $0x8] sm:$0xff]  ;;  %v59_v31 = vld [vmem:[%s31939_s6 + $0x10] sm:$0xff]  ;;  %v60_v32 = vld [vmem:[%s31939_s6 + $0x18] sm:$0xff] }
 0x329   :  { %25654 = vmatpush3.bf16.msra.mxu0 %v28555_v51  ;;  %v63_v51 = vld [vmem:[%s31938_s7 + $0x10] sm:$0xff]  ;;  %v2283_v3 = vand.u32 4294901760, %v60_v32 }
 0x32a   :  { %25655 = vmatprep.subr.bf16.mxu0 %v32131_v8  ;;  %v1867_v27 = vand.u32 4294901760, %v1866_v2  ;;  %v2280_v2 = vand.u32 4294901760, %v59_v31 }
 0x32c   :  { %v28724_v5 = vpack.c.bf16 %v1874_v48, %v1867_v27  ;;  %v28785_v27 = vpack.c.bf16 %v2283_v3, %v2280_v2 }
 0x32d   :  { %25657 = vmatpush3.bf16.msra.mxu0 %v28565_v36  ;;  %v64_v36 = vld [vmem:[%s31938_s7 + $0x18] sm:$0xff] }
 0x32e   :  { %25658 = vmatprep.subr.bf16.mxu0 %v32131_v8  ;;  %32148 = vst [vmem:[#allocation27_spill] sm:$0xff] %v28785_v27 }
 0x331   :  { %25660 = vmatpush3.bf16.msra.mxu0 %v28575_v39  ;;  %v1790_v39 = vand.u32 4294901760, %v63_v51 }
 0x332   :  { %25661 = vmatprep.subr.bf16.mxu0 %v32131_v8 }
 0x333   :  { %v1878_v16 = vsub.f32 %v63_v51, %v1790_v39  ;;  %v2277_v51 = vand.u32 4294901760, %v58_v41 }
 0x335   :  { %25663 = vmatpush3.bf16.msra.mxu0 %v28579_v49  ;;  %v1879_v21 = vand.u32 4294901760, %v1878_v16 }
 0x336   :  { %25820 = vmatprep.subr.bf16.mxu0 %v32131_v8 }
 0x337   :  { %v1880_v12 = vsub.f32 %v1878_v16, %v1879_v21 }
 0x338   :  { %22506 = vmatmul.mubr.f32.vlgmr.msra.gmra.mrb[2].mxu0 %v28592_v14  ;;  %v1793_v14 = vand.u32 4294901760, %v64_v36 }
 0x339   :  { %22738 = vmatprep.mubr.msk.f32.mxu0 %vm28106_vm0, %v32134_v1  ;;  %v1881_v25 = vand.u32 4294901760, %v1880_v12  ;;  %v2375_v12 = vsub.f32 %v60_v32, %v2283_v3 }
 0x33a   :  { %v28720_v7 = vpack.c.bf16 %v1793_v14, %v1790_v39  ;;  %v1885_v18 = vsub.f32 %v64_v36, %v1793_v14  ;;  %v2361_v14 = vsub.f32 %v58_v41, %v2277_v51 }
 0x33c   :  { %25669 = vmatpush3.bf16.msra.mxu1 %v28720_v7  ;;  %v1886_v24 = vand.u32 4294901760, %v1885_v18  ;;  %v28730_v46 = vpack.c.bf16 %v1885_v18, %v1878_v16 }
 0x33d   :  { %25670 = vmatprep.subr.bf16.mxu1 %v32131_v8 }
 0x33e   :  { %v1887_v13 = vsub.f32 %v1885_v18, %v1886_v24  ;;  %v2362_v18 = vand.u32 4294901760, %v2361_v14 }
 0x340   :  { %v1888_v26 = vand.u32 4294901760, %v1887_v13 }
 0x342   :  { %v28726_v10 = vpack.c.bf16 %v1888_v26, %v1881_v25 }
 0x393   :  { %v1218_v37 = vpop.f32.mrb[2].mxu1 }
 0x394   :  { %v22332_v22 = vpop.f32.mrb[3].mxu1 }
 0x40b   :  { %v1768_v30 = vpop.f32.mrb[2].mxu0 }
 0x40c   :  { %v27613_v54 = vadd.f32 %v1768_v30, %v1218_v37  ;;  %v22507_v47 = vpop.f32.mrb[3].mxu0  ;;  %v28734_v37 = vpack.c.bf16 %v1886_v24, %v1879_v21  ;;  %v2363_v21 = vsub.f32 %v2361_v14, %v2362_v18  ;;  %v2368_v24 = vsub.f32 %v59_v31, %v2280_v2 }
 0x40e   :  { %27988 = vrcp.f32 %v27613_v54  ;;  %v2364_v25 = vand.u32 4294901760, %v2363_v21  ;;  %v2369_v26 = vand.u32 4294901760, %v2368_v24 }
 0x418   :  { %v27989_v28 = vpop.eup %27988 }
 0x419   :  { %1775 = vperm.xlu0 %27984, %v27989_v28  }
 0x498   :  { %v1776_v22 = vpop.permute.xlu0 %1775 }
 0x499   :  { %v1778_v30 = vmul.f32 %v27613_v54, %v1776_v22  ;;  %v57_v54 = vld [vmem:[%s31939_s6] sm:$0xff]  ;;  %v2376_v22 = vand.u32 4294901760, %v2375_v12 }
 0x49a   :  { %v2274_v43 = vand.u32 4294901760, %v57_v54 }
 0x49b   :  { %v1781_v47 = vsel %vm72_vm1, %v1778_v30, 0 }
 0x49c   :  { %v1852_v28 = vand.u32 4294901760, %v1781_v47  ;;  %v28775_v36 = vpack.c.bf16 %v2277_v51, %v2274_v43  ;;  %v2354_v39 = vsub.f32 %v57_v54, %v2274_v43  ;;  %v28795_v54 = vpack.c.bf16 %v2375_v12, %v2368_v24 }
 0x49d   :  { %v28799_v43 = vpack.c.bf16 %v2376_v22, %v2369_v26 }
 0x49e   :  { %v1853_v44 = vsub.f32 %v1781_v47, %v1852_v28  ;;  %v2355_v16 = vand.u32 4294901760, %v2354_v39  ;;  %v2370_v47 = vsub.f32 %v2368_v24, %v2369_v26  ;;  %32152 = vst [vmem:[#allocation31_spill] sm:$0xff] %v28795_v54 }
 0x49f   :  { %32154 = vst [vmem:[#allocation33_spill] sm:$0xff] %v28799_v43 }
 0x4a0   :  { %v1854_v45 = vand.u32 4294901760, %v1853_v44  ;;  %v2356_v48 = vsub.f32 %v2354_v39, %v2355_v16  ;;  %v28797_v41 = vpack.c.bf16 %v2362_v18, %v2355_v16  ;;  %v1779_v16 = vld [vmem:[%s31940_s1] sm:$0xff] }
 0x4a2   :  { %v1855_v11 = vsub.f32 %v1853_v44, %v1854_v45  ;;  %v2357_v13 = vand.u32 4294901760, %v2356_v48  ;;  %32153 = vst [vmem:[#allocation32_spill] sm:$0xff] %v28797_v41 }
 0x4a4   :  { %v1856_v33 = vand.u32 4294901760, %v1855_v11  ;;  %v28789_v30 = vpack.c.bf16 %v2364_v25, %v2357_v13 }
 0x4a6   :  { %22517 = vmatmul.mubr.f32.vlgmr.msra.gmra.mrb[4].mxu1 %v1856_v33  ;;  %32149 = vst [vmem:[#allocation28_spill] sm:$0xff] %v28789_v30  ;;  %v28793_v33 = vpack.c.bf16 %v2361_v14, %v2354_v39 }
 0x4a7   :  { %25672 = vmatpush3.bf16.msra.mxu1 %v28724_v5  ;;  %22527 = vmatprep.mubr.msk.f32.mxu1 %vm28106_vm0, %v32134_v1 }
 0x4a8   :  { %25673 = vmatprep.subr.bf16.mxu1 %v32131_v8  ;;  %32151 = vst [vmem:[#allocation30_spill] sm:$0xff] %v28793_v33 }
 0x4ab   :  { %25675 = vmatpush3.bf16.msra.mxu1 %v28726_v10 }
 0x4ac   :  { %25676 = vmatprep.subr.bf16.mxu1 %v32131_v8 }
 0x4ae   :  { %22528 = vmatmul.mubr.f32.vlgmr.msra.gmra.mrb[6].mxu1 %v1852_v28 }
 0x4af   :  { %25678 = vmatpush3.bf16.msra.mxu1 %v28728_v42  ;;  %22538 = vmatprep.mubr.msk.f32.mxu1 %vm28106_vm0, %v32134_v1 }
 0x4b0   :  { %25679 = vmatprep.subr.bf16.mxu1 %v32131_v8 }
 0x4b3   :  { %25681 = vmatpush3.bf16.msra.mxu1 %v28730_v46 }
 0x4b4   :  { %25682 = vmatprep.subr.bf16.mxu1 %v32131_v8 }
 0x4b6   :  { %22539 = vmatmul.mubr.f32.vlgmr.msra.gmra.mrb[8].mxu1 %v1853_v44  ;;  %v2371_v44 = vand.u32 4294901760, %v2370_v47 }
 0x4b7   :  { %25684 = vmatpush3.bf16.msra.mxu1 %v28710_v4  ;;  %22549 = vmatprep.mubr.msk.f32.mxu1 %vm28106_vm0, %v32134_v1 }
 0x4b8   :  { %25685 = vmatprep.subr.bf16.mxu1 %v32131_v8 }
 0x4bb   :  { %25687 = vmatpush3.bf16.msra.mxu1 %v28720_v7 }
 0x4bc   :  { %25688 = vmatprep.subr.bf16.mxu1 %v32131_v8 }
 0x4be   :  { %22550 = vmatmul.mubr.f32.vlgmr.msra.gmra.mrb[10].mxu1 %v1854_v45 }
 0x4bf   :  { %25690 = vmatpush3.bf16.msra.mxu1 %v28732_v9  ;;  %22560 = vmatprep.mubr.msk.f32.mxu1 %vm28106_vm0, %v32134_v1 }
 0x4c0   :  { %25691 = vmatprep.subr.bf16.mxu1 %v32131_v8 }
 0x4c3   :  { %25693 = vmatpush3.bf16.msra.mxu1 %v28734_v37 }
 0x4c4   :  { %25694 = vmatprep.subr.bf16.mxu1 %v32131_v8 }
 0x4c6   :  { %22561 = vmatmul.mubr.f32.vlgmr.msra.gmra.mrb[12].mxu1 %v1852_v28 }
 0x4c7   :  { %25696 = vmatpush3.bf16.msra.mxu1 %v28710_v4  ;;  %22571 = vmatprep.mubr.msk.f32.mxu1 %vm28106_vm0, %v32134_v1 }
 0x4c8   :  { %25697 = vmatprep.subr.bf16.mxu1 %v32131_v8 }
 0x4cb   :  { %25699 = vmatpush3.bf16.msra.mxu1 %v28720_v7 }
 0x4cc   :  { %25700 = vmatprep.subr.bf16.mxu1 %v32131_v8 }
 0x4ce   :  { %22572 = vmatmul.mubr.f32.vlgmr.msra.gmra.mrb[14].mxu1 %v1852_v28  ;;  %v2377_v28 = vsub.f32 %v2375_v12, %v2376_v22 }
 0x4cf   :  { %22582 = vmatprep.mubr.msk.f32.mxu1 %vm28106_vm0, %v32134_v1  ;;  %25702 = vmatpush3.bf16.msra.mxu1 %v28775_v36 }
 0x4d0   :  { %25703 = vmatprep.subr.bf16.mxu1 %v32131_v8  ;;  %v2378_v45 = vand.u32 4294901760, %v2377_v28 }
 0x4d2   :  { %v28791_v11 = vpack.c.bf16 %v2378_v45, %v2371_v44 }
 0x4d3   :  { %25705 = vmatpush3.bf16.msra.mxu1 %v28785_v27 }
 0x4d4   :  { %25706 = vmatprep.subr.bf16.mxu1 %v32131_v8  ;;  %32150 = vst [vmem:[#allocation29_spill] sm:$0xff] %v28791_v11 }
 0x579   :  { %v1858_v51 = vpop.f32.mrb[4].mxu1 }
 0x57a   :  { %v22518_v31 = vpop.f32.mrb[5].mxu1 }
 0x581   :  { %v1949_v32 = vpop.f32.mrb[6].mxu1 }
 0x582   :  { %v1950_v2 = vadd.f32 %v1949_v32, %v1858_v51  ;;  %v22529_v3 = vpop.f32.mrb[7].mxu1 }
 0x589   :  { %v2029_v48 = vpop.f32.mrb[8].mxu1 }
 0x58a   :  { %v2030_v21 = vadd.f32 %v2029_v48, %v1950_v2  ;;  %v22540_v13 = vpop.f32.mrb[9].mxu1 }
 0x591   :  { %v2106_v25 = vpop.f32.mrb[10].mxu1 }
 0x592   :  { %v2107_v47 = vadd.f32 %v2106_v25, %v2030_v21  ;;  %v22551_v28 = vpop.f32.mrb[11].mxu1 }
 0x599   :  { %v2189_v44 = vpop.f32.mrb[12].mxu1 }
 0x59a   :  { %v2190_v39 = vadd.f32 %v2189_v44, %v2107_v47  ;;  %v22562_v14 = vpop.f32.mrb[13].mxu1 }
 0x5a1   :  { %v2264_v18 = vpop.f32.mrb[14].mxu1 }
 0x5a2   :  { %v2265_v24 = vadd.f32 %v2264_v18, %v2190_v39  ;;  %v22573_v12 = vpop.f32.mrb[15].mxu1 }
 0x5a4   :  { %v2268_v26 = vadd.f32 %v2265_v24, %v1779_v16 }
 0x5a6   :  { %v2269_v22 = vmax.f32 %v2268_v26, 0.0 }
 0x5a8   :  { %v2271_v45 = vsel %vm72_vm1, %v2269_v22, 0 }
 0x5a9   :  { %v2342_v51 = vand.u32 4294901760, %v2271_v45 }
 0x5ab   :  { %v2343_v31 = vsub.f32 %v2271_v45, %v2342_v51  ;;  %v28844_v45 = vld [vmem:[%s31941_s8] ss:$0 sm:$0xff] }
 0x5ac   :  { %32155 = vst [vmem:[#allocation34_spill] sm:$0xff] %v28844_v45 }
 0x5ad   :  { %v2344_v32 = vand.u32 4294901760, %v2343_v31 }
 0x5af   :  { %v2345_v2 = vsub.f32 %v2343_v31, %v2344_v32 }
 0x5b1   :  { %v2346_v3 = vand.u32 4294901760, %v2345_v2 }
 0x5b3   :  { %22583 = vmatmul.mubr.f32.vlgmr.msra.gmra.mrb[16].mxu1 %v2346_v3 }
 0x5b4   :  { %25708 = vmatpush3.bf16.msra.mxu1 %v28789_v30  ;;  %22593 = vmatprep.mubr.msk.f32.mxu1 %vm28106_vm0, %v32134_v1 }
 0x5b5   :  { %25709 = vmatprep.subr.bf16.mxu1 %v32131_v8 }
 0x5b8   :  { %25711 = vmatpush3.bf16.msra.mxu1 %v28791_v11 }
 0x5b9   :  { %25712 = vmatprep.subr.bf16.mxu1 %v32131_v8 }
 0x5bb   :  { %22594 = vmatmul.mubr.f32.vlgmr.msra.gmra.mrb[18].mxu1 %v2342_v51 }
 0x5bc   :  { %25714 = vmatpush3.bf16.msra.mxu1 %v28793_v33  ;;  %22604 = vmatprep.mubr.msk.f32.mxu1 %vm28106_vm0, %v32134_v1 }
 0x5bd   :  { %25715 = vmatprep.subr.bf16.mxu1 %v32131_v8 }
 0x5c0   :  { %25717 = vmatpush3.bf16.msra.mxu1 %v28795_v54 }
 0x5c1   :  { %25718 = vmatprep.subr.bf16.mxu1 %v32131_v8 }
 0x5c3   :  { %22605 = vmatmul.mubr.f32.vlgmr.msra.gmra.mrb[20].mxu1 %v2343_v31 }
 0x5c4   :  { %25720 = vmatpush3.bf16.msra.mxu1 %v28775_v36  ;;  %22615 = vmatprep.mubr.msk.f32.mxu1 %vm28106_vm0, %v32134_v1 }
 0x5c5   :  { %25721 = vmatprep.subr.bf16.mxu1 %v32131_v8 }
 0x5c8   :  { %25723 = vmatpush3.bf16.msra.mxu1 %v28785_v27 }
 0x5c9   :  { %25724 = vmatprep.subr.bf16.mxu1 %v32131_v8 }
 0x5cb   :  { %22616 = vmatmul.mubr.f32.vlgmr.msra.gmra.mrb[22].mxu1 %v2344_v32 }
 0x5cc   :  { %25726 = vmatpush3.bf16.msra.mxu1 %v28797_v41  ;;  %22626 = vmatprep.mubr.msk.f32.mxu1 %vm28106_vm0, %v32134_v1 }
 0x5cd   :  { %25727 = vmatprep.subr.bf16.mxu1 %v32131_v8 }
 0x5d0   :  { %25729 = vmatpush3.bf16.msra.mxu1 %v28799_v43 }
 0x5d1   :  { %25730 = vmatprep.subr.bf16.mxu1 %v32131_v8 }
 0x5d3   :  { %22627 = vmatmul.mubr.f32.vlgmr.msra.gmra.mrb[24].mxu1 %v2342_v51 }
 0x5d4   :  { %25732 = vmatpush3.bf16.msra.mxu1 %v28775_v36  ;;  %22637 = vmatprep.mubr.msk.f32.mxu1 %vm28106_vm0, %v32134_v1 }
 0x5d5   :  { %25733 = vmatprep.subr.bf16.mxu1 %v32131_v8 }
 0x5d8   :  { %25735 = vmatpush3.bf16.msra.mxu1 %v28785_v27 }
 0x5d9   :  { %25737 = vmatprep.subr.bf16.mxu1 %v28205_v15 }
 0x5db   :  { %22638 = vmatmul.mubr.f32.vlgmr.msra.gmra.mrb[26].mxu1 %v2342_v51 }
 0x5dc   :  { %25739 = vmatpush1.bf16.msra.mxu1 %v28209_v19  ;;  %2862 = vmatprep.mubr.f32.mxu1 %v32134_v1 }
 0x5dd   :  { %25741 = vmatprep.subr.bf16.mxu1 %v28211_v20 }
 0x5e0   :  { %25743 = vmatpush1.bf16.msra.mxu1 %v28216_v23 }
 0x5e1   :  { %25745 = vmatprep.subr.bf16.mxu1 %v28225_v50 }
 0x686   :  { %v2348_v48 = vpop.f32.mrb[16].mxu1 }
 0x687   :  { %v2349_v21 = vadd.f32 %v2348_v48, %v28323_v40  ;;  %v22584_v13 = vpop.f32.mrb[17].mxu1 }
 0x68e   :  { %v2439_v25 = vpop.f32.mrb[18].mxu1 }
 0x68f   :  { %v2440_v47 = vadd.f32 %v2439_v25, %v2349_v21  ;;  %v22595_v28 = vpop.f32.mrb[19].mxu1 }
 0x696   :  { %v2519_v44 = vpop.f32.mrb[20].mxu1 }
 0x697   :  { %v2520_v39 = vadd.f32 %v2519_v44, %v2440_v47  ;;  %v22606_v14 = vpop.f32.mrb[21].mxu1 }
 0x69e   :  { %v2596_v16 = vpop.f32.mrb[22].mxu1 }
 0x69f   :  { %v2597_v18 = vadd.f32 %v2596_v16, %v2520_v39  ;;  %v22617_v24 = vpop.f32.mrb[23].mxu1 }
 0x6a6   :  { %v2679_v12 = vpop.f32.mrb[24].mxu1 }
 0x6a7   :  { %v2680_v26 = vadd.f32 %v2679_v12, %v2597_v18  ;;  %v22628_v22 = vpop.f32.mrb[25].mxu1 }
 0x6ae   :  { %v2754_v51 = vpop.f32.mrb[26].mxu1 }
 0x6af   :  { %v2755_v40 = vadd.f32 %v2754_v51, %v2680_v26  ;;  %v22639_v31 = vpop.f32.mrb[27].mxu1 }
 0x6b1   :  { %v2758_v32 = vadd.f32 %v28844_v45, %v2755_v40 }
 0x6b3   :  { %27990 = vtanh.f32 %v2758_v32  ;;  %v20736_v3 = vmul.f32 -1.442695, %v2758_v32  ;;  %v20737_v32 = vld [vmem:[%s31935_s0 + $0x8] sm:$0xff] }
 0x6b5   :  { %27992 = vpow2.f32 %v20736_v3 }
 0x6bd   :  { %v27991_v2 = vpop.eup %27990 }
 0x6be   :  { %2768 = vrot.lane.b32.xlu1 %v27991_v2, %s28108_s28 }
 0x6bf   :  { %v27993_v48 = vpop.eup %27992 }
 0x6c0   :  { %v2762_v21 = vadd.f32 1.0, %v27993_v48 }
 0x6c2   :  { %27994 = vrcp.f32 %v2762_v21 }
 0x6cc   :  { %v27995_v13 = vpop.eup %27994 }
 0x6cd   :  { %v2766_v28 = vmul.f32 0.0, %v27995_v13 }
 0x730   :  { %v2769_v25 = vpop.permute.xlu1 %2768 }
 0x731   :  { %v2771_v47 = vmul.f32 %v27995_v13, %v2769_v25 }
 0x733   :  { %2773 = vrot.lane.b32.xlu1 %v2771_v47, %s28108_s28 }
 0x7a5   :  { %v2774_v44 = vpop.permute.xlu1 %2773 }
 0x7a6   :  { %v28849_v39 = vadd.f32 %v2774_v44, %v2766_v28 }
 0x7a8   :  { %32156 = vst [vmem:[#allocation35_spill] sm:$0xff] %v28849_v39  ;;  %27996 = vtanh.f32 %v28849_v39 }
 0x7b2   :  { %v27997_v14 = vpop.eup %27996 }
 0x7b3   :  { %2779 = vrot.lane.b32.xlu1 %v27997_v14, %s28108_s28 }
 0x825   :  { %v2780_v16 = vpop.permute.xlu1 %2779 }
 0x826   :  { %v2782_v18 = vmul.f32 %v27995_v13, %v2780_v16  ;;  %v32158_v16 = vld [vmem:[#allocation23_spill] sm:$0xff] }
 0x828   :  { %2784 = vrot.lane.b32.xlu1 %v2782_v18, %s28109_s29  ;;  %v32159_v18 = vld [vmem:[#allocation24_spill] sm:$0xff] }
 0x89a   :  { %v2785_v24 = vpop.permute.xlu1 %2784 }
 0x89b   :  { %2787 = vst.msk [vmem:[#allocation2] sm:$0xff] %vm72_vm1, %v2785_v24  ;;  %v2788_v12 = vsel %vm72_vm1, %v2785_v24, 0  ;;  %v32160_v24 = vld [vmem:[#allocation25_spill] sm:$0xff] }
 0x89c   :  { %v2863_v26 = vand.u32 4294901760, %v2788_v12 }
 0x89e   :  { %v2864_v22 = vsub.f32 %v2788_v12, %v2863_v26  ;;  %v32161_v12 = vld [vmem:[#allocation26_spill] sm:$0xff] }
 0x8a0   :  { %v2865_v51 = vand.u32 4294901760, %v2864_v22 }
 0x8a2   :  { %v2866_v40 = vsub.f32 %v2864_v22, %v2865_v51 }
 0x8a4   :  { %v2867_v31 = vand.u32 4294901760, %v2866_v40 }
 0x8a6   :  { %2868 = vmatmul.mubr.f32.vlgmr.msra.gmra.mrb[28].mxu1 %v2867_v31 }
 0x8a7   :  { %25747 = vmatpush1.bf16.msra.mxu1 %v28228_v53  ;;  %2978 = vmatprep.mubr.f32.mxu1 %v32134_v1 }
 0x8a8   :  { %25749 = vmatprep.subr.bf16.mxu1 %v28231_v55 }
 0x8ab   :  { %25751 = vmatpush1.bf16.msra.mxu1 %v28235_v56 }
 0x8ac   :  { %25753 = vmatprep.subr.bf16.mxu1 %v28239_v57 }
 0x8ae   :  { %2980 = vmatmul.mubr.f32.vlgmr.msra.gmra.mrb[28].mxu1 %v2863_v26 }
 0x8af   :  { %25755 = vmatpush1.bf16.msra.mxu1 %v28243_v58  ;;  %3066 = vmatprep.mubr.f32.mxu1 %v32134_v1 }
 0x8b0   :  { %25757 = vmatprep.subr.bf16.mxu1 %v28246_v59  ;;  %v3843_v59 = vld [vmem:[%s31936_s3 + $0x68] sm:$0xff] }
 0x8b1   :  { %v3886_v57 = vand.u32 4294901760, %v3843_v59 }
 0x8b3   :  { %25759 = vmatpush1.bf16.msra.mxu1 %v28250_v60  ;;  %v3842_v60 = vld [vmem:[%s31936_s3 + $0x60] sm:$0xff] }
 0x8b4   :  { %25761 = vmatprep.subr.bf16.mxu1 %v28205_v15  ;;  %v3883_v58 = vand.u32 4294901760, %v3842_v60 }
 0x8b6   :  { %3069 = vmatmul.mubr.f32.vlgmr.msra.gmra.mrb[28].mxu1 %v2864_v22  ;;  %v3831_v22 = vld [vmem:[%s31936_s3 + $0x8] sm:$0xff] }
 0x8b7   :  { %25763 = vmatpush1.bf16.msra.mxu1 %v28209_v19  ;;  %3147 = vmatprep.mubr.f32.mxu1 %v32134_v1  ;;  %v3850_v31 = vand.u32 4294901760, %v3831_v22 }
 0x8b8   :  { %25765 = vmatprep.subr.bf16.mxu1 %v28211_v20 }
 0x8bb   :  { %25767 = vmatpush1.bf16.msra.mxu1 %v28216_v23 }
 0x8bc   :  { %25769 = vmatprep.subr.bf16.mxu1 %v28260_v61 }
 0x8be   :  { %3151 = vmatmul.mubr.f32.vlgmr.msra.gmra.mrb[28].mxu1 %v2865_v51  ;;  %v3832_v51 = vld [vmem:[%s31936_s3 + $0x10] sm:$0xff] }
 0x8bf   :  { %25771 = vmatpush1.bf16.msra.mxu1 %v28263_v62  ;;  %3245 = vmatprep.mubr.f32.mxu1 %v32134_v1 }
 0x8c0   :  { %25773 = vmatprep.subr.bf16.mxu1 %v28266_v63 }
 0x8c3   :  { %25775 = vmatpush1.bf16.msra.mxu1 %v28270_v0  ;;  %v3841_v0 = vld [vmem:[%s31936_s3 + $0x58] sm:$0xff] }
 0x8c4   :  { %25777 = vmatprep.subr.bf16.mxu1 %v28205_v15  ;;  %v3880_v62 = vand.u32 4294901760, %v3841_v0 }
 0x8c6   :  { %3247 = vmatmul.mubr.f32.vlgmr.msra.gmra.mrb[28].mxu1 %v2863_v26 }
 0x8c7   :  { %25779 = vmatpush1.bf16.msra.mxu1 %v28209_v19  ;;  %3325 = vmatprep.mubr.f32.mxu1 %v32134_v1  ;;  %v29030_v19 = vsub.f32 %v3842_v60, %v3883_v58 }
 0x8c8   :  { %25781 = vmatprep.subr.bf16.mxu1 %v28211_v20  ;;  %v29028_v20 = vpack.c.bf16 %v3886_v57, %v3883_v58 }
 0x8cb   :  { %25783 = vmatpush1.bf16.msra.mxu1 %v28216_v23  ;;  %v29026_v23 = vsub.f32 %v3841_v0, %v3880_v62 }
 0x8cc   :  { %25784 = vmatprep.subr.bf16.mxu1 %v32131_v8 }
 0x8ce   :  { %3327 = vmatmul.mubr.f32.vlgmr.msra.gmra.mrb[28].mxu1 %v2863_v26  ;;  %v3830_v26 = vld [vmem:[%s31936_s3] sm:$0xff] }
 0x8cf   :  { %25786 = vmatpush3.bf16.msra.mxu1 %v28288_v6  ;;  %22648 = vmatprep.mubr.msk.f32.mxu1 %vm28106_vm0, %v32134_v1  ;;  %v3847_v40 = vand.u32 4294901760, %v3830_v26 }
 0x8d0   :  { %25787 = vmatprep.subr.bf16.mxu1 %v32131_v8 }
 0x8d3   :  { %25789 = vmatpush3.bf16.msra.mxu1 %v28304_v17 }
 0x8d4   :  { %25790 = vmatprep.subr.bf16.mxu1 %v32131_v8 }
 0x9a1   :  { %v28890_v2 = vpop.f32.mrb[28].mxu1 }
 0x9a2   :  { %32157 = vst [vmem:[#allocation36_spill] sm:$0xff] %v28890_v2  ;;  %v3330_v3 = vpop.f32.mrb[29].mxu1 }
 0x9a3   :  { %v3335_v48 = vadd.f32 %v20737_v32, %v3330_v3  ;;  %v3833_v32 = vld [vmem:[%s31936_s3 + $0x18] sm:$0xff]  ;;  %v3853_v3 = vand.u32 4294901760, %v3832_v51 }
 0x9a5   :  { %v3336_v21 = vmax.f32 %v3335_v48, 0.0  ;;  %v3856_v48 = vand.u32 4294901760, %v3833_v32 }
 0x9a7   :  { %v3338_v13 = vsel %vm72_vm1, %v3336_v21, 0  ;;  %v28941_v21 = vpack.c.bf16 %v3850_v31, %v3847_v40 }
 0x9a8   :  { %v3409_v25 = vand.u32 4294901760, %v3338_v13 }
 0x9a9   :  { %25822 = vmatpush3.bf16.msra.mxu0 %v28941_v21 }
 0x9aa   :  { %v3410_v47 = vsub.f32 %v3338_v13, %v3409_v25  ;;  %v28943_v13 = vsub.f32 %v3830_v26, %v3847_v40  ;;  %25823 = vmatprep.subr.bf16.mxu0 %v32131_v8  ;;  %v28960_v26 = vld [vmem:[%s31937_s4] sm:$0xff] }
 0x9ab   :  { %32162 = vst [vmem:[#allocation37_spill] sm:$0xff] %v28960_v26  ;;  %v3834_v40 = vld [vmem:[%s31936_s3 + $0x20] sm:$0xff] }
 0x9ac   :  { %v3411_v28 = vand.u32 4294901760, %v3410_v47 }
 0x9ae   :  { %v3412_v44 = vsub.f32 %v3410_v47, %v3411_v28 }
 0x9b0   :  { %v3413_v14 = vand.u32 4294901760, %v3412_v44  ;;  %v28952_v44 = vpack.c.bf16 %v3856_v48, %v3853_v3 }
 0x9b2   :  { %22649 = vmatmul.mubr.f32.vlgmr.msra.gmra.mrb[30].mxu1 %v3413_v14  ;;  %25825 = vmatpush3.bf16.msra.mxu0 %v28952_v44 }
 0x9b3   :  { %25792 = vmatpush3.bf16.msra.mxu1 %v28308_v29  ;;  %22659 = vmatprep.mubr.msk.f32.mxu1 %vm28106_vm0, %v32134_v1 }
 0x9b4   :  { %25793 = vmatprep.subr.bf16.mxu1 %v32131_v8  ;;  %25826 = vmatprep.subr.bf16.mxu0 %v32131_v8 }
 0x9b7   :  { %25795 = vmatpush3.bf16.msra.mxu1 %v28310_v34 }
 0x9b8   :  { %25796 = vmatprep.subr.bf16.mxu1 %v32131_v8 }
 0x9ba   :  { %22660 = vmatmul.mubr.f32.vlgmr.msra.gmra.mrb[30].mxu1 %v3409_v25 }
 0x9bb   :  { %25798 = vmatpush3.bf16.msra.mxu1 %v32158_v16  ;;  %22670 = vmatprep.mubr.msk.f32.mxu1 %vm28106_vm0, %v32134_v1  ;;  %v3839_v16 = vld [vmem:[%s31936_s3 + $0x48] sm:$0xff] }
 0x9bc   :  { %25799 = vmatprep.subr.bf16.mxu1 %v32131_v8  ;;  %v3874_v29 = vand.u32 4294901760, %v3839_v16 }
 0x9be   :  { %v29022_v2 = vsub.f32 %v3839_v16, %v3874_v29 }
 0x9bf   :  { %25801 = vmatpush3.bf16.msra.mxu1 %v32159_v18  ;;  %v3838_v18 = vld [vmem:[%s31936_s3 + $0x40] sm:$0xff] }
 0x9c0   :  { %25802 = vmatprep.subr.bf16.mxu1 %v32131_v8  ;;  %v3871_v34 = vand.u32 4294901760, %v3838_v18 }
 0x9c2   :  { %22671 = vmatmul.mubr.f32.vlgmr.msra.gmra.mrb[30].mxu1 %v3410_v47  ;;  %v28947_v47 = vsub.f32 %v3832_v51, %v3853_v3  ;;  %v29020_v45 = vsub.f32 %v3838_v18, %v3871_v34 }
 0x9c3   :  { %25804 = vmatpush3.bf16.msra.mxu1 %v28288_v6  ;;  %22681 = vmatprep.mubr.msk.f32.mxu1 %vm28106_vm0, %v32134_v1 }
 0x9c4   :  { %25805 = vmatprep.subr.bf16.mxu1 %v32131_v8 }
 0x9c7   :  { %25807 = vmatpush3.bf16.msra.mxu1 %v28304_v17 }
 0x9c8   :  { %25808 = vmatprep.subr.bf16.mxu1 %v32131_v8 }
 0x9ca   :  { %22682 = vmatmul.mubr.f32.vlgmr.msra.gmra.mrb[30].mxu1 %v3411_v28  ;;  %v28949_v28 = vsub.f32 %v3833_v32, %v3856_v48  ;;  %v3859_v32 = vand.u32 4294901760, %v3834_v40 }
 0x9cb   :  { %25810 = vmatpush3.bf16.msra.mxu1 %v32160_v24  ;;  %22692 = vmatprep.mubr.msk.f32.mxu1 %vm28106_vm0, %v32134_v1 }
 0x9cc   :  { %25811 = vmatprep.subr.bf16.mxu1 %v32131_v8  ;;  %v29012_v56 = vsub.f32 %v3834_v40, %v3859_v32  ;;  %v29032_v40 = vsub.f32 %v3843_v59, %v3886_v57  ;;  %v32023_v57 = vand.u32 4294901760, %v28947_v47  ;;  %v32020_v59 = vand.u32 4294901760, %v28949_v28 }
 0x9ce   :  { %v3955_v0 = vsub.f32 %v28947_v47, %v32023_v57  ;;  %v32017_v18 = vand.u32 4294901760, %v29012_v56 }
 0x9cf   :  { %25813 = vmatpush3.bf16.msra.mxu1 %v32161_v12 }
 0x9d0   :  { %25814 = vmatprep.subr.bf16.mxu1 %v32131_v8 }
 0x9d2   :  { %22693 = vmatmul.mubr.f32.vlgmr.msra.gmra.mrb[30].mxu1 %v3409_v25 }
 0x9d3   :  { %25816 = vmatpush3.bf16.msra.mxu1 %v28288_v6  ;;  %22703 = vmatprep.mubr.msk.f32.mxu1 %vm28106_vm0, %v32134_v1  ;;  %v3840_v6 = vld [vmem:[%s31936_s3 + $0x50] sm:$0xff] }
 0x9d4   :  { %25817 = vmatprep.subr.bf16.mxu1 %v32131_v8  ;;  %v3877_v63 = vand.u32 4294901760, %v3840_v6 }
 0x9d6   :  { %v29002_v61 = vpack.c.bf16 %v3880_v62, %v3877_v63  ;;  %v29024_v50 = vsub.f32 %v3840_v6, %v3877_v63  ;;  %v3962_v6 = vsub.f32 %v28949_v28, %v32020_v59 }
 0x9d7   :  { %25819 = vmatpush3.bf16.msra.mxu1 %v28304_v17  ;;  %v28992_v17 = vpack.c.bf16 %v3874_v29, %v3871_v34  ;;  %v3956_v34 = vand.u32 4294901760, %v3955_v0 }
 0x9d8   :  { %25964 = vmatprep.subr.bf16.mxu1 %v32131_v8  ;;  %v3963_v16 = vand.u32 4294901760, %v3962_v6 }
 0x9da   :  { %22704 = vmatmul.mubr.f32.vlgmr.msra.gmra.mrb[30].mxu1 %v3409_v25  ;;  %v28945_v25 = vsub.f32 %v3831_v22, %v3850_v31  ;;  %v3835_v31 = vld [vmem:[%s31936_s3 + $0x28] sm:$0xff] }
 0x9db   :  { %25966 = vmatpush3.bf16.msra.mxu1 %v28710_v4  ;;  %22924 = vmatprep.mubr.msk.f32.mxu1 %vm28106_vm0, %v32134_v1  ;;  %v3862_v3 = vand.u32 4294901760, %v3835_v31 }
 0x9dc   :  { %25967 = vmatprep.subr.bf16.mxu1 %v32131_v8 }
 0x9dd   :  { %v28972_v48 = vpack.c.bf16 %v3862_v3, %v3859_v32  ;;  %v29014_v55 = vsub.f32 %v3835_v31, %v3862_v3  ;;  %v32028_v31 = vand.u32 4294901760, %v28943_v13  ;;  %v29058_v32 = vpack.c.bf16 %v3963_v16, %v3956_v34 }
 0x9de   :  { %v3969_v3 = vsub.f32 %v29012_v56, %v32017_v18 }
 0x9df   :  { %25969 = vmatpush3.bf16.msra.mxu1 %v28720_v7  ;;  %25828 = vmatpush3.bf16.msra.mxu0 %v28972_v48  ;;  %v3941_v29 = vsub.f32 %v28943_v13, %v32028_v31 }
 0x9e0   :  { %25970 = vmatprep.subr.bf16.mxu1 %v32131_v8  ;;  %25829 = vmatprep.subr.bf16.mxu0 %v32131_v8 }
 0x9e1   :  { %v3942_v58 = vand.u32 4294901760, %v3941_v29 }
 0xaad   :  { %v3821_v14 = vpop.f32.mrb[30].mxu1 }
 0xaae   :  { %v28963_v22 = vadd.f32 %v28960_v26, %v3821_v14  ;;  %v22705_v51 = vpop.f32.mrb[31].mxu1  ;;  %v3836_v14 = vld [vmem:[%s31936_s3 + $0x30] sm:$0xff] }
 0xaaf   :  { %v3837_v51 = vld [vmem:[%s31936_s3 + $0x38] sm:$0xff]  ;;  %v3865_v26 = vand.u32 4294901760, %v3836_v14 }
 0xab0   :  { %3825 = vmax.xlane.f32.xlu1 %v28963_v22  ;;  %v3868_v12 = vand.u32 4294901760, %v3837_v51 }
 0xab1   :  { %v29016_v53 = vsub.f32 %v3836_v14, %v3865_v26 }
 0xab2   :  { %v28982_v24 = vpack.c.bf16 %v3868_v12, %v3865_v26  ;;  %v29018_v39 = vsub.f32 %v3837_v51, %v3868_v12  ;;  %v32024_v26 = vand.u32 4294901760, %v28945_v25  ;;  %v32015_v12 = vand.u32 4294901760, %v29014_v55 }
 0xab3   :  { %v3970_v51 = vand.u32 4294901760, %v3969_v3  ;;  %v32021_v3 = vand.u32 4294901760, %v29022_v2 }
 0xab4   :  { %25831 = vmatpush3.bf16.msra.mxu0 %v28982_v24  ;;  %v3948_v62 = vsub.f32 %v28945_v25, %v32024_v26  ;;  %v3976_v14 = vsub.f32 %v29014_v55, %v32015_v12  ;;  %v32019_v12 = vand.u32 4294901760, %v29020_v45 }
 0xab5   :  { %25832 = vmatprep.subr.bf16.mxu0 %v32131_v8 }
 0xab6   :  { %v3949_v60 = vand.u32 4294901760, %v3948_v62  ;;  %v3977_v29 = vand.u32 4294901760, %v3976_v14  ;;  %v32016_v62 = vand.u32 4294901760, %v29016_v53 }
 0xab8   :  { %25834 = vmatpush3.bf16.msra.mxu0 %v28992_v17  ;;  %v29048_v63 = vpack.c.bf16 %v3949_v60, %v3942_v58  ;;  %v32018_v58 = vand.u32 4294901760, %v29018_v39  ;;  %v29068_v60 = vpack.c.bf16 %v3977_v29, %v3970_v51  ;;  %v3983_v0 = vsub.f32 %v29016_v53, %v32016_v62 }
 0xab9   :  { %25835 = vmatprep.subr.bf16.mxu0 %v32131_v8  ;;  %v3997_v51 = vsub.f32 %v29020_v45, %v32019_v12  ;;  %v4004_v29 = vsub.f32 %v29022_v2, %v32021_v3  ;;  %v32026_v3 = vand.u32 4294901760, %v29030_v19 }
 0xaba   :  { %v3990_v6 = vsub.f32 %v29018_v39, %v32018_v58  ;;  %v3984_v34 = vand.u32 4294901760, %v3983_v0  ;;  %v32022_v58 = vand.u32 4294901760, %v29024_v50  ;;  %v32027_v0 = vand.u32 4294901760, %v29026_v23 }
 0xabb   :  { %v3998_v62 = vand.u32 4294901760, %v3997_v51  ;;  %v4005_v18 = vand.u32 4294901760, %v4004_v29  ;;  %v32025_v51 = vand.u32 4294901760, %v29032_v40 }
 0xabc   :  { %25837 = vmatpush3.bf16.msra.mxu0 %v29002_v61  ;;  %v3991_v16 = vand.u32 4294901760, %v3990_v6 }
 0xabd   :  { %25838 = vmatprep.subr.bf16.mxu0 %v32131_v8  ;;  %v29088_v6 = vpack.c.bf16 %v4005_v18, %v3998_v62  ;;  %v4025_v18 = vsub.f32 %v29030_v19, %v32026_v3  ;;  %v4032_v62 = vsub.f32 %v29032_v40, %v32025_v51 }
 0xabe   :  { %v29078_v14 = vpack.c.bf16 %v3991_v16, %v3984_v34  ;;  %v4011_v34 = vsub.f32 %v29024_v50, %v32022_v58  ;;  %v4018_v16 = vsub.f32 %v29026_v23, %v32027_v0 }
 0xabf   :  { %v4026_v58 = vand.u32 4294901760, %v4025_v18  ;;  %v4033_v57 = vand.u32 4294901760, %v4032_v62  ;;  %v29134_v18 = vpack.c.bf16 %v29032_v40, %v29030_v19 }
 0xac0   :  { %25840 = vmatpush3.bf16.msra.mxu0 %v29028_v20  ;;  %v4012_v12 = vand.u32 4294901760, %v4011_v34  ;;  %v4019_v59 = vand.u32 4294901760, %v4018_v16  ;;  %v29110_v34 = vpack.c.bf16 %v28945_v25, %v28943_v13  ;;  %v29122_v16 = vpack.c.bf16 %v29018_v39, %v29016_v53 }
 0xac1   :  { %25841 = vmatprep.subr.bf16.mxu0 %v32131_v8  ;;  %v29106_v26 = vpack.c.bf16 %v4033_v57, %v4026_v58  ;;  %v29126_v57 = vpack.c.bf16 %v29022_v2, %v29020_v45  ;;  %v29130_v58 = vpack.c.bf16 %v29026_v23, %v29024_v50 }
 0xac2   :  { %v29098_v29 = vpack.c.bf16 %v4019_v59, %v4012_v12  ;;  %v29114_v59 = vpack.c.bf16 %v28949_v28, %v28947_v47  ;;  %v29118_v12 = vpack.c.bf16 %v29014_v55, %v29012_v56 }
 0xac4   :  { %25843 = vmatpush3.bf16.msra.mxu0 %v28579_v49 }
 0xac5   :  { %25844 = vmatprep.subr.bf16.mxu0 %v32131_v8 }
 0xb3d   :  { %v3826_v62 = vpop.xlane.xlu1 %3825 }
 0xb3e   :  { %v3827_v51 = vsub.f32 %v28963_v22, %v3826_v62 }
 0xb40   :  { %v3828_v3 = vmul.f32 1.442695, %v3827_v51 }
 0xb42   :  { %27998 = vpow2.f32 %v3828_v3 }
 0xb4c   :  { %v27999_v0 = vpop.eup %27998 }
 0xb4d   :  { %v29137_v31 = vand.u32 4294901760, %v27999_v0 }
 0xb4f   :  { %v3928_v15 = vsub.f32 %v27999_v0, %v29137_v31 }
 0xb51   :  { %v3929_v43 = vand.u32 4294901760, %v3928_v15 }
 0xb53   :  { %v3930_v41 = vsub.f32 %v3928_v15, %v3929_v43 }
 0xb55   :  { %v3931_v54 = vand.u32 4294901760, %v3930_v41  ;;  %v32166_v41 = vand.u32 4294901760, %v28949_v28  ;;  %v32170_v28 = vand.u32 4294901760, %v29018_v39  ;;  %v32174_v39 = vand.u32 4294901760, %v29026_v23 }
 0xb57   :  { %22739 = vmatmul.mubr.f32.vlgmr.msra.gmra.mrb[4].mxu0 %v3931_v54  ;;  %v32165_v54 = vand.u32 4294901760, %v28947_v47  ;;  %v32169_v47 = vand.u32 4294901760, %v29016_v53  ;;  %v32173_v53 = vand.u32 4294901760, %v29024_v50 }
 0xb58   :  { %25846 = vmatpush3.bf16.msra.mxu0 %v29048_v63  ;;  %22773 = vmatprep.mubr.msk.f32.mxu0 %vm28106_vm0, %v32134_v1 }
 0xb59   :  { %25847 = vmatprep.subr.bf16.mxu0 %v32131_v8  ;;  %v29206_v22 = vpack.c.bf16 %v32166_v41, %v32165_v54  ;;  %v29224_v3 = vpack.c.bf16 %v32170_v28, %v32169_v47  ;;  %v29240_v51 = vpack.c.bf16 %v32174_v39, %v32173_v53 }
 0xb5c   :  { %25849 = vmatpush3.bf16.msra.mxu0 %v29058_v32 }
 0xb5d   :  { %25850 = vmatprep.subr.bf16.mxu0 %v32131_v8 }
 0xb60   :  { %25852 = vmatpush3.bf16.msra.mxu0 %v29068_v60 }
 0xb61   :  { %25853 = vmatprep.subr.bf16.mxu0 %v32131_v8 }
 0xb64   :  { %25855 = vmatpush3.bf16.msra.mxu0 %v29078_v14 }
 0xb65   :  { %25856 = vmatprep.subr.bf16.mxu0 %v32131_v8 }
 0xb68   :  { %25858 = vmatpush3.bf16.msra.mxu0 %v29088_v6 }
 0xb69   :  { %25859 = vmatprep.subr.bf16.mxu0 %v32131_v8 }
 0xb6c   :  { %25861 = vmatpush3.bf16.msra.mxu0 %v29098_v29 }
 0xb6d   :  { %25862 = vmatprep.subr.bf16.mxu0 %v32131_v8 }
 0xb70   :  { %25864 = vmatpush3.bf16.msra.mxu0 %v29106_v26 }
 0xb71   :  { %25865 = vmatprep.subr.bf16.mxu0 %v32131_v8 }
 0xb74   :  { %25867 = vmatpush3.bf16.msra.mxu0 %v28569_v35  ;;  %v32164_v35 = vand.u32 4294901760, %v28945_v25  ;;  %v32168_v25 = vand.u32 4294901760, %v29014_v55  ;;  %v32172_v55 = vand.u32 4294901760, %v29022_v2  ;;  %v32176_v2 = vand.u32 4294901760, %v29032_v40 }
 0xb75   :  { %25868 = vmatprep.subr.bf16.mxu0 %v32131_v8 }
 0xb77   :  { %22774 = vmatmul.mubr.f32.vlgmr.msra.gmra.mrb[4].mxu0 %v29137_v31 }
 0xb78   :  { %25870 = vmatpush3.bf16.msra.mxu0 %v29110_v34  ;;  %22808 = vmatprep.mubr.msk.f32.mxu0 %vm28106_vm0, %v32134_v1 }
 0xb79   :  { %25871 = vmatprep.subr.bf16.mxu0 %v32131_v8 }
 0xb7c   :  { %25873 = vmatpush3.bf16.msra.mxu0 %v29114_v59 }
 0xb7d   :  { %25874 = vmatprep.subr.bf16.mxu0 %v32131_v8 }
 0xb80   :  { %25876 = vmatpush3.bf16.msra.mxu0 %v29118_v12 }
 0xb81   :  { %25877 = vmatprep.subr.bf16.mxu0 %v32131_v8 }
 0xb84   :  { %25879 = vmatpush3.bf16.msra.mxu0 %v29122_v16 }
 0xb85   :  { %25880 = vmatprep.subr.bf16.mxu0 %v32131_v8 }
 0xb88   :  { %25882 = vmatpush3.bf16.msra.mxu0 %v29126_v57 }
 0xb89   :  { %25883 = vmatprep.subr.bf16.mxu0 %v32131_v8 }
 0xb8c   :  { %25885 = vmatpush3.bf16.msra.mxu0 %v29130_v58 }
 0xb8d   :  { %25886 = vmatprep.subr.bf16.mxu0 %v32131_v8 }
 0xb90   :  { %25888 = vmatpush3.bf16.msra.mxu0 %v29134_v18 }
 0xb91   :  { %25889 = vmatprep.subr.bf16.mxu0 %v32131_v8 }
 0xb94   :  { %25891 = vmatpush3.bf16.msra.mxu0 %v28614_v38 }
 0xb95   :  { %25892 = vmatprep.subr.bf16.mxu0 %v32131_v8 }
 0xb97   :  { %22809 = vmatmul.mubr.f32.vlgmr.msra.gmra.mrb[4].mxu0 %v3928_v15  ;;  %v32163_v15 = vand.u32 4294901760, %v28943_v13  ;;  %v32167_v13 = vand.u32 4294901760, %v29012_v56  ;;  %v32171_v56 = vand.u32 4294901760, %v29020_v45  ;;  %v32175_v45 = vand.u32 4294901760, %v29030_v19 }
 0xb98   :  { %25894 = vmatpush3.bf16.msra.mxu0 %v28941_v21  ;;  %22843 = vmatprep.mubr.msk.f32.mxu0 %vm28106_vm0, %v32134_v1 }
 0xb99   :  { %25895 = vmatprep.subr.bf16.mxu0 %v32131_v8  ;;  %v29198_v38 = vpack.c.bf16 %v32164_v35, %v32163_v15  ;;  %v29232_v0 = vpack.c.bf16 %v32172_v55, %v32171_v56  ;;  %v29248_v62 = vpack.c.bf16 %v32176_v2, %v32175_v45 }
 0xb9c   :  { %25897 = vmatpush3.bf16.msra.mxu0 %v28952_v44 }
 0xb9d   :  { %25898 = vmatprep.subr.bf16.mxu0 %v32131_v8 }
 0xba0   :  { %25900 = vmatpush3.bf16.msra.mxu0 %v28972_v48 }
 0xba1   :  { %25901 = vmatprep.subr.bf16.mxu0 %v32131_v8 }
 0xba4   :  { %25903 = vmatpush3.bf16.msra.mxu0 %v28982_v24 }
 0xba5   :  { %25904 = vmatprep.subr.bf16.mxu0 %v32131_v8 }
 0xba8   :  { %25906 = vmatpush3.bf16.msra.mxu0 %v28992_v17 }
 0xba9   :  { %25907 = vmatprep.subr.bf16.mxu0 %v32131_v8 }
 0xbac   :  { %25909 = vmatpush3.bf16.msra.mxu0 %v29002_v61 }
 0xbad   :  { %25910 = vmatprep.subr.bf16.mxu0 %v32131_v8 }
 0xbb0   :  { %25912 = vmatpush3.bf16.msra.mxu0 %v29028_v20 }
 0xbb1   :  { %25913 = vmatprep.subr.bf16.mxu0 %v32131_v8 }
 0xbb4   :  { %25915 = vmatpush3.bf16.msra.mxu0 %v28579_v49 }
 0xbb5   :  { %25916 = vmatprep.subr.bf16.mxu0 %v32131_v8 }
 0xbb7   :  { %22844 = vmatmul.mubr.f32.vlgmr.msra.gmra.mrb[4].mxu0 %v3929_v43  ;;  %v29216_v43 = vpack.c.bf16 %v32168_v25, %v32167_v13 }
 0xbb8   :  { %25918 = vmatpush3.bf16.msra.mxu0 %v29198_v38  ;;  %22878 = vmatprep.mubr.msk.f32.mxu0 %vm28106_vm0, %v32134_v1 }
 0xbb9   :  { %25919 = vmatprep.subr.bf16.mxu0 %v32131_v8 }
 0xbbc   :  { %25921 = vmatpush3.bf16.msra.mxu0 %v29206_v22 }
 0xbbd   :  { %25922 = vmatprep.subr.bf16.mxu0 %v32131_v8 }
 0xbc0   :  { %25924 = vmatpush3.bf16.msra.mxu0 %v29216_v43 }
 0xbc1   :  { %25925 = vmatprep.subr.bf16.mxu0 %v32131_v8 }
 0xbc4   :  { %25927 = vmatpush3.bf16.msra.mxu0 %v29224_v3 }
 0xbc5   :  { %25928 = vmatprep.subr.bf16.mxu0 %v32131_v8 }
 0xbc8   :  { %25930 = vmatpush3.bf16.msra.mxu0 %v29232_v0 }
 0xbc9   :  { %25931 = vmatprep.subr.bf16.mxu0 %v32131_v8 }
 0xbcc   :  { %25933 = vmatpush3.bf16.msra.mxu0 %v29240_v51 }
 0xbcd   :  { %25934 = vmatprep.subr.bf16.mxu0 %v32131_v8 }
 0xbd0   :  { %25936 = vmatpush3.bf16.msra.mxu0 %v29248_v62 }
 0xbd1   :  { %25937 = vmatprep.subr.bf16.mxu0 %v32131_v8 }
 0xbd4   :  { %25939 = vmatpush3.bf16.msra.mxu0 %v28677_v52 }
 0xbd5   :  { %25940 = vmatprep.subr.bf16.mxu0 %v32131_v8 }
 0xbd7   :  { %22879 = vmatmul.mubr.f32.vlgmr.msra.gmra.mrb[4].mxu0 %v29137_v31 }
 0xbd8   :  { %25942 = vmatpush3.bf16.msra.mxu0 %v28941_v21  ;;  %22913 = vmatprep.mubr.msk.f32.mxu0 %vm28106_vm0, %v32134_v1 }
 0xbd9   :  { %25943 = vmatprep.subr.bf16.mxu0 %v32131_v8 }
 0xbdc   :  { %25945 = vmatpush3.bf16.msra.mxu0 %v28952_v44 }
 0xbdd   :  { %25946 = vmatprep.subr.bf16.mxu0 %v32131_v8 }
 0xbe0   :  { %25948 = vmatpush3.bf16.msra.mxu0 %v28972_v48 }
 0xbe1   :  { %25949 = vmatprep.subr.bf16.mxu0 %v32131_v8 }
 0xbe4   :  { %25951 = vmatpush3.bf16.msra.mxu0 %v28982_v24 }
 0xbe5   :  { %25952 = vmatprep.subr.bf16.mxu0 %v32131_v8 }
 0xbe8   :  { %25954 = vmatpush3.bf16.msra.mxu0 %v28992_v17 }
 0xbe9   :  { %25955 = vmatprep.subr.bf16.mxu0 %v32131_v8 }
 0xbec   :  { %25957 = vmatpush3.bf16.msra.mxu0 %v29002_v61 }
 0xbed   :  { %25958 = vmatprep.subr.bf16.mxu0 %v32131_v8 }
 0xbf0   :  { %25960 = vmatpush3.bf16.msra.mxu0 %v29028_v20 }
 0xbf1   :  { %25961 = vmatprep.subr.bf16.mxu0 %v32131_v8 }
 0xbf4   :  { %25963 = vmatpush3.bf16.msra.mxu0 %v28579_v49 }
 0xbf5   :  { %26120 = vmatprep.subr.bf16.mxu0 %v32131_v8 }
 0xbf7   :  { %22914 = vmatmul.mubr.f32.vlgmr.msra.gmra.mrb[4].mxu0 %v29137_v31 }
 0xbf8   :  { %26122 = vmatpush3.bf16.msra.mxu0 %v28941_v21  ;;  %23146 = vmatprep.mubr.msk.f32.mxu0 %vm28106_vm0, %v32134_v1 }
 0xbf9   :  { %26123 = vmatprep.subr.bf16.mxu0 %v32131_v8 }
 0xbfc   :  { %26125 = vmatpush3.bf16.msra.mxu0 %v28952_v44 }
 0xbfd   :  { %26126 = vmatprep.subr.bf16.mxu0 %v32131_v8 }
 0xc00   :  { %26128 = vmatpush3.bf16.msra.mxu0 %v28972_v48 }
 0xc01   :  { %26129 = vmatprep.subr.bf16.mxu0 %v32131_v8 }
 0xc04   :  { %26131 = vmatpush3.bf16.msra.mxu0 %v28982_v24 }
 0xc05   :  { %26132 = vmatprep.subr.bf16.mxu0 %v32131_v8 }
 0xc08   :  { %26134 = vmatpush3.bf16.msra.mxu0 %v28992_v17 }
 0xc09   :  { %26135 = vmatprep.subr.bf16.mxu0 %v32131_v8 }
 0xc0c   :  { %26137 = vmatpush3.bf16.msra.mxu0 %v29002_v61 }
 0xc0d   :  { %26138 = vmatprep.subr.bf16.mxu0 %v32131_v8 }
 0xc10   :  { %26140 = vmatpush3.bf16.msra.mxu0 %v29028_v20 }
 0xc11   :  { %26141 = vmatprep.subr.bf16.mxu0 %v32131_v8 }
 0xcca   :  { %v4483_v19 = vpop.f32.mrb[4].mxu0 }
 0xccb   :  { %28000 = vrcp.f32 %v4483_v19  ;;  %v22915_v23 = vpop.f32.mrb[5].mxu0 }
 0xcd5   :  { %v28001_v50 = vpop.eup %28000 }
 0xcd6   :  { %4490 = vperm.xlu0 %27984, %v28001_v50  }
 0xd55   :  { %v4491_v49 = vpop.permute.xlu0 %4490 }
 0xd56   :  { %v4493_v52 = vmul.f32 %v4491_v49, %v4483_v19 }
 0xd58   :  { %v4497_v40 = vsel %vm72_vm1, %v4493_v52, 0  ;;  %v20738_v52 = vld [vmem:[%s31940_s1 + $0x8] sm:$0xff] }
 0xd59   :  { %v4568_v31 = vand.u32 4294901760, %v4497_v40 }
 0xd5b   :  { %v4569_v15 = vsub.f32 %v4497_v40, %v4568_v31 }
 0xd5d   :  { %v4570_v35 = vand.u32 4294901760, %v4569_v15 }
 0xd5f   :  { %v4571_v54 = vsub.f32 %v4569_v15, %v4570_v35 }
 0xd61   :  { %v4572_v41 = vand.u32 4294901760, %v4571_v54 }
 0xd63   :  { %22925 = vmatmul.mubr.f32.vlgmr.msra.gmra.mrb[32].mxu1 %v4572_v41 }
 0xd64   :  { %25972 = vmatpush3.bf16.msra.mxu1 %v28724_v5  ;;  %22935 = vmatprep.mubr.msk.f32.mxu1 %vm28106_vm0, %v32134_v1 }
 0xd65   :  { %25973 = vmatprep.subr.bf16.mxu1 %v32131_v8 }
 0xd68   :  { %25975 = vmatpush3.bf16.msra.mxu1 %v28726_v10 }
 0xd69   :  { %25976 = vmatprep.subr.bf16.mxu1 %v32131_v8 }
 0xd6b   :  { %22936 = vmatmul.mubr.f32.vlgmr.msra.gmra.mrb[34].mxu1 %v4568_v31 }
 0xd6c   :  { %25978 = vmatpush3.bf16.msra.mxu1 %v28728_v42  ;;  %22946 = vmatprep.mubr.msk.f32.mxu1 %vm28106_vm0, %v32134_v1 }
 0xd6d   :  { %25979 = vmatprep.subr.bf16.mxu1 %v32131_v8 }
 0xd70   :  { %25981 = vmatpush3.bf16.msra.mxu1 %v28730_v46 }
 0xd71   :  { %25982 = vmatprep.subr.bf16.mxu1 %v32131_v8 }
 0xd73   :  { %22947 = vmatmul.mubr.f32.vlgmr.msra.gmra.mrb[36].mxu1 %v4569_v15 }
 0xd74   :  { %25984 = vmatpush3.bf16.msra.mxu1 %v28710_v4  ;;  %22957 = vmatprep.mubr.msk.f32.mxu1 %vm28106_vm0, %v32134_v1 }
 0xd75   :  { %25985 = vmatprep.subr.bf16.mxu1 %v32131_v8 }
 0xd78   :  { %25987 = vmatpush3.bf16.msra.mxu1 %v28720_v7 }
 0xd79   :  { %25988 = vmatprep.subr.bf16.mxu1 %v32131_v8 }
 0xd7b   :  { %22958 = vmatmul.mubr.f32.vlgmr.msra.gmra.mrb[38].mxu1 %v4570_v35 }
 0xd7c   :  { %25990 = vmatpush3.bf16.msra.mxu1 %v28732_v9  ;;  %22968 = vmatprep.mubr.msk.f32.mxu1 %vm28106_vm0, %v32134_v1 }
 0xd7d   :  { %25991 = vmatprep.subr.bf16.mxu1 %v32131_v8 }
 0xd80   :  { %25993 = vmatpush3.bf16.msra.mxu1 %v28734_v37 }
 0xd81   :  { %25994 = vmatprep.subr.bf16.mxu1 %v32131_v8 }
 0xd83   :  { %22969 = vmatmul.mubr.f32.vlgmr.msra.gmra.mrb[40].mxu1 %v4568_v31 }
 0xd84   :  { %25996 = vmatpush3.bf16.msra.mxu1 %v28710_v4  ;;  %22979 = vmatprep.mubr.msk.f32.mxu1 %vm28106_vm0, %v32134_v1 }
 0xd85   :  { %25997 = vmatprep.subr.bf16.mxu1 %v32131_v8 }
 0xd88   :  { %25999 = vmatpush3.bf16.msra.mxu1 %v28720_v7 }
 0xd89   :  { %26000 = vmatprep.subr.bf16.mxu1 %v32131_v8 }
 0xd8b   :  { %22980 = vmatmul.mubr.f32.vlgmr.msra.gmra.mrb[42].mxu1 %v4568_v31 }
 0xd8c   :  { %26002 = vmatpush3.bf16.msra.mxu1 %v28775_v36  ;;  %22990 = vmatprep.mubr.msk.f32.mxu1 %vm28106_vm0, %v32134_v1 }
 0xd8d   :  { %26003 = vmatprep.subr.bf16.mxu1 %v32131_v8 }
 0xd90   :  { %26005 = vmatpush3.bf16.msra.mxu1 %v28785_v27 }
 0xd91   :  { %26006 = vmatprep.subr.bf16.mxu1 %v32131_v8 }
 0xe36   :  { %v4574_v13 = vpop.f32.mrb[32].mxu1 }
 0xe37   :  { %v22926_v25 = vpop.f32.mrb[33].mxu1 }
 0xe3e   :  { %v4665_v47 = vpop.f32.mrb[34].mxu1 }
 0xe3f   :  { %v4666_v28 = vadd.f32 %v4665_v47, %v4574_v13  ;;  %v22937_v56 = vpop.f32.mrb[35].mxu1 }
 0xe46   :  { %v4745_v55 = vpop.f32.mrb[36].mxu1 }
 0xe47   :  { %v4746_v53 = vadd.f32 %v4745_v55, %v4666_v28  ;;  %v22948_v39 = vpop.f32.mrb[37].mxu1  ;;  %v32177_v55 = vld [vmem:[#allocation31_spill] sm:$0xff] }
 0xe48   :  { %v32179_v39 = vld [vmem:[#allocation33_spill] sm:$0xff] }
 0xe4e   :  { %v4822_v45 = vpop.f32.mrb[38].mxu1 }
 0xe4f   :  { %v4823_v2 = vadd.f32 %v4822_v45, %v4746_v53  ;;  %v22959_v19 = vpop.f32.mrb[39].mxu1  ;;  %v32178_v53 = vld [vmem:[#allocation32_spill] sm:$0xff]  ;;  %v32180_v45 = vld [vmem:[#allocation3_spill] sm:$0xff] }
 0xe50   :  { %v32182_v19 = vld [vmem:[#allocation5_spill] sm:$0xff] }
 0xe56   :  { %v4905_v23 = vpop.f32.mrb[40].mxu1 }
 0xe57   :  { %v4906_v50 = vadd.f32 %v4905_v23, %v4823_v2  ;;  %v22970_v49 = vpop.f32.mrb[41].mxu1  ;;  %v32181_v2 = vld [vmem:[#allocation4_spill] sm:$0xff]  ;;  %v32183_v23 = vld [vmem:[#allocation6_spill] sm:$0xff] }
 0xe5e   :  { %v4980_v40 = vpop.f32.mrb[42].mxu1 }
 0xe5f   :  { %v4981_v31 = vadd.f32 %v4980_v40, %v4906_v50  ;;  %v22981_v15 = vpop.f32.mrb[43].mxu1  ;;  %v32184_v50 = vld [vmem:[#allocation7_spill] sm:$0xff] }
 0xe61   :  { %v4984_v35 = vadd.f32 %v20738_v52, %v4981_v31  ;;  %v32185_v52 = vld [vmem:[#allocation36_spill] sm:$0xff] }
 0xe63   :  { %v4985_v54 = vmax.f32 %v4984_v35, 0.0 }
 0xe65   :  { %v4987_v41 = vsel %vm72_vm1, %v4985_v54, 0 }
 0xe66   :  { %v5058_v13 = vand.u32 4294901760, %v4987_v41 }
 0xe68   :  { %v5059_v25 = vsub.f32 %v4987_v41, %v5058_v13 }
 0xe6a   :  { %v5060_v47 = vand.u32 4294901760, %v5059_v25 }
 0xe6c   :  { %v5061_v28 = vsub.f32 %v5059_v25, %v5060_v47 }
 0xe6e   :  { %v5062_v56 = vand.u32 4294901760, %v5061_v28 }
 0xe70   :  { %22991 = vmatmul.mubr.f32.vlgmr.msra.gmra.mrb[44].mxu1 %v5062_v56 }
 0xe71   :  { %26008 = vmatpush3.bf16.msra.mxu1 %v28789_v30  ;;  %23001 = vmatprep.mubr.msk.f32.mxu1 %vm28106_vm0, %v32134_v1 }
 0xe72   :  { %26009 = vmatprep.subr.bf16.mxu1 %v32131_v8 }
 0xe75   :  { %26011 = vmatpush3.bf16.msra.mxu1 %v28791_v11 }
 0xe76   :  { %26012 = vmatprep.subr.bf16.mxu1 %v32131_v8 }
 0xe78   :  { %23002 = vmatmul.mubr.f32.vlgmr.msra.gmra.mrb[46].mxu1 %v5058_v13 }
 0xe79   :  { %26014 = vmatpush3.bf16.msra.mxu1 %v28793_v33  ;;  %23012 = vmatprep.mubr.msk.f32.mxu1 %vm28106_vm0, %v32134_v1 }
 0xe7a   :  { %26015 = vmatprep.subr.bf16.mxu1 %v32131_v8 }
 0xe7d   :  { %26017 = vmatpush3.bf16.msra.mxu1 %v32177_v55 }
 0xe7e   :  { %26018 = vmatprep.subr.bf16.mxu1 %v32131_v8 }
 0xe80   :  { %23013 = vmatmul.mubr.f32.vlgmr.msra.gmra.mrb[48].mxu1 %v5059_v25 }
 0xe81   :  { %26020 = vmatpush3.bf16.msra.mxu1 %v28775_v36  ;;  %23023 = vmatprep.mubr.msk.f32.mxu1 %vm28106_vm0, %v32134_v1 }
 0xe82   :  { %26021 = vmatprep.subr.bf16.mxu1 %v32131_v8 }
 0xe85   :  { %26023 = vmatpush3.bf16.msra.mxu1 %v28785_v27 }
 0xe86   :  { %26024 = vmatprep.subr.bf16.mxu1 %v32131_v8 }
 0xe88   :  { %23024 = vmatmul.mubr.f32.vlgmr.msra.gmra.mrb[50].mxu1 %v5060_v47 }
 0xe89   :  { %26026 = vmatpush3.bf16.msra.mxu1 %v32178_v53  ;;  %23034 = vmatprep.mubr.msk.f32.mxu1 %vm28106_vm0, %v32134_v1 }
 0xe8a   :  { %26027 = vmatprep.subr.bf16.mxu1 %v32131_v8 }
 0xe8d   :  { %26029 = vmatpush3.bf16.msra.mxu1 %v32179_v39 }
 0xe8e   :  { %26030 = vmatprep.subr.bf16.mxu1 %v32131_v8 }
 0xe90   :  { %23035 = vmatmul.mubr.f32.vlgmr.msra.gmra.mrb[52].mxu1 %v5058_v13 }
 0xe91   :  { %26032 = vmatpush3.bf16.msra.mxu1 %v28775_v36  ;;  %23045 = vmatprep.mubr.msk.f32.mxu1 %vm28106_vm0, %v32134_v1 }
 0xe92   :  { %26033 = vmatprep.subr.bf16.mxu1 %v32131_v8 }
 0xe95   :  { %26035 = vmatpush3.bf16.msra.mxu1 %v28785_v27 }
 0xe96   :  { %26037 = vmatprep.subr.bf16.mxu1 %v32180_v45 }
 0xe98   :  { %23046 = vmatmul.mubr.f32.vlgmr.msra.gmra.mrb[54].mxu1 %v5058_v13 }
 0xe99   :  { %26039 = vmatpush1.bf16.msra.mxu1 %v32181_v2  ;;  %5579 = vmatprep.mubr.f32.mxu1 %v32134_v1 }
 0xe9a   :  { %26041 = vmatprep.subr.bf16.mxu1 %v32182_v19 }
 0xe9d   :  { %26043 = vmatpush1.bf16.msra.mxu1 %v32183_v23 }
 0xe9e   :  { %26045 = vmatprep.subr.bf16.mxu1 %v32184_v50  ;;  %v32186_v50 = vld [vmem:[#allocation34_spill] sm:$0xff] }
 0xf43   :  { %v5064_v49 = vpop.f32.mrb[44].mxu1 }
 0xf44   :  { %v5065_v40 = vadd.f32 %v5064_v49, %v32185_v52  ;;  %v22992_v31 = vpop.f32.mrb[45].mxu1 }
 0xf4b   :  { %v5155_v15 = vpop.f32.mrb[46].mxu1 }
 0xf4c   :  { %v5156_v35 = vadd.f32 %v5155_v15, %v5065_v40  ;;  %v23003_v54 = vpop.f32.mrb[47].mxu1 }
 0xf53   :  { %v5235_v41 = vpop.f32.mrb[48].mxu1 }
 0xf54   :  { %v5236_v25 = vadd.f32 %v5235_v41, %v5156_v35  ;;  %v23014_v13 = vpop.f32.mrb[49].mxu1 }
 0xf5b   :  { %v5312_v47 = vpop.f32.mrb[50].mxu1 }
 0xf5c   :  { %v5313_v28 = vadd.f32 %v5312_v47, %v5236_v25  ;;  %v23025_v56 = vpop.f32.mrb[51].mxu1 }
 0xf63   :  { %v5395_v39 = vpop.f32.mrb[52].mxu1 }
 0xf64   :  { %v5396_v53 = vadd.f32 %v5395_v39, %v5313_v28  ;;  %v23036_v55 = vpop.f32.mrb[53].mxu1 }
 0xf65   :  { %v32187_v55 = vld [vmem:[#allocation35_spill] sm:$0xff] }
 0xf6b   :  { %v5470_v33 = vpop.f32.mrb[54].mxu1 }
 0xf6c   :  { %v5471_v11 = vadd.f32 %v5470_v33, %v5396_v53  ;;  %v23047_v30 = vpop.f32.mrb[55].mxu1 }
 0xf6e   :  { %v5474_v27 = vadd.f32 %v32186_v50, %v5471_v11 }
 0xf70   :  { %28002 = vtanh.f32 %v5474_v27  ;;  %v20739_v52 = vmul.f32 -1.442695, %v5474_v27 }
 0xf72   :  { %28004 = vpow2.f32 %v20739_v52  ;;  %v32189_v52 = vld [vmem:[#allocation9_spill] sm:$0xff] }
 0xf7a   :  { %v28003_v49 = vpop.eup %28002 }
 0xf7b   :  { %5484 = vrot.lane.b32.xlu0 %v28003_v49, %s28108_s28  ;;  %v32188_v49 = vld [vmem:[#allocation8_spill] sm:$0xff] }
 0xf7c   :  { %v28005_v40 = vpop.eup %28004 }
 0xf7d   :  { %v5478_v31 = vadd.f32 1.0, %v28005_v40  ;;  %v32190_v40 = vld [vmem:[#allocation10_spill] sm:$0xff] }
 0xf7f   :  { %28006 = vrcp.f32 %v5478_v31  ;;  %v32191_v31 = vld [vmem:[#allocation11_spill] sm:$0xff] }
 0xf89   :  { %v28007_v15 = vpop.eup %28006 }
 0xf8a   :  { %v5482_v39 = vmul.f32 %v28007_v15, %v32187_v55  ;;  %v32195_v55 = vld [vmem:[#allocation15_spill] sm:$0xff] }
 0xfed   :  { %v5485_v35 = vpop.permute.xlu0 %5484 }
 0xfee   :  { %v5487_v54 = vmul.f32 %v28007_v15, %v5485_v35  ;;  %v32193_v35 = vld [vmem:[#allocation13_spill] sm:$0xff] }
 0xff0   :  { %5489 = vrot.lane.b32.xlu1 %v5487_v54, %s28108_s28  ;;  %v32194_v54 = vld [vmem:[#allocation14_spill] sm:$0xff] }
0x1062   :  { %v5490_v33 = vpop.permute.xlu1 %5489 }
0x1063   :  { %v29372_v30 = vadd.f32 %v5490_v33, %v5482_v39  ;;  %v32196_v39 = vld [vmem:[#allocation16_spill] sm:$0xff]  ;;  %v32197_v33 = vld [vmem:[#allocation17_spill] sm:$0xff] }
0x1065   :  { %28008 = vtanh.f32 %v29372_v30 }
0x106f   :  { %v28009_v11 = vpop.eup %28008 }
0x1070   :  { %5495 = vrot.lane.b32.xlu0 %v28009_v11, %s28108_s28  ;;  %v32198_v11 = vld [vmem:[#allocation18_spill] sm:$0xff] }
0x10e2   :  { %v5496_v27 = vpop.permute.xlu0 %5495 }
0x10e3   :  { %v5498_v53 = vmul.f32 %v28007_v15, %v5496_v27  ;;  %v32192_v15 = vld [vmem:[#allocation12_spill] sm:$0xff]  ;;  %v32199_v27 = vld [vmem:[#allocation19_spill] sm:$0xff] }
0x10e5   :  { %5500 = vrot.lane.b32.xlu0 %v5498_v53, %s28109_s29  ;;  %v32200_v53 = vld [vmem:[#allocation20_spill] sm:$0xff] }
0x1157   :  { %v5501_v50 = vpop.permute.xlu0 %5500 }
0x1158   :  { %5504 = vst.msk [vmem:[#allocation2 + $0x8] sm:$0xff] %vm72_vm1, %v5501_v50  ;;  %v5505_v41 = vsel %vm72_vm1, %v5501_v50, 0  ;;  %v20740_v50 = vld [vmem:[%s31935_s0 + $0x10] sm:$0xff] }
0x1159   :  { %v5580_v25 = vand.u32 4294901760, %v5505_v41 }
0x115b   :  { %v5581_v13 = vsub.f32 %v5505_v41, %v5580_v25 }
0x115d   :  { %v5582_v47 = vand.u32 4294901760, %v5581_v13 }
0x115f   :  { %v5583_v28 = vsub.f32 %v5581_v13, %v5582_v47 }
0x1161   :  { %v5584_v56 = vand.u32 4294901760, %v5583_v28 }
0x1163   :  { %5585 = vmatmul.mubr.f32.vlgmr.msra.gmra.mrb[56].mxu1 %v5584_v56 }
0x1164   :  { %26047 = vmatpush1.bf16.msra.mxu1 %v32188_v49  ;;  %5695 = vmatprep.mubr.f32.mxu1 %v32134_v1 }
0x1165   :  { %26049 = vmatprep.subr.bf16.mxu1 %v32189_v52 }
0x1168   :  { %26051 = vmatpush1.bf16.msra.mxu1 %v32190_v40 }
0x1169   :  { %26053 = vmatprep.subr.bf16.mxu1 %v32191_v31 }
0x116b   :  { %5697 = vmatmul.mubr.f32.vlgmr.msra.gmra.mrb[56].mxu1 %v5580_v25 }
0x116c   :  { %26055 = vmatpush1.bf16.msra.mxu1 %v32192_v15  ;;  %5783 = vmatprep.mubr.f32.mxu1 %v32134_v1 }
0x116d   :  { %26057 = vmatprep.subr.bf16.mxu1 %v32193_v35  ;;  %v32202_v35 = vld [vmem:[#allocation22_spill] sm:$0xff] }
0x1170   :  { %26059 = vmatpush1.bf16.msra.mxu1 %v32194_v54  ;;  %v32201_v54 = vld [vmem:[#allocation21_spill] sm:$0xff] }
0x1171   :  { %26061 = vmatprep.subr.bf16.mxu1 %v32180_v45 }
0x1173   :  { %5786 = vmatmul.mubr.f32.vlgmr.msra.gmra.mrb[56].mxu1 %v5581_v13 }
0x1174   :  { %26063 = vmatpush1.bf16.msra.mxu1 %v32181_v2  ;;  %5864 = vmatprep.mubr.f32.mxu1 %v32134_v1 }
0x1175   :  { %26065 = vmatprep.subr.bf16.mxu1 %v32182_v19 }
0x1178   :  { %26067 = vmatpush1.bf16.msra.mxu1 %v32183_v23 }
0x1179   :  { %26069 = vmatprep.subr.bf16.mxu1 %v32195_v55 }
0x117b   :  { %5868 = vmatmul.mubr.f32.vlgmr.msra.gmra.mrb[56].mxu1 %v5582_v47 }
0x117c   :  { %26071 = vmatpush1.bf16.msra.mxu1 %v32196_v39  ;;  %5962 = vmatprep.mubr.f32.mxu1 %v32134_v1 }
0x117d   :  { %26073 = vmatprep.subr.bf16.mxu1 %v32197_v33 }
0x1180   :  { %26075 = vmatpush1.bf16.msra.mxu1 %v32198_v11 }
0x1181   :  { %26077 = vmatprep.subr.bf16.mxu1 %v32180_v45 }
0x1183   :  { %5964 = vmatmul.mubr.f32.vlgmr.msra.gmra.mrb[56].mxu1 %v5580_v25 }
0x1184   :  { %26079 = vmatpush1.bf16.msra.mxu1 %v32181_v2  ;;  %6042 = vmatprep.mubr.f32.mxu1 %v32134_v1 }
0x1185   :  { %26081 = vmatprep.subr.bf16.mxu1 %v32182_v19 }
0x1188   :  { %26083 = vmatpush1.bf16.msra.mxu1 %v32183_v23 }
0x1189   :  { %26084 = vmatprep.subr.bf16.mxu1 %v32131_v8 }
0x118b   :  { %6044 = vmatmul.mubr.f32.vlgmr.msra.gmra.mrb[56].mxu1 %v5580_v25 }
0x118c   :  { %26086 = vmatpush3.bf16.msra.mxu1 %v32199_v27  ;;  %23056 = vmatprep.mubr.msk.f32.mxu1 %vm28106_vm0, %v32134_v1 }
0x118d   :  { %26087 = vmatprep.subr.bf16.mxu1 %v32131_v8 }
0x1190   :  { %26089 = vmatpush3.bf16.msra.mxu1 %v32200_v53 }
0x1191   :  { %26090 = vmatprep.subr.bf16.mxu1 %v32131_v8 }
0x125e   :  { %v29413_v41 = vpop.f32.mrb[56].mxu1 }
0x125f   :  { %v6047_v13 = vpop.f32.mrb[57].mxu1 }
0x1260   :  { %v6052_v47 = vadd.f32 %v20740_v50, %v6047_v13  ;;  %v32203_v50 = vld [vmem:[#allocation23_spill] sm:$0xff]  ;;  %v32207_v13 = vld [vmem:[#allocation37_spill] sm:$0xff] }
0x1262   :  { %v6053_v25 = vmax.f32 %v6052_v47, 0.0 }
0x1264   :  { %v6055_v28 = vsel %vm72_vm1, %v6053_v25, 0 }
0x1265   :  { %v6126_v56 = vand.u32 4294901760, %v6055_v28 }
0x1267   :  { %v6127_v11 = vsub.f32 %v6055_v28, %v6126_v56  ;;  %v6561_v28 = vld [vmem:[%s31936_s3 + $0x70] sm:$0xff] }
0x1269   :  { %v6128_v33 = vand.u32 4294901760, %v6127_v11 }
0x126b   :  { %v6129_v39 = vsub.f32 %v6127_v11, %v6128_v33 }
0x126d   :  { %v6130_v55 = vand.u32 4294901760, %v6129_v39  ;;  %v32205_v39 = vld [vmem:[#allocation25_spill] sm:$0xff] }
0x126f   :  { %23057 = vmatmul.mubr.f32.vlgmr.msra.gmra.mrb[58].mxu1 %v6130_v55  ;;  %v32204_v55 = vld [vmem:[#allocation24_spill] sm:$0xff] }
0x1270   :  { %26092 = vmatpush3.bf16.msra.mxu1 %v32201_v54  ;;  %23067 = vmatprep.mubr.msk.f32.mxu1 %vm28106_vm0, %v32134_v1 }
0x1271   :  { %26093 = vmatprep.subr.bf16.mxu1 %v32131_v8 }
0x1274   :  { %26095 = vmatpush3.bf16.msra.mxu1 %v32202_v35 }
0x1275   :  { %26096 = vmatprep.subr.bf16.mxu1 %v32131_v8 }
0x1277   :  { %23068 = vmatmul.mubr.f32.vlgmr.msra.gmra.mrb[58].mxu1 %v6126_v56 }
0x1278   :  { %26098 = vmatpush3.bf16.msra.mxu1 %v32203_v50  ;;  %23078 = vmatprep.mubr.msk.f32.mxu1 %vm28106_vm0, %v32134_v1 }
0x1279   :  { %26099 = vmatprep.subr.bf16.mxu1 %v32131_v8 }
0x127c   :  { %26101 = vmatpush3.bf16.msra.mxu1 %v32204_v55 }
0x127d   :  { %26102 = vmatprep.subr.bf16.mxu1 %v32131_v8 }
0x127f   :  { %23079 = vmatmul.mubr.f32.vlgmr.msra.gmra.mrb[58].mxu1 %v6127_v11  ;;  %v32206_v11 = vld [vmem:[#allocation26_spill] sm:$0xff] }
0x1280   :  { %26104 = vmatpush3.bf16.msra.mxu1 %v32199_v27  ;;  %23089 = vmatprep.mubr.msk.f32.mxu1 %vm28106_vm0, %v32134_v1 }
0x1281   :  { %26105 = vmatprep.subr.bf16.mxu1 %v32131_v8 }
0x1284   :  { %26107 = vmatpush3.bf16.msra.mxu1 %v32200_v53 }
0x1285   :  { %26108 = vmatprep.subr.bf16.mxu1 %v32131_v8 }
0x1287   :  { %23090 = vmatmul.mubr.f32.vlgmr.msra.gmra.mrb[58].mxu1 %v6128_v33 }
0x1288   :  { %26110 = vmatpush3.bf16.msra.mxu1 %v32205_v39  ;;  %23100 = vmatprep.mubr.msk.f32.mxu1 %vm28106_vm0, %v32134_v1 }
0x1289   :  { %26111 = vmatprep.subr.bf16.mxu1 %v32131_v8 }
0x128c   :  { %26113 = vmatpush3.bf16.msra.mxu1 %v32206_v11  ;;  %v6606_v11 = vand.u32 4294901760, %v6561_v28 }
0x128d   :  { %26114 = vmatprep.subr.bf16.mxu1 %v32131_v8 }
0x128e   :  { %v29461_v50 = vsub.f32 %v6561_v28, %v6606_v11 }
0x128f   :  { %23101 = vmatmul.mubr.f32.vlgmr.msra.gmra.mrb[58].mxu1 %v6126_v56 }
0x1290   :  { %26116 = vmatpush3.bf16.msra.mxu1 %v32199_v27  ;;  %23111 = vmatprep.mubr.msk.f32.mxu1 %vm28106_vm0, %v32134_v1 }
0x1291   :  { %26117 = vmatprep.subr.bf16.mxu1 %v32131_v8 }
0x1294   :  { %26119 = vmatpush3.bf16.msra.mxu1 %v32200_v53 }
0x1295   :  { %26264 = vmatprep.subr.bf16.mxu1 %v32131_v8 }
0x1297   :  { %23112 = vmatmul.mubr.f32.vlgmr.msra.gmra.mrb[58].mxu1 %v6126_v56  ;;  %v6562_v56 = vld [vmem:[%s31936_s3 + $0x78] sm:$0xff] }
0x1298   :  { %26266 = vmatpush3.bf16.msra.mxu1 %v28710_v4  ;;  %23332 = vmatprep.mubr.msk.f32.mxu1 %vm28106_vm0, %v32134_v1  ;;  %v6609_v39 = vand.u32 4294901760, %v6562_v56 }
0x1299   :  { %26267 = vmatprep.subr.bf16.mxu1 %v32131_v8 }
0x129a   :  { %v29459_v55 = vpack.c.bf16 %v6609_v39, %v6606_v11  ;;  %v29463_v35 = vsub.f32 %v6562_v56, %v6609_v39 }
0x129c   :  { %26269 = vmatpush3.bf16.msra.mxu1 %v28720_v7  ;;  %26143 = vmatpush3.bf16.msra.mxu0 %v29459_v55  ;;  %v29479_v56 = vpack.c.bf16 %v29463_v35, %v29461_v50 }
0x129d   :  { %26270 = vmatprep.subr.bf16.mxu1 %v32131_v8  ;;  %26144 = vmatprep.subr.bf16.mxu0 %v32131_v8 }
0x136a   :  { %v6538_v33 = vpop.f32.mrb[58].mxu1 }
0x136b   :  { %v27615_v47 = vadd.f32 %v32207_v13, %v6538_v33  ;;  %v23113_v25 = vpop.f32.mrb[59].mxu1  ;;  %v32047_v33 = vand.u32 4294901760, %v29461_v50  ;;  %v32048_v13 = vand.u32 4294901760, %v29463_v35 }
0x136d   :  { %6542 = vmax.xlane.f32.xlu0 %v27615_v47  ;;  %v6756_v25 = vsub.f32 %v29461_v50, %v32047_v33  ;;  %v6763_v54 = vsub.f32 %v29463_v35, %v32048_v13 }
0x136f   :  { %v6757_v11 = vand.u32 4294901760, %v6756_v25  ;;  %v6764_v28 = vand.u32 4294901760, %v6763_v54  ;;  %v32211_v25 = vld [vmem:[#allocation28_spill] sm:$0xff] }
0x1371   :  { %v29475_v39 = vpack.c.bf16 %v6764_v28, %v6757_v11  ;;  %v32212_v11 = vld [vmem:[#allocation29_spill] sm:$0xff]  ;;  %v32213_v28 = vld [vmem:[#allocation30_spill] sm:$0xff] }
0x13fa   :  { %v6543_v53 = vpop.xlane.xlu0 %6542 }
0x13fb   :  { %v6544_v27 = vsub.f32 %v27615_v47, %v6543_v53 }
0x13fd   :  { %v6545_v15 = vmul.f32 1.442695, %v6544_v27 }
0x13ff   :  { %28010 = vpow2.f32 %v6545_v15 }
0x1409   :  { %v28011_v31 = vpop.eup %28010 }
0x140a   :  { %v29481_v40 = vand.u32 4294901760, %v28011_v31 }
0x140c   :  { %v6645_v33 = vsub.f32 %v28011_v31, %v29481_v40 }
0x140e   :  { %v6646_v52 = vand.u32 4294901760, %v6645_v33 }
0x1410   :  { %v6647_v49 = vsub.f32 %v6645_v33, %v6646_v52 }
0x1412   :  { %v6648_v13 = vand.u32 4294901760, %v6647_v49 }
0x1414   :  { %23147 = vmatmul.mubr.f32.vlgmr.msra.gmra.mrb[6].mxu0 %v6648_v13 }
0x1415   :  { %26146 = vmatpush3.bf16.msra.mxu0 %v29048_v63  ;;  %23181 = vmatprep.mubr.msk.f32.mxu0 %vm28106_vm0, %v32134_v1  ;;  %v32209_v63 = vand.u32 4294901760, %v29463_v35 }
0x1416   :  { %26147 = vmatprep.subr.bf16.mxu0 %v32131_v8 }
0x1419   :  { %26149 = vmatpush3.bf16.msra.mxu0 %v29058_v32 }
0x141a   :  { %26150 = vmatprep.subr.bf16.mxu0 %v32131_v8 }
0x141d   :  { %26152 = vmatpush3.bf16.msra.mxu0 %v29068_v60 }
0x141e   :  { %26153 = vmatprep.subr.bf16.mxu0 %v32131_v8 }
0x1421   :  { %26155 = vmatpush3.bf16.msra.mxu0 %v29078_v14 }
0x1422   :  { %26156 = vmatprep.subr.bf16.mxu0 %v32131_v8 }
0x1425   :  { %26158 = vmatpush3.bf16.msra.mxu0 %v29088_v6 }
0x1426   :  { %26159 = vmatprep.subr.bf16.mxu0 %v32131_v8 }
0x1429   :  { %26161 = vmatpush3.bf16.msra.mxu0 %v29098_v29 }
0x142a   :  { %26162 = vmatprep.subr.bf16.mxu0 %v32131_v8 }
0x142d   :  { %26164 = vmatpush3.bf16.msra.mxu0 %v29106_v26  ;;  %v32208_v26 = vand.u32 4294901760, %v29461_v50 }
0x142e   :  { %26165 = vmatprep.subr.bf16.mxu0 %v32131_v8 }
0x142f   :  { %v29558_v32 = vpack.c.bf16 %v32209_v63, %v32208_v26  ;;  %v32214_v26 = vld [vmem:[#allocation31_spill] sm:$0xff]  ;;  %v32215_v63 = vld [vmem:[#allocation32_spill] sm:$0xff] }
0x1431   :  { %26167 = vmatpush3.bf16.msra.mxu0 %v29475_v39 }
0x1432   :  { %26168 = vmatprep.subr.bf16.mxu0 %v32131_v8 }
0x1434   :  { %23182 = vmatmul.mubr.f32.vlgmr.msra.gmra.mrb[6].mxu0 %v29481_v40 }
0x1435   :  { %26170 = vmatpush3.bf16.msra.mxu0 %v29110_v34  ;;  %23216 = vmatprep.mubr.msk.f32.mxu0 %vm28106_vm0, %v32134_v1  ;;  %v32210_v34 = vld [vmem:[#allocation27_spill] sm:$0xff] }
0x1436   :  { %26171 = vmatprep.subr.bf16.mxu0 %v32131_v8 }
0x1439   :  { %26173 = vmatpush3.bf16.msra.mxu0 %v29114_v59 }
0x143a   :  { %26174 = vmatprep.subr.bf16.mxu0 %v32131_v8 }
0x143d   :  { %26176 = vmatpush3.bf16.msra.mxu0 %v29118_v12 }
0x143e   :  { %26177 = vmatprep.subr.bf16.mxu0 %v32131_v8 }
0x1441   :  { %26179 = vmatpush3.bf16.msra.mxu0 %v29122_v16 }
0x1442   :  { %26180 = vmatprep.subr.bf16.mxu0 %v32131_v8 }
0x1445   :  { %26182 = vmatpush3.bf16.msra.mxu0 %v29126_v57 }
0x1446   :  { %26183 = vmatprep.subr.bf16.mxu0 %v32131_v8 }
0x1449   :  { %26185 = vmatpush3.bf16.msra.mxu0 %v29130_v58 }
0x144a   :  { %26186 = vmatprep.subr.bf16.mxu0 %v32131_v8 }
0x144d   :  { %26188 = vmatpush3.bf16.msra.mxu0 %v29134_v18 }
0x144e   :  { %26189 = vmatprep.subr.bf16.mxu0 %v32131_v8 }
0x1451   :  { %26191 = vmatpush3.bf16.msra.mxu0 %v29479_v56 }
0x1452   :  { %26192 = vmatprep.subr.bf16.mxu0 %v32131_v8 }
0x1454   :  { %23217 = vmatmul.mubr.f32.vlgmr.msra.gmra.mrb[6].mxu0 %v6645_v33 }
0x1455   :  { %26194 = vmatpush3.bf16.msra.mxu0 %v28941_v21  ;;  %23251 = vmatprep.mubr.msk.f32.mxu0 %vm28106_vm0, %v32134_v1 }
0x1456   :  { %26195 = vmatprep.subr.bf16.mxu0 %v32131_v8 }
0x1459   :  { %26197 = vmatpush3.bf16.msra.mxu0 %v28952_v44 }
0x145a   :  { %26198 = vmatprep.subr.bf16.mxu0 %v32131_v8 }
0x145d   :  { %26200 = vmatpush3.bf16.msra.mxu0 %v28972_v48 }
0x145e   :  { %26201 = vmatprep.subr.bf16.mxu0 %v32131_v8 }
0x1461   :  { %26203 = vmatpush3.bf16.msra.mxu0 %v28982_v24 }
0x1462   :  { %26204 = vmatprep.subr.bf16.mxu0 %v32131_v8 }
0x1465   :  { %26206 = vmatpush3.bf16.msra.mxu0 %v28992_v17 }
0x1466   :  { %26207 = vmatprep.subr.bf16.mxu0 %v32131_v8 }
0x1469   :  { %26209 = vmatpush3.bf16.msra.mxu0 %v29002_v61 }
0x146a   :  { %26210 = vmatprep.subr.bf16.mxu0 %v32131_v8 }
0x146d   :  { %26212 = vmatpush3.bf16.msra.mxu0 %v29028_v20 }
0x146e   :  { %26213 = vmatprep.subr.bf16.mxu0 %v32131_v8 }
0x1471   :  { %26215 = vmatpush3.bf16.msra.mxu0 %v29459_v55 }
0x1472   :  { %26216 = vmatprep.subr.bf16.mxu0 %v32131_v8 }
0x1474   :  { %23252 = vmatmul.mubr.f32.vlgmr.msra.gmra.mrb[6].mxu0 %v6646_v52  ;;  %v20741_v52 = vld [vmem:[%s31940_s1 + $0x10] sm:$0xff] }
0x1475   :  { %26218 = vmatpush3.bf16.msra.mxu0 %v29198_v38  ;;  %23286 = vmatprep.mubr.msk.f32.mxu0 %vm28106_vm0, %v32134_v1 }
0x1476   :  { %26219 = vmatprep.subr.bf16.mxu0 %v32131_v8 }
0x1479   :  { %26221 = vmatpush3.bf16.msra.mxu0 %v29206_v22 }
0x147a   :  { %26222 = vmatprep.subr.bf16.mxu0 %v32131_v8 }
0x147d   :  { %26224 = vmatpush3.bf16.msra.mxu0 %v29216_v43 }
0x147e   :  { %26225 = vmatprep.subr.bf16.mxu0 %v32131_v8 }
0x1481   :  { %26227 = vmatpush3.bf16.msra.mxu0 %v29224_v3 }
0x1482   :  { %26228 = vmatprep.subr.bf16.mxu0 %v32131_v8 }
0x1485   :  { %26230 = vmatpush3.bf16.msra.mxu0 %v29232_v0 }
0x1486   :  { %26231 = vmatprep.subr.bf16.mxu0 %v32131_v8 }
0x1489   :  { %26233 = vmatpush3.bf16.msra.mxu0 %v29240_v51 }
0x148a   :  { %26234 = vmatprep.subr.bf16.mxu0 %v32131_v8 }
0x148d   :  { %26236 = vmatpush3.bf16.msra.mxu0 %v29248_v62 }
0x148e   :  { %26237 = vmatprep.subr.bf16.mxu0 %v32131_v8 }
0x1491   :  { %26239 = vmatpush3.bf16.msra.mxu0 %v29558_v32 }
0x1492   :  { %26240 = vmatprep.subr.bf16.mxu0 %v32131_v8 }
0x1494   :  { %23287 = vmatmul.mubr.f32.vlgmr.msra.gmra.mrb[6].mxu0 %v29481_v40 }
0x1495   :  { %26242 = vmatpush3.bf16.msra.mxu0 %v28941_v21  ;;  %23321 = vmatprep.mubr.msk.f32.mxu0 %vm28106_vm0, %v32134_v1 }
0x1496   :  { %26243 = vmatprep.subr.bf16.mxu0 %v32131_v8 }
0x1499   :  { %26245 = vmatpush3.bf16.msra.mxu0 %v28952_v44 }
0x149a   :  { %26246 = vmatprep.subr.bf16.mxu0 %v32131_v8 }
0x149d   :  { %26248 = vmatpush3.bf16.msra.mxu0 %v28972_v48 }
0x149e   :  { %26249 = vmatprep.subr.bf16.mxu0 %v32131_v8 }
0x14a1   :  { %26251 = vmatpush3.bf16.msra.mxu0 %v28982_v24 }
0x14a2   :  { %26252 = vmatprep.subr.bf16.mxu0 %v32131_v8 }
0x14a5   :  { %26254 = vmatpush3.bf16.msra.mxu0 %v28992_v17 }
0x14a6   :  { %26255 = vmatprep.subr.bf16.mxu0 %v32131_v8 }
0x14a9   :  { %26257 = vmatpush3.bf16.msra.mxu0 %v29002_v61 }
0x14aa   :  { %26258 = vmatprep.subr.bf16.mxu0 %v32131_v8 }
0x14ad   :  { %26260 = vmatpush3.bf16.msra.mxu0 %v29028_v20 }
0x14ae   :  { %26261 = vmatprep.subr.bf16.mxu0 %v32131_v8 }
0x14b1   :  { %26263 = vmatpush3.bf16.msra.mxu0 %v29459_v55 }
0x14b2   :  { %26420 = vmatprep.subr.bf16.mxu0 %v32131_v8 }
0x14b4   :  { %23322 = vmatmul.mubr.f32.vlgmr.msra.gmra.mrb[6].mxu0 %v29481_v40 }
0x14b5   :  { %23554 = vmatprep.mubr.msk.f32.mxu0 %vm28106_vm0, %v32134_v1 }
0x1587   :  { %v7200_v17 = vpop.f32.mrb[6].mxu0 }
0x1588   :  { %28012 = vrcp.f32 %v7200_v17  ;;  %v23323_v24 = vpop.f32.mrb[7].mxu0 }
0x1589   :  { %v32217_v24 = vld [vmem:[#allocation7_spill] sm:$0xff] }
0x1592   :  { %v28013_v21 = vpop.eup %28012 }
0x1593   :  { %7207 = vperm.xlu1 %27985, %v28013_v21  }
0x1612   :  { %v7208_v61 = vpop.permute.xlu1 %7207 }
0x1613   :  { %v7210_v44 = vmul.f32 %v7208_v61, %v7200_v17  ;;  %v32216_v17 = vld [vmem:[#allocation33_spill] sm:$0xff] }
0x1615   :  { %v7214_v20 = vsel %vm72_vm1, %v7210_v44, 0 }
0x1616   :  { %v7285_v48 = vand.u32 4294901760, %v7214_v20 }
0x1618   :  { %v7286_v60 = vsub.f32 %v7214_v20, %v7285_v48 }
0x161a   :  { %v7287_v14 = vand.u32 4294901760, %v7286_v60 }
0x161c   :  { %v7288_v6 = vsub.f32 %v7286_v60, %v7287_v14 }
0x161e   :  { %v7289_v29 = vand.u32 4294901760, %v7288_v6 }
0x1620   :  { %23333 = vmatmul.mubr.f32.vlgmr.msra.gmra.mrb[60].mxu1 %v7289_v29 }
0x1621   :  { %26272 = vmatpush3.bf16.msra.mxu1 %v28724_v5  ;;  %23343 = vmatprep.mubr.msk.f32.mxu1 %vm28106_vm0, %v32134_v1 }
0x1622   :  { %26273 = vmatprep.subr.bf16.mxu1 %v32131_v8 }
0x1625   :  { %26275 = vmatpush3.bf16.msra.mxu1 %v28726_v10 }
0x1626   :  { %26276 = vmatprep.subr.bf16.mxu1 %v32131_v8 }
0x1628   :  { %23344 = vmatmul.mubr.f32.vlgmr.msra.gmra.mrb[62].mxu1 %v7285_v48 }
0x1629   :  { %26278 = vmatpush3.bf16.msra.mxu1 %v28728_v42  ;;  %23354 = vmatprep.mubr.msk.f32.mxu1 %vm28106_vm0, %v32134_v1 }
0x162a   :  { %26279 = vmatprep.subr.bf16.mxu1 %v32131_v8 }
0x162d   :  { %26281 = vmatpush3.bf16.msra.mxu1 %v28730_v46 }
0x162e   :  { %26282 = vmatprep.subr.bf16.mxu1 %v32131_v8 }
0x1630   :  { %23355 = vmatmul.mubr.f32.vlgmr.msra.gmra.mrb[64].mxu1 %v7286_v60 }
0x1631   :  { %26284 = vmatpush3.bf16.msra.mxu1 %v28710_v4  ;;  %23365 = vmatprep.mubr.msk.f32.mxu1 %vm28106_vm0, %v32134_v1 }
0x1632   :  { %26285 = vmatprep.subr.bf16.mxu1 %v32131_v8 }
0x1635   :  { %26287 = vmatpush3.bf16.msra.mxu1 %v28720_v7 }
0x1636   :  { %26288 = vmatprep.subr.bf16.mxu1 %v32131_v8 }
0x1638   :  { %23366 = vmatmul.mubr.f32.vlgmr.msra.gmra.mrb[66].mxu1 %v7287_v14 }
0x1639   :  { %26290 = vmatpush3.bf16.msra.mxu1 %v28732_v9  ;;  %23376 = vmatprep.mubr.msk.f32.mxu1 %vm28106_vm0, %v32134_v1 }
0x163a   :  { %26291 = vmatprep.subr.bf16.mxu1 %v32131_v8 }
0x163d   :  { %26293 = vmatpush3.bf16.msra.mxu1 %v28734_v37 }
0x163e   :  { %26294 = vmatprep.subr.bf16.mxu1 %v32131_v8 }
0x1640   :  { %23377 = vmatmul.mubr.f32.vlgmr.msra.gmra.mrb[68].mxu1 %v7285_v48 }
0x1641   :  { %26296 = vmatpush3.bf16.msra.mxu1 %v28710_v4  ;;  %23387 = vmatprep.mubr.msk.f32.mxu1 %vm28106_vm0, %v32134_v1 }
0x1642   :  { %26297 = vmatprep.subr.bf16.mxu1 %v32131_v8 }
0x1645   :  { %26299 = vmatpush3.bf16.msra.mxu1 %v28720_v7 }
0x1646   :  { %26300 = vmatprep.subr.bf16.mxu1 %v32131_v8 }
0x1648   :  { %23388 = vmatmul.mubr.f32.vlgmr.msra.gmra.mrb[70].mxu1 %v7285_v48 }
0x1649   :  { %26302 = vmatpush3.bf16.msra.mxu1 %v28775_v36  ;;  %23398 = vmatprep.mubr.msk.f32.mxu1 %vm28106_vm0, %v32134_v1 }
0x164a   :  { %26303 = vmatprep.subr.bf16.mxu1 %v32131_v8 }
0x164d   :  { %26305 = vmatpush3.bf16.msra.mxu1 %v32210_v34 }
0x164e   :  { %26306 = vmatprep.subr.bf16.mxu1 %v32131_v8 }
0x16f3   :  { %v7291_v59 = vpop.f32.mrb[60].mxu1 }
0x16f4   :  { %v23334_v12 = vpop.f32.mrb[61].mxu1 }
0x16fb   :  { %v7382_v16 = vpop.f32.mrb[62].mxu1 }
0x16fc   :  { %v7383_v57 = vadd.f32 %v7382_v16, %v7291_v59  ;;  %v23345_v58 = vpop.f32.mrb[63].mxu1 }
0x1703   :  { %v7462_v18 = vpop.f32.mrb[64].mxu1 }
0x1704   :  { %v7463_v38 = vadd.f32 %v7462_v18, %v7383_v57  ;;  %v23356_v22 = vpop.f32.mrb[65].mxu1 }
0x170b   :  { %v7539_v43 = vpop.f32.mrb[66].mxu1 }
0x170c   :  { %v7540_v3 = vadd.f32 %v7539_v43, %v7463_v38  ;;  %v23367_v0 = vpop.f32.mrb[67].mxu1 }
0x1713   :  { %v7622_v51 = vpop.f32.mrb[68].mxu1 }
0x1714   :  { %v7623_v62 = vadd.f32 %v7622_v51, %v7540_v3  ;;  %v23378_v49 = vpop.f32.mrb[69].mxu1 }
0x171b   :  { %v7697_v40 = vpop.f32.mrb[70].mxu1 }
0x171c   :  { %v7698_v31 = vadd.f32 %v7697_v40, %v7623_v62  ;;  %v23389_v15 = vpop.f32.mrb[71].mxu1 }
0x171e   :  { %v7701_v35 = vadd.f32 %v20741_v52, %v7698_v31 }
0x1720   :  { %v7702_v54 = vmax.f32 %v7701_v35, 0.0 }
0x1722   :  { %v7704_v27 = vsel %vm72_vm1, %v7702_v54, 0 }
0x1723   :  { %v7775_v53 = vand.u32 4294901760, %v7704_v27 }
0x1725   :  { %v7776_v50 = vsub.f32 %v7704_v27, %v7775_v53 }
0x1727   :  { %v7777_v47 = vand.u32 4294901760, %v7776_v50 }
0x1729   :  { %v7778_v33 = vsub.f32 %v7776_v50, %v7777_v47 }
0x172b   :  { %v7779_v13 = vand.u32 4294901760, %v7778_v33 }
0x172d   :  { %23399 = vmatmul.mubr.f32.vlgmr.msra.gmra.mrb[72].mxu1 %v7779_v13 }
0x172e   :  { %26308 = vmatpush3.bf16.msra.mxu1 %v32211_v25  ;;  %23409 = vmatprep.mubr.msk.f32.mxu1 %vm28106_vm0, %v32134_v1 }
0x172f   :  { %26309 = vmatprep.subr.bf16.mxu1 %v32131_v8 }
0x1732   :  { %26311 = vmatpush3.bf16.msra.mxu1 %v32212_v11 }
0x1733   :  { %26312 = vmatprep.subr.bf16.mxu1 %v32131_v8 }
0x1735   :  { %23410 = vmatmul.mubr.f32.vlgmr.msra.gmra.mrb[74].mxu1 %v7775_v53 }
0x1736   :  { %26314 = vmatpush3.bf16.msra.mxu1 %v32213_v28  ;;  %23420 = vmatprep.mubr.msk.f32.mxu1 %vm28106_vm0, %v32134_v1 }
0x1737   :  { %26315 = vmatprep.subr.bf16.mxu1 %v32131_v8 }
0x173a   :  { %26317 = vmatpush3.bf16.msra.mxu1 %v32214_v26 }
0x173b   :  { %26318 = vmatprep.subr.bf16.mxu1 %v32131_v8 }
0x173d   :  { %23421 = vmatmul.mubr.f32.vlgmr.msra.gmra.mrb[76].mxu1 %v7776_v50 }
0x173e   :  { %26320 = vmatpush3.bf16.msra.mxu1 %v28775_v36  ;;  %23431 = vmatprep.mubr.msk.f32.mxu1 %vm28106_vm0, %v32134_v1 }
0x173f   :  { %26321 = vmatprep.subr.bf16.mxu1 %v32131_v8 }
0x1742   :  { %26323 = vmatpush3.bf16.msra.mxu1 %v32210_v34 }
0x1743   :  { %26324 = vmatprep.subr.bf16.mxu1 %v32131_v8 }
0x1745   :  { %23432 = vmatmul.mubr.f32.vlgmr.msra.gmra.mrb[78].mxu1 %v7777_v47 }
0x1746   :  { %26326 = vmatpush3.bf16.msra.mxu1 %v32215_v63  ;;  %23442 = vmatprep.mubr.msk.f32.mxu1 %vm28106_vm0, %v32134_v1 }
0x1747   :  { %26327 = vmatprep.subr.bf16.mxu1 %v32131_v8 }
0x174a   :  { %26329 = vmatpush3.bf16.msra.mxu1 %v32216_v17 }
0x174b   :  { %26330 = vmatprep.subr.bf16.mxu1 %v32131_v8 }
0x174d   :  { %23443 = vmatmul.mubr.f32.vlgmr.msra.gmra.mrb[80].mxu1 %v7775_v53 }
0x174e   :  { %26332 = vmatpush3.bf16.msra.mxu1 %v28775_v36  ;;  %23453 = vmatprep.mubr.msk.f32.mxu1 %vm28106_vm0, %v32134_v1 }
0x174f   :  { %26333 = vmatprep.subr.bf16.mxu1 %v32131_v8 }
0x1752   :  { %26335 = vmatpush3.bf16.msra.mxu1 %v32210_v34 }
0x1753   :  { %26337 = vmatprep.subr.bf16.mxu1 %v32180_v45 }
0x1755   :  { %23454 = vmatmul.mubr.f32.vlgmr.msra.gmra.mrb[82].mxu1 %v7775_v53 }
0x1756   :  { %26339 = vmatpush1.bf16.msra.mxu1 %v32181_v2  ;;  %8296 = vmatprep.mubr.f32.mxu1 %v32134_v1 }
0x1757   :  { %26341 = vmatprep.subr.bf16.mxu1 %v32182_v19 }
0x175a   :  { %26343 = vmatpush1.bf16.msra.mxu1 %v32183_v23 }
0x175b   :  { %26345 = vmatprep.subr.bf16.mxu1 %v32217_v24 }
0x1800   :  { %v7781_v21 = vpop.f32.mrb[72].mxu1 }
0x1801   :  { %v7782_v61 = vadd.f32 %v7781_v21, %v29413_v41  ;;  %v23400_v44 = vpop.f32.mrb[73].mxu1  ;;  %v29665_v41 = vld [vmem:[%s31941_s8] ss:$0 sm:$0xff] }
0x1802   :  { %32218 = vst [vmem:[#allocation36_spill] sm:$0xff] %v29665_v41 }
0x1808   :  { %v7872_v20 = vpop.f32.mrb[74].mxu1 }
0x1809   :  { %v7873_v48 = vadd.f32 %v7872_v20, %v7782_v61  ;;  %v23411_v60 = vpop.f32.mrb[75].mxu1  ;;  %v32220_v20 = vld [vmem:[#allocation8_spill] sm:$0xff] }
0x180a   :  { %v32222_v60 = vld [vmem:[#allocation10_spill] sm:$0xff] }
0x1810   :  { %v7952_v14 = vpop.f32.mrb[76].mxu1 }
0x1811   :  { %v7953_v6 = vadd.f32 %v7952_v14, %v7873_v48  ;;  %v23422_v29 = vpop.f32.mrb[77].mxu1  ;;  %v32221_v48 = vld [vmem:[#allocation9_spill] sm:$0xff]  ;;  %v32223_v14 = vld [vmem:[#allocation11_spill] sm:$0xff] }
0x1812   :  { %v32225_v29 = vld [vmem:[#allocation13_spill] sm:$0xff] }
0x1818   :  { %v8029_v59 = vpop.f32.mrb[78].mxu1 }
0x1819   :  { %v8030_v12 = vadd.f32 %v8029_v59, %v7953_v6  ;;  %v23433_v16 = vpop.f32.mrb[79].mxu1  ;;  %v32224_v6 = vld [vmem:[#allocation12_spill] sm:$0xff]  ;;  %v32226_v59 = vld [vmem:[#allocation14_spill] sm:$0xff] }
0x181a   :  { %v32228_v16 = vld [vmem:[#allocation16_spill] sm:$0xff] }
0x1820   :  { %v8112_v57 = vpop.f32.mrb[80].mxu1 }
0x1821   :  { %v8113_v58 = vadd.f32 %v8112_v57, %v8030_v12  ;;  %v23444_v18 = vpop.f32.mrb[81].mxu1  ;;  %v32227_v12 = vld [vmem:[#allocation15_spill] sm:$0xff]  ;;  %v32229_v57 = vld [vmem:[#allocation17_spill] sm:$0xff] }
0x1822   :  { %v32231_v18 = vld [vmem:[#allocation19_spill] sm:$0xff] }
0x1828   :  { %v8187_v38 = vpop.f32.mrb[82].mxu1 }
0x1829   :  { %v8188_v22 = vadd.f32 %v8187_v38, %v8113_v58  ;;  %v23455_v43 = vpop.f32.mrb[83].mxu1  ;;  %v32230_v58 = vld [vmem:[#allocation18_spill] sm:$0xff]  ;;  %v32232_v38 = vld [vmem:[#allocation20_spill] sm:$0xff] }
0x182b   :  { %v8191_v3 = vadd.f32 %v29665_v41, %v8188_v22  ;;  %v20743_v22 = vld [vmem:[%s31935_s0 + $0x18] sm:$0xff] }
0x182d   :  { %28014 = vtanh.f32 %v8191_v3  ;;  %v20742_v51 = vmul.f32 -1.442695, %v8191_v3 }
0x182f   :  { %28016 = vpow2.f32 %v20742_v51 }
0x1837   :  { %v28015_v0 = vpop.eup %28014 }
0x1838   :  { %8201 = vrot.lane.b32.xlu1 %v28015_v0, %s28108_s28 }
0x1839   :  { %v28017_v62 = vpop.eup %28016 }
0x183a   :  { %v8195_v49 = vadd.f32 1.0, %v28017_v62 }
0x183c   :  { %28018 = vrcp.f32 %v8195_v49 }
0x1846   :  { %v28019_v52 = vpop.eup %28018 }
0x1847   :  { %v8199_v15 = vmul.f32 %v28019_v52, %v29372_v30 }
0x18aa   :  { %v8202_v40 = vpop.permute.xlu1 %8201 }
0x18ab   :  { %v8204_v31 = vmul.f32 %v28019_v52, %v8202_v40 }
0x18ad   :  { %8206 = vrot.lane.b32.xlu1 %v8204_v31, %s28108_s28 }
0x191f   :  { %v8207_v35 = vpop.permute.xlu1 %8206 }
0x1920   :  { %v29671_v54 = vadd.f32 %v8207_v35, %v8199_v15  ;;  %v32234_v35 = vld [vmem:[#allocation21_spill] sm:$0xff] }
0x1922   :  { %32219 = vst [vmem:[#allocation34_spill] sm:$0xff] %v29671_v54  ;;  %28020 = vtanh.f32 %v29671_v54 }
0x192c   :  { %v28021_v27 = vpop.eup %28020 }
0x192d   :  { %8212 = vrot.lane.b32.xlu1 %v28021_v27, %s28108_s28  ;;  %v32235_v27 = vld [vmem:[#allocation22_spill] sm:$0xff] }
0x199f   :  { %v8213_v53 = vpop.permute.xlu1 %8212 }
0x19a0   :  { %v8215_v50 = vmul.f32 %v28019_v52, %v8213_v53  ;;  %v32236_v53 = vld [vmem:[#allocation23_spill] sm:$0xff] }
0x19a2   :  { %8217 = vrot.lane.b32.xlu1 %v8215_v50, %s28109_s29  ;;  %v32237_v50 = vld [vmem:[#allocation24_spill] sm:$0xff] }
0x1a14   :  { %v8218_v47 = vpop.permute.xlu1 %8217 }
0x1a15   :  { %8221 = vst.msk [vmem:[#allocation2 + $0x10] sm:$0xff] %vm72_vm1, %v8218_v47  ;;  %v8222_v33 = vsel %vm72_vm1, %v8218_v47, 0  ;;  %v32238_v47 = vld [vmem:[#allocation25_spill] sm:$0xff] }
0x1a16   :  { %v8297_v13 = vand.u32 4294901760, %v8222_v33 }
0x1a18   :  { %v8298_v21 = vsub.f32 %v8222_v33, %v8297_v13  ;;  %v32239_v33 = vld [vmem:[#allocation26_spill] sm:$0xff] }
0x1a1a   :  { %v8299_v30 = vand.u32 4294901760, %v8298_v21 }
0x1a1c   :  { %v8300_v61 = vsub.f32 %v8298_v21, %v8299_v30 }
0x1a1e   :  { %v8301_v44 = vand.u32 4294901760, %v8300_v61 }
0x1a20   :  { %8302 = vmatmul.mubr.f32.vlgmr.msra.gmra.mrb[84].mxu1 %v8301_v44 }
0x1a21   :  { %26347 = vmatpush1.bf16.msra.mxu1 %v32220_v20  ;;  %8412 = vmatprep.mubr.f32.mxu1 %v32134_v1 }
0x1a22   :  { %26349 = vmatprep.subr.bf16.mxu1 %v32221_v48 }
0x1a25   :  { %26351 = vmatpush1.bf16.msra.mxu1 %v32222_v60 }
0x1a26   :  { %26353 = vmatprep.subr.bf16.mxu1 %v32223_v14 }
0x1a28   :  { %8414 = vmatmul.mubr.f32.vlgmr.msra.gmra.mrb[84].mxu1 %v8297_v13 }
0x1a29   :  { %26355 = vmatpush1.bf16.msra.mxu1 %v32224_v6  ;;  %8500 = vmatprep.mubr.f32.mxu1 %v32134_v1 }
0x1a2a   :  { %26357 = vmatprep.subr.bf16.mxu1 %v32225_v29  ;;  %v9277_v29 = vld [vmem:[%s31936_s3 + $0x68] sm:$0xff] }
0x1a2b   :  { %v9320_v14 = vand.u32 4294901760, %v9277_v29 }
0x1a2d   :  { %26359 = vmatpush1.bf16.msra.mxu1 %v32226_v59  ;;  %v9276_v59 = vld [vmem:[%s31936_s3 + $0x60] sm:$0xff] }
0x1a2e   :  { %26361 = vmatprep.subr.bf16.mxu1 %v32180_v45  ;;  %v9317_v6 = vand.u32 4294901760, %v9276_v59 }
0x1a30   :  { %8503 = vmatmul.mubr.f32.vlgmr.msra.gmra.mrb[84].mxu1 %v8298_v21  ;;  %v9265_v21 = vld [vmem:[%s31936_s3 + $0x8] sm:$0xff] }
0x1a31   :  { %26363 = vmatpush1.bf16.msra.mxu1 %v32181_v2  ;;  %8581 = vmatprep.mubr.f32.mxu1 %v32134_v1  ;;  %v9284_v44 = vand.u32 4294901760, %v9265_v21 }
0x1a32   :  { %26365 = vmatprep.subr.bf16.mxu1 %v32182_v19 }
0x1a35   :  { %26367 = vmatpush1.bf16.msra.mxu1 %v32183_v23 }
0x1a36   :  { %26369 = vmatprep.subr.bf16.mxu1 %v32227_v12 }
0x1a38   :  { %8585 = vmatmul.mubr.f32.vlgmr.msra.gmra.mrb[84].mxu1 %v8299_v30  ;;  %v9266_v30 = vld [vmem:[%s31936_s3 + $0x10] sm:$0xff] }
0x1a39   :  { %26371 = vmatpush1.bf16.msra.mxu1 %v32228_v16  ;;  %8679 = vmatprep.mubr.f32.mxu1 %v32134_v1 }
0x1a3a   :  { %26373 = vmatprep.subr.bf16.mxu1 %v32229_v57 }
0x1a3d   :  { %26375 = vmatpush1.bf16.msra.mxu1 %v32230_v58  ;;  %v9275_v58 = vld [vmem:[%s31936_s3 + $0x58] sm:$0xff] }
0x1a3e   :  { %26377 = vmatprep.subr.bf16.mxu1 %v32180_v45  ;;  %v9314_v16 = vand.u32 4294901760, %v9275_v58 }
0x1a40   :  { %8681 = vmatmul.mubr.f32.vlgmr.msra.gmra.mrb[84].mxu1 %v8297_v13 }
0x1a41   :  { %26379 = vmatpush1.bf16.msra.mxu1 %v32181_v2  ;;  %8759 = vmatprep.mubr.f32.mxu1 %v32134_v1  ;;  %v29852_v2 = vsub.f32 %v9276_v59, %v9317_v6 }
0x1a42   :  { %26381 = vmatprep.subr.bf16.mxu1 %v32182_v19  ;;  %v29850_v19 = vpack.c.bf16 %v9320_v14, %v9317_v6 }
0x1a45   :  { %26383 = vmatpush1.bf16.msra.mxu1 %v32183_v23  ;;  %v29848_v23 = vsub.f32 %v9275_v58, %v9314_v16 }
0x1a46   :  { %26384 = vmatprep.subr.bf16.mxu1 %v32131_v8 }
0x1a48   :  { %8761 = vmatmul.mubr.f32.vlgmr.msra.gmra.mrb[84].mxu1 %v8297_v13  ;;  %v9264_v13 = vld [vmem:[%s31936_s3] sm:$0xff] }
0x1a49   :  { %26386 = vmatpush3.bf16.msra.mxu1 %v32231_v18  ;;  %23464 = vmatprep.mubr.msk.f32.mxu1 %vm28106_vm0, %v32134_v1  ;;  %v9281_v61 = vand.u32 4294901760, %v9264_v13 }
0x1a4a   :  { %26387 = vmatprep.subr.bf16.mxu1 %v32131_v8 }
0x1a4d   :  { %26389 = vmatpush3.bf16.msra.mxu1 %v32232_v38 }
0x1a4e   :  { %26390 = vmatprep.subr.bf16.mxu1 %v32131_v8 }
0x1b1b   :  { %v29712_v43 = vpop.f32.mrb[84].mxu1 }
0x1b1c   :  { %32233 = vst [vmem:[#allocation35_spill] sm:$0xff] %v29712_v43  ;;  %v8764_v3 = vpop.f32.mrb[85].mxu1 }
0x1b1d   :  { %v8769_v0 = vadd.f32 %v20743_v22, %v8764_v3  ;;  %v9267_v22 = vld [vmem:[%s31936_s3 + $0x18] sm:$0xff]  ;;  %v9287_v3 = vand.u32 4294901760, %v9266_v30 }
0x1b1f   :  { %v8770_v51 = vmax.f32 %v8769_v0, 0.0  ;;  %v9290_v0 = vand.u32 4294901760, %v9267_v22 }
0x1b21   :  { %v8772_v62 = vsel %vm72_vm1, %v8770_v51, 0  ;;  %v29763_v51 = vpack.c.bf16 %v9284_v44, %v9281_v61 }
0x1b22   :  { %v8843_v49 = vand.u32 4294901760, %v8772_v62 }
0x1b23   :  { %26422 = vmatpush3.bf16.msra.mxu0 %v29763_v51 }
0x1b24   :  { %v8844_v52 = vsub.f32 %v8772_v62, %v8843_v49  ;;  %v29765_v62 = vsub.f32 %v9264_v13, %v9281_v61  ;;  %26423 = vmatprep.subr.bf16.mxu0 %v32131_v8  ;;  %v29782_v13 = vld [vmem:[%s31937_s4] sm:$0xff] }
0x1b25   :  { %32240 = vst [vmem:[#allocation37_spill] sm:$0xff] %v29782_v13  ;;  %v9268_v61 = vld [vmem:[%s31936_s3 + $0x20] sm:$0xff] }
0x1b26   :  { %v8845_v40 = vand.u32 4294901760, %v8844_v52 }
0x1b28   :  { %v8846_v31 = vsub.f32 %v8844_v52, %v8845_v40 }
0x1b2a   :  { %v8847_v15 = vand.u32 4294901760, %v8846_v31  ;;  %v29774_v31 = vpack.c.bf16 %v9290_v0, %v9287_v3 }
0x1b2c   :  { %23465 = vmatmul.mubr.f32.vlgmr.msra.gmra.mrb[86].mxu1 %v8847_v15  ;;  %26425 = vmatpush3.bf16.msra.mxu0 %v29774_v31 }
0x1b2d   :  { %26392 = vmatpush3.bf16.msra.mxu1 %v32234_v35  ;;  %23475 = vmatprep.mubr.msk.f32.mxu1 %vm28106_vm0, %v32134_v1 }
0x1b2e   :  { %26393 = vmatprep.subr.bf16.mxu1 %v32131_v8  ;;  %26426 = vmatprep.subr.bf16.mxu0 %v32131_v8 }
0x1b31   :  { %26395 = vmatpush3.bf16.msra.mxu1 %v32235_v27 }
0x1b32   :  { %26396 = vmatprep.subr.bf16.mxu1 %v32131_v8 }
0x1b34   :  { %23476 = vmatmul.mubr.f32.vlgmr.msra.gmra.mrb[86].mxu1 %v8843_v49 }
0x1b35   :  { %26398 = vmatpush3.bf16.msra.mxu1 %v32236_v53  ;;  %23486 = vmatprep.mubr.msk.f32.mxu1 %vm28106_vm0, %v32134_v1  ;;  %v9273_v53 = vld [vmem:[%s31936_s3 + $0x48] sm:$0xff] }
0x1b36   :  { %26399 = vmatprep.subr.bf16.mxu1 %v32131_v8  ;;  %v9308_v35 = vand.u32 4294901760, %v9273_v53 }
0x1b38   :  { %v29844_v43 = vsub.f32 %v9273_v53, %v9308_v35 }
0x1b39   :  { %26401 = vmatpush3.bf16.msra.mxu1 %v32237_v50  ;;  %v9272_v50 = vld [vmem:[%s31936_s3 + $0x40] sm:$0xff] }
0x1b3a   :  { %26402 = vmatprep.subr.bf16.mxu1 %v32131_v8  ;;  %v9305_v27 = vand.u32 4294901760, %v9272_v50 }
0x1b3c   :  { %23487 = vmatmul.mubr.f32.vlgmr.msra.gmra.mrb[86].mxu1 %v8844_v52  ;;  %v29769_v52 = vsub.f32 %v9266_v30, %v9287_v3  ;;  %v29842_v41 = vsub.f32 %v9272_v50, %v9305_v27 }
0x1b3d   :  { %26404 = vmatpush3.bf16.msra.mxu1 %v32231_v18  ;;  %23497 = vmatprep.mubr.msk.f32.mxu1 %vm28106_vm0, %v32134_v1 }
0x1b3e   :  { %26405 = vmatprep.subr.bf16.mxu1 %v32131_v8 }
0x1b41   :  { %26407 = vmatpush3.bf16.msra.mxu1 %v32232_v38 }
0x1b42   :  { %26408 = vmatprep.subr.bf16.mxu1 %v32131_v8 }
0x1b44   :  { %23498 = vmatmul.mubr.f32.vlgmr.msra.gmra.mrb[86].mxu1 %v8845_v40  ;;  %v29771_v40 = vsub.f32 %v9267_v22, %v9290_v0  ;;  %v9293_v22 = vand.u32 4294901760, %v9268_v61 }
0x1b45   :  { %26410 = vmatpush3.bf16.msra.mxu1 %v32238_v47  ;;  %23508 = vmatprep.mubr.msk.f32.mxu1 %vm28106_vm0, %v32134_v1 }
0x1b46   :  { %26411 = vmatprep.subr.bf16.mxu1 %v32131_v8  ;;  %v29834_v60 = vsub.f32 %v9268_v61, %v9293_v22  ;;  %v29854_v61 = vsub.f32 %v9277_v29, %v9320_v14  ;;  %v32065_v14 = vand.u32 4294901760, %v29769_v52  ;;  %v32062_v29 = vand.u32 4294901760, %v29771_v40 }
0x1b48   :  { %v9389_v58 = vsub.f32 %v29769_v52, %v32065_v14  ;;  %v32059_v50 = vand.u32 4294901760, %v29834_v60 }
0x1b49   :  { %26413 = vmatpush3.bf16.msra.mxu1 %v32239_v33 }
0x1b4a   :  { %26414 = vmatprep.subr.bf16.mxu1 %v32131_v8 }
0x1b4c   :  { %23509 = vmatmul.mubr.f32.vlgmr.msra.gmra.mrb[86].mxu1 %v8843_v49 }
0x1b4d   :  { %26416 = vmatpush3.bf16.msra.mxu1 %v32231_v18  ;;  %23519 = vmatprep.mubr.msk.f32.mxu1 %vm28106_vm0, %v32134_v1  ;;  %v9274_v18 = vld [vmem:[%s31936_s3 + $0x50] sm:$0xff] }
0x1b4e   :  { %26417 = vmatprep.subr.bf16.mxu1 %v32131_v8  ;;  %v9311_v57 = vand.u32 4294901760, %v9274_v18 }
0x1b50   :  { %v29824_v12 = vpack.c.bf16 %v9314_v16, %v9311_v57  ;;  %v29846_v24 = vsub.f32 %v9274_v18, %v9311_v57  ;;  %v9396_v18 = vsub.f32 %v29771_v40, %v32062_v29 }
0x1b51   :  { %26419 = vmatpush3.bf16.msra.mxu1 %v32232_v38  ;;  %v29814_v38 = vpack.c.bf16 %v9308_v35, %v9305_v27  ;;  %v9390_v27 = vand.u32 4294901760, %v9389_v58 }
0x1b52   :  { %26564 = vmatprep.subr.bf16.mxu1 %v32131_v8  ;;  %v9397_v53 = vand.u32 4294901760, %v9396_v18 }
0x1b54   :  { %23520 = vmatmul.mubr.f32.vlgmr.msra.gmra.mrb[86].mxu1 %v8843_v49  ;;  %v29767_v49 = vsub.f32 %v9265_v21, %v9284_v44  ;;  %v9269_v44 = vld [vmem:[%s31936_s3 + $0x28] sm:$0xff] }
0x1b55   :  { %26566 = vmatpush3.bf16.msra.mxu1 %v28710_v4  ;;  %23740 = vmatprep.mubr.msk.f32.mxu1 %vm28106_vm0, %v32134_v1  ;;  %v9296_v3 = vand.u32 4294901760, %v9269_v44 }
0x1b56   :  { %26567 = vmatprep.subr.bf16.mxu1 %v32131_v8 }
0x1b57   :  { %v29794_v0 = vpack.c.bf16 %v9296_v3, %v9293_v22  ;;  %v29836_v48 = vsub.f32 %v9269_v44, %v9296_v3  ;;  %v32070_v44 = vand.u32 4294901760, %v29765_v62  ;;  %v29880_v22 = vpack.c.bf16 %v9397_v53, %v9390_v27 }
0x1b58   :  { %v9403_v3 = vsub.f32 %v29834_v60, %v32059_v50 }
0x1b59   :  { %26569 = vmatpush3.bf16.msra.mxu1 %v28720_v7  ;;  %26428 = vmatpush3.bf16.msra.mxu0 %v29794_v0  ;;  %v9375_v35 = vsub.f32 %v29765_v62, %v32070_v44 }
0x1b5a   :  { %26570 = vmatprep.subr.bf16.mxu1 %v32131_v8  ;;  %26429 = vmatprep.subr.bf16.mxu0 %v32131_v8 }
0x1b5b   :  { %v9376_v6 = vand.u32 4294901760, %v9375_v35 }
0x1c27   :  { %v9255_v15 = vpop.f32.mrb[86].mxu1 }
0x1c28   :  { %v29785_v21 = vadd.f32 %v29782_v13, %v9255_v15  ;;  %v23521_v30 = vpop.f32.mrb[87].mxu1  ;;  %v9270_v15 = vld [vmem:[%s31936_s3 + $0x30] sm:$0xff] }
0x1c29   :  { %v9271_v30 = vld [vmem:[%s31936_s3 + $0x38] sm:$0xff]  ;;  %v9299_v13 = vand.u32 4294901760, %v9270_v15 }
0x1c2a   :  { %9259 = vmax.xlane.f32.xlu1 %v29785_v21  ;;  %v9302_v33 = vand.u32 4294901760, %v9271_v30 }
0x1c2b   :  { %v29838_v20 = vsub.f32 %v9270_v15, %v9299_v13 }
0x1c2c   :  { %v29804_v47 = vpack.c.bf16 %v9302_v33, %v9299_v13  ;;  %v29840_v54 = vsub.f32 %v9271_v30, %v9302_v33  ;;  %v32066_v13 = vand.u32 4294901760, %v29767_v49  ;;  %v32057_v33 = vand.u32 4294901760, %v29836_v48 }
0x1c2d   :  { %v9404_v30 = vand.u32 4294901760, %v9403_v3  ;;  %v32063_v3 = vand.u32 4294901760, %v29844_v43 }
0x1c2e   :  { %26431 = vmatpush3.bf16.msra.mxu0 %v29804_v47  ;;  %v9382_v16 = vsub.f32 %v29767_v49, %v32066_v13  ;;  %v9410_v15 = vsub.f32 %v29836_v48, %v32057_v33  ;;  %v32061_v33 = vand.u32 4294901760, %v29842_v41 }
0x1c2f   :  { %26432 = vmatprep.subr.bf16.mxu0 %v32131_v8 }
0x1c30   :  { %v9383_v59 = vand.u32 4294901760, %v9382_v16  ;;  %v9411_v35 = vand.u32 4294901760, %v9410_v15  ;;  %v32058_v16 = vand.u32 4294901760, %v29838_v20 }
0x1c32   :  { %26434 = vmatpush3.bf16.msra.mxu0 %v29814_v38  ;;  %v29870_v57 = vpack.c.bf16 %v9383_v59, %v9376_v6  ;;  %v32060_v6 = vand.u32 4294901760, %v29840_v54  ;;  %v29890_v59 = vpack.c.bf16 %v9411_v35, %v9404_v30  ;;  %v9417_v58 = vsub.f32 %v29838_v20, %v32058_v16 }
0x1c33   :  { %26435 = vmatprep.subr.bf16.mxu0 %v32131_v8  ;;  %v9431_v30 = vsub.f32 %v29842_v41, %v32061_v33  ;;  %v9438_v35 = vsub.f32 %v29844_v43, %v32063_v3  ;;  %v32068_v3 = vand.u32 4294901760, %v29852_v2 }
0x1c34   :  { %v9424_v18 = vsub.f32 %v29840_v54, %v32060_v6  ;;  %v9418_v27 = vand.u32 4294901760, %v9417_v58  ;;  %v32064_v6 = vand.u32 4294901760, %v29846_v24  ;;  %v32069_v58 = vand.u32 4294901760, %v29848_v23 }
0x1c35   :  { %v9432_v16 = vand.u32 4294901760, %v9431_v30  ;;  %v9439_v50 = vand.u32 4294901760, %v9438_v35  ;;  %v32067_v30 = vand.u32 4294901760, %v29854_v61 }
0x1c36   :  { %26437 = vmatpush3.bf16.msra.mxu0 %v29824_v12  ;;  %v9425_v53 = vand.u32 4294901760, %v9424_v18 }
0x1c37   :  { %26438 = vmatprep.subr.bf16.mxu0 %v32131_v8  ;;  %v29910_v18 = vpack.c.bf16 %v9439_v50, %v9432_v16  ;;  %v9459_v50 = vsub.f32 %v29852_v2, %v32068_v3  ;;  %v9466_v16 = vsub.f32 %v29854_v61, %v32067_v30 }
0x1c38   :  { %v29900_v15 = vpack.c.bf16 %v9425_v53, %v9418_v27  ;;  %v9445_v27 = vsub.f32 %v29846_v24, %v32064_v6  ;;  %v9452_v53 = vsub.f32 %v29848_v23, %v32069_v58 }
0x1c39   :  { %v9460_v6 = vand.u32 4294901760, %v9459_v50  ;;  %v9467_v14 = vand.u32 4294901760, %v9466_v16  ;;  %v29956_v50 = vpack.c.bf16 %v29854_v61, %v29852_v2 }
0x1c3a   :  { %26440 = vmatpush3.bf16.msra.mxu0 %v29850_v19  ;;  %v9446_v33 = vand.u32 4294901760, %v9445_v27  ;;  %v9453_v29 = vand.u32 4294901760, %v9452_v53  ;;  %v29932_v27 = vpack.c.bf16 %v29767_v49, %v29765_v62  ;;  %v29944_v53 = vpack.c.bf16 %v29840_v54, %v29838_v20 }
0x1c3b   :  { %26441 = vmatprep.subr.bf16.mxu0 %v32131_v8  ;;  %v29928_v13 = vpack.c.bf16 %v9467_v14, %v9460_v6  ;;  %v29948_v14 = vpack.c.bf16 %v29844_v43, %v29842_v41  ;;  %v29952_v6 = vpack.c.bf16 %v29848_v23, %v29846_v24 }
0x1c3c   :  { %v29920_v35 = vpack.c.bf16 %v9453_v29, %v9446_v33  ;;  %v29936_v29 = vpack.c.bf16 %v29771_v40, %v29769_v52  ;;  %v29940_v33 = vpack.c.bf16 %v29836_v48, %v29834_v60 }
0x1c3e   :  { %26443 = vmatpush3.bf16.msra.mxu0 %v29459_v55 }
0x1c3f   :  { %26444 = vmatprep.subr.bf16.mxu0 %v32131_v8 }
0x1cb7   :  { %v9260_v16 = vpop.xlane.xlu1 %9259 }
0x1cb8   :  { %v9261_v30 = vsub.f32 %v29785_v21, %v9260_v16 }
0x1cba   :  { %v9262_v3 = vmul.f32 1.442695, %v9261_v30 }
0x1cbc   :  { %28022 = vpow2.f32 %v9262_v3 }
0x1cc6   :  { %v28023_v58 = vpop.eup %28022 }
0x1cc7   :  { %v29959_v44 = vand.u32 4294901760, %v28023_v58 }
0x1cc9   :  { %v9362_v45 = vsub.f32 %v28023_v58, %v29959_v44 }
0x1ccb   :  { %v9363_v17 = vand.u32 4294901760, %v9362_v45 }
0x1ccd   :  { %v9364_v63 = vsub.f32 %v9362_v45, %v9363_v17 }
0x1ccf   :  { %v9365_v26 = vand.u32 4294901760, %v9364_v63  ;;  %v32244_v63 = vand.u32 4294901760, %v29771_v40  ;;  %v32248_v40 = vand.u32 4294901760, %v29840_v54  ;;  %v32252_v54 = vand.u32 4294901760, %v29848_v23 }
0x1cd1   :  { %23555 = vmatmul.mubr.f32.vlgmr.msra.gmra.mrb[8].mxu0 %v9365_v26  ;;  %v32243_v26 = vand.u32 4294901760, %v29769_v52  ;;  %v32247_v52 = vand.u32 4294901760, %v29838_v20  ;;  %v32251_v20 = vand.u32 4294901760, %v29846_v24 }
0x1cd2   :  { %26446 = vmatpush3.bf16.msra.mxu0 %v29870_v57  ;;  %23589 = vmatprep.mubr.msk.f32.mxu0 %vm28106_vm0, %v32134_v1 }
0x1cd3   :  { %26447 = vmatprep.subr.bf16.mxu0 %v32131_v8  ;;  %v30028_v21 = vpack.c.bf16 %v32244_v63, %v32243_v26  ;;  %v30046_v3 = vpack.c.bf16 %v32248_v40, %v32247_v52  ;;  %v30062_v30 = vpack.c.bf16 %v32252_v54, %v32251_v20 }
0x1cd6   :  { %26449 = vmatpush3.bf16.msra.mxu0 %v29880_v22 }
0x1cd7   :  { %26450 = vmatprep.subr.bf16.mxu0 %v32131_v8 }
0x1cda   :  { %26452 = vmatpush3.bf16.msra.mxu0 %v29890_v59 }
0x1cdb   :  { %26453 = vmatprep.subr.bf16.mxu0 %v32131_v8 }
0x1cde   :  { %26455 = vmatpush3.bf16.msra.mxu0 %v29900_v15 }
0x1cdf   :  { %26456 = vmatprep.subr.bf16.mxu0 %v32131_v8 }
0x1ce2   :  { %26458 = vmatpush3.bf16.msra.mxu0 %v29910_v18 }
0x1ce3   :  { %26459 = vmatprep.subr.bf16.mxu0 %v32131_v8 }
0x1ce6   :  { %26461 = vmatpush3.bf16.msra.mxu0 %v29920_v35 }
0x1ce7   :  { %26462 = vmatprep.subr.bf16.mxu0 %v32131_v8 }
0x1cea   :  { %26464 = vmatpush3.bf16.msra.mxu0 %v29928_v13 }
0x1ceb   :  { %26465 = vmatprep.subr.bf16.mxu0 %v32131_v8 }
0x1cee   :  { %26467 = vmatpush3.bf16.msra.mxu0 %v29475_v39  ;;  %v32242_v39 = vand.u32 4294901760, %v29767_v49  ;;  %v32246_v49 = vand.u32 4294901760, %v29836_v48  ;;  %v32250_v48 = vand.u32 4294901760, %v29844_v43  ;;  %v32254_v43 = vand.u32 4294901760, %v29854_v61 }
0x1cef   :  { %26468 = vmatprep.subr.bf16.mxu0 %v32131_v8 }
0x1cf1   :  { %23590 = vmatmul.mubr.f32.vlgmr.msra.gmra.mrb[8].mxu0 %v29959_v44 }
0x1cf2   :  { %26470 = vmatpush3.bf16.msra.mxu0 %v29932_v27  ;;  %23624 = vmatprep.mubr.msk.f32.mxu0 %vm28106_vm0, %v32134_v1 }
0x1cf3   :  { %26471 = vmatprep.subr.bf16.mxu0 %v32131_v8 }
0x1cf6   :  { %26473 = vmatpush3.bf16.msra.mxu0 %v29936_v29 }
0x1cf7   :  { %26474 = vmatprep.subr.bf16.mxu0 %v32131_v8 }
0x1cfa   :  { %26476 = vmatpush3.bf16.msra.mxu0 %v29940_v33 }
0x1cfb   :  { %26477 = vmatprep.subr.bf16.mxu0 %v32131_v8 }
0x1cfe   :  { %26479 = vmatpush3.bf16.msra.mxu0 %v29944_v53 }
0x1cff   :  { %26480 = vmatprep.subr.bf16.mxu0 %v32131_v8 }
0x1d02   :  { %26482 = vmatpush3.bf16.msra.mxu0 %v29948_v14 }
0x1d03   :  { %26483 = vmatprep.subr.bf16.mxu0 %v32131_v8 }
0x1d06   :  { %26485 = vmatpush3.bf16.msra.mxu0 %v29952_v6 }
0x1d07   :  { %26486 = vmatprep.subr.bf16.mxu0 %v32131_v8 }
0x1d0a   :  { %26488 = vmatpush3.bf16.msra.mxu0 %v29956_v50 }
0x1d0b   :  { %26489 = vmatprep.subr.bf16.mxu0 %v32131_v8 }
0x1d0e   :  { %26491 = vmatpush3.bf16.msra.mxu0 %v29479_v56 }
0x1d0f   :  { %26492 = vmatprep.subr.bf16.mxu0 %v32131_v8 }
0x1d11   :  { %23625 = vmatmul.mubr.f32.vlgmr.msra.gmra.mrb[8].mxu0 %v9362_v45  ;;  %v32241_v45 = vand.u32 4294901760, %v29765_v62  ;;  %v32245_v62 = vand.u32 4294901760, %v29834_v60  ;;  %v32249_v60 = vand.u32 4294901760, %v29842_v41  ;;  %v32253_v41 = vand.u32 4294901760, %v29852_v2 }
0x1d12   :  { %26494 = vmatpush3.bf16.msra.mxu0 %v29763_v51  ;;  %23659 = vmatprep.mubr.msk.f32.mxu0 %vm28106_vm0, %v32134_v1 }
0x1d13   :  { %26495 = vmatprep.subr.bf16.mxu0 %v32131_v8  ;;  %v30020_v56 = vpack.c.bf16 %v32242_v39, %v32241_v45  ;;  %v30054_v58 = vpack.c.bf16 %v32250_v48, %v32249_v60  ;;  %v30070_v16 = vpack.c.bf16 %v32254_v43, %v32253_v41 }
0x1d16   :  { %26497 = vmatpush3.bf16.msra.mxu0 %v29774_v31 }
0x1d17   :  { %26498 = vmatprep.subr.bf16.mxu0 %v32131_v8 }
0x1d1a   :  { %26500 = vmatpush3.bf16.msra.mxu0 %v29794_v0 }
0x1d1b   :  { %26501 = vmatprep.subr.bf16.mxu0 %v32131_v8 }
0x1d1e   :  { %26503 = vmatpush3.bf16.msra.mxu0 %v29804_v47 }
0x1d1f   :  { %26504 = vmatprep.subr.bf16.mxu0 %v32131_v8 }
0x1d22   :  { %26506 = vmatpush3.bf16.msra.mxu0 %v29814_v38 }
0x1d23   :  { %26507 = vmatprep.subr.bf16.mxu0 %v32131_v8 }
0x1d26   :  { %26509 = vmatpush3.bf16.msra.mxu0 %v29824_v12 }
0x1d27   :  { %26510 = vmatprep.subr.bf16.mxu0 %v32131_v8 }
0x1d2a   :  { %26512 = vmatpush3.bf16.msra.mxu0 %v29850_v19 }
0x1d2b   :  { %26513 = vmatprep.subr.bf16.mxu0 %v32131_v8 }
0x1d2e   :  { %26515 = vmatpush3.bf16.msra.mxu0 %v29459_v55 }
0x1d2f   :  { %26516 = vmatprep.subr.bf16.mxu0 %v32131_v8 }
0x1d31   :  { %23660 = vmatmul.mubr.f32.vlgmr.msra.gmra.mrb[8].mxu0 %v9363_v17  ;;  %v30038_v17 = vpack.c.bf16 %v32246_v49, %v32245_v62 }
0x1d32   :  { %26518 = vmatpush3.bf16.msra.mxu0 %v30020_v56  ;;  %23694 = vmatprep.mubr.msk.f32.mxu0 %vm28106_vm0, %v32134_v1 }
0x1d33   :  { %26519 = vmatprep.subr.bf16.mxu0 %v32131_v8 }
0x1d36   :  { %26521 = vmatpush3.bf16.msra.mxu0 %v30028_v21 }
0x1d37   :  { %26522 = vmatprep.subr.bf16.mxu0 %v32131_v8 }
0x1d3a   :  { %26524 = vmatpush3.bf16.msra.mxu0 %v30038_v17 }
0x1d3b   :  { %26525 = vmatprep.subr.bf16.mxu0 %v32131_v8 }
0x1d3e   :  { %26527 = vmatpush3.bf16.msra.mxu0 %v30046_v3 }
0x1d3f   :  { %26528 = vmatprep.subr.bf16.mxu0 %v32131_v8 }
0x1d42   :  { %26530 = vmatpush3.bf16.msra.mxu0 %v30054_v58 }
0x1d43   :  { %26531 = vmatprep.subr.bf16.mxu0 %v32131_v8 }
0x1d46   :  { %26533 = vmatpush3.bf16.msra.mxu0 %v30062_v30 }
0x1d47   :  { %26534 = vmatprep.subr.bf16.mxu0 %v32131_v8 }
0x1d4a   :  { %26536 = vmatpush3.bf16.msra.mxu0 %v30070_v16 }
0x1d4b   :  { %26537 = vmatprep.subr.bf16.mxu0 %v32131_v8 }
0x1d4e   :  { %26539 = vmatpush3.bf16.msra.mxu0 %v29558_v32 }
0x1d4f   :  { %26540 = vmatprep.subr.bf16.mxu0 %v32131_v8 }
0x1d51   :  { %23695 = vmatmul.mubr.f32.vlgmr.msra.gmra.mrb[8].mxu0 %v29959_v44 }
0x1d52   :  { %26542 = vmatpush3.bf16.msra.mxu0 %v29763_v51  ;;  %23729 = vmatprep.mubr.msk.f32.mxu0 %vm28106_vm0, %v32134_v1 }
0x1d53   :  { %26543 = vmatprep.subr.bf16.mxu0 %v32131_v8 }
0x1d56   :  { %26545 = vmatpush3.bf16.msra.mxu0 %v29774_v31 }
0x1d57   :  { %26546 = vmatprep.subr.bf16.mxu0 %v32131_v8 }
0x1d5a   :  { %26548 = vmatpush3.bf16.msra.mxu0 %v29794_v0 }
0x1d5b   :  { %26549 = vmatprep.subr.bf16.mxu0 %v32131_v8 }
0x1d5e   :  { %26551 = vmatpush3.bf16.msra.mxu0 %v29804_v47 }
0x1d5f   :  { %26552 = vmatprep.subr.bf16.mxu0 %v32131_v8 }
0x1d62   :  { %26554 = vmatpush3.bf16.msra.mxu0 %v29814_v38 }
0x1d63   :  { %26555 = vmatprep.subr.bf16.mxu0 %v32131_v8 }
0x1d66   :  { %26557 = vmatpush3.bf16.msra.mxu0 %v29824_v12 }
0x1d67   :  { %26558 = vmatprep.subr.bf16.mxu0 %v32131_v8 }
0x1d6a   :  { %26560 = vmatpush3.bf16.msra.mxu0 %v29850_v19 }
0x1d6b   :  { %26561 = vmatprep.subr.bf16.mxu0 %v32131_v8 }
0x1d6e   :  { %26563 = vmatpush3.bf16.msra.mxu0 %v29459_v55 }
0x1d6f   :  { %26720 = vmatprep.subr.bf16.mxu0 %v32131_v8 }
0x1d71   :  { %23730 = vmatmul.mubr.f32.vlgmr.msra.gmra.mrb[8].mxu0 %v29959_v44 }
0x1d72   :  { %26722 = vmatpush3.bf16.msra.mxu0 %v29763_v51  ;;  %23962 = vmatprep.mubr.msk.f32.mxu0 %vm28106_vm0, %v32134_v1 }
0x1d73   :  { %26723 = vmatprep.subr.bf16.mxu0 %v32131_v8 }
0x1d76   :  { %26725 = vmatpush3.bf16.msra.mxu0 %v29774_v31 }
0x1d77   :  { %26726 = vmatprep.subr.bf16.mxu0 %v32131_v8 }
0x1d7a   :  { %26728 = vmatpush3.bf16.msra.mxu0 %v29794_v0 }
0x1d7b   :  { %26729 = vmatprep.subr.bf16.mxu0 %v32131_v8 }
0x1d7e   :  { %26731 = vmatpush3.bf16.msra.mxu0 %v29804_v47 }
0x1d7f   :  { %26732 = vmatprep.subr.bf16.mxu0 %v32131_v8 }
0x1d82   :  { %26734 = vmatpush3.bf16.msra.mxu0 %v29814_v38 }
0x1d83   :  { %26735 = vmatprep.subr.bf16.mxu0 %v32131_v8 }
0x1d86   :  { %26737 = vmatpush3.bf16.msra.mxu0 %v29824_v12 }
0x1d87   :  { %26738 = vmatprep.subr.bf16.mxu0 %v32131_v8 }
0x1d8a   :  { %26740 = vmatpush3.bf16.msra.mxu0 %v29850_v19 }
0x1d8b   :  { %26741 = vmatprep.subr.bf16.mxu0 %v32131_v8 }
0x1e44   :  { %v9917_v2 = vpop.f32.mrb[8].mxu0 }
0x1e45   :  { %28024 = vrcp.f32 %v9917_v2  ;;  %v23731_v23 = vpop.f32.mrb[9].mxu0 }
0x1e4f   :  { %v28025_v55 = vpop.eup %28024 }
0x1e50   :  { %9924 = vperm.xlu0 %27984, %v28025_v55  }
0x1ecf   :  { %v9925_v32 = vpop.permute.xlu0 %9924 }
0x1ed0   :  { %v9927_v24 = vmul.f32 %v9925_v32, %v9917_v2 }
0x1ed2   :  { %v9931_v61 = vsel %vm72_vm1, %v9927_v24, 0  ;;  %v20744_v24 = vld [vmem:[%s31940_s1 + $0x18] sm:$0xff] }
0x1ed3   :  { %v10002_v44 = vand.u32 4294901760, %v9931_v61 }
0x1ed5   :  { %v10003_v45 = vsub.f32 %v9931_v61, %v10002_v44 }
0x1ed7   :  { %v10004_v39 = vand.u32 4294901760, %v10003_v45 }
0x1ed9   :  { %v10005_v26 = vsub.f32 %v10003_v45, %v10004_v39 }
0x1edb   :  { %v10006_v63 = vand.u32 4294901760, %v10005_v26 }
0x1edd   :  { %23741 = vmatmul.mubr.f32.vlgmr.msra.gmra.mrb[88].mxu1 %v10006_v63 }
0x1ede   :  { %26572 = vmatpush3.bf16.msra.mxu1 %v28724_v5  ;;  %23751 = vmatprep.mubr.msk.f32.mxu1 %vm28106_vm0, %v32134_v1 }
0x1edf   :  { %26573 = vmatprep.subr.bf16.mxu1 %v32131_v8 }
0x1ee2   :  { %26575 = vmatpush3.bf16.msra.mxu1 %v28726_v10 }
0x1ee3   :  { %26576 = vmatprep.subr.bf16.mxu1 %v32131_v8 }
0x1ee5   :  { %23752 = vmatmul.mubr.f32.vlgmr.msra.gmra.mrb[90].mxu1 %v10002_v44 }
0x1ee6   :  { %26578 = vmatpush3.bf16.msra.mxu1 %v28728_v42  ;;  %23762 = vmatprep.mubr.msk.f32.mxu1 %vm28106_vm0, %v32134_v1 }
0x1ee7   :  { %26579 = vmatprep.subr.bf16.mxu1 %v32131_v8 }
0x1eea   :  { %26581 = vmatpush3.bf16.msra.mxu1 %v28730_v46 }
0x1eeb   :  { %26582 = vmatprep.subr.bf16.mxu1 %v32131_v8 }
0x1eed   :  { %23763 = vmatmul.mubr.f32.vlgmr.msra.gmra.mrb[92].mxu1 %v10003_v45 }
0x1eee   :  { %26584 = vmatpush3.bf16.msra.mxu1 %v28710_v4  ;;  %23773 = vmatprep.mubr.msk.f32.mxu1 %vm28106_vm0, %v32134_v1 }
0x1eef   :  { %26585 = vmatprep.subr.bf16.mxu1 %v32131_v8 }
0x1ef2   :  { %26587 = vmatpush3.bf16.msra.mxu1 %v28720_v7 }
0x1ef3   :  { %26588 = vmatprep.subr.bf16.mxu1 %v32131_v8 }
0x1ef5   :  { %23774 = vmatmul.mubr.f32.vlgmr.msra.gmra.mrb[94].mxu1 %v10004_v39 }
0x1ef6   :  { %26590 = vmatpush3.bf16.msra.mxu1 %v28732_v9  ;;  %23784 = vmatprep.mubr.msk.f32.mxu1 %vm28106_vm0, %v32134_v1 }
0x1ef7   :  { %26591 = vmatprep.subr.bf16.mxu1 %v32131_v8 }
0x1efa   :  { %26593 = vmatpush3.bf16.msra.mxu1 %v28734_v37 }
0x1efb   :  { %26594 = vmatprep.subr.bf16.mxu1 %v32131_v8 }
0x1efd   :  { %23785 = vmatmul.mubr.f32.vlgmr.msra.gmra.mrb[96].mxu1 %v10002_v44 }
0x1efe   :  { %26596 = vmatpush3.bf16.msra.mxu1 %v28710_v4  ;;  %23795 = vmatprep.mubr.msk.f32.mxu1 %vm28106_vm0, %v32134_v1 }
0x1eff   :  { %26597 = vmatprep.subr.bf16.mxu1 %v32131_v8 }
0x1f02   :  { %26599 = vmatpush3.bf16.msra.mxu1 %v28720_v7 }
0x1f03   :  { %26600 = vmatprep.subr.bf16.mxu1 %v32131_v8 }
0x1f05   :  { %23796 = vmatmul.mubr.f32.vlgmr.msra.gmra.mrb[98].mxu1 %v10002_v44 }
0x1f06   :  { %26602 = vmatpush3.bf16.msra.mxu1 %v28775_v36  ;;  %23806 = vmatprep.mubr.msk.f32.mxu1 %vm28106_vm0, %v32134_v1 }
0x1f07   :  { %26603 = vmatprep.subr.bf16.mxu1 %v32131_v8 }
0x1f0a   :  { %26605 = vmatpush3.bf16.msra.mxu1 %v32210_v34 }
0x1f0b   :  { %26606 = vmatprep.subr.bf16.mxu1 %v32131_v8 }
0x1fb0   :  { %v10008_v62 = vpop.f32.mrb[88].mxu1 }
0x1fb1   :  { %v23742_v49 = vpop.f32.mrb[89].mxu1 }
0x1fb8   :  { %v10099_v52 = vpop.f32.mrb[90].mxu1 }
0x1fb9   :  { %v10100_v40 = vadd.f32 %v10099_v52, %v10008_v62  ;;  %v23753_v60 = vpop.f32.mrb[91].mxu1 }
0x1fc0   :  { %v10179_v48 = vpop.f32.mrb[92].mxu1 }
0x1fc1   :  { %v10180_v20 = vadd.f32 %v10179_v48, %v10100_v40  ;;  %v23764_v54 = vpop.f32.mrb[93].mxu1  ;;  %v32255_v48 = vld [vmem:[#allocation31_spill] sm:$0xff] }
0x1fc2   :  { %v32257_v54 = vld [vmem:[#allocation33_spill] sm:$0xff] }
0x1fc8   :  { %v10256_v41 = vpop.f32.mrb[94].mxu1 }
0x1fc9   :  { %v10257_v43 = vadd.f32 %v10256_v41, %v10180_v20  ;;  %v23775_v2 = vpop.f32.mrb[95].mxu1  ;;  %v32256_v20 = vld [vmem:[#allocation32_spill] sm:$0xff]  ;;  %v32258_v41 = vld [vmem:[#allocation3_spill] sm:$0xff] }
0x1fca   :  { %v32260_v2 = vld [vmem:[#allocation5_spill] sm:$0xff] }
0x1fd0   :  { %v10339_v23 = vpop.f32.mrb[96].mxu1 }
0x1fd1   :  { %v10340_v55 = vadd.f32 %v10339_v23, %v10257_v43  ;;  %v23786_v32 = vpop.f32.mrb[97].mxu1  ;;  %v32259_v43 = vld [vmem:[#allocation4_spill] sm:$0xff]  ;;  %v32261_v23 = vld [vmem:[#allocation6_spill] sm:$0xff] }
0x1fd8   :  { %v10414_v61 = vpop.f32.mrb[98].mxu1 }
0x1fd9   :  { %v10415_v44 = vadd.f32 %v10414_v61, %v10340_v55  ;;  %v23797_v45 = vpop.f32.mrb[99].mxu1  ;;  %v32262_v55 = vld [vmem:[#allocation7_spill] sm:$0xff] }
0x1fdb   :  { %v10418_v39 = vadd.f32 %v20744_v24, %v10415_v44  ;;  %v32263_v24 = vld [vmem:[#allocation35_spill] sm:$0xff] }
0x1fdd   :  { %v10419_v26 = vmax.f32 %v10418_v39, 0.0 }
0x1fdf   :  { %v10421_v63 = vsel %vm72_vm1, %v10419_v26, 0 }
0x1fe0   :  { %v10492_v62 = vand.u32 4294901760, %v10421_v63 }
0x1fe2   :  { %v10493_v49 = vsub.f32 %v10421_v63, %v10492_v62 }
0x1fe4   :  { %v10494_v52 = vand.u32 4294901760, %v10493_v49 }
0x1fe6   :  { %v10495_v40 = vsub.f32 %v10493_v49, %v10494_v52 }
0x1fe8   :  { %v10496_v60 = vand.u32 4294901760, %v10495_v40 }
0x1fea   :  { %23807 = vmatmul.mubr.f32.vlgmr.msra.gmra.mrb[100].mxu1 %v10496_v60 }
0x1feb   :  { %26608 = vmatpush3.bf16.msra.mxu1 %v32211_v25  ;;  %23817 = vmatprep.mubr.msk.f32.mxu1 %vm28106_vm0, %v32134_v1 }
0x1fec   :  { %26609 = vmatprep.subr.bf16.mxu1 %v32131_v8 }
0x1fef   :  { %26611 = vmatpush3.bf16.msra.mxu1 %v32212_v11 }
0x1ff0   :  { %26612 = vmatprep.subr.bf16.mxu1 %v32131_v8 }
0x1ff2   :  { %23818 = vmatmul.mubr.f32.vlgmr.msra.gmra.mrb[102].mxu1 %v10492_v62 }
0x1ff3   :  { %26614 = vmatpush3.bf16.msra.mxu1 %v32213_v28  ;;  %23828 = vmatprep.mubr.msk.f32.mxu1 %vm28106_vm0, %v32134_v1 }
0x1ff4   :  { %26615 = vmatprep.subr.bf16.mxu1 %v32131_v8 }
0x1ff7   :  { %26617 = vmatpush3.bf16.msra.mxu1 %v32255_v48 }
0x1ff8   :  { %26618 = vmatprep.subr.bf16.mxu1 %v32131_v8 }
0x1ffa   :  { %23829 = vmatmul.mubr.f32.vlgmr.msra.gmra.mrb[104].mxu1 %v10493_v49 }
0x1ffb   :  { %26620 = vmatpush3.bf16.msra.mxu1 %v28775_v36  ;;  %23839 = vmatprep.mubr.msk.f32.mxu1 %vm28106_vm0, %v32134_v1 }
0x1ffc   :  { %26621 = vmatprep.subr.bf16.mxu1 %v32131_v8 }
0x1fff   :  { %26623 = vmatpush3.bf16.msra.mxu1 %v32210_v34 }
0x2000   :  { %26624 = vmatprep.subr.bf16.mxu1 %v32131_v8 }
0x2002   :  { %23840 = vmatmul.mubr.f32.vlgmr.msra.gmra.mrb[106].mxu1 %v10494_v52 }
0x2003   :  { %26626 = vmatpush3.bf16.msra.mxu1 %v32256_v20  ;;  %23850 = vmatprep.mubr.msk.f32.mxu1 %vm28106_vm0, %v32134_v1 }
0x2004   :  { %26627 = vmatprep.subr.bf16.mxu1 %v32131_v8 }
0x2007   :  { %26629 = vmatpush3.bf16.msra.mxu1 %v32257_v54 }
0x2008   :  { %26630 = vmatprep.subr.bf16.mxu1 %v32131_v8 }
0x200a   :  { %23851 = vmatmul.mubr.f32.vlgmr.msra.gmra.mrb[108].mxu1 %v10492_v62 }
0x200b   :  { %26632 = vmatpush3.bf16.msra.mxu1 %v28775_v36  ;;  %23861 = vmatprep.mubr.msk.f32.mxu1 %vm28106_vm0, %v32134_v1 }
0x200c   :  { %26633 = vmatprep.subr.bf16.mxu1 %v32131_v8 }
0x200f   :  { %26635 = vmatpush3.bf16.msra.mxu1 %v32210_v34 }
0x2010   :  { %26637 = vmatprep.subr.bf16.mxu1 %v32258_v41 }
0x2012   :  { %23862 = vmatmul.mubr.f32.vlgmr.msra.gmra.mrb[110].mxu1 %v10492_v62 }
0x2013   :  { %26639 = vmatpush1.bf16.msra.mxu1 %v32259_v43  ;;  %11013 = vmatprep.mubr.f32.mxu1 %v32134_v1 }
0x2014   :  { %26641 = vmatprep.subr.bf16.mxu1 %v32260_v2 }
0x2017   :  { %26643 = vmatpush1.bf16.msra.mxu1 %v32261_v23 }
0x2018   :  { %26645 = vmatprep.subr.bf16.mxu1 %v32262_v55  ;;  %v32264_v55 = vld [vmem:[#allocation36_spill] sm:$0xff] }
0x20bd   :  { %v10498_v32 = vpop.f32.mrb[100].mxu1 }
0x20be   :  { %v10499_v61 = vadd.f32 %v10498_v32, %v32263_v24  ;;  %v23808_v44 = vpop.f32.mrb[101].mxu1 }
0x20c5   :  { %v10589_v45 = vpop.f32.mrb[102].mxu1 }
0x20c6   :  { %v10590_v39 = vadd.f32 %v10589_v45, %v10499_v61  ;;  %v23819_v26 = vpop.f32.mrb[103].mxu1 }
0x20cd   :  { %v10669_v63 = vpop.f32.mrb[104].mxu1 }
0x20ce   :  { %v10670_v49 = vadd.f32 %v10669_v63, %v10590_v39  ;;  %v23830_v62 = vpop.f32.mrb[105].mxu1 }
0x20d5   :  { %v10746_v52 = vpop.f32.mrb[106].mxu1 }
0x20d6   :  { %v10747_v40 = vadd.f32 %v10746_v52, %v10670_v49  ;;  %v23841_v60 = vpop.f32.mrb[107].mxu1 }
0x20dd   :  { %v10829_v54 = vpop.f32.mrb[108].mxu1 }
0x20de   :  { %v10830_v20 = vadd.f32 %v10829_v54, %v10747_v40  ;;  %v23852_v48 = vpop.f32.mrb[109].mxu1 }
0x20df   :  { %v32265_v48 = vld [vmem:[#allocation34_spill] sm:$0xff] }
0x20e5   :  { %v10904_v28 = vpop.f32.mrb[110].mxu1 }
0x20e6   :  { %v10905_v11 = vadd.f32 %v10904_v28, %v10830_v20  ;;  %v23863_v25 = vpop.f32.mrb[111].mxu1 }
0x20e8   :  { %v10908_v34 = vadd.f32 %v32264_v55, %v10905_v11 }
0x20ea   :  { %28026 = vtanh.f32 %v10908_v34  ;;  %v20745_v24 = vmul.f32 -1.442695, %v10908_v34 }
0x20ec   :  { %28028 = vpow2.f32 %v20745_v24  ;;  %v32267_v24 = vld [vmem:[#allocation9_spill] sm:$0xff] }
0x20f4   :  { %v28027_v32 = vpop.eup %28026 }
0x20f5   :  { %10918 = vrot.lane.b32.xlu0 %v28027_v32, %s28108_s28  ;;  %v32266_v32 = vld [vmem:[#allocation8_spill] sm:$0xff] }
0x20f6   :  { %v28029_v61 = vpop.eup %28028 }
0x20f7   :  { %v10912_v44 = vadd.f32 1.0, %v28029_v61  ;;  %v32268_v61 = vld [vmem:[#allocation10_spill] sm:$0xff] }
0x20f9   :  { %28030 = vrcp.f32 %v10912_v44  ;;  %v32269_v44 = vld [vmem:[#allocation11_spill] sm:$0xff] }
0x2103   :  { %v28031_v45 = vpop.eup %28030 }
0x2104   :  { %v10916_v54 = vmul.f32 %v28031_v45, %v32265_v48  ;;  %v32273_v48 = vld [vmem:[#allocation15_spill] sm:$0xff] }
0x2167   :  { %v10919_v39 = vpop.permute.xlu0 %10918 }
0x2168   :  { %v10921_v26 = vmul.f32 %v28031_v45, %v10919_v39  ;;  %v32271_v39 = vld [vmem:[#allocation13_spill] sm:$0xff] }
0x216a   :  { %10923 = vrot.lane.b32.xlu0 %v10921_v26, %s28108_s28  ;;  %v32272_v26 = vld [vmem:[#allocation14_spill] sm:$0xff] }
0x21dc   :  { %v10924_v28 = vpop.permute.xlu0 %10923 }
0x21dd   :  { %v30194_v25 = vadd.f32 %v10924_v28, %v10916_v54  ;;  %v32274_v54 = vld [vmem:[#allocation16_spill] sm:$0xff]  ;;  %v32275_v28 = vld [vmem:[#allocation17_spill] sm:$0xff] }
0x21df   :  { %28032 = vtanh.f32 %v30194_v25 }
0x21e9   :  { %v28033_v11 = vpop.eup %28032 }
0x21ea   :  { %10929 = vrot.lane.b32.xlu0 %v28033_v11, %s28108_s28  ;;  %v32276_v11 = vld [vmem:[#allocation18_spill] sm:$0xff] }
0x225c   :  { %v10930_v34 = vpop.permute.xlu0 %10929 }
0x225d   :  { %v10932_v20 = vmul.f32 %v28031_v45, %v10930_v34  ;;  %v32270_v45 = vld [vmem:[#allocation12_spill] sm:$0xff]  ;;  %v32277_v34 = vld [vmem:[#allocation19_spill] sm:$0xff] }
0x225f   :  { %10934 = vrot.lane.b32.xlu1 %v10932_v20, %s28109_s29  ;;  %v32278_v20 = vld [vmem:[#allocation20_spill] sm:$0xff] }
0x22d1   :  { %v10935_v55 = vpop.permute.xlu1 %10934 }
0x22d2   :  { %10938 = vst.msk [vmem:[#allocation2 + $0x18] sm:$0xff] %vm72_vm1, %v10935_v55  ;;  %v10939_v63 = vsel %vm72_vm1, %v10935_v55, 0  ;;  %v20746_v55 = vld [vmem:[%s31935_s0 + $0x20] sm:$0xff] }
0x22d3   :  { %v11014_v49 = vand.u32 4294901760, %v10939_v63 }
0x22d5   :  { %v11015_v62 = vsub.f32 %v10939_v63, %v11014_v49 }
0x22d7   :  { %v11016_v52 = vand.u32 4294901760, %v11015_v62 }
0x22d9   :  { %v11017_v40 = vsub.f32 %v11015_v62, %v11016_v52 }
0x22db   :  { %v11018_v60 = vand.u32 4294901760, %v11017_v40 }
0x22dd   :  { %11019 = vmatmul.mubr.f32.vlgmr.msra.gmra.mrb[112].mxu1 %v11018_v60 }
0x22de   :  { %26647 = vmatpush1.bf16.msra.mxu1 %v32266_v32  ;;  %11129 = vmatprep.mubr.f32.mxu1 %v32134_v1 }
0x22df   :  { %26649 = vmatprep.subr.bf16.mxu1 %v32267_v24 }
0x22e2   :  { %26651 = vmatpush1.bf16.msra.mxu1 %v32268_v61 }
0x22e3   :  { %26653 = vmatprep.subr.bf16.mxu1 %v32269_v44 }
0x22e5   :  { %11131 = vmatmul.mubr.f32.vlgmr.msra.gmra.mrb[112].mxu1 %v11014_v49 }
0x22e6   :  { %26655 = vmatpush1.bf16.msra.mxu1 %v32270_v45  ;;  %11217 = vmatprep.mubr.f32.mxu1 %v32134_v1 }
0x22e7   :  { %26657 = vmatprep.subr.bf16.mxu1 %v32271_v39  ;;  %v32280_v39 = vld [vmem:[#allocation22_spill] sm:$0xff] }
0x22ea   :  { %26659 = vmatpush1.bf16.msra.mxu1 %v32272_v26  ;;  %v32279_v26 = vld [vmem:[#allocation21_spill] sm:$0xff] }
0x22eb   :  { %26661 = vmatprep.subr.bf16.mxu1 %v32258_v41 }
0x22ed   :  { %11220 = vmatmul.mubr.f32.vlgmr.msra.gmra.mrb[112].mxu1 %v11015_v62 }
0x22ee   :  { %26663 = vmatpush1.bf16.msra.mxu1 %v32259_v43  ;;  %11298 = vmatprep.mubr.f32.mxu1 %v32134_v1 }
0x22ef   :  { %26665 = vmatprep.subr.bf16.mxu1 %v32260_v2 }
0x22f2   :  { %26667 = vmatpush1.bf16.msra.mxu1 %v32261_v23 }
0x22f3   :  { %26669 = vmatprep.subr.bf16.mxu1 %v32273_v48 }
0x22f5   :  { %11302 = vmatmul.mubr.f32.vlgmr.msra.gmra.mrb[112].mxu1 %v11016_v52 }
0x22f6   :  { %26671 = vmatpush1.bf16.msra.mxu1 %v32274_v54  ;;  %11396 = vmatprep.mubr.f32.mxu1 %v32134_v1 }
0x22f7   :  { %26673 = vmatprep.subr.bf16.mxu1 %v32275_v28 }
0x22fa   :  { %26675 = vmatpush1.bf16.msra.mxu1 %v32276_v11 }
0x22fb   :  { %26677 = vmatprep.subr.bf16.mxu1 %v32258_v41 }
0x22fd   :  { %11398 = vmatmul.mubr.f32.vlgmr.msra.gmra.mrb[112].mxu1 %v11014_v49 }
0x22fe   :  { %26679 = vmatpush1.bf16.msra.mxu1 %v32259_v43  ;;  %11476 = vmatprep.mubr.f32.mxu1 %v32134_v1 }
0x22ff   :  { %26681 = vmatprep.subr.bf16.mxu1 %v32260_v2 }
0x2302   :  { %26683 = vmatpush1.bf16.msra.mxu1 %v32261_v23 }
0x2303   :  { %26684 = vmatprep.subr.bf16.mxu1 %v32131_v8 }
0x2305   :  { %11478 = vmatmul.mubr.f32.vlgmr.msra.gmra.mrb[112].mxu1 %v11014_v49 }
0x2306   :  { %26686 = vmatpush3.bf16.msra.mxu1 %v32277_v34  ;;  %23872 = vmatprep.mubr.msk.f32.mxu1 %vm28106_vm0, %v32134_v1 }
0x2307   :  { %26687 = vmatprep.subr.bf16.mxu1 %v32131_v8 }
0x230a   :  { %26689 = vmatpush3.bf16.msra.mxu1 %v32278_v20 }
0x230b   :  { %26690 = vmatprep.subr.bf16.mxu1 %v32131_v8 }
0x23d8   :  { %v30235_v63 = vpop.f32.mrb[112].mxu1 }
0x23d9   :  { %v11481_v62 = vpop.f32.mrb[113].mxu1 }
0x23da   :  { %v11486_v52 = vadd.f32 %v20746_v55, %v11481_v62  ;;  %v32281_v55 = vld [vmem:[#allocation23_spill] sm:$0xff]  ;;  %v32285_v62 = vld [vmem:[#allocation37_spill] sm:$0xff] }
0x23dc   :  { %v11487_v49 = vmax.f32 %v11486_v52, 0.0 }
0x23de   :  { %v11489_v40 = vsel %vm72_vm1, %v11487_v49, 0 }
0x23df   :  { %v11560_v60 = vand.u32 4294901760, %v11489_v40 }
0x23e1   :  { %v11561_v11 = vsub.f32 %v11489_v40, %v11560_v60  ;;  %v11995_v40 = vld [vmem:[%s31936_s3 + $0x70] sm:$0xff] }
0x23e3   :  { %v11562_v28 = vand.u32 4294901760, %v11561_v11 }
0x23e5   :  { %v11563_v54 = vsub.f32 %v11561_v11, %v11562_v28 }
0x23e7   :  { %v11564_v48 = vand.u32 4294901760, %v11563_v54  ;;  %v32283_v54 = vld [vmem:[#allocation25_spill] sm:$0xff] }
0x23e9   :  { %23873 = vmatmul.mubr.f32.vlgmr.msra.gmra.mrb[114].mxu1 %v11564_v48  ;;  %v32282_v48 = vld [vmem:[#allocation24_spill] sm:$0xff] }
0x23ea   :  { %26692 = vmatpush3.bf16.msra.mxu1 %v32279_v26  ;;  %23883 = vmatprep.mubr.msk.f32.mxu1 %vm28106_vm0, %v32134_v1 }
0x23eb   :  { %26693 = vmatprep.subr.bf16.mxu1 %v32131_v8 }
0x23ee   :  { %26695 = vmatpush3.bf16.msra.mxu1 %v32280_v39 }
0x23ef   :  { %26696 = vmatprep.subr.bf16.mxu1 %v32131_v8 }
0x23f1   :  { %23884 = vmatmul.mubr.f32.vlgmr.msra.gmra.mrb[114].mxu1 %v11560_v60 }
0x23f2   :  { %26698 = vmatpush3.bf16.msra.mxu1 %v32281_v55  ;;  %23894 = vmatprep.mubr.msk.f32.mxu1 %vm28106_vm0, %v32134_v1 }
0x23f3   :  { %26699 = vmatprep.subr.bf16.mxu1 %v32131_v8 }
0x23f6   :  { %26701 = vmatpush3.bf16.msra.mxu1 %v32282_v48 }
0x23f7   :  { %26702 = vmatprep.subr.bf16.mxu1 %v32131_v8 }
0x23f9   :  { %23895 = vmatmul.mubr.f32.vlgmr.msra.gmra.mrb[114].mxu1 %v11561_v11  ;;  %v32284_v11 = vld [vmem:[#allocation26_spill] sm:$0xff] }
0x23fa   :  { %26704 = vmatpush3.bf16.msra.mxu1 %v32277_v34  ;;  %23905 = vmatprep.mubr.msk.f32.mxu1 %vm28106_vm0, %v32134_v1 }
0x23fb   :  { %26705 = vmatprep.subr.bf16.mxu1 %v32131_v8 }
0x23fe   :  { %26707 = vmatpush3.bf16.msra.mxu1 %v32278_v20 }
0x23ff   :  { %26708 = vmatprep.subr.bf16.mxu1 %v32131_v8 }
0x2401   :  { %23906 = vmatmul.mubr.f32.vlgmr.msra.gmra.mrb[114].mxu1 %v11562_v28 }
0x2402   :  { %26710 = vmatpush3.bf16.msra.mxu1 %v32283_v54  ;;  %23916 = vmatprep.mubr.msk.f32.mxu1 %vm28106_vm0, %v32134_v1 }
0x2403   :  { %26711 = vmatprep.subr.bf16.mxu1 %v32131_v8 }
0x2406   :  { %26713 = vmatpush3.bf16.msra.mxu1 %v32284_v11  ;;  %v12040_v11 = vand.u32 4294901760, %v11995_v40 }
0x2407   :  { %26714 = vmatprep.subr.bf16.mxu1 %v32131_v8 }
0x2408   :  { %v30283_v55 = vsub.f32 %v11995_v40, %v12040_v11 }
0x2409   :  { %23917 = vmatmul.mubr.f32.vlgmr.msra.gmra.mrb[114].mxu1 %v11560_v60 }
0x240a   :  { %26716 = vmatpush3.bf16.msra.mxu1 %v32277_v34  ;;  %23927 = vmatprep.mubr.msk.f32.mxu1 %vm28106_vm0, %v32134_v1 }
0x240b   :  { %26717 = vmatprep.subr.bf16.mxu1 %v32131_v8 }
0x240e   :  { %26719 = vmatpush3.bf16.msra.mxu1 %v32278_v20 }
0x240f   :  { %26864 = vmatprep.subr.bf16.mxu1 %v32131_v8 }
0x2411   :  { %23928 = vmatmul.mubr.f32.vlgmr.msra.gmra.mrb[114].mxu1 %v11560_v60  ;;  %v11996_v60 = vld [vmem:[%s31936_s3 + $0x78] sm:$0xff] }
0x2412   :  { %26866 = vmatpush3.bf16.msra.mxu1 %v28710_v4  ;;  %24148 = vmatprep.mubr.msk.f32.mxu1 %vm28106_vm0, %v32134_v1  ;;  %v12043_v54 = vand.u32 4294901760, %v11996_v60 }
0x2413   :  { %26867 = vmatprep.subr.bf16.mxu1 %v32131_v8 }
0x2414   :  { %v30281_v48 = vpack.c.bf16 %v12043_v54, %v12040_v11  ;;  %v30285_v39 = vsub.f32 %v11996_v60, %v12043_v54 }
0x2416   :  { %26869 = vmatpush3.bf16.msra.mxu1 %v28720_v7  ;;  %26743 = vmatpush3.bf16.msra.mxu0 %v30281_v48  ;;  %v30301_v60 = vpack.c.bf16 %v30285_v39, %v30283_v55 }
0x2417   :  { %26870 = vmatprep.subr.bf16.mxu1 %v32131_v8  ;;  %26744 = vmatprep.subr.bf16.mxu0 %v32131_v8 }
0x24e4   :  { %v11972_v28 = vpop.f32.mrb[114].mxu1 }
0x24e5   :  { %v27617_v52 = vadd.f32 %v32285_v62, %v11972_v28  ;;  %v23929_v49 = vpop.f32.mrb[115].mxu1  ;;  %v32078_v28 = vand.u32 4294901760, %v30283_v55  ;;  %v32079_v62 = vand.u32 4294901760, %v30285_v39 }
0x24e7   :  { %11976 = vmax.xlane.f32.xlu0 %v27617_v52  ;;  %v12190_v49 = vsub.f32 %v30283_v55, %v32078_v28  ;;  %v12197_v26 = vsub.f32 %v30285_v39, %v32079_v62 }
0x24e9   :  { %v12191_v11 = vand.u32 4294901760, %v12190_v49  ;;  %v12198_v40 = vand.u32 4294901760, %v12197_v26  ;;  %v32289_v49 = vld [vmem:[#allocation28_spill] sm:$0xff] }
0x24eb   :  { %v30297_v54 = vpack.c.bf16 %v12198_v40, %v12191_v11  ;;  %v32290_v11 = vld [vmem:[#allocation29_spill] sm:$0xff]  ;;  %v32291_v40 = vld [vmem:[#allocation30_spill] sm:$0xff] }
0x2574   :  { %v11977_v20 = vpop.xlane.xlu0 %11976 }
0x2575   :  { %v11978_v34 = vsub.f32 %v27617_v52, %v11977_v20 }
0x2577   :  { %v11979_v45 = vmul.f32 1.442695, %v11978_v34 }
0x2579   :  { %28034 = vpow2.f32 %v11979_v45 }
0x2583   :  { %v28035_v44 = vpop.eup %28034 }
0x2584   :  { %v30303_v61 = vand.u32 4294901760, %v28035_v44 }
0x2586   :  { %v12079_v28 = vsub.f32 %v28035_v44, %v30303_v61 }
0x2588   :  { %v12080_v24 = vand.u32 4294901760, %v12079_v28 }
0x258a   :  { %v12081_v32 = vsub.f32 %v12079_v28, %v12080_v24 }
0x258c   :  { %v12082_v62 = vand.u32 4294901760, %v12081_v32 }
0x258e   :  { %23963 = vmatmul.mubr.f32.vlgmr.msra.gmra.mrb[10].mxu0 %v12082_v62 }
0x258f   :  { %26746 = vmatpush3.bf16.msra.mxu0 %v29870_v57  ;;  %23997 = vmatprep.mubr.msk.f32.mxu0 %vm28106_vm0, %v32134_v1  ;;  %v32287_v57 = vand.u32 4294901760, %v30285_v39 }
0x2590   :  { %26747 = vmatprep.subr.bf16.mxu0 %v32131_v8 }
0x2593   :  { %26749 = vmatpush3.bf16.msra.mxu0 %v29880_v22 }
0x2594   :  { %26750 = vmatprep.subr.bf16.mxu0 %v32131_v8 }
0x2597   :  { %26752 = vmatpush3.bf16.msra.mxu0 %v29890_v59 }
0x2598   :  { %26753 = vmatprep.subr.bf16.mxu0 %v32131_v8 }
0x259b   :  { %26755 = vmatpush3.bf16.msra.mxu0 %v29900_v15 }
0x259c   :  { %26756 = vmatprep.subr.bf16.mxu0 %v32131_v8 }
0x259f   :  { %26758 = vmatpush3.bf16.msra.mxu0 %v29910_v18 }
0x25a0   :  { %26759 = vmatprep.subr.bf16.mxu0 %v32131_v8 }
0x25a3   :  { %26761 = vmatpush3.bf16.msra.mxu0 %v29920_v35 }
0x25a4   :  { %26762 = vmatprep.subr.bf16.mxu0 %v32131_v8 }
0x25a7   :  { %26764 = vmatpush3.bf16.msra.mxu0 %v29928_v13  ;;  %v32286_v13 = vand.u32 4294901760, %v30283_v55 }
0x25a8   :  { %26765 = vmatprep.subr.bf16.mxu0 %v32131_v8 }
0x25a9   :  { %v30380_v22 = vpack.c.bf16 %v32287_v57, %v32286_v13  ;;  %v32292_v13 = vld [vmem:[#allocation31_spill] sm:$0xff]  ;;  %v32293_v57 = vld [vmem:[#allocation32_spill] sm:$0xff] }
0x25ab   :  { %26767 = vmatpush3.bf16.msra.mxu0 %v30297_v54 }
0x25ac   :  { %26768 = vmatprep.subr.bf16.mxu0 %v32131_v8 }
0x25ae   :  { %23998 = vmatmul.mubr.f32.vlgmr.msra.gmra.mrb[10].mxu0 %v30303_v61 }
0x25af   :  { %26770 = vmatpush3.bf16.msra.mxu0 %v29932_v27  ;;  %24032 = vmatprep.mubr.msk.f32.mxu0 %vm28106_vm0, %v32134_v1  ;;  %v32288_v27 = vld [vmem:[#allocation27_spill] sm:$0xff] }
0x25b0   :  { %26771 = vmatprep.subr.bf16.mxu0 %v32131_v8 }
0x25b3   :  { %26773 = vmatpush3.bf16.msra.mxu0 %v29936_v29 }
0x25b4   :  { %26774 = vmatprep.subr.bf16.mxu0 %v32131_v8 }
0x25b7   :  { %26776 = vmatpush3.bf16.msra.mxu0 %v29940_v33 }
0x25b8   :  { %26777 = vmatprep.subr.bf16.mxu0 %v32131_v8 }
0x25bb   :  { %26779 = vmatpush3.bf16.msra.mxu0 %v29944_v53 }
0x25bc   :  { %26780 = vmatprep.subr.bf16.mxu0 %v32131_v8 }
0x25bf   :  { %26782 = vmatpush3.bf16.msra.mxu0 %v29948_v14 }
0x25c0   :  { %26783 = vmatprep.subr.bf16.mxu0 %v32131_v8 }
0x25c3   :  { %26785 = vmatpush3.bf16.msra.mxu0 %v29952_v6 }
0x25c4   :  { %26786 = vmatprep.subr.bf16.mxu0 %v32131_v8 }
0x25c7   :  { %26788 = vmatpush3.bf16.msra.mxu0 %v29956_v50 }
0x25c8   :  { %26789 = vmatprep.subr.bf16.mxu0 %v32131_v8 }
0x25cb   :  { %26791 = vmatpush3.bf16.msra.mxu0 %v30301_v60 }
0x25cc   :  { %26792 = vmatprep.subr.bf16.mxu0 %v32131_v8 }
0x25ce   :  { %24033 = vmatmul.mubr.f32.vlgmr.msra.gmra.mrb[10].mxu0 %v12079_v28 }
0x25cf   :  { %26794 = vmatpush3.bf16.msra.mxu0 %v29763_v51  ;;  %24067 = vmatprep.mubr.msk.f32.mxu0 %vm28106_vm0, %v32134_v1 }
0x25d0   :  { %26795 = vmatprep.subr.bf16.mxu0 %v32131_v8 }
0x25d3   :  { %26797 = vmatpush3.bf16.msra.mxu0 %v29774_v31 }
0x25d4   :  { %26798 = vmatprep.subr.bf16.mxu0 %v32131_v8 }
0x25d7   :  { %26800 = vmatpush3.bf16.msra.mxu0 %v29794_v0 }
0x25d8   :  { %26801 = vmatprep.subr.bf16.mxu0 %v32131_v8 }
0x25db   :  { %26803 = vmatpush3.bf16.msra.mxu0 %v29804_v47 }
0x25dc   :  { %26804 = vmatprep.subr.bf16.mxu0 %v32131_v8 }
0x25df   :  { %26806 = vmatpush3.bf16.msra.mxu0 %v29814_v38 }
0x25e0   :  { %26807 = vmatprep.subr.bf16.mxu0 %v32131_v8 }
0x25e3   :  { %26809 = vmatpush3.bf16.msra.mxu0 %v29824_v12 }
0x25e4   :  { %26810 = vmatprep.subr.bf16.mxu0 %v32131_v8 }
0x25e7   :  { %26812 = vmatpush3.bf16.msra.mxu0 %v29850_v19 }
0x25e8   :  { %26813 = vmatprep.subr.bf16.mxu0 %v32131_v8 }
0x25eb   :  { %26815 = vmatpush3.bf16.msra.mxu0 %v30281_v48 }
0x25ec   :  { %26816 = vmatprep.subr.bf16.mxu0 %v32131_v8 }
0x25ee   :  { %24068 = vmatmul.mubr.f32.vlgmr.msra.gmra.mrb[10].mxu0 %v12080_v24  ;;  %v20747_v24 = vld [vmem:[%s31940_s1 + $0x20] sm:$0xff] }
0x25ef   :  { %26818 = vmatpush3.bf16.msra.mxu0 %v30020_v56  ;;  %24102 = vmatprep.mubr.msk.f32.mxu0 %vm28106_vm0, %v32134_v1 }
0x25f0   :  { %26819 = vmatprep.subr.bf16.mxu0 %v32131_v8 }
0x25f3   :  { %26821 = vmatpush3.bf16.msra.mxu0 %v30028_v21 }
0x25f4   :  { %26822 = vmatprep.subr.bf16.mxu0 %v32131_v8 }
0x25f7   :  { %26824 = vmatpush3.bf16.msra.mxu0 %v30038_v17 }
0x25f8   :  { %26825 = vmatprep.subr.bf16.mxu0 %v32131_v8 }
0x25fb   :  { %26827 = vmatpush3.bf16.msra.mxu0 %v30046_v3 }
0x25fc   :  { %26828 = vmatprep.subr.bf16.mxu0 %v32131_v8 }
0x25ff   :  { %26830 = vmatpush3.bf16.msra.mxu0 %v30054_v58 }
0x2600   :  { %26831 = vmatprep.subr.bf16.mxu0 %v32131_v8 }
0x2603   :  { %26833 = vmatpush3.bf16.msra.mxu0 %v30062_v30 }
0x2604   :  { %26834 = vmatprep.subr.bf16.mxu0 %v32131_v8 }
0x2607   :  { %26836 = vmatpush3.bf16.msra.mxu0 %v30070_v16 }
0x2608   :  { %26837 = vmatprep.subr.bf16.mxu0 %v32131_v8 }
0x260b   :  { %26839 = vmatpush3.bf16.msra.mxu0 %v30380_v22 }
0x260c   :  { %26840 = vmatprep.subr.bf16.mxu0 %v32131_v8 }
0x260e   :  { %24103 = vmatmul.mubr.f32.vlgmr.msra.gmra.mrb[10].mxu0 %v30303_v61 }
0x260f   :  { %26842 = vmatpush3.bf16.msra.mxu0 %v29763_v51  ;;  %24137 = vmatprep.mubr.msk.f32.mxu0 %vm28106_vm0, %v32134_v1 }
0x2610   :  { %26843 = vmatprep.subr.bf16.mxu0 %v32131_v8 }
0x2613   :  { %26845 = vmatpush3.bf16.msra.mxu0 %v29774_v31 }
0x2614   :  { %26846 = vmatprep.subr.bf16.mxu0 %v32131_v8 }
0x2617   :  { %26848 = vmatpush3.bf16.msra.mxu0 %v29794_v0 }
0x2618   :  { %26849 = vmatprep.subr.bf16.mxu0 %v32131_v8 }
0x261b   :  { %26851 = vmatpush3.bf16.msra.mxu0 %v29804_v47 }
0x261c   :  { %26852 = vmatprep.subr.bf16.mxu0 %v32131_v8 }
0x261f   :  { %26854 = vmatpush3.bf16.msra.mxu0 %v29814_v38 }
0x2620   :  { %26855 = vmatprep.subr.bf16.mxu0 %v32131_v8 }
0x2623   :  { %26857 = vmatpush3.bf16.msra.mxu0 %v29824_v12 }
0x2624   :  { %26858 = vmatprep.subr.bf16.mxu0 %v32131_v8 }
0x2627   :  { %26860 = vmatpush3.bf16.msra.mxu0 %v29850_v19 }
0x2628   :  { %26861 = vmatprep.subr.bf16.mxu0 %v32131_v8 }
0x262b   :  { %26863 = vmatpush3.bf16.msra.mxu0 %v30281_v48 }
0x262c   :  { %27020 = vmatprep.subr.bf16.mxu0 %v32131_v8 }
0x262e   :  { %24138 = vmatmul.mubr.f32.vlgmr.msra.gmra.mrb[10].mxu0 %v30303_v61 }
0x262f   :  { %24370 = vmatprep.mubr.msk.f32.mxu0 %vm28106_vm0, %v32134_v1 }
0x2701   :  { %v12634_v38 = vpop.f32.mrb[10].mxu0 }
0x2702   :  { %28036 = vrcp.f32 %v12634_v38  ;;  %v24139_v47 = vpop.f32.mrb[11].mxu0 }
0x2703   :  { %v32295_v47 = vld [vmem:[#allocation7_spill] sm:$0xff] }
0x270c   :  { %v28037_v51 = vpop.eup %28036 }
0x270d   :  { %12641 = vperm.xlu1 %27985, %v28037_v51  }
0x278c   :  { %v12642_v12 = vpop.permute.xlu1 %12641 }
0x278d   :  { %v12644_v31 = vmul.f32 %v12642_v12, %v12634_v38  ;;  %v32294_v38 = vld [vmem:[#allocation33_spill] sm:$0xff] }
0x278f   :  { %v12648_v19 = vsel %vm72_vm1, %v12644_v31, 0 }
0x2790   :  { %v12719_v0 = vand.u32 4294901760, %v12648_v19 }
0x2792   :  { %v12720_v59 = vsub.f32 %v12648_v19, %v12719_v0 }
0x2794   :  { %v12721_v15 = vand.u32 4294901760, %v12720_v59 }
0x2796   :  { %v12722_v18 = vsub.f32 %v12720_v59, %v12721_v15 }
0x2798   :  { %v12723_v35 = vand.u32 4294901760, %v12722_v18 }
0x279a   :  { %24149 = vmatmul.mubr.f32.vlgmr.msra.gmra.mrb[116].mxu1 %v12723_v35 }
0x279b   :  { %26872 = vmatpush3.bf16.msra.mxu1 %v28724_v5  ;;  %24159 = vmatprep.mubr.msk.f32.mxu1 %vm28106_vm0, %v32134_v1 }
0x279c   :  { %26873 = vmatprep.subr.bf16.mxu1 %v32131_v8 }
0x279f   :  { %26875 = vmatpush3.bf16.msra.mxu1 %v28726_v10 }
0x27a0   :  { %26876 = vmatprep.subr.bf16.mxu1 %v32131_v8 }
0x27a2   :  { %24160 = vmatmul.mubr.f32.vlgmr.msra.gmra.mrb[118].mxu1 %v12719_v0 }
0x27a3   :  { %26878 = vmatpush3.bf16.msra.mxu1 %v28728_v42  ;;  %24170 = vmatprep.mubr.msk.f32.mxu1 %vm28106_vm0, %v32134_v1 }
0x27a4   :  { %26879 = vmatprep.subr.bf16.mxu1 %v32131_v8 }
0x27a7   :  { %26881 = vmatpush3.bf16.msra.mxu1 %v28730_v46 }
0x27a8   :  { %26882 = vmatprep.subr.bf16.mxu1 %v32131_v8 }
0x27aa   :  { %24171 = vmatmul.mubr.f32.vlgmr.msra.gmra.mrb[120].mxu1 %v12720_v59 }
0x27ab   :  { %26884 = vmatpush3.bf16.msra.mxu1 %v28710_v4  ;;  %24181 = vmatprep.mubr.msk.f32.mxu1 %vm28106_vm0, %v32134_v1 }
0x27ac   :  { %26885 = vmatprep.subr.bf16.mxu1 %v32131_v8 }
0x27af   :  { %26887 = vmatpush3.bf16.msra.mxu1 %v28720_v7 }
0x27b0   :  { %26888 = vmatprep.subr.bf16.mxu1 %v32131_v8 }
0x27b2   :  { %24182 = vmatmul.mubr.f32.vlgmr.msra.gmra.mrb[122].mxu1 %v12721_v15 }
0x27b3   :  { %26890 = vmatpush3.bf16.msra.mxu1 %v28732_v9  ;;  %24192 = vmatprep.mubr.msk.f32.mxu1 %vm28106_vm0, %v32134_v1 }
0x27b4   :  { %26891 = vmatprep.subr.bf16.mxu1 %v32131_v8 }
0x27b7   :  { %26893 = vmatpush3.bf16.msra.mxu1 %v28734_v37 }
0x27b8   :  { %26894 = vmatprep.subr.bf16.mxu1 %v32131_v8 }
0x27ba   :  { %24193 = vmatmul.mubr.f32.vlgmr.msra.gmra.mrb[124].mxu1 %v12719_v0 }
0x27bb   :  { %26896 = vmatpush3.bf16.msra.mxu1 %v28710_v4  ;;  %24203 = vmatprep.mubr.msk.f32.mxu1 %vm28106_vm0, %v32134_v1 }
0x27bc   :  { %26897 = vmatprep.subr.bf16.mxu1 %v32131_v8 }
0x27bf   :  { %26899 = vmatpush3.bf16.msra.mxu1 %v28720_v7 }
0x27c0   :  { %26900 = vmatprep.subr.bf16.mxu1 %v32131_v8 }
0x27c2   :  { %24204 = vmatmul.mubr.f32.vlgmr.msra.gmra.mrb[126].mxu1 %v12719_v0 }
0x27c3   :  { %26902 = vmatpush3.bf16.msra.mxu1 %v28775_v36  ;;  %24214 = vmatprep.mubr.msk.f32.mxu1 %vm28106_vm0, %v32134_v1 }
0x27c4   :  { %26903 = vmatprep.subr.bf16.mxu1 %v32131_v8 }
0x27c7   :  { %26905 = vmatpush3.bf16.msra.mxu1 %v32288_v27 }
0x27c8   :  { %26906 = vmatprep.subr.bf16.mxu1 %v32131_v8 }
0x286d   :  { %v12725_v29 = vpop.f32.mrb[116].mxu1 }
0x286e   :  { %v24150_v33 = vpop.f32.mrb[117].mxu1 }
0x2875   :  { %v12816_v53 = vpop.f32.mrb[118].mxu1 }
0x2876   :  { %v12817_v14 = vadd.f32 %v12816_v53, %v12725_v29  ;;  %v24161_v6 = vpop.f32.mrb[119].mxu1 }
0x287d   :  { %v12896_v50 = vpop.f32.mrb[120].mxu1 }
0x287e   :  { %v12897_v56 = vadd.f32 %v12896_v50, %v12817_v14  ;;  %v24172_v21 = vpop.f32.mrb[121].mxu1 }
0x2885   :  { %v12973_v17 = vpop.f32.mrb[122].mxu1 }
0x2886   :  { %v12974_v3 = vadd.f32 %v12973_v17, %v12897_v56  ;;  %v24183_v58 = vpop.f32.mrb[123].mxu1 }
0x288d   :  { %v13056_v30 = vpop.f32.mrb[124].mxu1 }
0x288e   :  { %v13057_v16 = vadd.f32 %v13056_v30, %v12974_v3  ;;  %v24194_v32 = vpop.f32.mrb[125].mxu1 }
0x2895   :  { %v13131_v61 = vpop.f32.mrb[126].mxu1 }
0x2896   :  { %v13132_v44 = vadd.f32 %v13131_v61, %v13057_v16  ;;  %v24205_v45 = vpop.f32.mrb[127].mxu1 }
0x2898   :  { %v13135_v39 = vadd.f32 %v20747_v24, %v13132_v44 }
0x289a   :  { %v13136_v26 = vmax.f32 %v13135_v39, 0.0 }
0x289c   :  { %v13138_v34 = vsel %vm72_vm1, %v13136_v26, 0 }
0x289d   :  { %v13209_v20 = vand.u32 4294901760, %v13138_v34 }
0x289f   :  { %v13210_v55 = vsub.f32 %v13138_v34, %v13209_v20 }
0x28a1   :  { %v13211_v52 = vand.u32 4294901760, %v13210_v55 }
0x28a3   :  { %v13212_v28 = vsub.f32 %v13210_v55, %v13211_v52 }
0x28a5   :  { %v13213_v62 = vand.u32 4294901760, %v13212_v28 }
0x28a7   :  { %24215 = vmatmul.mubr.f32.vlgmr.msra.gmra.mrb[128].mxu1 %v13213_v62 }
0x28a8   :  { %26908 = vmatpush3.bf16.msra.mxu1 %v32289_v49  ;;  %24225 = vmatprep.mubr.msk.f32.mxu1 %vm28106_vm0, %v32134_v1 }
0x28a9   :  { %26909 = vmatprep.subr.bf16.mxu1 %v32131_v8 }
0x28ac   :  { %26911 = vmatpush3.bf16.msra.mxu1 %v32290_v11 }
0x28ad   :  { %26912 = vmatprep.subr.bf16.mxu1 %v32131_v8 }
0x28af   :  { %24226 = vmatmul.mubr.f32.vlgmr.msra.gmra.mrb[130].mxu1 %v13209_v20 }
0x28b0   :  { %26914 = vmatpush3.bf16.msra.mxu1 %v32291_v40  ;;  %24236 = vmatprep.mubr.msk.f32.mxu1 %vm28106_vm0, %v32134_v1 }
0x28b1   :  { %26915 = vmatprep.subr.bf16.mxu1 %v32131_v8 }
0x28b4   :  { %26917 = vmatpush3.bf16.msra.mxu1 %v32292_v13 }
0x28b5   :  { %26918 = vmatprep.subr.bf16.mxu1 %v32131_v8 }
0x28b7   :  { %24237 = vmatmul.mubr.f32.vlgmr.msra.gmra.mrb[132].mxu1 %v13210_v55 }
0x28b8   :  { %26920 = vmatpush3.bf16.msra.mxu1 %v28775_v36  ;;  %24247 = vmatprep.mubr.msk.f32.mxu1 %vm28106_vm0, %v32134_v1 }
0x28b9   :  { %26921 = vmatprep.subr.bf16.mxu1 %v32131_v8 }
0x28bc   :  { %26923 = vmatpush3.bf16.msra.mxu1 %v32288_v27 }
0x28bd   :  { %26924 = vmatprep.subr.bf16.mxu1 %v32131_v8 }
0x28bf   :  { %24248 = vmatmul.mubr.f32.vlgmr.msra.gmra.mrb[134].mxu1 %v13211_v52 }
0x28c0   :  { %26926 = vmatpush3.bf16.msra.mxu1 %v32293_v57  ;;  %24258 = vmatprep.mubr.msk.f32.mxu1 %vm28106_vm0, %v32134_v1 }
0x28c1   :  { %26927 = vmatprep.subr.bf16.mxu1 %v32131_v8 }
0x28c4   :  { %26929 = vmatpush3.bf16.msra.mxu1 %v32294_v38 }
0x28c5   :  { %26930 = vmatprep.subr.bf16.mxu1 %v32131_v8 }
0x28c7   :  { %24259 = vmatmul.mubr.f32.vlgmr.msra.gmra.mrb[136].mxu1 %v13209_v20 }
0x28c8   :  { %26932 = vmatpush3.bf16.msra.mxu1 %v28775_v36  ;;  %24269 = vmatprep.mubr.msk.f32.mxu1 %vm28106_vm0, %v32134_v1 }
0x28c9   :  { %26933 = vmatprep.subr.bf16.mxu1 %v32131_v8 }
0x28cc   :  { %26935 = vmatpush3.bf16.msra.mxu1 %v32288_v27 }
0x28cd   :  { %26937 = vmatprep.subr.bf16.mxu1 %v32258_v41 }
0x28cf   :  { %24270 = vmatmul.mubr.f32.vlgmr.msra.gmra.mrb[138].mxu1 %v13209_v20 }
0x28d0   :  { %26939 = vmatpush1.bf16.msra.mxu1 %v32259_v43  ;;  %13730 = vmatprep.mubr.f32.mxu1 %v32134_v1 }
0x28d1   :  { %26941 = vmatprep.subr.bf16.mxu1 %v32260_v2 }
0x28d4   :  { %26943 = vmatpush1.bf16.msra.mxu1 %v32261_v23 }
0x28d5   :  { %26945 = vmatprep.subr.bf16.mxu1 %v32295_v47 }
0x297a   :  { %v13215_v51 = vpop.f32.mrb[128].mxu1 }
0x297b   :  { %v13216_v12 = vadd.f32 %v13215_v51, %v30235_v63  ;;  %v24216_v31 = vpop.f32.mrb[129].mxu1  ;;  %v30487_v63 = vld [vmem:[%s31941_s8] ss:$0 sm:$0xff] }
0x297c   :  { %32296 = vst [vmem:[#allocation35_spill] sm:$0xff] %v30487_v63 }
0x2982   :  { %v13306_v19 = vpop.f32.mrb[130].mxu1 }
0x2983   :  { %v13307_v0 = vadd.f32 %v13306_v19, %v13216_v12  ;;  %v24227_v59 = vpop.f32.mrb[131].mxu1  ;;  %v32298_v19 = vld [vmem:[#allocation8_spill] sm:$0xff] }
0x2984   :  { %v32300_v59 = vld [vmem:[#allocation10_spill] sm:$0xff] }
0x298a   :  { %v13386_v15 = vpop.f32.mrb[132].mxu1 }
0x298b   :  { %v13387_v18 = vadd.f32 %v13386_v15, %v13307_v0  ;;  %v24238_v35 = vpop.f32.mrb[133].mxu1  ;;  %v32299_v0 = vld [vmem:[#allocation9_spill] sm:$0xff]  ;;  %v32301_v15 = vld [vmem:[#allocation11_spill] sm:$0xff] }
0x298c   :  { %v32303_v35 = vld [vmem:[#allocation13_spill] sm:$0xff] }
0x2992   :  { %v13463_v29 = vpop.f32.mrb[134].mxu1 }
0x2993   :  { %v13464_v33 = vadd.f32 %v13463_v29, %v13387_v18  ;;  %v24249_v53 = vpop.f32.mrb[135].mxu1  ;;  %v32302_v18 = vld [vmem:[#allocation12_spill] sm:$0xff]  ;;  %v32304_v29 = vld [vmem:[#allocation14_spill] sm:$0xff] }
0x2994   :  { %v32306_v53 = vld [vmem:[#allocation16_spill] sm:$0xff] }
0x299a   :  { %v13546_v14 = vpop.f32.mrb[136].mxu1 }
0x299b   :  { %v13547_v6 = vadd.f32 %v13546_v14, %v13464_v33  ;;  %v24260_v50 = vpop.f32.mrb[137].mxu1  ;;  %v32305_v33 = vld [vmem:[#allocation15_spill] sm:$0xff]  ;;  %v32307_v14 = vld [vmem:[#allocation17_spill] sm:$0xff] }
0x299c   :  { %v32309_v50 = vld [vmem:[#allocation19_spill] sm:$0xff] }
0x29a2   :  { %v13621_v56 = vpop.f32.mrb[138].mxu1 }
0x29a3   :  { %v13622_v21 = vadd.f32 %v13621_v56, %v13547_v6  ;;  %v24271_v17 = vpop.f32.mrb[139].mxu1  ;;  %v32308_v6 = vld [vmem:[#allocation18_spill] sm:$0xff]  ;;  %v32310_v56 = vld [vmem:[#allocation20_spill] sm:$0xff] }
0x29a5   :  { %v13625_v3 = vadd.f32 %v30487_v63, %v13622_v21  ;;  %v20749_v21 = vld [vmem:[%s31935_s0 + $0x28] sm:$0xff] }
0x29a7   :  { %28038 = vtanh.f32 %v13625_v3  ;;  %v20748_v30 = vmul.f32 -1.442695, %v13625_v3 }
0x29a9   :  { %28040 = vpow2.f32 %v20748_v30 }
0x29b1   :  { %v28039_v58 = vpop.eup %28038 }
0x29b2   :  { %13635 = vrot.lane.b32.xlu1 %v28039_v58, %s28108_s28 }
0x29b3   :  { %v28041_v16 = vpop.eup %28040 }
0x29b4   :  { %v13629_v32 = vadd.f32 1.0, %v28041_v16 }
0x29b6   :  { %28042 = vrcp.f32 %v13629_v32 }
0x29c0   :  { %v28043_v24 = vpop.eup %28042 }
0x29c1   :  { %v13633_v45 = vmul.f32 %v28043_v24, %v30194_v25 }
0x2a24   :  { %v13636_v61 = vpop.permute.xlu1 %13635 }
0x2a25   :  { %v13638_v44 = vmul.f32 %v28043_v24, %v13636_v61 }
0x2a27   :  { %13640 = vrot.lane.b32.xlu1 %v13638_v44, %s28108_s28 }
0x2a99   :  { %v13641_v39 = vpop.permute.xlu1 %13640 }
0x2a9a   :  { %v30493_v26 = vadd.f32 %v13641_v39, %v13633_v45  ;;  %v32312_v39 = vld [vmem:[#allocation21_spill] sm:$0xff] }
0x2a9c   :  { %32297 = vst [vmem:[#allocation36_spill] sm:$0xff] %v30493_v26  ;;  %28044 = vtanh.f32 %v30493_v26 }
0x2aa6   :  { %v28045_v34 = vpop.eup %28044 }
0x2aa7   :  { %13646 = vrot.lane.b32.xlu1 %v28045_v34, %s28108_s28  ;;  %v32313_v34 = vld [vmem:[#allocation22_spill] sm:$0xff] }
0x2b19   :  { %v13647_v20 = vpop.permute.xlu1 %13646 }
0x2b1a   :  { %v13649_v55 = vmul.f32 %v28043_v24, %v13647_v20  ;;  %v32314_v20 = vld [vmem:[#allocation23_spill] sm:$0xff] }
0x2b1c   :  { %13651 = vrot.lane.b32.xlu1 %v13649_v55, %s28109_s29  ;;  %v32315_v55 = vld [vmem:[#allocation24_spill] sm:$0xff] }
0x2b8e   :  { %v13652_v52 = vpop.permute.xlu1 %13651 }
0x2b8f   :  { %13655 = vst.msk [vmem:[#allocation2 + $0x20] sm:$0xff] %vm72_vm1, %v13652_v52  ;;  %v13656_v28 = vsel %vm72_vm1, %v13652_v52, 0  ;;  %v32316_v52 = vld [vmem:[#allocation25_spill] sm:$0xff] }
0x2b90   :  { %v13731_v62 = vand.u32 4294901760, %v13656_v28 }
0x2b92   :  { %v13732_v51 = vsub.f32 %v13656_v28, %v13731_v62  ;;  %v32317_v28 = vld [vmem:[#allocation26_spill] sm:$0xff] }
0x2b94   :  { %v13733_v25 = vand.u32 4294901760, %v13732_v51 }
0x2b96   :  { %v13734_v12 = vsub.f32 %v13732_v51, %v13733_v25 }
0x2b98   :  { %v13735_v31 = vand.u32 4294901760, %v13734_v12 }
0x2b9a   :  { %13736 = vmatmul.mubr.f32.vlgmr.msra.gmra.mrb[140].mxu1 %v13735_v31 }
0x2b9b   :  { %26947 = vmatpush1.bf16.msra.mxu1 %v32298_v19  ;;  %13846 = vmatprep.mubr.f32.mxu1 %v32134_v1 }
0x2b9c   :  { %26949 = vmatprep.subr.bf16.mxu1 %v32299_v0 }
0x2b9f   :  { %26951 = vmatpush1.bf16.msra.mxu1 %v32300_v59 }
0x2ba0   :  { %26953 = vmatprep.subr.bf16.mxu1 %v32301_v15 }
0x2ba2   :  { %13848 = vmatmul.mubr.f32.vlgmr.msra.gmra.mrb[140].mxu1 %v13731_v62 }
0x2ba3   :  { %26955 = vmatpush1.bf16.msra.mxu1 %v32302_v18  ;;  %13934 = vmatprep.mubr.f32.mxu1 %v32134_v1 }
0x2ba4   :  { %26957 = vmatprep.subr.bf16.mxu1 %v32303_v35  ;;  %v14711_v35 = vld [vmem:[%s31936_s3 + $0x68] sm:$0xff] }
0x2ba5   :  { %v14754_v15 = vand.u32 4294901760, %v14711_v35 }
0x2ba7   :  { %26959 = vmatpush1.bf16.msra.mxu1 %v32304_v29  ;;  %v14710_v29 = vld [vmem:[%s31936_s3 + $0x60] sm:$0xff] }
0x2ba8   :  { %26961 = vmatprep.subr.bf16.mxu1 %v32258_v41  ;;  %v14751_v18 = vand.u32 4294901760, %v14710_v29 }
0x2baa   :  { %13937 = vmatmul.mubr.f32.vlgmr.msra.gmra.mrb[140].mxu1 %v13732_v51  ;;  %v14699_v51 = vld [vmem:[%s31936_s3 + $0x8] sm:$0xff] }
0x2bab   :  { %26963 = vmatpush1.bf16.msra.mxu1 %v32259_v43  ;;  %14015 = vmatprep.mubr.f32.mxu1 %v32134_v1  ;;  %v14718_v31 = vand.u32 4294901760, %v14699_v51 }
0x2bac   :  { %26965 = vmatprep.subr.bf16.mxu1 %v32260_v2 }
0x2baf   :  { %26967 = vmatpush1.bf16.msra.mxu1 %v32261_v23 }
0x2bb0   :  { %26969 = vmatprep.subr.bf16.mxu1 %v32305_v33 }
0x2bb2   :  { %14019 = vmatmul.mubr.f32.vlgmr.msra.gmra.mrb[140].mxu1 %v13733_v25  ;;  %v14700_v25 = vld [vmem:[%s31936_s3 + $0x10] sm:$0xff] }
0x2bb3   :  { %26971 = vmatpush1.bf16.msra.mxu1 %v32306_v53  ;;  %14113 = vmatprep.mubr.f32.mxu1 %v32134_v1 }
0x2bb4   :  { %26973 = vmatprep.subr.bf16.mxu1 %v32307_v14 }
0x2bb7   :  { %26975 = vmatpush1.bf16.msra.mxu1 %v32308_v6  ;;  %v14709_v6 = vld [vmem:[%s31936_s3 + $0x58] sm:$0xff] }
0x2bb8   :  { %26977 = vmatprep.subr.bf16.mxu1 %v32258_v41  ;;  %v14748_v53 = vand.u32 4294901760, %v14709_v6 }
0x2bba   :  { %14115 = vmatmul.mubr.f32.vlgmr.msra.gmra.mrb[140].mxu1 %v13731_v62 }
0x2bbb   :  { %26979 = vmatpush1.bf16.msra.mxu1 %v32259_v43  ;;  %14193 = vmatprep.mubr.f32.mxu1 %v32134_v1  ;;  %v30674_v43 = vsub.f32 %v14710_v29, %v14751_v18 }
0x2bbc   :  { %26981 = vmatprep.subr.bf16.mxu1 %v32260_v2  ;;  %v30672_v2 = vpack.c.bf16 %v14754_v15, %v14751_v18 }
0x2bbf   :  { %26983 = vmatpush1.bf16.msra.mxu1 %v32261_v23  ;;  %v30670_v23 = vsub.f32 %v14709_v6, %v14748_v53 }
0x2bc0   :  { %26984 = vmatprep.subr.bf16.mxu1 %v32131_v8 }
0x2bc2   :  { %14195 = vmatmul.mubr.f32.vlgmr.msra.gmra.mrb[140].mxu1 %v13731_v62  ;;  %v14698_v62 = vld [vmem:[%s31936_s3] sm:$0xff] }
0x2bc3   :  { %26986 = vmatpush3.bf16.msra.mxu1 %v32309_v50  ;;  %24280 = vmatprep.mubr.msk.f32.mxu1 %vm28106_vm0, %v32134_v1  ;;  %v14715_v12 = vand.u32 4294901760, %v14698_v62 }
0x2bc4   :  { %26987 = vmatprep.subr.bf16.mxu1 %v32131_v8 }
0x2bc7   :  { %26989 = vmatpush3.bf16.msra.mxu1 %v32310_v56 }
0x2bc8   :  { %26990 = vmatprep.subr.bf16.mxu1 %v32131_v8 }
0x2c95   :  { %v30534_v17 = vpop.f32.mrb[140].mxu1 }
0x2c96   :  { %32311 = vst [vmem:[#allocation34_spill] sm:$0xff] %v30534_v17  ;;  %v14198_v3 = vpop.f32.mrb[141].mxu1 }
0x2c97   :  { %v14203_v58 = vadd.f32 %v20749_v21, %v14198_v3  ;;  %v14701_v21 = vld [vmem:[%s31936_s3 + $0x18] sm:$0xff]  ;;  %v14721_v3 = vand.u32 4294901760, %v14700_v25 }
0x2c99   :  { %v14204_v30 = vmax.f32 %v14203_v58, 0.0  ;;  %v14724_v58 = vand.u32 4294901760, %v14701_v21 }
0x2c9b   :  { %v14206_v16 = vsel %vm72_vm1, %v14204_v30, 0  ;;  %v30585_v30 = vpack.c.bf16 %v14718_v31, %v14715_v12 }
0x2c9c   :  { %v14277_v32 = vand.u32 4294901760, %v14206_v16 }
0x2c9d   :  { %27022 = vmatpush3.bf16.msra.mxu0 %v30585_v30 }
0x2c9e   :  { %v14278_v24 = vsub.f32 %v14206_v16, %v14277_v32  ;;  %v30587_v16 = vsub.f32 %v14698_v62, %v14715_v12  ;;  %27023 = vmatprep.subr.bf16.mxu0 %v32131_v8  ;;  %v30604_v62 = vld [vmem:[%s31937_s4] sm:$0xff] }
0x2c9f   :  { %32318 = vst [vmem:[#allocation37_spill] sm:$0xff] %v30604_v62  ;;  %v14702_v12 = vld [vmem:[%s31936_s3 + $0x20] sm:$0xff] }
0x2ca0   :  { %v14279_v61 = vand.u32 4294901760, %v14278_v24 }
0x2ca2   :  { %v14280_v44 = vsub.f32 %v14278_v24, %v14279_v61 }
0x2ca4   :  { %v14281_v45 = vand.u32 4294901760, %v14280_v44  ;;  %v30596_v44 = vpack.c.bf16 %v14724_v58, %v14721_v3 }
0x2ca6   :  { %24281 = vmatmul.mubr.f32.vlgmr.msra.gmra.mrb[142].mxu1 %v14281_v45  ;;  %27025 = vmatpush3.bf16.msra.mxu0 %v30596_v44 }
0x2ca7   :  { %26992 = vmatpush3.bf16.msra.mxu1 %v32312_v39  ;;  %24291 = vmatprep.mubr.msk.f32.mxu1 %vm28106_vm0, %v32134_v1 }
0x2ca8   :  { %26993 = vmatprep.subr.bf16.mxu1 %v32131_v8  ;;  %27026 = vmatprep.subr.bf16.mxu0 %v32131_v8 }
0x2cab   :  { %26995 = vmatpush3.bf16.msra.mxu1 %v32313_v34 }
0x2cac   :  { %26996 = vmatprep.subr.bf16.mxu1 %v32131_v8 }
0x2cae   :  { %24292 = vmatmul.mubr.f32.vlgmr.msra.gmra.mrb[142].mxu1 %v14277_v32 }
0x2caf   :  { %26998 = vmatpush3.bf16.msra.mxu1 %v32314_v20  ;;  %24302 = vmatprep.mubr.msk.f32.mxu1 %vm28106_vm0, %v32134_v1  ;;  %v14707_v20 = vld [vmem:[%s31936_s3 + $0x48] sm:$0xff] }
0x2cb0   :  { %26999 = vmatprep.subr.bf16.mxu1 %v32131_v8  ;;  %v14742_v39 = vand.u32 4294901760, %v14707_v20 }
0x2cb2   :  { %v30666_v17 = vsub.f32 %v14707_v20, %v14742_v39 }
0x2cb3   :  { %27001 = vmatpush3.bf16.msra.mxu1 %v32315_v55  ;;  %v14706_v55 = vld [vmem:[%s31936_s3 + $0x40] sm:$0xff] }
0x2cb4   :  { %27002 = vmatprep.subr.bf16.mxu1 %v32131_v8  ;;  %v14739_v34 = vand.u32 4294901760, %v14706_v55 }
0x2cb6   :  { %24303 = vmatmul.mubr.f32.vlgmr.msra.gmra.mrb[142].mxu1 %v14278_v24  ;;  %v30591_v24 = vsub.f32 %v14700_v25, %v14721_v3  ;;  %v30664_v63 = vsub.f32 %v14706_v55, %v14739_v34 }
0x2cb7   :  { %27004 = vmatpush3.bf16.msra.mxu1 %v32309_v50  ;;  %24313 = vmatprep.mubr.msk.f32.mxu1 %vm28106_vm0, %v32134_v1 }
0x2cb8   :  { %27005 = vmatprep.subr.bf16.mxu1 %v32131_v8 }
0x2cbb   :  { %27007 = vmatpush3.bf16.msra.mxu1 %v32310_v56 }
0x2cbc   :  { %27008 = vmatprep.subr.bf16.mxu1 %v32131_v8 }
0x2cbe   :  { %24314 = vmatmul.mubr.f32.vlgmr.msra.gmra.mrb[142].mxu1 %v14279_v61  ;;  %v30593_v61 = vsub.f32 %v14701_v21, %v14724_v58  ;;  %v14727_v21 = vand.u32 4294901760, %v14702_v12 }
0x2cbf   :  { %27010 = vmatpush3.bf16.msra.mxu1 %v32316_v52  ;;  %24324 = vmatprep.mubr.msk.f32.mxu1 %vm28106_vm0, %v32134_v1 }
0x2cc0   :  { %27011 = vmatprep.subr.bf16.mxu1 %v32131_v8  ;;  %v30656_v59 = vsub.f32 %v14702_v12, %v14727_v21  ;;  %v30676_v12 = vsub.f32 %v14711_v35, %v14754_v15  ;;  %v32096_v15 = vand.u32 4294901760, %v30591_v24  ;;  %v32093_v35 = vand.u32 4294901760, %v30593_v61 }
0x2cc2   :  { %v14823_v6 = vsub.f32 %v30591_v24, %v32096_v15  ;;  %v32090_v55 = vand.u32 4294901760, %v30656_v59 }
0x2cc3   :  { %27013 = vmatpush3.bf16.msra.mxu1 %v32317_v28 }
0x2cc4   :  { %27014 = vmatprep.subr.bf16.mxu1 %v32131_v8 }
0x2cc6   :  { %24325 = vmatmul.mubr.f32.vlgmr.msra.gmra.mrb[142].mxu1 %v14277_v32 }
0x2cc7   :  { %27016 = vmatpush3.bf16.msra.mxu1 %v32309_v50  ;;  %24335 = vmatprep.mubr.msk.f32.mxu1 %vm28106_vm0, %v32134_v1  ;;  %v14708_v50 = vld [vmem:[%s31936_s3 + $0x50] sm:$0xff] }
0x2cc8   :  { %27017 = vmatprep.subr.bf16.mxu1 %v32131_v8  ;;  %v14745_v14 = vand.u32 4294901760, %v14708_v50 }
0x2cca   :  { %v30646_v33 = vpack.c.bf16 %v14748_v53, %v14745_v14  ;;  %v30668_v47 = vsub.f32 %v14708_v50, %v14745_v14  ;;  %v14830_v50 = vsub.f32 %v30593_v61, %v32093_v35 }
0x2ccb   :  { %27019 = vmatpush3.bf16.msra.mxu1 %v32310_v56  ;;  %v30636_v56 = vpack.c.bf16 %v14742_v39, %v14739_v34  ;;  %v14824_v34 = vand.u32 4294901760, %v14823_v6 }
0x2ccc   :  { %27164 = vmatprep.subr.bf16.mxu1 %v32131_v8  ;;  %v14831_v20 = vand.u32 4294901760, %v14830_v50 }
0x2cce   :  { %24336 = vmatmul.mubr.f32.vlgmr.msra.gmra.mrb[142].mxu1 %v14277_v32  ;;  %v30589_v32 = vsub.f32 %v14699_v51, %v14718_v31  ;;  %v14703_v31 = vld [vmem:[%s31936_s3 + $0x28] sm:$0xff] }
0x2ccf   :  { %27166 = vmatpush3.bf16.msra.mxu1 %v28710_v4  ;;  %24556 = vmatprep.mubr.msk.f32.mxu1 %vm28106_vm0, %v32134_v1  ;;  %v14730_v3 = vand.u32 4294901760, %v14703_v31 }
0x2cd0   :  { %27167 = vmatprep.subr.bf16.mxu1 %v32131_v8 }
0x2cd1   :  { %v30616_v58 = vpack.c.bf16 %v14730_v3, %v14727_v21  ;;  %v30658_v0 = vsub.f32 %v14703_v31, %v14730_v3  ;;  %v32101_v31 = vand.u32 4294901760, %v30587_v16  ;;  %v30702_v21 = vpack.c.bf16 %v14831_v20, %v14824_v34 }
0x2cd2   :  { %v14837_v3 = vsub.f32 %v30656_v59, %v32090_v55 }
0x2cd3   :  { %27169 = vmatpush3.bf16.msra.mxu1 %v28720_v7  ;;  %27028 = vmatpush3.bf16.msra.mxu0 %v30616_v58  ;;  %v14809_v39 = vsub.f32 %v30587_v16, %v32101_v31 }
0x2cd4   :  { %27170 = vmatprep.subr.bf16.mxu1 %v32131_v8  ;;  %27029 = vmatprep.subr.bf16.mxu0 %v32131_v8 }
0x2cd5   :  { %v14810_v18 = vand.u32 4294901760, %v14809_v39 }
0x2da1   :  { %v14689_v45 = vpop.f32.mrb[142].mxu1 }
0x2da2   :  { %v30607_v51 = vadd.f32 %v30604_v62, %v14689_v45  ;;  %v24337_v25 = vpop.f32.mrb[143].mxu1  ;;  %v14704_v45 = vld [vmem:[%s31936_s3 + $0x30] sm:$0xff] }
0x2da3   :  { %v14705_v25 = vld [vmem:[%s31936_s3 + $0x38] sm:$0xff]  ;;  %v14733_v62 = vand.u32 4294901760, %v14704_v45 }
0x2da4   :  { %14693 = vmax.xlane.f32.xlu0 %v30607_v51  ;;  %v14736_v28 = vand.u32 4294901760, %v14705_v25 }
0x2da5   :  { %v30660_v19 = vsub.f32 %v14704_v45, %v14733_v62 }
0x2da6   :  { %v30626_v52 = vpack.c.bf16 %v14736_v28, %v14733_v62  ;;  %v30662_v26 = vsub.f32 %v14705_v25, %v14736_v28  ;;  %v32097_v62 = vand.u32 4294901760, %v30589_v32  ;;  %v32088_v28 = vand.u32 4294901760, %v30658_v0 }
0x2da7   :  { %v14838_v25 = vand.u32 4294901760, %v14837_v3  ;;  %v32094_v3 = vand.u32 4294901760, %v30666_v17 }
0x2da8   :  { %27031 = vmatpush3.bf16.msra.mxu0 %v30626_v52  ;;  %v14816_v53 = vsub.f32 %v30589_v32, %v32097_v62  ;;  %v14844_v45 = vsub.f32 %v30658_v0, %v32088_v28  ;;  %v32092_v28 = vand.u32 4294901760, %v30664_v63 }
0x2da9   :  { %27032 = vmatprep.subr.bf16.mxu0 %v32131_v8 }
0x2daa   :  { %v14817_v29 = vand.u32 4294901760, %v14816_v53  ;;  %v14845_v39 = vand.u32 4294901760, %v14844_v45  ;;  %v32089_v53 = vand.u32 4294901760, %v30660_v19 }
0x2dac   :  { %27034 = vmatpush3.bf16.msra.mxu0 %v30636_v56  ;;  %v30692_v14 = vpack.c.bf16 %v14817_v29, %v14810_v18  ;;  %v32091_v18 = vand.u32 4294901760, %v30662_v26  ;;  %v30712_v29 = vpack.c.bf16 %v14845_v39, %v14838_v25  ;;  %v14851_v6 = vsub.f32 %v30660_v19, %v32089_v53 }
0x2dad   :  { %27035 = vmatprep.subr.bf16.mxu0 %v32131_v8  ;;  %v14865_v25 = vsub.f32 %v30664_v63, %v32092_v28  ;;  %v14872_v39 = vsub.f32 %v30666_v17, %v32094_v3  ;;  %v32099_v3 = vand.u32 4294901760, %v30674_v43 }
0x2dae   :  { %v14858_v50 = vsub.f32 %v30662_v26, %v32091_v18  ;;  %v14852_v34 = vand.u32 4294901760, %v14851_v6  ;;  %v32095_v18 = vand.u32 4294901760, %v30668_v47  ;;  %v32100_v6 = vand.u32 4294901760, %v30670_v23 }
0x2daf   :  { %v14866_v53 = vand.u32 4294901760, %v14865_v25  ;;  %v14873_v55 = vand.u32 4294901760, %v14872_v39  ;;  %v32098_v25 = vand.u32 4294901760, %v30676_v12 }
0x2db0   :  { %27037 = vmatpush3.bf16.msra.mxu0 %v30646_v33  ;;  %v14859_v20 = vand.u32 4294901760, %v14858_v50 }
0x2db1   :  { %27038 = vmatprep.subr.bf16.mxu0 %v32131_v8  ;;  %v30732_v50 = vpack.c.bf16 %v14873_v55, %v14866_v53  ;;  %v14893_v55 = vsub.f32 %v30674_v43, %v32099_v3  ;;  %v14900_v53 = vsub.f32 %v30676_v12, %v32098_v25 }
0x2db2   :  { %v30722_v45 = vpack.c.bf16 %v14859_v20, %v14852_v34  ;;  %v14879_v34 = vsub.f32 %v30668_v47, %v32095_v18  ;;  %v14886_v20 = vsub.f32 %v30670_v23, %v32100_v6 }
0x2db3   :  { %v14894_v18 = vand.u32 4294901760, %v14893_v55  ;;  %v14901_v15 = vand.u32 4294901760, %v14900_v53  ;;  %v30778_v55 = vpack.c.bf16 %v30676_v12, %v30674_v43 }
0x2db4   :  { %27040 = vmatpush3.bf16.msra.mxu0 %v30672_v2  ;;  %v14880_v28 = vand.u32 4294901760, %v14879_v34  ;;  %v14887_v35 = vand.u32 4294901760, %v14886_v20  ;;  %v30754_v34 = vpack.c.bf16 %v30589_v32, %v30587_v16  ;;  %v30766_v20 = vpack.c.bf16 %v30662_v26, %v30660_v19 }
0x2db5   :  { %27041 = vmatprep.subr.bf16.mxu0 %v32131_v8  ;;  %v30750_v62 = vpack.c.bf16 %v14901_v15, %v14894_v18  ;;  %v30770_v15 = vpack.c.bf16 %v30666_v17, %v30664_v63  ;;  %v30774_v18 = vpack.c.bf16 %v30670_v23, %v30668_v47 }
0x2db6   :  { %v30742_v39 = vpack.c.bf16 %v14887_v35, %v14880_v28  ;;  %v30758_v35 = vpack.c.bf16 %v30593_v61, %v30591_v24  ;;  %v30762_v28 = vpack.c.bf16 %v30658_v0, %v30656_v59 }
0x2db8   :  { %27043 = vmatpush3.bf16.msra.mxu0 %v30281_v48 }
0x2db9   :  { %27044 = vmatprep.subr.bf16.mxu0 %v32131_v8 }
0x2e31   :  { %v14694_v53 = vpop.xlane.xlu0 %14693 }
0x2e32   :  { %v14695_v25 = vsub.f32 %v30607_v51, %v14694_v53 }
0x2e34   :  { %v14696_v3 = vmul.f32 1.442695, %v14695_v25 }
0x2e36   :  { %28046 = vpow2.f32 %v14696_v3 }
0x2e40   :  { %v28047_v6 = vpop.eup %28046 }
0x2e41   :  { %v30781_v31 = vand.u32 4294901760, %v28047_v6 }
0x2e43   :  { %v14796_v41 = vsub.f32 %v28047_v6, %v30781_v31 }
0x2e45   :  { %v14797_v38 = vand.u32 4294901760, %v14796_v41 }
0x2e47   :  { %v14798_v57 = vsub.f32 %v14796_v41, %v14797_v38 }
0x2e49   :  { %v14799_v13 = vand.u32 4294901760, %v14798_v57  ;;  %v32322_v57 = vand.u32 4294901760, %v30593_v61  ;;  %v32326_v61 = vand.u32 4294901760, %v30662_v26  ;;  %v32330_v26 = vand.u32 4294901760, %v30670_v23 }
0x2e4b   :  { %24371 = vmatmul.mubr.f32.vlgmr.msra.gmra.mrb[12].mxu0 %v14799_v13  ;;  %v32321_v13 = vand.u32 4294901760, %v30591_v24  ;;  %v32325_v24 = vand.u32 4294901760, %v30660_v19  ;;  %v32329_v19 = vand.u32 4294901760, %v30668_v47 }
0x2e4c   :  { %27046 = vmatpush3.bf16.msra.mxu0 %v30692_v14  ;;  %24405 = vmatprep.mubr.msk.f32.mxu0 %vm28106_vm0, %v32134_v1 }
0x2e4d   :  { %27047 = vmatprep.subr.bf16.mxu0 %v32131_v8  ;;  %v30850_v51 = vpack.c.bf16 %v32322_v57, %v32321_v13  ;;  %v30868_v3 = vpack.c.bf16 %v32326_v61, %v32325_v24  ;;  %v30884_v25 = vpack.c.bf16 %v32330_v26, %v32329_v19 }
0x2e50   :  { %27049 = vmatpush3.bf16.msra.mxu0 %v30702_v21 }
0x2e51   :  { %27050 = vmatprep.subr.bf16.mxu0 %v32131_v8 }
0x2e54   :  { %27052 = vmatpush3.bf16.msra.mxu0 %v30712_v29 }
0x2e55   :  { %27053 = vmatprep.subr.bf16.mxu0 %v32131_v8 }
0x2e58   :  { %27055 = vmatpush3.bf16.msra.mxu0 %v30722_v45 }
0x2e59   :  { %27056 = vmatprep.subr.bf16.mxu0 %v32131_v8 }
0x2e5c   :  { %27058 = vmatpush3.bf16.msra.mxu0 %v30732_v50 }
0x2e5d   :  { %27059 = vmatprep.subr.bf16.mxu0 %v32131_v8 }
0x2e60   :  { %27061 = vmatpush3.bf16.msra.mxu0 %v30742_v39 }
0x2e61   :  { %27062 = vmatprep.subr.bf16.mxu0 %v32131_v8 }
0x2e64   :  { %27064 = vmatpush3.bf16.msra.mxu0 %v30750_v62 }
0x2e65   :  { %27065 = vmatprep.subr.bf16.mxu0 %v32131_v8 }
0x2e68   :  { %27067 = vmatpush3.bf16.msra.mxu0 %v30297_v54  ;;  %v32320_v54 = vand.u32 4294901760, %v30589_v32  ;;  %v32324_v32 = vand.u32 4294901760, %v30658_v0  ;;  %v32328_v0 = vand.u32 4294901760, %v30666_v17  ;;  %v32332_v17 = vand.u32 4294901760, %v30676_v12 }
0x2e69   :  { %27068 = vmatprep.subr.bf16.mxu0 %v32131_v8 }
0x2e6b   :  { %24406 = vmatmul.mubr.f32.vlgmr.msra.gmra.mrb[12].mxu0 %v30781_v31 }
0x2e6c   :  { %27070 = vmatpush3.bf16.msra.mxu0 %v30754_v34  ;;  %24440 = vmatprep.mubr.msk.f32.mxu0 %vm28106_vm0, %v32134_v1 }
0x2e6d   :  { %27071 = vmatprep.subr.bf16.mxu0 %v32131_v8 }
0x2e70   :  { %27073 = vmatpush3.bf16.msra.mxu0 %v30758_v35 }
0x2e71   :  { %27074 = vmatprep.subr.bf16.mxu0 %v32131_v8 }
0x2e74   :  { %27076 = vmatpush3.bf16.msra.mxu0 %v30762_v28 }
0x2e75   :  { %27077 = vmatprep.subr.bf16.mxu0 %v32131_v8 }
0x2e78   :  { %27079 = vmatpush3.bf16.msra.mxu0 %v30766_v20 }
0x2e79   :  { %27080 = vmatprep.subr.bf16.mxu0 %v32131_v8 }
0x2e7c   :  { %27082 = vmatpush3.bf16.msra.mxu0 %v30770_v15 }
0x2e7d   :  { %27083 = vmatprep.subr.bf16.mxu0 %v32131_v8 }
0x2e80   :  { %27085 = vmatpush3.bf16.msra.mxu0 %v30774_v18 }
0x2e81   :  { %27086 = vmatprep.subr.bf16.mxu0 %v32131_v8 }
0x2e84   :  { %27088 = vmatpush3.bf16.msra.mxu0 %v30778_v55 }
0x2e85   :  { %27089 = vmatprep.subr.bf16.mxu0 %v32131_v8 }
0x2e88   :  { %27091 = vmatpush3.bf16.msra.mxu0 %v30301_v60 }
0x2e89   :  { %27092 = vmatprep.subr.bf16.mxu0 %v32131_v8 }
0x2e8b   :  { %24441 = vmatmul.mubr.f32.vlgmr.msra.gmra.mrb[12].mxu0 %v14796_v41  ;;  %v32319_v41 = vand.u32 4294901760, %v30587_v16  ;;  %v32323_v16 = vand.u32 4294901760, %v30656_v59  ;;  %v32327_v59 = vand.u32 4294901760, %v30664_v63  ;;  %v32331_v63 = vand.u32 4294901760, %v30674_v43 }
0x2e8c   :  { %27094 = vmatpush3.bf16.msra.mxu0 %v30585_v30  ;;  %24475 = vmatprep.mubr.msk.f32.mxu0 %vm28106_vm0, %v32134_v1 }
0x2e8d   :  { %27095 = vmatprep.subr.bf16.mxu0 %v32131_v8  ;;  %v30842_v60 = vpack.c.bf16 %v32320_v54, %v32319_v41  ;;  %v30876_v6 = vpack.c.bf16 %v32328_v0, %v32327_v59  ;;  %v30892_v53 = vpack.c.bf16 %v32332_v17, %v32331_v63 }
0x2e90   :  { %27097 = vmatpush3.bf16.msra.mxu0 %v30596_v44 }
0x2e91   :  { %27098 = vmatprep.subr.bf16.mxu0 %v32131_v8 }
0x2e94   :  { %27100 = vmatpush3.bf16.msra.mxu0 %v30616_v58 }
0x2e95   :  { %27101 = vmatprep.subr.bf16.mxu0 %v32131_v8 }
0x2e98   :  { %27103 = vmatpush3.bf16.msra.mxu0 %v30626_v52 }
0x2e99   :  { %27104 = vmatprep.subr.bf16.mxu0 %v32131_v8 }
0x2e9c   :  { %27106 = vmatpush3.bf16.msra.mxu0 %v30636_v56 }
0x2e9d   :  { %27107 = vmatprep.subr.bf16.mxu0 %v32131_v8 }
0x2ea0   :  { %27109 = vmatpush3.bf16.msra.mxu0 %v30646_v33 }
0x2ea1   :  { %27110 = vmatprep.subr.bf16.mxu0 %v32131_v8 }
0x2ea4   :  { %27112 = vmatpush3.bf16.msra.mxu0 %v30672_v2 }
0x2ea5   :  { %27113 = vmatprep.subr.bf16.mxu0 %v32131_v8 }
0x2ea8   :  { %27115 = vmatpush3.bf16.msra.mxu0 %v30281_v48 }
0x2ea9   :  { %27116 = vmatprep.subr.bf16.mxu0 %v32131_v8 }
0x2eab   :  { %24476 = vmatmul.mubr.f32.vlgmr.msra.gmra.mrb[12].mxu0 %v14797_v38  ;;  %v30860_v38 = vpack.c.bf16 %v32324_v32, %v32323_v16 }
0x2eac   :  { %27118 = vmatpush3.bf16.msra.mxu0 %v30842_v60  ;;  %24510 = vmatprep.mubr.msk.f32.mxu0 %vm28106_vm0, %v32134_v1 }
0x2ead   :  { %27119 = vmatprep.subr.bf16.mxu0 %v32131_v8 }
0x2eb0   :  { %27121 = vmatpush3.bf16.msra.mxu0 %v30850_v51 }
0x2eb1   :  { %27122 = vmatprep.subr.bf16.mxu0 %v32131_v8 }
0x2eb4   :  { %27124 = vmatpush3.bf16.msra.mxu0 %v30860_v38 }
0x2eb5   :  { %27125 = vmatprep.subr.bf16.mxu0 %v32131_v8 }
0x2eb8   :  { %27127 = vmatpush3.bf16.msra.mxu0 %v30868_v3 }
0x2eb9   :  { %27128 = vmatprep.subr.bf16.mxu0 %v32131_v8 }
0x2ebc   :  { %27130 = vmatpush3.bf16.msra.mxu0 %v30876_v6 }
0x2ebd   :  { %27131 = vmatprep.subr.bf16.mxu0 %v32131_v8 }
0x2ec0   :  { %27133 = vmatpush3.bf16.msra.mxu0 %v30884_v25 }
0x2ec1   :  { %27134 = vmatprep.subr.bf16.mxu0 %v32131_v8 }
0x2ec4   :  { %27136 = vmatpush3.bf16.msra.mxu0 %v30892_v53 }
0x2ec5   :  { %27137 = vmatprep.subr.bf16.mxu0 %v32131_v8 }
0x2ec8   :  { %27139 = vmatpush3.bf16.msra.mxu0 %v30380_v22 }
0x2ec9   :  { %27140 = vmatprep.subr.bf16.mxu0 %v32131_v8 }
0x2ecb   :  { %24511 = vmatmul.mubr.f32.vlgmr.msra.gmra.mrb[12].mxu0 %v30781_v31 }
0x2ecc   :  { %27142 = vmatpush3.bf16.msra.mxu0 %v30585_v30  ;;  %24545 = vmatprep.mubr.msk.f32.mxu0 %vm28106_vm0, %v32134_v1 }
0x2ecd   :  { %27143 = vmatprep.subr.bf16.mxu0 %v32131_v8 }
0x2ed0   :  { %27145 = vmatpush3.bf16.msra.mxu0 %v30596_v44 }
0x2ed1   :  { %27146 = vmatprep.subr.bf16.mxu0 %v32131_v8 }
0x2ed4   :  { %27148 = vmatpush3.bf16.msra.mxu0 %v30616_v58 }
0x2ed5   :  { %27149 = vmatprep.subr.bf16.mxu0 %v32131_v8 }
0x2ed8   :  { %27151 = vmatpush3.bf16.msra.mxu0 %v30626_v52 }
0x2ed9   :  { %27152 = vmatprep.subr.bf16.mxu0 %v32131_v8 }
0x2edc   :  { %27154 = vmatpush3.bf16.msra.mxu0 %v30636_v56 }
0x2edd   :  { %27155 = vmatprep.subr.bf16.mxu0 %v32131_v8 }
0x2ee0   :  { %27157 = vmatpush3.bf16.msra.mxu0 %v30646_v33 }
0x2ee1   :  { %27158 = vmatprep.subr.bf16.mxu0 %v32131_v8 }
0x2ee4   :  { %27160 = vmatpush3.bf16.msra.mxu0 %v30672_v2 }
0x2ee5   :  { %27161 = vmatprep.subr.bf16.mxu0 %v32131_v8 }
0x2ee8   :  { %27163 = vmatpush3.bf16.msra.mxu0 %v30281_v48 }
0x2ee9   :  { %27320 = vmatprep.subr.bf16.mxu0 %v32131_v8 }
0x2eeb   :  { %24546 = vmatmul.mubr.f32.vlgmr.msra.gmra.mrb[12].mxu0 %v30781_v31 }
0x2eec   :  { %27322 = vmatpush3.bf16.msra.mxu0 %v30585_v30  ;;  %24778 = vmatprep.mubr.msk.f32.mxu0 %vm28106_vm0, %v32134_v1 }
0x2eed   :  { %27323 = vmatprep.subr.bf16.mxu0 %v32131_v8 }
0x2ef0   :  { %27325 = vmatpush3.bf16.msra.mxu0 %v30596_v44 }
0x2ef1   :  { %27326 = vmatprep.subr.bf16.mxu0 %v32131_v8 }
0x2ef4   :  { %27328 = vmatpush3.bf16.msra.mxu0 %v30616_v58 }
0x2ef5   :  { %27329 = vmatprep.subr.bf16.mxu0 %v32131_v8 }
0x2ef8   :  { %27331 = vmatpush3.bf16.msra.mxu0 %v30626_v52 }
0x2ef9   :  { %27332 = vmatprep.subr.bf16.mxu0 %v32131_v8 }
0x2efc   :  { %27334 = vmatpush3.bf16.msra.mxu0 %v30636_v56 }
0x2efd   :  { %27335 = vmatprep.subr.bf16.mxu0 %v32131_v8 }
0x2f00   :  { %27337 = vmatpush3.bf16.msra.mxu0 %v30646_v33 }
0x2f01   :  { %27338 = vmatprep.subr.bf16.mxu0 %v32131_v8 }
0x2f04   :  { %27340 = vmatpush3.bf16.msra.mxu0 %v30672_v2 }
0x2f05   :  { %27341 = vmatprep.subr.bf16.mxu0 %v32131_v8 }
0x2fbe   :  { %v15351_v43 = vpop.f32.mrb[12].mxu0 }
0x2fbf   :  { %28048 = vrcp.f32 %v15351_v43  ;;  %v24547_v23 = vpop.f32.mrb[13].mxu0 }
0x2fc9   :  { %v28049_v48 = vpop.eup %28048 }
0x2fca   :  { %15358 = vperm.xlu1 %27985, %v28049_v48  }
0x3049   :  { %v15359_v22 = vpop.permute.xlu1 %15358 }
0x304a   :  { %v15361_v47 = vmul.f32 %v15359_v22, %v15351_v43 }
0x304c   :  { %v15365_v12 = vsel %vm72_vm1, %v15361_v47, 0  ;;  %v20750_v47 = vld [vmem:[%s31940_s1 + $0x28] sm:$0xff] }
0x304d   :  { %v15436_v31 = vand.u32 4294901760, %v15365_v12 }
0x304f   :  { %v15437_v41 = vsub.f32 %v15365_v12, %v15436_v31 }
0x3051   :  { %v15438_v54 = vand.u32 4294901760, %v15437_v41 }
0x3053   :  { %v15439_v13 = vsub.f32 %v15437_v41, %v15438_v54 }
0x3055   :  { %v15440_v57 = vand.u32 4294901760, %v15439_v13 }
0x3057   :  { %24557 = vmatmul.mubr.f32.vlgmr.msra.gmra.mrb[144].mxu1 %v15440_v57 }
0x3058   :  { %27172 = vmatpush3.bf16.msra.mxu1 %v28724_v5  ;;  %24567 = vmatprep.mubr.msk.f32.mxu1 %vm28106_vm0, %v32134_v1 }
0x3059   :  { %27173 = vmatprep.subr.bf16.mxu1 %v32131_v8 }
0x305c   :  { %27175 = vmatpush3.bf16.msra.mxu1 %v28726_v10 }
0x305d   :  { %27176 = vmatprep.subr.bf16.mxu1 %v32131_v8 }
0x305f   :  { %24568 = vmatmul.mubr.f32.vlgmr.msra.gmra.mrb[146].mxu1 %v15436_v31 }
0x3060   :  { %27178 = vmatpush3.bf16.msra.mxu1 %v28728_v42  ;;  %24578 = vmatprep.mubr.msk.f32.mxu1 %vm28106_vm0, %v32134_v1 }
0x3061   :  { %27179 = vmatprep.subr.bf16.mxu1 %v32131_v8 }
0x3064   :  { %27181 = vmatpush3.bf16.msra.mxu1 %v28730_v46 }
0x3065   :  { %27182 = vmatprep.subr.bf16.mxu1 %v32131_v8 }
0x3067   :  { %24579 = vmatmul.mubr.f32.vlgmr.msra.gmra.mrb[148].mxu1 %v15437_v41 }
0x3068   :  { %27184 = vmatpush3.bf16.msra.mxu1 %v28710_v4  ;;  %24589 = vmatprep.mubr.msk.f32.mxu1 %vm28106_vm0, %v32134_v1 }
0x3069   :  { %27185 = vmatprep.subr.bf16.mxu1 %v32131_v8 }
0x306c   :  { %27187 = vmatpush3.bf16.msra.mxu1 %v28720_v7 }
0x306d   :  { %27188 = vmatprep.subr.bf16.mxu1 %v32131_v8 }
0x306f   :  { %24590 = vmatmul.mubr.f32.vlgmr.msra.gmra.mrb[150].mxu1 %v15438_v54 }
0x3070   :  { %27190 = vmatpush3.bf16.msra.mxu1 %v28732_v9  ;;  %24600 = vmatprep.mubr.msk.f32.mxu1 %vm28106_vm0, %v32134_v1 }
0x3071   :  { %27191 = vmatprep.subr.bf16.mxu1 %v32131_v8 }
0x3074   :  { %27193 = vmatpush3.bf16.msra.mxu1 %v28734_v37 }
0x3075   :  { %27194 = vmatprep.subr.bf16.mxu1 %v32131_v8 }
0x3077   :  { %24601 = vmatmul.mubr.f32.vlgmr.msra.gmra.mrb[152].mxu1 %v15436_v31 }
0x3078   :  { %27196 = vmatpush3.bf16.msra.mxu1 %v28710_v4  ;;  %24611 = vmatprep.mubr.msk.f32.mxu1 %vm28106_vm0, %v32134_v1 }
0x3079   :  { %27197 = vmatprep.subr.bf16.mxu1 %v32131_v8 }
0x307c   :  { %27199 = vmatpush3.bf16.msra.mxu1 %v28720_v7 }
0x307d   :  { %27200 = vmatprep.subr.bf16.mxu1 %v32131_v8 }
0x307f   :  { %24612 = vmatmul.mubr.f32.vlgmr.msra.gmra.mrb[154].mxu1 %v15436_v31 }
0x3080   :  { %27202 = vmatpush3.bf16.msra.mxu1 %v28775_v36  ;;  %24622 = vmatprep.mubr.msk.f32.mxu1 %vm28106_vm0, %v32134_v1 }
0x3081   :  { %27203 = vmatprep.subr.bf16.mxu1 %v32131_v8 }
0x3084   :  { %27205 = vmatpush3.bf16.msra.mxu1 %v32288_v27 }
0x3085   :  { %27206 = vmatprep.subr.bf16.mxu1 %v32131_v8 }
0x312a   :  { %v15442_v16 = vpop.f32.mrb[144].mxu1 }
0x312b   :  { %v24558_v32 = vpop.f32.mrb[145].mxu1 }
0x3132   :  { %v15533_v24 = vpop.f32.mrb[146].mxu1 }
0x3133   :  { %v15534_v61 = vadd.f32 %v15533_v24, %v15442_v16  ;;  %v24569_v59 = vpop.f32.mrb[147].mxu1 }
0x313a   :  { %v15613_v0 = vpop.f32.mrb[148].mxu1 }
0x313b   :  { %v15614_v19 = vadd.f32 %v15613_v0, %v15534_v61  ;;  %v24580_v26 = vpop.f32.mrb[149].mxu1  ;;  %v32333_v0 = vld [vmem:[#allocation31_spill] sm:$0xff] }
0x313c   :  { %v32335_v26 = vld [vmem:[#allocation33_spill] sm:$0xff] }
0x3142   :  { %v15690_v63 = vpop.f32.mrb[150].mxu1 }
0x3143   :  { %v15691_v17 = vadd.f32 %v15690_v63, %v15614_v19  ;;  %v24591_v43 = vpop.f32.mrb[151].mxu1  ;;  %v32334_v19 = vld [vmem:[#allocation32_spill] sm:$0xff]  ;;  %v32336_v63 = vld [vmem:[#allocation3_spill] sm:$0xff] }
0x3144   :  { %v32338_v43 = vld [vmem:[#allocation5_spill] sm:$0xff] }
0x314a   :  { %v15773_v23 = vpop.f32.mrb[152].mxu1 }
0x314b   :  { %v15774_v48 = vadd.f32 %v15773_v23, %v15691_v17  ;;  %v24602_v22 = vpop.f32.mrb[153].mxu1  ;;  %v32337_v17 = vld [vmem:[#allocation4_spill] sm:$0xff]  ;;  %v32339_v23 = vld [vmem:[#allocation6_spill] sm:$0xff] }
0x3152   :  { %v15848_v12 = vpop.f32.mrb[154].mxu1 }
0x3153   :  { %v15849_v31 = vadd.f32 %v15848_v12, %v15774_v48  ;;  %v24613_v41 = vpop.f32.mrb[155].mxu1  ;;  %v32340_v48 = vld [vmem:[#allocation7_spill] sm:$0xff] }
0x3155   :  { %v15852_v54 = vadd.f32 %v20750_v47, %v15849_v31  ;;  %v32341_v47 = vld [vmem:[#allocation34_spill] sm:$0xff] }
0x3157   :  { %v15853_v13 = vmax.f32 %v15852_v54, 0.0 }
0x3159   :  { %v15855_v57 = vsel %vm72_vm1, %v15853_v13, 0 }
0x315a   :  { %v15926_v16 = vand.u32 4294901760, %v15855_v57 }
0x315c   :  { %v15927_v32 = vsub.f32 %v15855_v57, %v15926_v16 }
0x315e   :  { %v15928_v24 = vand.u32 4294901760, %v15927_v32 }
0x3160   :  { %v15929_v61 = vsub.f32 %v15927_v32, %v15928_v24 }
0x3162   :  { %v15930_v59 = vand.u32 4294901760, %v15929_v61 }
0x3164   :  { %24623 = vmatmul.mubr.f32.vlgmr.msra.gmra.mrb[156].mxu1 %v15930_v59 }
0x3165   :  { %27208 = vmatpush3.bf16.msra.mxu1 %v32289_v49  ;;  %24633 = vmatprep.mubr.msk.f32.mxu1 %vm28106_vm0, %v32134_v1 }
0x3166   :  { %27209 = vmatprep.subr.bf16.mxu1 %v32131_v8 }
0x3169   :  { %27211 = vmatpush3.bf16.msra.mxu1 %v32290_v11 }
0x316a   :  { %27212 = vmatprep.subr.bf16.mxu1 %v32131_v8 }
0x316c   :  { %24634 = vmatmul.mubr.f32.vlgmr.msra.gmra.mrb[158].mxu1 %v15926_v16 }
0x316d   :  { %27214 = vmatpush3.bf16.msra.mxu1 %v32291_v40  ;;  %24644 = vmatprep.mubr.msk.f32.mxu1 %vm28106_vm0, %v32134_v1 }
0x316e   :  { %27215 = vmatprep.subr.bf16.mxu1 %v32131_v8 }
0x3171   :  { %27217 = vmatpush3.bf16.msra.mxu1 %v32333_v0 }
0x3172   :  { %27218 = vmatprep.subr.bf16.mxu1 %v32131_v8 }
0x3174   :  { %24645 = vmatmul.mubr.f32.vlgmr.msra.gmra.mrb[160].mxu1 %v15927_v32 }
0x3175   :  { %27220 = vmatpush3.bf16.msra.mxu1 %v28775_v36  ;;  %24655 = vmatprep.mubr.msk.f32.mxu1 %vm28106_vm0, %v32134_v1 }
0x3176   :  { %27221 = vmatprep.subr.bf16.mxu1 %v32131_v8 }
0x3179   :  { %27223 = vmatpush3.bf16.msra.mxu1 %v32288_v27 }
0x317a   :  { %27224 = vmatprep.subr.bf16.mxu1 %v32131_v8 }
0x317c   :  { %24656 = vmatmul.mubr.f32.vlgmr.msra.gmra.mrb[162].mxu1 %v15928_v24 }
0x317d   :  { %27226 = vmatpush3.bf16.msra.mxu1 %v32334_v19  ;;  %24666 = vmatprep.mubr.msk.f32.mxu1 %vm28106_vm0, %v32134_v1 }
0x317e   :  { %27227 = vmatprep.subr.bf16.mxu1 %v32131_v8 }
0x3181   :  { %27229 = vmatpush3.bf16.msra.mxu1 %v32335_v26 }
0x3182   :  { %27230 = vmatprep.subr.bf16.mxu1 %v32131_v8 }
0x3184   :  { %24667 = vmatmul.mubr.f32.vlgmr.msra.gmra.mrb[164].mxu1 %v15926_v16 }
0x3185   :  { %27232 = vmatpush3.bf16.msra.mxu1 %v28775_v36  ;;  %24677 = vmatprep.mubr.msk.f32.mxu1 %vm28106_vm0, %v32134_v1 }
0x3186   :  { %27233 = vmatprep.subr.bf16.mxu1 %v32131_v8 }
0x3189   :  { %27235 = vmatpush3.bf16.msra.mxu1 %v32288_v27 }
0x318a   :  { %27237 = vmatprep.subr.bf16.mxu1 %v32336_v63 }
0x318c   :  { %24678 = vmatmul.mubr.f32.vlgmr.msra.gmra.mrb[166].mxu1 %v15926_v16 }
0x318d   :  { %27239 = vmatpush1.bf16.msra.mxu1 %v32337_v17  ;;  %16447 = vmatprep.mubr.f32.mxu1 %v32134_v1 }
0x318e   :  { %27241 = vmatprep.subr.bf16.mxu1 %v32338_v43 }
0x3191   :  { %27243 = vmatpush1.bf16.msra.mxu1 %v32339_v23 }
0x3192   :  { %27245 = vmatprep.subr.bf16.mxu1 %v32340_v48  ;;  %v32342_v48 = vld [vmem:[#allocation35_spill] sm:$0xff] }
0x3237   :  { %v15932_v22 = vpop.f32.mrb[156].mxu1 }
0x3238   :  { %v15933_v12 = vadd.f32 %v15932_v22, %v32341_v47  ;;  %v24624_v31 = vpop.f32.mrb[157].mxu1 }
0x323f   :  { %v16023_v41 = vpop.f32.mrb[158].mxu1 }
0x3240   :  { %v16024_v54 = vadd.f32 %v16023_v41, %v15933_v12  ;;  %v24635_v13 = vpop.f32.mrb[159].mxu1 }
0x3247   :  { %v16103_v57 = vpop.f32.mrb[160].mxu1 }
0x3248   :  { %v16104_v32 = vadd.f32 %v16103_v57, %v16024_v54  ;;  %v24646_v16 = vpop.f32.mrb[161].mxu1 }
0x324f   :  { %v16180_v24 = vpop.f32.mrb[162].mxu1 }
0x3250   :  { %v16181_v61 = vadd.f32 %v16180_v24, %v16104_v32  ;;  %v24657_v59 = vpop.f32.mrb[163].mxu1 }
0x3257   :  { %v16263_v26 = vpop.f32.mrb[164].mxu1 }
0x3258   :  { %v16264_v19 = vadd.f32 %v16263_v26, %v16181_v61  ;;  %v24668_v0 = vpop.f32.mrb[165].mxu1 }
0x3259   :  { %v32343_v0 = vld [vmem:[#allocation36_spill] sm:$0xff] }
0x325f   :  { %v16338_v40 = vpop.f32.mrb[166].mxu1 }
0x3260   :  { %v16339_v11 = vadd.f32 %v16338_v40, %v16264_v19  ;;  %v24679_v49 = vpop.f32.mrb[167].mxu1 }
0x3262   :  { %v16342_v27 = vadd.f32 %v32342_v48, %v16339_v11 }
0x3264   :  { %28050 = vtanh.f32 %v16342_v27  ;;  %v20751_v47 = vmul.f32 -1.442695, %v16342_v27 }
0x3266   :  { %28052 = vpow2.f32 %v20751_v47  ;;  %v32345_v47 = vld [vmem:[#allocation9_spill] sm:$0xff] }
0x326e   :  { %v28051_v22 = vpop.eup %28050 }
0x326f   :  { %16352 = vrot.lane.b32.xlu0 %v28051_v22, %s28108_s28  ;;  %v32344_v22 = vld [vmem:[#allocation8_spill] sm:$0xff] }
0x3270   :  { %v28053_v12 = vpop.eup %28052 }
0x3271   :  { %v16346_v31 = vadd.f32 1.0, %v28053_v12  ;;  %v32346_v12 = vld [vmem:[#allocation10_spill] sm:$0xff] }
0x3273   :  { %28054 = vrcp.f32 %v16346_v31  ;;  %v32347_v31 = vld [vmem:[#allocation11_spill] sm:$0xff] }
0x327d   :  { %v28055_v41 = vpop.eup %28054 }
0x327e   :  { %v16350_v26 = vmul.f32 %v28055_v41, %v32343_v0  ;;  %v32351_v0 = vld [vmem:[#allocation15_spill] sm:$0xff] }
0x32e1   :  { %v16353_v54 = vpop.permute.xlu0 %16352 }
0x32e2   :  { %v16355_v13 = vmul.f32 %v28055_v41, %v16353_v54  ;;  %v32349_v54 = vld [vmem:[#allocation13_spill] sm:$0xff] }
0x32e4   :  { %16357 = vrot.lane.b32.xlu1 %v16355_v13, %s28108_s28  ;;  %v32350_v13 = vld [vmem:[#allocation14_spill] sm:$0xff] }
0x3356   :  { %v16358_v40 = vpop.permute.xlu1 %16357 }
0x3357   :  { %v31016_v49 = vadd.f32 %v16358_v40, %v16350_v26  ;;  %v32352_v26 = vld [vmem:[#allocation16_spill] sm:$0xff]  ;;  %v32353_v40 = vld [vmem:[#allocation17_spill] sm:$0xff] }
0x3359   :  { %28056 = vtanh.f32 %v31016_v49 }
0x3363   :  { %v28057_v11 = vpop.eup %28056 }
0x3364   :  { %16363 = vrot.lane.b32.xlu1 %v28057_v11, %s28108_s28  ;;  %v32354_v11 = vld [vmem:[#allocation18_spill] sm:$0xff] }
0x33d6   :  { %v16364_v27 = vpop.permute.xlu1 %16363 }
0x33d7   :  { %v16366_v19 = vmul.f32 %v28055_v41, %v16364_v27  ;;  %v32348_v41 = vld [vmem:[#allocation12_spill] sm:$0xff]  ;;  %v32355_v27 = vld [vmem:[#allocation19_spill] sm:$0xff] }
0x33d9   :  { %16368 = vrot.lane.b32.xlu1 %v16366_v19, %s28109_s29 }
0x344b   :  { %v16369_v57 = vpop.permute.xlu1 %16368 }
0x344c   :  { %16372 = vst.msk [vmem:[#allocation2 + $0x28] sm:$0xff] %vm72_vm1, %v16369_v57  ;;  %v16373_v32 = vsel %vm72_vm1, %v16369_v57, 0 }
0x344d   :  { %v16448_v16 = vand.u32 4294901760, %v16373_v32 }
0x344f   :  { %v16449_v24 = vsub.f32 %v16373_v32, %v16448_v16 }
0x3451   :  { %v16450_v61 = vand.u32 4294901760, %v16449_v24 }
0x3453   :  { %v16451_v59 = vsub.f32 %v16449_v24, %v16450_v61 }
0x3455   :  { %v16452_v48 = vand.u32 4294901760, %v16451_v59 }
0x3457   :  { %16453 = vmatmul.mubr.f32.vlgmr.msra.gmra.mrb[168].mxu1 %v16452_v48 }
0x3458   :  { %27247 = vmatpush1.bf16.msra.mxu1 %v32344_v22  ;;  %16563 = vmatprep.mubr.f32.mxu1 %v32134_v1  ;;  %v32357_v22 = vld [vmem:[#allocation21_spill] sm:$0xff] }
0x3459   :  { %27249 = vmatprep.subr.bf16.mxu1 %v32345_v47  ;;  %v32358_v47 = vld [vmem:[#allocation22_spill] sm:$0xff] }
0x345c   :  { %27251 = vmatpush1.bf16.msra.mxu1 %v32346_v12  ;;  %v32359_v12 = vld [vmem:[#allocation23_spill] sm:$0xff] }
0x345d   :  { %27253 = vmatprep.subr.bf16.mxu1 %v32347_v31  ;;  %v32360_v31 = vld [vmem:[#allocation24_spill] sm:$0xff] }
0x345f   :  { %16565 = vmatmul.mubr.f32.vlgmr.msra.gmra.mrb[168].mxu1 %v16448_v16 }
0x3460   :  { %27255 = vmatpush1.bf16.msra.mxu1 %v32348_v41  ;;  %16651 = vmatprep.mubr.f32.mxu1 %v32134_v1  ;;  %v32361_v41 = vld [vmem:[#allocation25_spill] sm:$0xff] }
0x3461   :  { %27257 = vmatprep.subr.bf16.mxu1 %v32349_v54  ;;  %v32362_v54 = vld [vmem:[#allocation26_spill] sm:$0xff] }
0x3464   :  { %27259 = vmatpush1.bf16.msra.mxu1 %v32350_v13 }
0x3465   :  { %27261 = vmatprep.subr.bf16.mxu1 %v32336_v63 }
0x3467   :  { %16654 = vmatmul.mubr.f32.vlgmr.msra.gmra.mrb[168].mxu1 %v16449_v24 }
0x3468   :  { %27263 = vmatpush1.bf16.msra.mxu1 %v32337_v17  ;;  %16732 = vmatprep.mubr.f32.mxu1 %v32134_v1 }
0x3469   :  { %27265 = vmatprep.subr.bf16.mxu1 %v32338_v43 }
0x346c   :  { %27267 = vmatpush1.bf16.msra.mxu1 %v32339_v23 }
0x346d   :  { %27269 = vmatprep.subr.bf16.mxu1 %v32351_v0  ;;  %v32363_v0 = vld [vmem:[#allocation37_spill] sm:$0xff] }
0x346f   :  { %16736 = vmatmul.mubr.f32.vlgmr.msra.gmra.mrb[168].mxu1 %v16450_v61 }
0x3470   :  { %27271 = vmatpush1.bf16.msra.mxu1 %v32352_v26  ;;  %16830 = vmatprep.mubr.f32.mxu1 %v32134_v1 }
0x3471   :  { %27273 = vmatprep.subr.bf16.mxu1 %v32353_v40 }
0x3474   :  { %27275 = vmatpush1.bf16.msra.mxu1 %v32354_v11  ;;  %v17429_v11 = vld [vmem:[%s31936_s3 + $0x70] sm:$0xff] }
0x3475   :  { %27277 = vmatprep.subr.bf16.mxu1 %v32336_v63  ;;  %v32356_v63 = vld [vmem:[#allocation20_spill] sm:$0xff] }
0x3477   :  { %16832 = vmatmul.mubr.f32.vlgmr.msra.gmra.mrb[168].mxu1 %v16448_v16 }
0x3478   :  { %27279 = vmatpush1.bf16.msra.mxu1 %v32337_v17  ;;  %16910 = vmatprep.mubr.f32.mxu1 %v32134_v1  ;;  %v20752_v17 = vld [vmem:[%s31935_s0 + $0x30] sm:$0xff] }
0x3479   :  { %27281 = vmatprep.subr.bf16.mxu1 %v32338_v43 }
0x347c   :  { %27283 = vmatpush1.bf16.msra.mxu1 %v32339_v23 }
0x347d   :  { %27284 = vmatprep.subr.bf16.mxu1 %v32131_v8 }
0x347f   :  { %16912 = vmatmul.mubr.f32.vlgmr.msra.gmra.mrb[168].mxu1 %v16448_v16 }
0x3480   :  { %27286 = vmatpush3.bf16.msra.mxu1 %v32355_v27  ;;  %24688 = vmatprep.mubr.msk.f32.mxu1 %vm28106_vm0, %v32134_v1 }
0x3481   :  { %27287 = vmatprep.subr.bf16.mxu1 %v32131_v8 }
0x3484   :  { %27289 = vmatpush3.bf16.msra.mxu1 %v32356_v63 }
0x3485   :  { %27290 = vmatprep.subr.bf16.mxu1 %v32131_v8 }
0x3552   :  { %v31057_v43 = vpop.f32.mrb[168].mxu1 }
0x3553   :  { %v16915_v23 = vpop.f32.mrb[169].mxu1 }
0x3554   :  { %v16920_v19 = vadd.f32 %v20752_v17, %v16915_v23 }
0x3556   :  { %v16921_v57 = vmax.f32 %v16920_v19, 0.0 }
0x3558   :  { %v16923_v32 = vsel %vm72_vm1, %v16921_v57, 0 }
0x3559   :  { %v16994_v16 = vand.u32 4294901760, %v16923_v32 }
0x355b   :  { %v16995_v24 = vsub.f32 %v16923_v32, %v16994_v16 }
0x355d   :  { %v16996_v61 = vand.u32 4294901760, %v16995_v24 }
0x355f   :  { %v16997_v59 = vsub.f32 %v16995_v24, %v16996_v61 }
0x3561   :  { %v16998_v48 = vand.u32 4294901760, %v16997_v59 }
0x3563   :  { %24689 = vmatmul.mubr.f32.vlgmr.msra.gmra.mrb[170].mxu1 %v16998_v48 }
0x3564   :  { %27292 = vmatpush3.bf16.msra.mxu1 %v32357_v22  ;;  %24699 = vmatprep.mubr.msk.f32.mxu1 %vm28106_vm0, %v32134_v1 }
0x3565   :  { %27293 = vmatprep.subr.bf16.mxu1 %v32131_v8 }
0x3568   :  { %27295 = vmatpush3.bf16.msra.mxu1 %v32358_v47 }
0x3569   :  { %27296 = vmatprep.subr.bf16.mxu1 %v32131_v8 }
0x356b   :  { %24700 = vmatmul.mubr.f32.vlgmr.msra.gmra.mrb[170].mxu1 %v16994_v16 }
0x356c   :  { %27298 = vmatpush3.bf16.msra.mxu1 %v32359_v12  ;;  %24710 = vmatprep.mubr.msk.f32.mxu1 %vm28106_vm0, %v32134_v1 }
0x356d   :  { %27299 = vmatprep.subr.bf16.mxu1 %v32131_v8 }
0x3570   :  { %27301 = vmatpush3.bf16.msra.mxu1 %v32360_v31 }
0x3571   :  { %27302 = vmatprep.subr.bf16.mxu1 %v32131_v8 }
0x3573   :  { %24711 = vmatmul.mubr.f32.vlgmr.msra.gmra.mrb[170].mxu1 %v16995_v24 }
0x3574   :  { %27304 = vmatpush3.bf16.msra.mxu1 %v32355_v27  ;;  %24721 = vmatprep.mubr.msk.f32.mxu1 %vm28106_vm0, %v32134_v1 }
0x3575   :  { %27305 = vmatprep.subr.bf16.mxu1 %v32131_v8 }
0x3578   :  { %27307 = vmatpush3.bf16.msra.mxu1 %v32356_v63 }
0x3579   :  { %27308 = vmatprep.subr.bf16.mxu1 %v32131_v8 }
0x357b   :  { %24722 = vmatmul.mubr.f32.vlgmr.msra.gmra.mrb[170].mxu1 %v16996_v61 }
0x357c   :  { %27310 = vmatpush3.bf16.msra.mxu1 %v32361_v41  ;;  %24732 = vmatprep.mubr.msk.f32.mxu1 %vm28106_vm0, %v32134_v1 }
0x357d   :  { %27311 = vmatprep.subr.bf16.mxu1 %v32131_v8 }
0x3580   :  { %27313 = vmatpush3.bf16.msra.mxu1 %v32362_v54 }
0x3581   :  { %27314 = vmatprep.subr.bf16.mxu1 %v32131_v8 }
0x3583   :  { %24733 = vmatmul.mubr.f32.vlgmr.msra.gmra.mrb[170].mxu1 %v16994_v16 }
0x3584   :  { %27316 = vmatpush3.bf16.msra.mxu1 %v32355_v27  ;;  %24743 = vmatprep.mubr.msk.f32.mxu1 %vm28106_vm0, %v32134_v1  ;;  %v17430_v27 = vld [vmem:[%s31936_s3 + $0x78] sm:$0xff] }
0x3585   :  { %27317 = vmatprep.subr.bf16.mxu1 %v32131_v8  ;;  %v17477_v17 = vand.u32 4294901760, %v17430_v27 }
0x3587   :  { %v31107_v57 = vsub.f32 %v17430_v27, %v17477_v17 }
0x3588   :  { %27319 = vmatpush3.bf16.msra.mxu1 %v32356_v63  ;;  %v17474_v63 = vand.u32 4294901760, %v17429_v11 }
0x3589   :  { %27464 = vmatprep.subr.bf16.mxu1 %v32131_v8 }
0x358a   :  { %v31103_v23 = vpack.c.bf16 %v17477_v17, %v17474_v63  ;;  %v31105_v19 = vsub.f32 %v17429_v11, %v17474_v63 }
0x358b   :  { %24744 = vmatmul.mubr.f32.vlgmr.msra.gmra.mrb[170].mxu1 %v16994_v16  ;;  %v17630_v16 = vand.u32 4294901760, %v31107_v57 }
0x358c   :  { %27466 = vmatpush3.bf16.msra.mxu1 %v28710_v4  ;;  %24964 = vmatprep.mubr.msk.f32.mxu1 %vm28106_vm0, %v32134_v1  ;;  %v17623_v32 = vand.u32 4294901760, %v31105_v19  ;;  %v27390_v47 = vpack.c.bf16 %v31107_v57, %v31105_v19 }
0x358d   :  { %27467 = vmatprep.subr.bf16.mxu1 %v32131_v8  ;;  %27343 = vmatpush3.bf16.msra.mxu0 %v31103_v23  ;;  %v17631_v61 = vsub.f32 %v31107_v57, %v17630_v16 }
0x358e   :  { %27344 = vmatprep.subr.bf16.mxu0 %v32131_v8  ;;  %v17624_v24 = vsub.f32 %v31105_v19, %v17623_v32 }
0x358f   :  { %v17632_v48 = vand.u32 4294901760, %v17631_v61 }
0x3590   :  { %27469 = vmatpush3.bf16.msra.mxu1 %v28720_v7  ;;  %v17625_v59 = vand.u32 4294901760, %v17624_v24 }
0x3591   :  { %27470 = vmatprep.subr.bf16.mxu1 %v32131_v8 }
0x3592   :  { %v27366_v22 = vpack.c.bf16 %v17632_v48, %v17625_v59 }
0x365e   :  { %v17406_v13 = vpop.f32.mrb[170].mxu1 }
0x365f   :  { %v27619_v26 = vadd.f32 %v32363_v0, %v17406_v13  ;;  %v24745_v40 = vpop.f32.mrb[171].mxu1 }
0x3661   :  { %17410 = vmax.xlane.f32.xlu1 %v27619_v26 }
0x36ee   :  { %v17411_v12 = vpop.xlane.xlu1 %17410 }
0x36ef   :  { %v17412_v31 = vsub.f32 %v27619_v26, %v17411_v12 }
0x36f1   :  { %v17413_v41 = vmul.f32 1.442695, %v17412_v31  ;;  %v32365_v31 = vld [vmem:[#allocation28_spill] sm:$0xff] }
0x36f3   :  { %28058 = vpow2.f32 %v17413_v41  ;;  %v32366_v41 = vld [vmem:[#allocation29_spill] sm:$0xff] }
0x36fd   :  { %v28059_v54 = vpop.eup %28058 }
0x36fe   :  { %v31121_v13 = vand.u32 4294901760, %v28059_v54 }
0x3700   :  { %v17513_v0 = vsub.f32 %v28059_v54, %v31121_v13  ;;  %v32367_v54 = vld [vmem:[#allocation30_spill] sm:$0xff] }
0x3702   :  { %v17514_v40 = vand.u32 4294901760, %v17513_v0 }
0x3704   :  { %v17515_v11 = vsub.f32 %v17513_v0, %v17514_v40 }
0x3706   :  { %v17516_v27 = vand.u32 4294901760, %v17515_v11 }
0x3708   :  { %24779 = vmatmul.mubr.f32.vlgmr.msra.gmra.mrb[14].mxu0 %v17516_v27  ;;  %v19091_v27 = vld [vmem:[#allocation2 + $0x8] sm:$0xff] }
0x3709   :  { %27346 = vmatpush3.bf16.msra.mxu0 %v30692_v14  ;;  %24813 = vmatprep.mubr.msk.f32.mxu0 %vm28106_vm0, %v32134_v1 }
0x370a   :  { %27347 = vmatprep.subr.bf16.mxu0 %v32131_v8 }
0x370d   :  { %27349 = vmatpush3.bf16.msra.mxu0 %v30702_v21 }
0x370e   :  { %27350 = vmatprep.subr.bf16.mxu0 %v32131_v8 }
0x3711   :  { %27352 = vmatpush3.bf16.msra.mxu0 %v30712_v29 }
0x3712   :  { %27353 = vmatprep.subr.bf16.mxu0 %v32131_v8 }
0x3715   :  { %27355 = vmatpush3.bf16.msra.mxu0 %v30722_v45 }
0x3716   :  { %27356 = vmatprep.subr.bf16.mxu0 %v32131_v8 }
0x3719   :  { %27358 = vmatpush3.bf16.msra.mxu0 %v30732_v50 }
0x371a   :  { %27359 = vmatprep.subr.bf16.mxu0 %v32131_v8 }
0x371d   :  { %27361 = vmatpush3.bf16.msra.mxu0 %v30742_v39 }
0x371e   :  { %27362 = vmatprep.subr.bf16.mxu0 %v32131_v8 }
0x3721   :  { %27364 = vmatpush3.bf16.msra.mxu0 %v30750_v62  ;;  %v27438_v62 = vpack.c.bf16 %v17630_v16, %v17623_v32 }
0x3722   :  { %27365 = vmatprep.subr.bf16.mxu0 %v32131_v8 }
0x3725   :  { %27367 = vmatpush3.bf16.msra.mxu0 %v27366_v22 }
0x3726   :  { %27368 = vmatprep.subr.bf16.mxu0 %v32131_v8 }
0x3728   :  { %24814 = vmatmul.mubr.f32.vlgmr.msra.gmra.mrb[14].mxu0 %v31121_v13 }
0x3729   :  { %27370 = vmatpush3.bf16.msra.mxu0 %v30754_v34  ;;  %24848 = vmatprep.mubr.msk.f32.mxu0 %vm28106_vm0, %v32134_v1 }
0x372a   :  { %27371 = vmatprep.subr.bf16.mxu0 %v32131_v8 }
0x372d   :  { %27373 = vmatpush3.bf16.msra.mxu0 %v30758_v35 }
0x372e   :  { %27374 = vmatprep.subr.bf16.mxu0 %v32131_v8 }
0x3731   :  { %27376 = vmatpush3.bf16.msra.mxu0 %v30762_v28 }
0x3732   :  { %27377 = vmatprep.subr.bf16.mxu0 %v32131_v8 }
0x3735   :  { %27379 = vmatpush3.bf16.msra.mxu0 %v30766_v20 }
0x3736   :  { %27380 = vmatprep.subr.bf16.mxu0 %v32131_v8 }
0x3739   :  { %27382 = vmatpush3.bf16.msra.mxu0 %v30770_v15 }
0x373a   :  { %27383 = vmatprep.subr.bf16.mxu0 %v32131_v8 }
0x373d   :  { %27385 = vmatpush3.bf16.msra.mxu0 %v30774_v18 }
0x373e   :  { %27386 = vmatprep.subr.bf16.mxu0 %v32131_v8 }
0x3741   :  { %27388 = vmatpush3.bf16.msra.mxu0 %v30778_v55 }
0x3742   :  { %27389 = vmatprep.subr.bf16.mxu0 %v32131_v8 }
0x3745   :  { %27391 = vmatpush3.bf16.msra.mxu0 %v27390_v47 }
0x3746   :  { %27392 = vmatprep.subr.bf16.mxu0 %v32131_v8 }
0x3748   :  { %24849 = vmatmul.mubr.f32.vlgmr.msra.gmra.mrb[14].mxu0 %v17513_v0  ;;  %v19090_v0 = vld [vmem:[#allocation2] sm:$0xff] }
0x3749   :  { %27394 = vmatpush3.bf16.msra.mxu0 %v30585_v30  ;;  %24883 = vmatprep.mubr.msk.f32.mxu0 %vm28106_vm0, %v32134_v1  ;;  %v19109_v11 = vsel %vm72_vm1, %v19090_v0, 0 }
0x374a   :  { %27395 = vmatprep.subr.bf16.mxu0 %v32131_v8 }
0x374d   :  { %27397 = vmatpush3.bf16.msra.mxu0 %v30596_v44 }
0x374e   :  { %27398 = vmatprep.subr.bf16.mxu0 %v32131_v8 }
0x3751   :  { %27400 = vmatpush3.bf16.msra.mxu0 %v30616_v58 }
0x3752   :  { %27401 = vmatprep.subr.bf16.mxu0 %v32131_v8 }
0x3755   :  { %27403 = vmatpush3.bf16.msra.mxu0 %v30626_v52 }
0x3756   :  { %27404 = vmatprep.subr.bf16.mxu0 %v32131_v8 }
0x3759   :  { %27406 = vmatpush3.bf16.msra.mxu0 %v30636_v56 }
0x375a   :  { %27407 = vmatprep.subr.bf16.mxu0 %v32131_v8 }
0x375d   :  { %27409 = vmatpush3.bf16.msra.mxu0 %v30646_v33 }
0x375e   :  { %27410 = vmatprep.subr.bf16.mxu0 %v32131_v8 }
0x3761   :  { %27412 = vmatpush3.bf16.msra.mxu0 %v30672_v2 }
0x3762   :  { %27413 = vmatprep.subr.bf16.mxu0 %v32131_v8 }
0x3765   :  { %27415 = vmatpush3.bf16.msra.mxu0 %v31103_v23 }
0x3766   :  { %27416 = vmatprep.subr.bf16.mxu0 %v32131_v8 }
0x3768   :  { %24884 = vmatmul.mubr.f32.vlgmr.msra.gmra.mrb[14].mxu0 %v17514_v40  ;;  %v32369_v40 = vld [vmem:[#allocation32_spill] sm:$0xff] }
0x3769   :  { %27418 = vmatpush3.bf16.msra.mxu0 %v30842_v60  ;;  %24918 = vmatprep.mubr.msk.f32.mxu0 %vm28106_vm0, %v32134_v1 }
0x376a   :  { %27419 = vmatprep.subr.bf16.mxu0 %v32131_v8 }
0x376d   :  { %27421 = vmatpush3.bf16.msra.mxu0 %v30850_v51 }
0x376e   :  { %27422 = vmatprep.subr.bf16.mxu0 %v32131_v8 }
0x3771   :  { %27424 = vmatpush3.bf16.msra.mxu0 %v30860_v38 }
0x3772   :  { %27425 = vmatprep.subr.bf16.mxu0 %v32131_v8 }
0x3775   :  { %27427 = vmatpush3.bf16.msra.mxu0 %v30868_v3 }
0x3776   :  { %27428 = vmatprep.subr.bf16.mxu0 %v32131_v8 }
0x3779   :  { %27430 = vmatpush3.bf16.msra.mxu0 %v30876_v6 }
0x377a   :  { %27431 = vmatprep.subr.bf16.mxu0 %v32131_v8 }
0x377d   :  { %27433 = vmatpush3.bf16.msra.mxu0 %v30884_v25 }
0x377e   :  { %27434 = vmatprep.subr.bf16.mxu0 %v32131_v8 }
0x3781   :  { %27436 = vmatpush3.bf16.msra.mxu0 %v30892_v53 }
0x3782   :  { %27437 = vmatprep.subr.bf16.mxu0 %v32131_v8 }
0x3785   :  { %27439 = vmatpush3.bf16.msra.mxu0 %v27438_v62  ;;  %v32370_v62 = vld [vmem:[#allocation33_spill] sm:$0xff] }
0x3786   :  { %27440 = vmatprep.subr.bf16.mxu0 %v32131_v8 }
0x3788   :  { %24919 = vmatmul.mubr.f32.vlgmr.msra.gmra.mrb[14].mxu0 %v31121_v13 }
0x3789   :  { %27442 = vmatpush3.bf16.msra.mxu0 %v30585_v30  ;;  %24953 = vmatprep.mubr.msk.f32.mxu0 %vm28106_vm0, %v32134_v1 }
0x378a   :  { %27443 = vmatprep.subr.bf16.mxu0 %v32131_v8 }
0x378d   :  { %27445 = vmatpush3.bf16.msra.mxu0 %v30596_v44 }
0x378e   :  { %27446 = vmatprep.subr.bf16.mxu0 %v32131_v8 }
0x3791   :  { %27448 = vmatpush3.bf16.msra.mxu0 %v30616_v58 }
0x3792   :  { %27449 = vmatprep.subr.bf16.mxu0 %v32131_v8 }
0x3795   :  { %27451 = vmatpush3.bf16.msra.mxu0 %v30626_v52 }
0x3796   :  { %27452 = vmatprep.subr.bf16.mxu0 %v32131_v8 }
0x3799   :  { %27454 = vmatpush3.bf16.msra.mxu0 %v30636_v56 }
0x379a   :  { %27455 = vmatprep.subr.bf16.mxu0 %v32131_v8 }
0x379d   :  { %27457 = vmatpush3.bf16.msra.mxu0 %v30646_v33 }
0x379e   :  { %27458 = vmatprep.subr.bf16.mxu0 %v32131_v8 }
0x37a1   :  { %27460 = vmatpush3.bf16.msra.mxu0 %v30672_v2 }
0x37a2   :  { %27461 = vmatprep.subr.bf16.mxu0 %v32131_v8 }
0x37a5   :  { %27463 = vmatpush3.bf16.msra.mxu0 %v31103_v23  ;;  %v20753_v23 = vld [vmem:[%s31940_s1 + $0x30] sm:$0xff] }
0x37a6   :  { %27572 = vmatprep.subr.bf16.mxu0 %v32131_v8 }
0x37a8   :  { %24954 = vmatmul.mubr.f32.vlgmr.msra.gmra.mrb[14].mxu0 %v31121_v13  ;;  %v32368_v13 = vld [vmem:[#allocation31_spill] sm:$0xff] }
0x37a9   :  { %25270 = vmatprep.mubr.msk.f32.mxu0 %vm28106_vm0, %v32134_v1 }
0x387b   :  { %v18068_v56 = vpop.f32.mrb[14].mxu0 }
0x387c   :  { %28060 = vrcp.f32 %v18068_v56  ;;  %v24955_v52 = vpop.f32.mrb[15].mxu0 }
0x387d   :  { %v19112_v52 = vsel %vm72_vm1, %v19091_v27, 0 }
0x3886   :  { %v28061_v30 = vpop.eup %28060 }
0x3887   :  { %18075 = vperm.xlu0 %27984, %v28061_v30   ;;  %v19092_v30 = vld [vmem:[#allocation2 + $0x10] sm:$0xff] }
0x3906   :  { %v18076_v33 = vpop.permute.xlu0 %18075 }
0x3907   :  { %v18078_v44 = vmul.f32 %v18076_v33, %v18068_v56  ;;  %v31330_v56 = vand.u32 4294901760, %v19109_v11  ;;  %v31336_v33 = vand.u32 4294901760, %v19112_v52 }
0x3909   :  { %v18082_v2 = vsel %vm72_vm1, %v18078_v44, 0  ;;  %v31340_v44 = vsub.f32 %v19109_v11, %v31330_v56 }
0x390a   :  { %v18153_v58 = vand.u32 4294901760, %v18082_v2 }
0x390c   :  { %v18154_v14 = vsub.f32 %v18082_v2, %v18153_v58  ;;  %v19115_v2 = vsel %vm72_vm1, %v19092_v30, 0 }
0x390e   :  { %v18155_v21 = vand.u32 4294901760, %v18154_v14 }
0x3910   :  { %v18156_v29 = vsub.f32 %v18154_v14, %v18155_v21 }
0x3912   :  { %v18157_v45 = vand.u32 4294901760, %v18156_v29  ;;  %v31355_v29 = vand.u32 4294901760, %v19115_v2 }
0x3914   :  { %24965 = vmatmul.mubr.f32.vlgmr.msra.gmra.mrb[172].mxu1 %v18157_v45 }
0x3915   :  { %27472 = vmatpush3.bf16.msra.mxu1 %v28724_v5  ;;  %24975 = vmatprep.mubr.msk.f32.mxu1 %vm28106_vm0, %v32134_v1  ;;  %v32364_v5 = vld [vmem:[#allocation27_spill] sm:$0xff] }
0x3916   :  { %27473 = vmatprep.subr.bf16.mxu1 %v32131_v8 }
0x3919   :  { %27475 = vmatpush3.bf16.msra.mxu1 %v28726_v10 }
0x391a   :  { %27476 = vmatprep.subr.bf16.mxu1 %v32131_v8 }
0x391c   :  { %24976 = vmatmul.mubr.f32.vlgmr.msra.gmra.mrb[174].mxu1 %v18153_v58 }
0x391d   :  { %27478 = vmatpush3.bf16.msra.mxu1 %v28728_v42  ;;  %24986 = vmatprep.mubr.msk.f32.mxu1 %vm28106_vm0, %v32134_v1 }
0x391e   :  { %27479 = vmatprep.subr.bf16.mxu1 %v32131_v8 }
0x3921   :  { %27481 = vmatpush3.bf16.msra.mxu1 %v28730_v46  ;;  %v31272_v46 = vld [vmem:[%s31942_s9 + $0x10] sm:$0xff] }
0x3922   :  { %27482 = vmatprep.subr.bf16.mxu1 %v32131_v8  ;;  %v19136_v39 = vand.u32 4294901760, %v31272_v46 }
0x3924   :  { %24987 = vmatmul.mubr.f32.vlgmr.msra.gmra.mrb[176].mxu1 %v18154_v14  ;;  %v31294_v35 = vsub.f32 %v31272_v46, %v19136_v39  ;;  %v31351_v14 = vsub.f32 %v19112_v52, %v31336_v33 }
0x3925   :  { %27484 = vmatpush3.bf16.msra.mxu1 %v28710_v4  ;;  %24997 = vmatprep.mubr.msk.f32.mxu1 %vm28106_vm0, %v32134_v1 }
0x3926   :  { %27485 = vmatprep.subr.bf16.mxu1 %v32131_v8 }
0x3929   :  { %27487 = vmatpush3.bf16.msra.mxu1 %v28720_v7 }
0x392a   :  { %27488 = vmatprep.subr.bf16.mxu1 %v32131_v8 }
0x392c   :  { %24998 = vmatmul.mubr.f32.vlgmr.msra.gmra.mrb[178].mxu1 %v18155_v21  ;;  %v19200_v21 = vand.u32 4294901760, %v31340_v44 }
0x392d   :  { %27490 = vmatpush3.bf16.msra.mxu1 %v28732_v9  ;;  %25008 = vmatprep.mubr.msk.f32.mxu1 %vm28106_vm0, %v32134_v1  ;;  %v31277_v9 = vld [vmem:[%s31942_s9 + $0x18] sm:$0xff] }
0x392e   :  { %27491 = vmatprep.subr.bf16.mxu1 %v32131_v8  ;;  %v19139_v34 = vand.u32 4294901760, %v31277_v9 }
0x3930   :  { %v31299_v28 = vsub.f32 %v31277_v9, %v19139_v34  ;;  %v19095_v9 = vld [vmem:[#allocation2 + $0x28] sm:$0xff] }
0x3931   :  { %27493 = vmatpush3.bf16.msra.mxu1 %v28734_v37 }
0x3932   :  { %27494 = vmatprep.subr.bf16.mxu1 %v32131_v8 }
0x3934   :  { %25009 = vmatmul.mubr.f32.vlgmr.msra.gmra.mrb[180].mxu1 %v18153_v58 }
0x3935   :  { %27496 = vmatpush3.bf16.msra.mxu1 %v28710_v4  ;;  %25019 = vmatprep.mubr.msk.f32.mxu1 %vm28106_vm0, %v32134_v1  ;;  %v31260_v4 = vld [vmem:[%s31942_s9] sm:$0xff] }
0x3936   :  { %27497 = vmatprep.subr.bf16.mxu1 %v32131_v8  ;;  %v19130_v10 = vand.u32 4294901760, %v31260_v4 }
0x3938   :  { %v31282_v37 = vsub.f32 %v31260_v4, %v19130_v10  ;;  %v19210_v4 = vand.u32 4294901760, %v31351_v14 }
0x3939   :  { %27499 = vmatpush3.bf16.msra.mxu1 %v28720_v7  ;;  %v31265_v7 = vld [vmem:[%s31942_s9 + $0x8] sm:$0xff] }
0x393a   :  { %27500 = vmatprep.subr.bf16.mxu1 %v32131_v8  ;;  %v19133_v42 = vand.u32 4294901760, %v31265_v7 }
0x393c   :  { %25020 = vmatmul.mubr.f32.vlgmr.msra.gmra.mrb[182].mxu1 %v18153_v58  ;;  %v31287_v50 = vsub.f32 %v31265_v7, %v19133_v42  ;;  %v19093_v58 = vld [vmem:[#allocation2 + $0x18] sm:$0xff]  ;;  %v19201_v7 = vsub.f32 %v31340_v44, %v19200_v21 }
0x393d   :  { %27502 = vmatpush3.bf16.msra.mxu1 %v28775_v36  ;;  %25030 = vmatprep.mubr.msk.f32.mxu1 %vm28106_vm0, %v32134_v1  ;;  %v19118_v45 = vsel %vm72_vm1, %v19093_v58, 0 }
0x393e   :  { %27503 = vmatprep.subr.bf16.mxu1 %v32131_v8 }
0x3941   :  { %27505 = vmatpush3.bf16.msra.mxu1 %v32364_v5 }
0x3942   :  { %27506 = vmatprep.subr.bf16.mxu1 %v32131_v8 }
0x39e7   :  { %v18159_v20 = vpop.f32.mrb[172].mxu1 }
0x39e8   :  { %v24966_v15 = vpop.f32.mrb[173].mxu1 }
0x39ef   :  { %v18250_v18 = vpop.f32.mrb[174].mxu1 }
0x39f0   :  { %v18251_v55 = vadd.f32 %v18250_v18, %v18159_v20  ;;  %v24977_v60 = vpop.f32.mrb[175].mxu1  ;;  %v19094_v20 = vld [vmem:[#allocation2 + $0x20] sm:$0xff] }
0x39f1   :  { %v19121_v46 = vsel %vm72_vm1, %v19094_v20, 0  ;;  %v19124_v60 = vsel %vm72_vm1, %v19095_v9, 0 }
0x39f7   :  { %v18330_v51 = vpop.f32.mrb[176].mxu1 }
0x39f8   :  { %v18331_v38 = vadd.f32 %v18330_v51, %v18251_v55  ;;  %v24988_v3 = vpop.f32.mrb[177].mxu1  ;;  %v31386_v55 = vand.u32 4294901760, %v19121_v46 }
0x39ff   :  { %v18407_v6 = vpop.f32.mrb[178].mxu1 }
0x3a00   :  { %v18408_v25 = vadd.f32 %v18407_v6, %v18331_v38  ;;  %v24999_v53 = vpop.f32.mrb[179].mxu1  ;;  %v31397_v6 = vsub.f32 %v19121_v46, %v31386_v55 }
0x3a07   :  { %v18490_v26 = vpop.f32.mrb[180].mxu1 }
0x3a08   :  { %v18491_v63 = vadd.f32 %v18490_v26, %v18408_v25  ;;  %v25010_v17 = vpop.f32.mrb[181].mxu1  ;;  %v31399_v25 = vand.u32 4294901760, %v19124_v60 }
0x3a0a   :  { %v31408_v17 = vsub.f32 %v19124_v60, %v31399_v25 }
0x3a0f   :  { %v18565_v19 = vpop.f32.mrb[182].mxu1 }
0x3a10   :  { %v18566_v57 = vadd.f32 %v18565_v19, %v18491_v63  ;;  %v25021_v32 = vpop.f32.mrb[183].mxu1  ;;  %v19240_v63 = vand.u32 4294901760, %v31397_v6 }
0x3a12   :  { %v18569_v16 = vadd.f32 %v20753_v23, %v18566_v57  ;;  %v19241_v19 = vsub.f32 %v31397_v6, %v19240_v63  ;;  %v19250_v57 = vand.u32 4294901760, %v31408_v17 }
0x3a14   :  { %v18570_v24 = vmax.f32 %v18569_v16, 0.0  ;;  %v19242_v32 = vand.u32 4294901760, %v19241_v19  ;;  %v19251_v16 = vsub.f32 %v31408_v17, %v19250_v57 }
0x3a16   :  { %v18572_v61 = vsel %vm72_vm1, %v18570_v24, 0  ;;  %v19252_v24 = vand.u32 4294901760, %v19251_v16 }
0x3a17   :  { %v18643_v59 = vand.u32 4294901760, %v18572_v61 }
0x3a19   :  { %v18644_v48 = vsub.f32 %v18572_v61, %v18643_v59 }
0x3a1b   :  { %v18645_v22 = vand.u32 4294901760, %v18644_v48 }
0x3a1d   :  { %v18646_v47 = vsub.f32 %v18644_v48, %v18645_v22 }
0x3a1f   :  { %v18647_v12 = vand.u32 4294901760, %v18646_v47 }
0x3a21   :  { %25031 = vmatmul.mubr.f32.vlgmr.msra.gmra.mrb[184].mxu1 %v18647_v12 }
0x3a22   :  { %27508 = vmatpush3.bf16.msra.mxu1 %v32365_v31  ;;  %25041 = vmatprep.mubr.msk.f32.mxu1 %vm28106_vm0, %v32134_v1 }
0x3a23   :  { %27509 = vmatprep.subr.bf16.mxu1 %v32131_v8 }
0x3a26   :  { %27511 = vmatpush3.bf16.msra.mxu1 %v32366_v41 }
0x3a27   :  { %27512 = vmatprep.subr.bf16.mxu1 %v32131_v8 }
0x3a29   :  { %25042 = vmatmul.mubr.f32.vlgmr.msra.gmra.mrb[186].mxu1 %v18643_v59 }
0x3a2a   :  { %27514 = vmatpush3.bf16.msra.mxu1 %v32367_v54  ;;  %25052 = vmatprep.mubr.msk.f32.mxu1 %vm28106_vm0, %v32134_v1 }
0x3a2b   :  { %27515 = vmatprep.subr.bf16.mxu1 %v32131_v8 }
0x3a2e   :  { %27517 = vmatpush3.bf16.msra.mxu1 %v32368_v13 }
0x3a2f   :  { %27518 = vmatprep.subr.bf16.mxu1 %v32131_v8 }
0x3a31   :  { %25053 = vmatmul.mubr.f32.vlgmr.msra.gmra.mrb[188].mxu1 %v18644_v48 }
0x3a32   :  { %27520 = vmatpush3.bf16.msra.mxu1 %v28775_v36  ;;  %25063 = vmatprep.mubr.msk.f32.mxu1 %vm28106_vm0, %v32134_v1 }
0x3a33   :  { %27521 = vmatprep.subr.bf16.mxu1 %v32131_v8 }
0x3a36   :  { %27523 = vmatpush3.bf16.msra.mxu1 %v32364_v5 }
0x3a37   :  { %27524 = vmatprep.subr.bf16.mxu1 %v32131_v8 }
0x3a39   :  { %25064 = vmatmul.mubr.f32.vlgmr.msra.gmra.mrb[190].mxu1 %v18645_v22 }
0x3a3a   :  { %27526 = vmatpush3.bf16.msra.mxu1 %v32369_v40  ;;  %25074 = vmatprep.mubr.msk.f32.mxu1 %vm28106_vm0, %v32134_v1 }
0x3a3b   :  { %27527 = vmatprep.subr.bf16.mxu1 %v32131_v8 }
0x3a3e   :  { %27529 = vmatpush3.bf16.msra.mxu1 %v32370_v62 }
0x3a3f   :  { %27530 = vmatprep.subr.bf16.mxu1 %v32131_v8 }
0x3a41   :  { %25075 = vmatmul.mubr.f32.vlgmr.msra.gmra.mrb[192].mxu1 %v18643_v59 }
0x3a42   :  { %27532 = vmatpush3.bf16.msra.mxu1 %v28775_v36  ;;  %25085 = vmatprep.mubr.msk.f32.mxu1 %vm28106_vm0, %v32134_v1  ;;  %v31348_v36 = vpack.c.bf16 %v19133_v42, %v19130_v10  ;;  %v31373_v10 = vsub.f32 %v19115_v2, %v31355_v29  ;;  %v31375_v42 = vand.u32 4294901760, %v19118_v45 }
0x3a43   :  { %27533 = vmatprep.subr.bf16.mxu1 %v32131_v8 }
0x3a44   :  { %v19220_v15 = vand.u32 4294901760, %v31373_v10  ;;  %v31384_v18 = vsub.f32 %v19118_v45, %v31375_v42 }
0x3a46   :  { %27535 = vmatpush3.bf16.msra.mxu1 %v32364_v5  ;;  %v31363_v5 = vpack.c.bf16 %v19139_v34, %v19136_v39  ;;  %v19211_v39 = vsub.f32 %v31351_v14, %v19210_v4  ;;  %v19202_v34 = vand.u32 4294901760, %v19201_v7  ;;  %v19221_v38 = vsub.f32 %v31373_v10, %v19220_v15 }
0x3a47   :  { %27536 = vmatprep.subr.bf16.mxu1 %v32131_v8  ;;  %v19230_v3 = vand.u32 4294901760, %v31384_v18 }
0x3a48   :  { %v19212_v51 = vand.u32 4294901760, %v19211_v39  ;;  %v19222_v53 = vand.u32 4294901760, %v19221_v38 }
0x3a49   :  { %25086 = vmatmul.mubr.f32.vlgmr.msra.gmra.mrb[194].mxu1 %v18643_v59  ;;  %v19231_v26 = vsub.f32 %v31384_v18, %v19230_v3 }
0x3a4a   :  { %27538 = vmatpush3.bf16.msra.mxu1 %v31348_v36  ;;  %25096 = vmatprep.mubr.msk.f32.mxu1 %vm28106_vm0, %v32134_v1 }
0x3a4b   :  { %27539 = vmatprep.subr.bf16.mxu1 %v32131_v8  ;;  %v19232_v23 = vand.u32 4294901760, %v19231_v26  ;;  %v19278_v26 = vand.u32 4294901760, %v31287_v50 }
0x3a4d   :  { %v19279_v19 = vsub.f32 %v31287_v50, %v19278_v26 }
0x3a4e   :  { %27541 = vmatpush3.bf16.msra.mxu1 %v31363_v5 }
0x3a4f   :  { %27542 = vmatprep.subr.bf16.mxu1 %v32131_v8  ;;  %v19280_v16 = vand.u32 4294901760, %v19279_v19 }
0x3a51   :  { %25097 = vmatmul.mubr.f32.vlgmr.msra.gmra.mrb[196].mxu1 %v19202_v34 }
0x3a52   :  { %25099 = vmatprep.mubr.msk.f32.mxu1 %vm28106_vm0, %v32134_v1 }
0x3a55   :  { %25100 = vmatmul.mubr.f32.gmra.mrb[198].mxu1 %v19212_v51 }
0x3a56   :  { %25102 = vmatprep.mubr.msk.f32.mxu1 %vm28106_vm0, %v32134_v1 }
0x3a59   :  { %25103 = vmatmul.mubr.f32.gmra.mrb[200].mxu1 %v19222_v53  ;;  %v19271_v53 = vand.u32 4294901760, %v31282_v37 }
0x3a5a   :  { %25105 = vmatprep.mubr.msk.f32.mxu1 %vm28106_vm0, %v32134_v1 }
0x3a5d   :  { %25106 = vmatmul.mubr.f32.gmra.mrb[202].mxu1 %v19232_v23  ;;  %v19272_v23 = vsub.f32 %v31282_v37, %v19271_v53 }
0x3a5e   :  { %25108 = vmatprep.mubr.msk.f32.mxu1 %vm28106_vm0, %v32134_v1 }
0x3a61   :  { %25109 = vmatmul.mubr.f32.gmra.mrb[204].mxu1 %v19242_v32  ;;  %v19273_v32 = vand.u32 4294901760, %v19272_v23 }
0x3a62   :  { %25111 = vmatprep.mubr.msk.f32.mxu1 %vm28106_vm0, %v32134_v1 }
0x3a65   :  { %25112 = vmatmul.mubr.f32.gmra.mrb[206].mxu1 %v19252_v24  ;;  %v27543_v24 = vpack.c.bf16 %v19280_v16, %v19273_v32 }
0x3a66   :  { %25114 = vmatprep.mubr.msk.f32.mxu1 %vm28106_vm0, %v32134_v1 }
0x3a67   :  { %27544 = vmatpush3.bf16.msra.mxu1 %v27543_v24 }
0x3a68   :  { %27545 = vmatprep.subr.bf16.mxu1 %v32131_v8 }
0x3af4   :  { %v18649_v61 = vpop.f32.mrb[184].mxu1 }
0x3af5   :  { %v18650_v59 = vadd.f32 %v18649_v61, %v31057_v43  ;;  %v25032_v48 = vpop.f32.mrb[185].mxu1  ;;  %v28103_v43 = vld [vmem:[%s31941_s8] ss:$0 sm:$0xff]  ;;  %v19285_v61 = vand.u32 4294901760, %v31294_v35 }
0x3af7   :  { %v19286_v48 = vsub.f32 %v31294_v35, %v19285_v61 }
0x3afc   :  { %v18740_v22 = vpop.f32.mrb[186].mxu1 }
0x3afd   :  { %v18741_v47 = vadd.f32 %v18740_v22, %v18650_v59  ;;  %v25043_v12 = vpop.f32.mrb[187].mxu1  ;;  %v19292_v59 = vand.u32 4294901760, %v31299_v28 }
0x3aff   :  { %v19293_v22 = vsub.f32 %v31299_v28, %v19292_v59 }
0x3b01   :  { %v19294_v12 = vand.u32 4294901760, %v19293_v22 }
0x3b04   :  { %v18820_v31 = vpop.f32.mrb[188].mxu1 }
0x3b05   :  { %v18821_v41 = vadd.f32 %v18820_v31, %v18741_v47  ;;  %v25054_v54 = vpop.f32.mrb[189].mxu1  ;;  %v19287_v47 = vand.u32 4294901760, %v19286_v48 }
0x3b07   :  { %v27546_v31 = vpack.c.bf16 %v19294_v12, %v19287_v47 }
0x3b09   :  { %27547 = vmatpush3.bf16.msra.mxu1 %v27546_v31 }
0x3b0a   :  { %27548 = vmatprep.subr.bf16.mxu1 %v32131_v8 }
0x3b0c   :  { %v18897_v13 = vpop.f32.mrb[190].mxu1 }
0x3b0d   :  { %v18898_v0 = vadd.f32 %v18897_v13, %v18821_v41  ;;  %v25065_v40 = vpop.f32.mrb[191].mxu1  ;;  %v27552_v13 = vpack.c.bf16 %v31299_v28, %v31294_v35 }
0x3b14   :  { %v18980_v11 = vpop.f32.mrb[192].mxu1 }
0x3b15   :  { %v18981_v27 = vadd.f32 %v18980_v11, %v18898_v0  ;;  %v25076_v62 = vpop.f32.mrb[193].mxu1 }
0x3b1c   :  { %v19055_v52 = vpop.f32.mrb[194].mxu1 }
0x3b1d   :  { %v19056_v30 = vadd.f32 %v19055_v52, %v18981_v27  ;;  %v25087_v2 = vpop.f32.mrb[195].mxu1 }
0x3b1f   :  { %v19059_v58 = vadd.f32 %v28103_v43, %v19056_v30  ;;  %v27549_v43 = vpack.c.bf16 %v31287_v50, %v31282_v37  ;;  %v19872_v37 = vld [vmem:[%s31943_s11] sm:$0xff]  ;;  %v19873_v50 = vld [vmem:[%s31943_s11 + $0x8] sm:$0xff] }
0x3b20   :  { %v19905_v35 = vand.u32 4294901760, %v19872_v37  ;;  %v19908_v28 = vand.u32 4294901760, %v19873_v50 }
0x3b21   :  { %28062 = vtanh.f32 %v19059_v58  ;;  %v20754_v20 = vmul.f32 -1.442695, %v19059_v58  ;;  %v27561_v58 = vpack.c.bf16 %v19278_v26, %v19271_v53 }
0x3b23   :  { %28064 = vpow2.f32 %v20754_v20 }
0x3b2b   :  { %v28063_v45 = vpop.eup %28062 }
0x3b2c   :  { %19069 = vrot.lane.b32.xlu0 %v28063_v45, %s28108_s28  ;;  %v27564_v45 = vpack.c.bf16 %v19292_v59, %v19285_v61 }
0x3b2d   :  { %v28065_v7 = vpop.eup %28064 }
0x3b2e   :  { %v19063_v46 = vadd.f32 1.0, %v28065_v7 }
0x3b30   :  { %28066 = vrcp.f32 %v19063_v46 }
0x3b3a   :  { %v28067_v9 = vpop.eup %28066 }
0x3b3b   :  { %v19067_v60 = vmul.f32 %v28067_v9, %v31016_v49 }
0x3b9e   :  { %v19070_v39 = vpop.permute.xlu0 %19069 }
0x3b9f   :  { %v19072_v34 = vmul.f32 %v28067_v9, %v19070_v39 }
0x3ba1   :  { %19074 = vrot.lane.b32.xlu0 %v19072_v34, %s28108_s28 }
0x3c13   :  { %v19075_v51 = vpop.permute.xlu0 %19074 }
0x3c14   :  { %v19077_v38 = vadd.f32 %v19075_v51, %v19067_v60  ;;  %v20755_v60 = vld [vmem:[%s31944_s10] ss:$0 sm:$0xff] }
0x3c16   :  { %28068 = vtanh.f32 %v19077_v38 }
0x3c20   :  { %v28069_v49 = vpop.eup %28068 }
0x3c21   :  { %19080 = vrot.lane.b32.xlu0 %v28069_v49, %s28108_s28 }
0x3c93   :  { %v19081_v41 = vpop.permute.xlu0 %19080 }
0x3c94   :  { %v19083_v54 = vmul.f32 %v28067_v9, %v19081_v41 }
0x3c96   :  { %19085 = vrot.lane.b32.xlu0 %v19083_v54, %s28109_s29 }
0x3d08   :  { %v19086_v0 = vpop.permute.xlu0 %19085 }
0x3d09   :  { %19089 = vst.msk [vmem:[#allocation2 + $0x30] sm:$0xff] %vm72_vm1, %v19086_v0 }
0x3d10   :  { %v19096_v40 = vld [vmem:[#allocation2 + $0x30] sm:$0xff] }
0x3d11   :  { %v19127_v11 = vsel %vm72_vm1, %v19096_v40, 0 }
0x3d12   :  { %v31456_v27 = vand.u32 4294901760, %v19127_v11 }
0x3d14   :  { %v19259_v62 = vsub.f32 %v19127_v11, %v31456_v27 }
0x3d16   :  { %v19260_v52 = vand.u32 4294901760, %v19259_v62 }
0x3d18   :  { %v19261_v30 = vsub.f32 %v19259_v62, %v19260_v52 }
0x3d1a   :  { %v19262_v2 = vand.u32 4294901760, %v19261_v30 }
0x3d1c   :  { %25115 = vmatmul.mubr.f32.gmra.mrb[208].mxu1 %v19262_v2 }
0x3d1d   :  { %25125 = vmatprep.mubr.msk.f32.mxu1 %vm28106_vm0, %v32134_v1 }
0x3d20   :  { %25126 = vmatmul.mubr.f32.vlgmr.msra.gmra.mrb[196].mxu1 %v31330_v56 }
0x3d21   :  { %27550 = vmatpush3.bf16.msra.mxu1 %v27549_v43  ;;  %25128 = vmatprep.mubr.msk.f32.mxu1 %vm28106_vm0, %v32134_v1 }
0x3d22   :  { %27551 = vmatprep.subr.bf16.mxu1 %v32131_v8 }
0x3d24   :  { %25129 = vmatmul.mubr.f32.gmra.mrb[198].mxu1 %v31336_v33 }
0x3d25   :  { %25131 = vmatprep.mubr.msk.f32.mxu1 %vm28106_vm0, %v32134_v1  ;;  %27553 = vmatpush3.bf16.msra.mxu1 %v27552_v13 }
0x3d26   :  { %27554 = vmatprep.subr.bf16.mxu1 %v32131_v8 }
0x3d28   :  { %25132 = vmatmul.mubr.f32.gmra.mrb[200].mxu1 %v31355_v29 }
0x3d29   :  { %25134 = vmatprep.mubr.msk.f32.mxu1 %vm28106_vm0, %v32134_v1 }
0x3d2c   :  { %25135 = vmatmul.mubr.f32.gmra.mrb[202].mxu1 %v31375_v42 }
0x3d2d   :  { %25137 = vmatprep.mubr.msk.f32.mxu1 %vm28106_vm0, %v32134_v1 }
0x3d30   :  { %25138 = vmatmul.mubr.f32.gmra.mrb[204].mxu1 %v31386_v55 }
0x3d31   :  { %25140 = vmatprep.mubr.msk.f32.mxu1 %vm28106_vm0, %v32134_v1 }
0x3d34   :  { %25141 = vmatmul.mubr.f32.gmra.mrb[206].mxu1 %v31399_v25 }
0x3d35   :  { %25143 = vmatprep.mubr.msk.f32.mxu1 %vm28106_vm0, %v32134_v1 }
0x3d38   :  { %25144 = vmatmul.mubr.f32.gmra.mrb[208].mxu1 %v31456_v27 }
0x3d39   :  { %25154 = vmatprep.mubr.msk.f32.mxu1 %vm28106_vm0, %v32134_v1 }
0x3d3c   :  { %25155 = vmatmul.mubr.f32.vlgmr.msra.gmra.mrb[196].mxu1 %v31340_v44  ;;  %v19875_v44 = vld [vmem:[%s31943_s11 + $0x18] sm:$0xff] }
0x3d3d   :  { %27556 = vmatpush3.bf16.msra.mxu1 %v31348_v36  ;;  %25157 = vmatprep.mubr.msk.f32.mxu1 %vm28106_vm0, %v32134_v1 }
0x3d3e   :  { %27557 = vmatprep.subr.bf16.mxu1 %v32131_v8 }
0x3d40   :  { %25158 = vmatmul.mubr.f32.gmra.mrb[198].mxu1 %v31351_v14  ;;  %v19914_v14 = vand.u32 4294901760, %v19875_v44 }
0x3d41   :  { %25160 = vmatprep.mubr.msk.f32.mxu1 %vm28106_vm0, %v32134_v1  ;;  %27559 = vmatpush3.bf16.msra.mxu1 %v31363_v5 }
0x3d42   :  { %27560 = vmatprep.subr.bf16.mxu1 %v32131_v8 }
0x3d44   :  { %25161 = vmatmul.mubr.f32.gmra.mrb[200].mxu1 %v31373_v10 }
0x3d45   :  { %25163 = vmatprep.mubr.msk.f32.mxu1 %vm28106_vm0, %v32134_v1 }
0x3d48   :  { %25164 = vmatmul.mubr.f32.gmra.mrb[202].mxu1 %v31384_v18 }
0x3d49   :  { %25166 = vmatprep.mubr.msk.f32.mxu1 %vm28106_vm0, %v32134_v1 }
0x3d4c   :  { %25167 = vmatmul.mubr.f32.gmra.mrb[204].mxu1 %v31397_v6 }
0x3d4d   :  { %25169 = vmatprep.mubr.msk.f32.mxu1 %vm28106_vm0, %v32134_v1 }
0x3d50   :  { %25170 = vmatmul.mubr.f32.gmra.mrb[206].mxu1 %v31408_v17 }
0x3d51   :  { %25172 = vmatprep.mubr.msk.f32.mxu1 %vm28106_vm0, %v32134_v1 }
0x3d54   :  { %25173 = vmatmul.mubr.f32.gmra.mrb[208].mxu1 %v19259_v62 }
0x3d55   :  { %25183 = vmatprep.mubr.msk.f32.mxu1 %vm28106_vm0, %v32134_v1 }
0x3d58   :  { %25184 = vmatmul.mubr.f32.vlgmr.msra.gmra.mrb[196].mxu1 %v19200_v21  ;;  %v31610_v21 = vsub.f32 %v19872_v37, %v19905_v35 }
0x3d59   :  { %27562 = vmatpush3.bf16.msra.mxu1 %v27561_v58  ;;  %25186 = vmatprep.mubr.msk.f32.mxu1 %vm28106_vm0, %v32134_v1 }
0x3d5a   :  { %27563 = vmatprep.subr.bf16.mxu1 %v32131_v8 }
0x3d5c   :  { %25187 = vmatmul.mubr.f32.gmra.mrb[198].mxu1 %v19210_v4  ;;  %v20046_v4 = vand.u32 4294901760, %v31610_v21 }
0x3d5d   :  { %25189 = vmatprep.mubr.msk.f32.mxu1 %vm28106_vm0, %v32134_v1  ;;  %27565 = vmatpush3.bf16.msra.mxu1 %v27564_v45 }
0x3d5e   :  { %27566 = vmatprep.subr.bf16.mxu1 %v32131_v8  ;;  %v20047_v18 = vsub.f32 %v31610_v21, %v20046_v4 }
0x3d60   :  { %25190 = vmatmul.mubr.f32.gmra.mrb[200].mxu1 %v19220_v15  ;;  %v31623_v15 = vsub.f32 %v19875_v44, %v19914_v14 }
0x3d61   :  { %25192 = vmatprep.mubr.msk.f32.mxu1 %vm28106_vm0, %v32134_v1 }
0x3d64   :  { %25193 = vmatmul.mubr.f32.gmra.mrb[202].mxu1 %v19230_v3  ;;  %v20048_v3 = vand.u32 4294901760, %v20047_v18 }
0x3d65   :  { %25195 = vmatprep.mubr.msk.f32.mxu1 %vm28106_vm0, %v32134_v1 }
0x3d68   :  { %25196 = vmatmul.mubr.f32.gmra.mrb[204].mxu1 %v19240_v63  ;;  %v20067_v63 = vand.u32 4294901760, %v31623_v15 }
0x3d69   :  { %25198 = vmatprep.mubr.msk.f32.mxu1 %vm28106_vm0, %v32134_v1 }
0x3d6a   :  { %v20068_v20 = vsub.f32 %v31623_v15, %v20067_v63 }
0x3d6c   :  { %25199 = vmatmul.mubr.f32.gmra.mrb[206].mxu1 %v19250_v57  ;;  %v20069_v46 = vand.u32 4294901760, %v20068_v20 }
0x3d6d   :  { %25201 = vmatprep.mubr.msk.f32.mxu1 %vm28106_vm0, %v32134_v1 }
0x3d70   :  { %25202 = vmatmul.mubr.f32.gmra.mrb[208].mxu1 %v19260_v52 }
0x3d71   :  { %25212 = vmatprep.mubr.msk.f32.mxu1 %vm28106_vm0, %v32134_v1 }
0x3d74   :  { %25213 = vmatmul.mubr.f32.vlgmr.msra.gmra.mrb[196].mxu1 %v31330_v56 }
0x3d75   :  { %27568 = vmatpush3.bf16.msra.mxu1 %v31348_v36  ;;  %25215 = vmatprep.mubr.msk.f32.mxu1 %vm28106_vm0, %v32134_v1 }
0x3d76   :  { %27569 = vmatprep.subr.bf16.mxu1 %v32131_v8 }
0x3d78   :  { %25216 = vmatmul.mubr.f32.gmra.mrb[198].mxu1 %v31336_v33 }
0x3d79   :  { %25218 = vmatprep.mubr.msk.f32.mxu1 %vm28106_vm0, %v32134_v1  ;;  %27571 = vmatpush3.bf16.msra.mxu1 %v31363_v5 }
0x3d7a   :  { %27608 = vmatprep.subr.bf16.mxu1 %v32131_v8 }
0x3d7c   :  { %25219 = vmatmul.mubr.f32.gmra.mrb[200].mxu1 %v31355_v29 }
0x3d7d   :  { %25221 = vmatprep.mubr.msk.f32.mxu1 %vm28106_vm0, %v32134_v1 }
0x3d80   :  { %25222 = vmatmul.mubr.f32.gmra.mrb[202].mxu1 %v31375_v42 }
0x3d81   :  { %25224 = vmatprep.mubr.msk.f32.mxu1 %vm28106_vm0, %v32134_v1 }
0x3d84   :  { %25225 = vmatmul.mubr.f32.gmra.mrb[204].mxu1 %v31386_v55 }
0x3d85   :  { %25227 = vmatprep.mubr.msk.f32.mxu1 %vm28106_vm0, %v32134_v1 }
0x3d88   :  { %25228 = vmatmul.mubr.f32.gmra.mrb[206].mxu1 %v31399_v25 }
0x3d89   :  { %25230 = vmatprep.mubr.msk.f32.mxu1 %vm28106_vm0, %v32134_v1 }
0x3d8c   :  { %25231 = vmatmul.mubr.f32.gmra.mrb[208].mxu1 %v31456_v27 }
0x3d8d   :  { %25241 = vmatprep.mubr.msk.f32.mxu1 %vm28106_vm0, %v32134_v1 }
0x3d90   :  { %25242 = vmatmul.mubr.f32.vlgmr.msra.gmra.mrb[196].mxu1 %v31330_v56  ;;  %v31598_v56 = vpack.c.bf16 %v19908_v28, %v19905_v35 }
0x3d91   :  { %25244 = vmatprep.mubr.msk.f32.mxu1 %vm28106_vm0, %v32134_v1 }
0x3d92   :  { %27574 = vmatpush3.bf16.msra.mxu0 %v31598_v56  ;;  %27610 = vmatpush3.bf16.msra.mxu1 %v31598_v56 }
0x3d93   :  { %27575 = vmatprep.subr.bf16.mxu0 %v32131_v8  ;;  %27609 = vmatprep.subr.bf16.mxu1 %v32131_v8 }
0x3d94   :  { %25245 = vmatmul.mubr.f32.gmra.mrb[198].mxu1 %v31336_v33  ;;  %v19874_v33 = vld [vmem:[%s31943_s11 + $0x10] sm:$0xff] }
0x3d95   :  { %25247 = vmatprep.mubr.msk.f32.mxu1 %vm28106_vm0, %v32134_v1  ;;  %v19911_v36 = vand.u32 4294901760, %v19874_v33 }
0x3d97   :  { %v31614_v5 = vpack.c.bf16 %v19914_v14, %v19911_v36 }
0x3d98   :  { %25248 = vmatmul.mubr.f32.gmra.mrb[200].mxu1 %v31355_v29  ;;  %v31612_v29 = vsub.f32 %v19873_v50, %v19908_v28 }
0x3d99   :  { %25250 = vmatprep.mubr.msk.f32.mxu1 %vm28106_vm0, %v32134_v1  ;;  %27577 = vmatpush3.bf16.msra.mxu0 %v31614_v5 }
0x3d9a   :  { %v20053_v10 = vand.u32 4294901760, %v31612_v29  ;;  %27611 = vmatpush3.bf16.msra.mxu1 %v31614_v5  ;;  %27578 = vmatprep.subr.bf16.mxu0 %v32131_v8  ;;  %v27585_v39 = vpack.c.bf16 %v31612_v29, %v31610_v21 }
0x3d9c   :  { %25251 = vmatmul.mubr.f32.gmra.mrb[202].mxu1 %v31375_v42  ;;  %v31621_v42 = vsub.f32 %v19874_v33, %v19911_v36 }
0x3d9d   :  { %25253 = vmatprep.mubr.msk.f32.mxu1 %vm28106_vm0, %v32134_v1 }
0x3d9e   :  { %v27588_v34 = vpack.c.bf16 %v31623_v15, %v31621_v42  ;;  %v19876_v15 = vld [vmem:[%s31945_s12] sm:$0xff] }
0x3da0   :  { %25254 = vmatmul.mubr.f32.gmra.mrb[204].mxu1 %v31386_v55  ;;  %v20054_v55 = vsub.f32 %v31612_v29, %v20053_v10 }
0x3da1   :  { %25256 = vmatprep.mubr.msk.f32.mxu1 %vm28106_vm0, %v32134_v1 }
0x3da2   :  { %v20055_v6 = vand.u32 4294901760, %v20054_v55 }
0x3da4   :  { %25257 = vmatmul.mubr.f32.gmra.mrb[206].mxu1 %v31399_v25  ;;  %v20060_v25 = vand.u32 4294901760, %v31621_v42  ;;  %v27579_v17 = vpack.c.bf16 %v20055_v6, %v20048_v3 }
0x3da5   :  { %25259 = vmatprep.mubr.msk.f32.mxu1 %vm28106_vm0, %v32134_v1 }
0x3da6   :  { %v20061_v57 = vsub.f32 %v31621_v42, %v20060_v25 }
0x3da8   :  { %25260 = vmatmul.mubr.f32.gmra.mrb[208].mxu1 %v31456_v27  ;;  %v20062_v7 = vand.u32 4294901760, %v20061_v57 }
0x3da9   :  { %25279 = vmatprep.mubr.msk.f32.mxu1 %vm28106_vm0, %v32134_v1 }
0x3daa   :  { %v27582_v9 = vpack.c.bf16 %v20069_v46, %v20062_v7 }
0x3e63   :  { %v19832_v51 = vpop.f32.mrb[196].mxu1 }
0x3e64   :  { %v27620_v38 = vadd.f32 %v20755_v60, %v19832_v51  ;;  %v25243_v53 = vpop.f32.mrb[197].mxu1 }
0x3e66   :  { %v19884_v26 = vsel %vm72_vm1, %v27620_v38, 0 }
0x3e67   :  { %v31647_v23 = vand.u32 4294901760, %v19884_v26  ;;  %v19838_v19 = vpop.f32.mrb[198].mxu1 }
0x3e68   :  { %v27621_v32 = vadd.f32 %v20755_v60, %v19838_v19  ;;  %v25246_v16 = vpop.f32.mrb[199].mxu1 }
0x3e69   :  { %v31650_v24 = vsub.f32 %v19884_v26, %v31647_v23 }
0x3e6a   :  { %v19887_v49 = vsel %vm72_vm1, %v27621_v32, 0 }
0x3e6b   :  { %v19975_v61 = vand.u32 4294901760, %v31650_v24  ;;  %v31654_v59 = vand.u32 4294901760, %v19887_v49  ;;  %v19844_v48 = vpop.f32.mrb[200].mxu1 }
0x3e6c   :  { %v27622_v22 = vadd.f32 %v20755_v60, %v19844_v48  ;;  %v25249_v47 = vpop.f32.mrb[201].mxu1 }
0x3e6d   :  { %v31657_v12 = vsub.f32 %v19887_v49, %v31654_v59  ;;  %v19976_v31 = vsub.f32 %v31650_v24, %v19975_v61 }
0x3e6e   :  { %v19890_v41 = vsel %vm72_vm1, %v27622_v22, 0 }
0x3e6f   :  { %v31663_v54 = vand.u32 4294901760, %v19890_v41  ;;  %v19850_v13 = vpop.f32.mrb[202].mxu1  ;;  %v19977_v0 = vand.u32 4294901760, %v19976_v31  ;;  %v19985_v40 = vand.u32 4294901760, %v31657_v12 }
0x3e70   :  { %v27623_v11 = vadd.f32 %v20755_v60, %v19850_v13  ;;  %v25252_v27 = vpop.f32.mrb[203].mxu1 }
0x3e71   :  { %v31667_v62 = vsub.f32 %v19890_v41, %v31663_v54  ;;  %25271 = vmatmul.mubr.f32.vlgmr.msra.gmra.mrb[16].mxu0 %v19977_v0  ;;  %v19986_v52 = vsub.f32 %v31657_v12, %v19985_v40  ;;  %v27600_v41 = vpack.c.bf16 %v20067_v63, %v20060_v25  ;;  %v19880_v27 = vld [vmem:[%s31945_s12 + $0x20] sm:$0xff] }
0x3e72   :  { %v19893_v30 = vsel %vm72_vm1, %v27623_v11, 0  ;;  %27580 = vmatpush3.bf16.msra.mxu0 %v27579_v17  ;;  %25273 = vmatprep.mubr.msk.f32.mxu0 %vm28106_vm0, %v32134_v1 }
0x3e73   :  { %v31675_v2 = vand.u32 4294901760, %v19893_v30  ;;  %v19856_v43 = vpop.f32.mrb[204].mxu1  ;;  %v19987_v58 = vand.u32 4294901760, %v19986_v52  ;;  %27581 = vmatprep.subr.bf16.mxu0 %v32131_v8  ;;  %v19995_v45 = vand.u32 4294901760, %v31667_v62 }
0x3e74   :  { %v27624_v37 = vadd.f32 %v20755_v60, %v19856_v43  ;;  %v25255_v50 = vpop.f32.mrb[205].mxu1  ;;  %v19881_v43 = vld [vmem:[%s31945_s12 + $0x28] sm:$0xff] }
0x3e75   :  { %v31680_v35 = vsub.f32 %v19893_v30, %v31675_v2  ;;  %25274 = vmatmul.mubr.f32.gmra.mrb[18].mxu0 %v19987_v58  ;;  %v19996_v28 = vsub.f32 %v31667_v62, %v19995_v45 }
0x3e76   :  { %v19896_v33 = vsel %vm72_vm1, %v27624_v37, 0  ;;  %25276 = vmatprep.mubr.msk.f32.mxu0 %vm28106_vm0, %v32134_v1  ;;  %27583 = vmatpush3.bf16.msra.mxu0 %v27582_v9 }
0x3e77   :  { %v20005_v44 = vand.u32 4294901760, %v31680_v35  ;;  %v31689_v36 = vand.u32 4294901760, %v19896_v33  ;;  %v19862_v14 = vpop.f32.mrb[206].mxu1  ;;  %v19997_v18 = vand.u32 4294901760, %v19996_v28  ;;  %27584 = vmatprep.subr.bf16.mxu0 %v32131_v8 }
0x3e78   :  { %v27625_v55 = vadd.f32 %v20755_v60, %v19862_v14  ;;  %v25258_v3 = vpop.f32.mrb[207].mxu1 }
0x3e79   :  { %v20006_v6 = vsub.f32 %v31680_v35, %v20005_v44  ;;  %v31696_v17 = vsub.f32 %v19896_v33, %v31689_v36  ;;  %25277 = vmatmul.mubr.f32.gmra.mrb[20].mxu0 %v19997_v18 }
0x3e7a   :  { %v19899_v57 = vsel %vm72_vm1, %v27625_v55, 0  ;;  %25299 = vmatprep.mubr.msk.f32.mxu0 %vm28106_vm0, %v32134_v1 }
0x3e7b   :  { %v20007_v20 = vand.u32 4294901760, %v20006_v6  ;;  %v31701_v7 = vand.u32 4294901760, %v19899_v57  ;;  %v19868_v46 = vpop.f32.mrb[208].mxu1  ;;  %v20015_v9 = vand.u32 4294901760, %v31696_v17 }
0x3e7c   :  { %v27626_v51 = vadd.f32 %v20755_v60, %v19868_v46  ;;  %v25261_v38 = vpop.f32.mrb[209].mxu1 }
0x3e7d   :  { %v31705_v53 = vsub.f32 %v19899_v57, %v31701_v7  ;;  %25280 = vmatmul.mubr.f32.vlgmr.msra.gmra.mrb[210].mxu1 %v20007_v20  ;;  %25300 = vmatmul.mubr.f32.vlgmr.msra.gmra.mrb[16].mxu0 %v31647_v23  ;;  %v20016_v26 = vsub.f32 %v31696_v17, %v20015_v9 }
0x3e7e   :  { %v19902_v19 = vsel %vm72_vm1, %v27626_v51, 0  ;;  %27586 = vmatpush3.bf16.msra.mxu0 %v27585_v39  ;;  %25282 = vmatprep.mubr.msk.f32.mxu1 %vm28106_vm0, %v32134_v1 }
0x3e7f   :  { %v31717_v60 = vand.u32 4294901760, %v19902_v19  ;;  %25302 = vmatprep.mubr.msk.f32.mxu0 %vm28106_vm0, %v32134_v1  ;;  %v20017_v32 = vand.u32 4294901760, %v20016_v26  ;;  %v20025_v16 = vand.u32 4294901760, %v31705_v53  ;;  %27587 = vmatprep.subr.bf16.mxu0 %v32131_v8 }
0x3e81   :  { %v20034_v49 = vsub.f32 %v19902_v19, %v31717_v60  ;;  %25283 = vmatmul.mubr.f32.gmra.mrb[212].mxu1 %v20017_v32  ;;  %25303 = vmatmul.mubr.f32.gmra.mrb[18].mxu0 %v31654_v59  ;;  %v20026_v39 = vsub.f32 %v31705_v53, %v20025_v16 }
0x3e82   :  { %25285 = vmatprep.mubr.msk.f32.mxu1 %vm28106_vm0, %v32134_v1  ;;  %25305 = vmatprep.mubr.msk.f32.mxu0 %vm28106_vm0, %v32134_v1 }
0x3e83   :  { %v20027_v48 = vand.u32 4294901760, %v20026_v39  ;;  %v20035_v22 = vand.u32 4294901760, %v20034_v49  ;;  %27589 = vmatpush3.bf16.msra.mxu0 %v27588_v34  ;;  %v27597_v34 = vpack.c.bf16 %v20053_v10, %v20046_v4 }
0x3e84   :  { %27590 = vmatprep.subr.bf16.mxu0 %v32131_v8 }
0x3e85   :  { %25286 = vmatmul.mubr.f32.gmra.mrb[214].mxu1 %v20027_v48  ;;  %25306 = vmatmul.mubr.f32.gmra.mrb[20].mxu0 %v31663_v54  ;;  %v20036_v47 = vsub.f32 %v20034_v49, %v20035_v22 }
0x3e86   :  { %25288 = vmatprep.mubr.msk.f32.mxu1 %vm28106_vm0, %v32134_v1  ;;  %25308 = vmatprep.mubr.msk.f32.mxu0 %vm28106_vm0, %v32134_v1 }
0x3e87   :  { %v20037_v31 = vand.u32 4294901760, %v20036_v47 }
0x3e89   :  { %25289 = vmatmul.mubr.f32.gmra.mrb[216].mxu1 %v20037_v31  ;;  %25309 = vmatmul.mubr.f32.gmra.mrb[22].mxu0 %v31675_v2 }
0x3e8a   :  { %25311 = vmatprep.mubr.msk.f32.mxu0 %vm28106_vm0, %v32134_v1 }
0x3e8d   :  { %25312 = vmatmul.mubr.f32.gmra.mrb[24].mxu0 %v31689_v36 }
0x3e8e   :  { %25314 = vmatprep.mubr.msk.f32.mxu0 %vm28106_vm0, %v32134_v1 }
0x3e91   :  { %25315 = vmatmul.mubr.f32.gmra.mrb[26].mxu0 %v31701_v7 }
0x3e92   :  { %25317 = vmatprep.mubr.msk.f32.mxu0 %vm28106_vm0, %v32134_v1 }
0x3e95   :  { %25318 = vmatmul.mubr.f32.gmra.mrb[28].mxu0 %v31717_v60 }
0x3e96   :  { %25328 = vmatprep.mubr.msk.f32.mxu0 %vm28106_vm0, %v32134_v1 }
0x3e99   :  { %25329 = vmatmul.mubr.f32.vlgmr.msra.gmra.mrb[16].mxu0 %v31650_v24 }
0x3e9a   :  { %27592 = vmatpush3.bf16.msra.mxu0 %v31598_v56  ;;  %25331 = vmatprep.mubr.msk.f32.mxu0 %vm28106_vm0, %v32134_v1 }
0x3e9b   :  { %27593 = vmatprep.subr.bf16.mxu0 %v32131_v8 }
0x3e9d   :  { %25332 = vmatmul.mubr.f32.gmra.mrb[18].mxu0 %v31657_v12  ;;  %v19878_v12 = vld [vmem:[%s31945_s12 + $0x10] sm:$0xff] }
0x3e9e   :  { %25334 = vmatprep.mubr.msk.f32.mxu0 %vm28106_vm0, %v32134_v1  ;;  %27595 = vmatpush3.bf16.msra.mxu0 %v31614_v5 }
0x3e9f   :  { %27596 = vmatprep.subr.bf16.mxu0 %v32131_v8 }
0x3ea1   :  { %25335 = vmatmul.mubr.f32.gmra.mrb[20].mxu0 %v31667_v62 }
0x3ea2   :  { %25337 = vmatprep.mubr.msk.f32.mxu0 %vm28106_vm0, %v32134_v1 }
0x3ea5   :  { %25338 = vmatmul.mubr.f32.gmra.mrb[22].mxu0 %v31680_v35  ;;  %v19882_v35 = vld [vmem:[%s31945_s12 + $0x30] sm:$0xff] }
0x3ea6   :  { %25340 = vmatprep.mubr.msk.f32.mxu0 %vm28106_vm0, %v32134_v1 }
0x3ea9   :  { %25341 = vmatmul.mubr.f32.gmra.mrb[24].mxu0 %v31696_v17 }
0x3eaa   :  { %25343 = vmatprep.mubr.msk.f32.mxu0 %vm28106_vm0, %v32134_v1 }
0x3ead   :  { %25344 = vmatmul.mubr.f32.gmra.mrb[26].mxu0 %v31705_v53 }
0x3eae   :  { %25346 = vmatprep.mubr.msk.f32.mxu0 %vm28106_vm0, %v32134_v1 }
0x3eb1   :  { %25347 = vmatmul.mubr.f32.gmra.mrb[28].mxu0 %v20034_v49 }
0x3eb2   :  { %25357 = vmatprep.mubr.msk.f32.mxu0 %vm28106_vm0, %v32134_v1 }
0x3eb5   :  { %25358 = vmatmul.mubr.f32.vlgmr.msra.gmra.mrb[16].mxu0 %v19975_v61 }
0x3eb6   :  { %27598 = vmatpush3.bf16.msra.mxu0 %v27597_v34  ;;  %25360 = vmatprep.mubr.msk.f32.mxu0 %vm28106_vm0, %v32134_v1 }
0x3eb7   :  { %27599 = vmatprep.subr.bf16.mxu0 %v32131_v8 }
0x3eb9   :  { %25361 = vmatmul.mubr.f32.gmra.mrb[18].mxu0 %v19985_v40 }
0x3eba   :  { %25363 = vmatprep.mubr.msk.f32.mxu0 %vm28106_vm0, %v32134_v1  ;;  %27601 = vmatpush3.bf16.msra.mxu0 %v27600_v41 }
0x3ebb   :  { %27602 = vmatprep.subr.bf16.mxu0 %v32131_v8 }
0x3ebd   :  { %25364 = vmatmul.mubr.f32.gmra.mrb[20].mxu0 %v19995_v45 }
0x3ebe   :  { %25366 = vmatprep.mubr.msk.f32.mxu0 %vm28106_vm0, %v32134_v1 }
0x3ec1   :  { %25367 = vmatmul.mubr.f32.gmra.mrb[22].mxu0 %v20005_v44 }
0x3ec2   :  { %25369 = vmatprep.mubr.msk.f32.mxu0 %vm28106_vm0, %v32134_v1 }
0x3ec5   :  { %25370 = vmatmul.mubr.f32.gmra.mrb[24].mxu0 %v20015_v9 }
0x3ec6   :  { %25372 = vmatprep.mubr.msk.f32.mxu0 %vm28106_vm0, %v32134_v1 }
0x3ec9   :  { %25373 = vmatmul.mubr.f32.gmra.mrb[26].mxu0 %v20025_v16 }
0x3eca   :  { %25375 = vmatprep.mubr.msk.f32.mxu0 %vm28106_vm0, %v32134_v1 }
0x3ecd   :  { %25376 = vmatmul.mubr.f32.gmra.mrb[28].mxu0 %v20035_v22 }
0x3ece   :  { %25386 = vmatprep.mubr.msk.f32.mxu0 %vm28106_vm0, %v32134_v1 }
0x3ed1   :  { %25387 = vmatmul.mubr.f32.vlgmr.msra.gmra.mrb[16].mxu0 %v31647_v23 }
0x3ed2   :  { %27604 = vmatpush3.bf16.msra.mxu0 %v31598_v56  ;;  %25389 = vmatprep.mubr.msk.f32.mxu0 %vm28106_vm0, %v32134_v1 }
0x3ed3   :  { %27605 = vmatprep.subr.bf16.mxu0 %v32131_v8 }
0x3ed5   :  { %25390 = vmatmul.mubr.f32.gmra.mrb[18].mxu0 %v31654_v59 }
0x3ed6   :  { %25392 = vmatprep.mubr.msk.f32.mxu0 %vm28106_vm0, %v32134_v1  ;;  %27607 = vmatpush3.bf16.msra.mxu0 %v31614_v5 }
0x3ed9   :  { %25393 = vmatmul.mubr.f32.gmra.mrb[20].mxu0 %v31663_v54 }
0x3eda   :  { %25395 = vmatprep.mubr.msk.f32.mxu0 %vm28106_vm0, %v32134_v1 }
0x3edd   :  { %25396 = vmatmul.mubr.f32.gmra.mrb[22].mxu0 %v31675_v2 }
0x3ede   :  { %25398 = vmatprep.mubr.msk.f32.mxu0 %vm28106_vm0, %v32134_v1 }
0x3ee1   :  { %25399 = vmatmul.mubr.f32.gmra.mrb[24].mxu0 %v31689_v36 }
0x3ee2   :  { %25401 = vmatprep.mubr.msk.f32.mxu0 %vm28106_vm0, %v32134_v1 }
0x3ee5   :  { %25402 = vmatmul.mubr.f32.gmra.mrb[26].mxu0 %v31701_v7 }
0x3ee6   :  { %25404 = vmatprep.mubr.msk.f32.mxu0 %vm28106_vm0, %v32134_v1 }
0x3ee9   :  { %25405 = vmatmul.mubr.f32.gmra.mrb[28].mxu0 %v31717_v60 }
0x3eea   :  { %25415 = vmatprep.mubr.msk.f32.mxu0 %vm28106_vm0, %v32134_v1 }
0x3eed   :  { %25416 = vmatmul.mubr.f32.vlgmr.msra.gmra.mrb[16].mxu0 %v31647_v23 }
0x3eee   :  { %25418 = vmatprep.mubr.msk.f32.mxu0 %vm28106_vm0, %v32134_v1 }
0x3ef1   :  { %25419 = vmatmul.mubr.f32.gmra.mrb[18].mxu0 %v31654_v59 }
0x3ef2   :  { %25421 = vmatprep.mubr.msk.f32.mxu0 %vm28106_vm0, %v32134_v1 }
0x3ef5   :  { %25422 = vmatmul.mubr.f32.gmra.mrb[20].mxu0 %v31663_v54  ;;  %v19879_v54 = vld [vmem:[%s31945_s12 + $0x18] sm:$0xff] }
0x3ef6   :  { %25424 = vmatprep.mubr.msk.f32.mxu0 %vm28106_vm0, %v32134_v1 }
0x3ef9   :  { %25425 = vmatmul.mubr.f32.gmra.mrb[22].mxu0 %v31675_v2 }
0x3efa   :  { %25427 = vmatprep.mubr.msk.f32.mxu0 %vm28106_vm0, %v32134_v1 }
0x3efd   :  { %25428 = vmatmul.mubr.f32.gmra.mrb[24].mxu0 %v31689_v36 }
0x3efe   :  { %25430 = vmatprep.mubr.msk.f32.mxu0 %vm28106_vm0, %v32134_v1 }
0x3f01   :  { %25431 = vmatmul.mubr.f32.gmra.mrb[26].mxu0 %v31701_v7 }
0x3f02   :  { %25433 = vmatprep.mubr.msk.f32.mxu0 %vm28106_vm0, %v32134_v1  ;;  %v19877_v1 = vld [vmem:[%s31945_s12 + $0x8] sm:$0xff] }
0x3f05   :  { %25434 = vmatmul.mubr.f32.gmra.mrb[28].mxu0 %v31717_v60 }
0x3f50   :  { %v20009_v8 = vpop.f32.mrb[210].mxu1 }
0x3f51   :  { %v25281_v56 = vpop.f32.mrb[211].mxu1  ;;  %v20010_v11 = vadd.f32 %v20009_v8, %v19879_v54 }
0x3f54   :  { %v20019_v21 = vpop.f32.mrb[212].mxu1 }
0x3f55   :  { %v25284_v29 = vpop.f32.mrb[213].mxu1  ;;  %v20020_v2 = vadd.f32 %v20019_v21, %v19880_v27 }
0x3f58   :  { %v20029_v5 = vpop.f32.mrb[214].mxu1 }
0x3f59   :  { %v25287_v4 = vpop.f32.mrb[215].mxu1  ;;  %v20030_v50 = vadd.f32 %v20029_v5, %v19881_v43 }
0x3f5c   :  { %v20039_v10 = vpop.f32.mrb[216].mxu1 }
0x3f5d   :  { %v25290_v42 = vpop.f32.mrb[217].mxu1  ;;  %v20040_v36 = vadd.f32 %v20039_v10, %v19882_v35 }
0x3fc0   :  { %v20607_v25 = vpop.f32.mrb[16].mxu0 }
0x3fc1   :  { %v31855_v63 = vadd.f32 %v20607_v25, %v19876_v15  ;;  %v25417_v23 = vpop.f32.mrb[17].mxu0 }
0x3fc3   :  { %20647 = vmax.xlane.f32.xlu0 %v31855_v63 }
0x3fc4   :  { %v20613_v24 = vpop.f32.mrb[18].mxu0 }
0x3fc5   :  { %v31861_v61 = vadd.f32 %v20613_v24, %v19877_v1  ;;  %v25420_v59 = vpop.f32.mrb[19].mxu0 }
0x3fc7   :  { %20649 = vmax.xlane.f32.xlu1 %v31861_v61 }
0x3fc8   :  { %v20619_v13 = vpop.f32.mrb[20].mxu0 }
0x3fc9   :  { %v31870_v0 = vadd.f32 %v20619_v13, %v19878_v12  ;;  %v25423_v40 = vpop.f32.mrb[21].mxu0 }
0x3fcb   :  { %20651 = vmax.xlane.f32.xlu1 %v31870_v0 }
0x3fcc   :  { %v20625_v62 = vpop.f32.mrb[22].mxu0 }
0x3fcd   :  { %v31876_v52 = vadd.f32 %v20625_v62, %v20010_v11  ;;  %v25426_v30 = vpop.f32.mrb[23].mxu0 }
0x3fcf   :  { %20653 = vmax.xlane.f32.xlu1 %v31876_v52 }
0x3fd0   :  { %v20631_v58 = vpop.f32.mrb[24].mxu0 }
0x3fd1   :  { %v31882_v45 = vadd.f32 %v20631_v58, %v20020_v2  ;;  %v25429_v37 = vpop.f32.mrb[25].mxu0 }
0x3fd3   :  { %20655 = vmax.xlane.f32.xlu1 %v31882_v45 }
0x3fd4   :  { %v20637_v28 = vpop.f32.mrb[26].mxu0 }
0x3fd5   :  { %v31888_v33 = vadd.f32 %v20637_v28, %v20030_v50  ;;  %v25432_v44 = vpop.f32.mrb[27].mxu0 }
0x3fd7   :  { %20657 = vmax.xlane.f32.xlu1 %v31888_v33 }
0x3fd8   :  { %v20643_v14 = vpop.f32.mrb[28].mxu0 }
0x3fd9   :  { %v31891_v18 = vadd.f32 %v20643_v14, %v20040_v36  ;;  %v25435_v55 = vpop.f32.mrb[29].mxu0 }
0x3fdb   :  { %20659 = vmax.xlane.f32.xlu1 %v31891_v18 }
0x4050   :  { %v20648_v3 = vpop.xlane.xlu0 %20647 }
0x4051   :  { %v20661_v6 = vsub.f32 %v31855_v63, %v20648_v3 }
0x4053   :  { %v20668_v17 = vmul.f32 1.442695, %v20661_v6 }
0x4054   :  { %v20650_v57 = vpop.xlane.xlu1 %20649 }
0x4055   :  { %28070 = vpow2.f32 %v20668_v17  ;;  %v20662_v20 = vsub.f32 %v31861_v61, %v20650_v57 }
0x4057   :  { %v20670_v7 = vmul.f32 1.442695, %v20662_v20 }
0x4058   :  { %v20652_v46 = vpop.xlane.xlu1 %20651 }
0x4059   :  { %28072 = vpow2.f32 %v20670_v7  ;;  %v20663_v9 = vsub.f32 %v31870_v0, %v20652_v46 }
0x405b   :  { %v20672_v51 = vmul.f32 1.442695, %v20663_v9 }
0x405c   :  { %v31897_v38 = vpop.xlane.xlu1 %20653 }
0x405d   :  { %28074 = vpow2.f32 %v20672_v51  ;;  %v20664_v53 = vsub.f32 %v31876_v52, %v31897_v38 }
0x405f   :  { %v28071_v26 = vpop.eup %28070  ;;  %v20674_v19 = vmul.f32 1.442695, %v20664_v53 }
0x4060   :  { %20682 = vadd.xlane.f32.xlu0 %v28071_v26  ;;  %v20656_v60 = vpop.xlane.xlu1 %20655 }
0x4061   :  { %28076 = vpow2.f32 %v20674_v19  ;;  %v20665_v32 = vsub.f32 %v31882_v45, %v20656_v60 }
0x4063   :  { %v28073_v16 = vpop.eup %28072  ;;  %v20676_v49 = vmul.f32 1.442695, %v20665_v32 }
0x4064   :  { %v20658_v39 = vpop.xlane.xlu1 %20657  ;;  %20684 = vadd.xlane.f32.xlu1 %v28073_v16 }
0x4065   :  { %28078 = vpow2.f32 %v20676_v49  ;;  %v20666_v48 = vsub.f32 %v31888_v33, %v20658_v39 }
0x4067   :  { %v28075_v22 = vpop.eup %28074  ;;  %v20678_v47 = vmul.f32 1.442695, %v20666_v48 }
0x4068   :  { %20686 = vadd.xlane.f32.xlu0 %v28075_v22  ;;  %v20660_v31 = vpop.xlane.xlu1 %20659 }
0x4069   :  { %28080 = vpow2.f32 %v20678_v47  ;;  %v20667_v34 = vsub.f32 %v31891_v18, %v20660_v31 }
0x406b   :  { %v28077_v41 = vpop.eup %28076  ;;  %v20680_v8 = vmul.f32 1.442695, %v20667_v34 }
0x406c   :  { %20688 = vadd.xlane.f32.xlu1 %v28077_v41 }
0x406d   :  { %28082 = vpow2.f32 %v20680_v8 }
0x406f   :  { %v28079_v56 = vpop.eup %28078 }
0x4070   :  { %20690 = vadd.xlane.f32.xlu0 %v28079_v56 }
0x4073   :  { %v28081_v21 = vpop.eup %28080 }
0x4074   :  { %20692 = vadd.xlane.f32.xlu1 %v28081_v21 }
0x4077   :  { %v28083_v29 = vpop.eup %28082 }
0x4078   :  { %20694 = vadd.xlane.f32.xlu0 %v28083_v29 }
0x40ed   :  { %v20683_v5 = vpop.xlane.xlu0 %20682 }
0x40ee   :  { %28084 = vlog2.f32 %v20683_v5 }
0x40f1   :  { %v20685_v4 = vpop.xlane.xlu1 %20684 }
0x40f2   :  { %28086 = vlog2.f32 %v20685_v4 }
0x40f5   :  { %v20687_v10 = vpop.xlane.xlu0 %20686 }
0x40f6   :  { %28088 = vlog2.f32 %v20687_v10 }
0x40f8   :  { %v28085_v42 = vpop.eup %28084 }
0x40f9   :  { %v20697_v15 = vmul.f32 0.6931472, %v28085_v42  ;;  %v20689_v25 = vpop.xlane.xlu1 %20688 }
0x40fa   :  { %28090 = vlog2.f32 %v20689_v25 }
0x40fb   :  { %v20710_v23 = vadd.f32 %v20697_v15, %v20648_v3 }
0x40fc   :  { %v28087_v1 = vpop.eup %28086 }
0x40fd   :  { %v20717_v24 = vsub.f32 %v31855_v63, %v20710_v23  ;;  %v20699_v59 = vmul.f32 0.6931472, %v28087_v1  ;;  %v20691_v12 = vpop.xlane.xlu0 %20690 }
0x40fe   :  { %28092 = vlog2.f32 %v20691_v12 }
0x40ff   :  { %20724 = vst [vmem:[%s31946_s13] sm:$0xff] %v20717_v24  ;;  %v20711_v54 = vadd.f32 %v20699_v59, %v20650_v57 }
0x4100   :  { %v28089_v13 = vpop.eup %28088 }
0x4101   :  { %v20718_v40 = vsub.f32 %v31861_v61, %v20711_v54  ;;  %v20701_v11 = vmul.f32 0.6931472, %v28089_v13  ;;  %v20693_v27 = vpop.xlane.xlu1 %20692 }
0x4102   :  { %28094 = vlog2.f32 %v20693_v27 }
0x4103   :  { %20725 = vst [vmem:[%s31946_s13 + $0x8] sm:$0xff] %v20718_v40  ;;  %v20712_v62 = vadd.f32 %v20701_v11, %v20652_v46 }
0x4104   :  { %v28091_v63 = vpop.eup %28090 }
0x4105   :  { %v20719_v30 = vsub.f32 %v31870_v0, %v20712_v62  ;;  %v20703_v2 = vmul.f32 0.6931472, %v28091_v63  ;;  %v20695_v43 = vpop.xlane.xlu0 %20694 }
0x4106   :  { %28096 = vlog2.f32 %v20695_v43 }
0x4107   :  { %20726 = vst [vmem:[%s31946_s13 + $0x10] sm:$0xff] %v20719_v30  ;;  %v20713_v61 = vadd.f32 %v20703_v2, %v31897_v38 }
0x4108   :  { %v28093_v58 = vpop.eup %28092 }
0x4109   :  { %v20720_v37 = vsub.f32 %v31876_v52, %v20713_v61  ;;  %v20705_v50 = vmul.f32 0.6931472, %v28093_v58 }
0x410b   :  { %20727 = vst [vmem:[%s31946_s13 + $0x18] sm:$0xff] %v20720_v37  ;;  %v20714_v35 = vadd.f32 %v20705_v50, %v20656_v60 }
0x410c   :  { %v28095_v28 = vpop.eup %28094 }
0x410d   :  { %v20721_v0 = vsub.f32 %v31882_v45, %v20714_v35  ;;  %v20707_v44 = vmul.f32 0.6931472, %v28095_v28 }
0x410f   :  { %20728 = vst [vmem:[%s31946_s13 + $0x20] sm:$0xff] %v20721_v0  ;;  %v20715_v36 = vadd.f32 %v20707_v44, %v20658_v39 }
0x4110   :  { %v28097_v14 = vpop.eup %28096 }
0x4111   :  { %v20722_v55 = vsub.f32 %v31888_v33, %v20715_v36  ;;  %v20709_v3 = vmul.f32 0.6931472, %v28097_v14 }
0x4113   :  { %20729 = vst [vmem:[%s31946_s13 + $0x28] sm:$0xff] %v20722_v55  ;;  %v20716_v52 = vadd.f32 %v20709_v3, %v20660_v31 }
0x4115   :  { %v20723_v6 = vsub.f32 %v31891_v18, %v20716_v52 }
0x4117   :  { %20730 = vst [vmem:[%s31946_s13 + $0x30] sm:$0xff] %v20723_v6 }

</bundles_post_ra>
